<compile_context>
chip_gen: v7x
topology: tpu7x:2x2x1
jax: 0.10.0
libtpu: 0.0.40
codegen_flags: <defaults>
</compile_context>

<pallas_src>
import math
import jax
import jax.numpy as jnp
from jax.experimental import pallas as pl
from jax.experimental.pallas import tpu as pltpu

# ---- Vnav(enc_dim=32, context_size=5, pred_horizon=8) hyper-parameters ------------
ENC_DIM = 32
CTX = 5
SEQ = CTX + 1
NHEAD = 2
HEAD_DIM = ENC_DIM // NHEAD
NLAYER = 4
FFN_DIM = 4 * ENC_DIM
FEAT_DIM = 1280          # EfficientNet-b0 _fc.in_features
IMG_H = IMG_W = 16
HW = IMG_H * IMG_W
LN_EPS = 1e-5
NEG_INF = -1e30          # large-negative bias (exp() underflows to exactly 0)
# ~24*SEQ = 144 packed rows/step fills a 128-wide MXU (v5e/v6e); bump to 40 on v7x.
MAX_B_TILE = 24


# =============================== Pallas kernel =====================================
def _layernorm(x, g, b):
    m = jnp.mean(x, axis=-1, keepdims=True)
    v = jnp.mean((x - m) ** 2, axis=-1, keepdims=True)
    return (x - m) * jax.lax.rsqrt(v + LN_EPS) * g + b


def _gelu(x):  # exact (erf) gelu, matching PyTorch activation='gelu'
    return 0.5 * x * (1.0 + jax.lax.erf(x * (1.0 / math.sqrt(2.0))))


def vision_encoder_kernel(obs_ref, gv_ref, kp_ref, avg_ref,
                          s_obs_ref, s_goal_ref, a_sel_ref, bd_ref, pe_ref,
                          obs_w_ref, goal_w_ref,
                          wqkv_ref, bqkv_ref, wo_ref, bo_ref,
                          ln1g_ref, ln1b_ref, ln2g_ref, ln2b_ref,
                          w1_ref, b1_ref, w2_ref, b2_ref,
                          out_ref):
    """B_TILE batch elements per grid step; fully fused VisionEncoder forward."""
    scale = 1.0 / math.sqrt(HEAD_DIM)

    # ---- surrogate backbone + compress_obs_enc, host-folded into ONE matmul ----
    # TODO(synk): EfficientNet-b0 extract_features source not provided; deterministic
    # surrogate (per-channel avg-pool + 3->1280->32 affine) folded exactly into obs_w.
    obs_enc = jnp.dot(obs_ref[...], obs_w_ref[...],
                      preferred_element_type=jnp.float32)            # (B_TILE*CTX, D)

    # ---- goal encoder Linear(2, D), expanded (avoids a degenerate K=2 MXU push) ----
    gv = gv_ref[...]                                                  # (B_TILE, 2)
    gw = goal_w_ref[...]                                              # (2, D)
    goal_enc = gv[:, 0:1] * gw[0:1, :] + gv[:, 1:2] * gw[1:2, :]      # (B_TILE, D)

    # ---- pack tokens into (R, D) = (B_TILE*SEQ, D) rows via constant selection
    #      matmuls (no in-kernel relayout); pe_ref already carries the encoder biases
    x = (jnp.dot(s_obs_ref[...], obs_enc, preferred_element_type=jnp.float32)
         + jnp.dot(s_goal_ref[...], goal_enc, preferred_element_type=jnp.float32)
         + pe_ref[...])                                               # (R, D)

    # ---- attention bias, hoisted once per step out of the layer/head loops:
    #      block-diagonal (sequences stay independent) + key-padding on goal columns
    bias = bd_ref[...] + kp_ref[0]                                    # (R, R)

    # ---- 4 post-LN transformer encoder layers (2 heads, gelu FFN, eval mode) ----
    for l in range(NLAYER):                                           # static unroll
        wo_l = wo_ref[l]                                              # (D, D)
        qkv = jnp.dot(x, wqkv_ref[l], preferred_element_type=jnp.float32) + bqkv_ref[l]
        q = qkv[:, 0:ENC_DIM]
        k = qkv[:, ENC_DIM:2 * ENC_DIM]
        v = qkv[:, 2 * ENC_DIM:3 * ENC_DIM]

        attn = bo_ref[l]                                              # (1, D) broadcasts
        for h in range(NHEAD):                                        # static unroll
            sl = slice(h * HEAD_DIM, (h + 1) * HEAD_DIM)
            s = jax.lax.dot_general(q[:, sl], k[:, sl], (((1,), (1,)), ((), ())),
                                    preferred_element_type=jnp.float32) * scale + bias
            s = s - jnp.max(s, axis=-1, keepdims=True)
            p = jnp.exp(s)
            p = p * pl.reciprocal(jnp.sum(p, axis=-1, keepdims=True), approx=True)
            pv = jnp.dot(p, v[:, sl], preferred_element_type=jnp.float32)
            # per-head slice of the out-projection: no head concat / relayout
            attn = attn + jnp.dot(pv, wo_l[sl, :], preferred_element_type=jnp.float32)

        x = _layernorm(x + attn, ln1g_ref[l], ln1b_ref[l])
        h1 = _gelu(jnp.dot(x, w1_ref[l], preferred_element_type=jnp.float32) + b1_ref[l])
        h2 = jnp.dot(h1, w2_ref[l], preferred_element_type=jnp.float32) + b2_ref[l]
        x = _layernorm(x + h2, ln2g_ref[l], ln2b_ref[l])

    # ---- masked mean:  out[i] = sum_s (avg[i,s]/SEQ) * x[i*SEQ + s]  (one matmul) ----
    sel = a_sel_ref[...] * avg_ref[0]                                 # (B_TILE, R)
    out_ref[...] = jnp.dot(sel, x, preferred_element_type=jnp.float32)


# ================================ wrapper ==========================================
def _round_up(x, m):
    return ((x + m - 1) // m) * m


def pallas_vision_encoder(goal_mask, obs_flat, goal_vec, p):
    """obs_flat: (BS, CTX*3*HW) f32, goal_vec: (BS, 2) f32, goal_mask: (BS,) i32."""
    BS = obs_flat.shape[0]
    b_tile = min(MAX_B_TILE, _round_up(BS, 8))     # keeps B_TILE*CTX a multiple of 8
    bs_pad = _round_up(BS, b_tile)
    n_steps = bs_pad // b_tile
    R = b_tile * SEQ

    pad = bs_pad - BS
    if pad:
        obs_flat = jnp.pad(obs_flat, ((0, pad), (0, 0)))
        goal_vec = jnp.pad(goal_vec, ((0, pad), (0, 0)))
        goal_mask = jnp.pad(goal_mask, ((0, pad),))
    obs_rows = obs_flat.reshape(bs_pad * CTX, 3 * HW)

    # ---- goal_mask-dependent per-key bias and averaging weights (tiny, in XLA) ----
    is_last = (jnp.arange(SEQ) == SEQ - 1)[None, :]                   # (1, SEQ)
    masked = goal_mask[:, None] > 0                                   # (bs_pad, 1)
    kp = jnp.where(masked & is_last, NEG_INF, 0.0).astype(jnp.float32)
    avg = (jnp.where(masked, jnp.where(is_last, 0.0, SEQ / CTX), 1.0)
           .astype(jnp.float32)) * (1.0 / SEQ)
    kp_flat = kp.reshape(n_steps, 1, R)
    avg_flat = avg.reshape(n_steps, 1, R)

    # ---- per-step constants (depend only on b_tile; DMA'd once, reused every step) --
    rows = jnp.arange(R)
    row_seq = rows // SEQ
    row_pos = rows % SEQ
    obs_col = jnp.arange(b_tile * CTX)
    s_obs = ((obs_col[None, :] == (row_seq * CTX + row_pos)[:, None])
             & (row_pos[:, None] < CTX)).astype(jnp.float32)          # (R, b_tile*CTX)
    s_goal = ((jnp.arange(b_tile)[None, :] == row_seq[:, None])
              & (row_pos[:, None] == CTX)).astype(jnp.float32)        # (R, b_tile)
    a_sel = (jnp.arange(b_tile)[:, None] == row_seq[None, :]).astype(jnp.float32)
    bd_bias = jnp.where(row_seq[:, None] == row_seq[None, :],
                        0.0, NEG_INF).astype(jnp.float32)             # (R, R)
    enc_bias = jnp.concatenate([jnp.tile(p['obs_b'], (CTX, 1)), p['goal_b']], axis=0)
    pe_tiled = jnp.tile(p['pe'] + enc_bias, (b_tile, 1))              # (R, D)

    weights = [s_obs, s_goal, a_sel, bd_bias, pe_tiled,
               p['obs_w'], p['goal_w'],
               p['wqkv'], p['bqkv'], p['wo'], p['bo'],
               p['ln1g'], p['ln1b'], p['ln2g'], p['ln2b'],
               p['w1'], p['b1'], p['w2'], p['b2']]

    def _full_spec(a):
        nd = a.ndim
        return pl.BlockSpec(a.shape, lambda b, _nd=nd: (0,) * _nd)

    in_specs = ([pl.BlockSpec((b_tile * CTX, 3 * HW), lambda b: (b, 0)),
                 pl.BlockSpec((b_tile, 2), lambda b: (b, 0)),
                 pl.BlockSpec((1, 1, R), lambda b: (b, 0, 0)),
                 pl.BlockSpec((1, 1, R), lambda b: (b, 0, 0))]
                + [_full_spec(w) for w in weights])

    out = pl.pallas_call(
        vision_encoder_kernel,
        out_shape=jax.ShapeDtypeStruct((bs_pad, ENC_DIM), jnp.float32),
        grid_spec=pltpu.PrefetchScalarGridSpec(
            num_scalar_prefetch=0,
            grid=(n_steps,),
            in_specs=in_specs,
            out_specs=pl.BlockSpec((b_tile, ENC_DIM), lambda b: (b, 0)),
        ),
        compiler_params=pltpu.CompilerParams(dimension_semantics=("parallel",)),
    )(obs_rows, goal_vec, kp_flat, avg_flat, *weights)
    return out[:BS]


# ============================ parameter construction ================================
def make_params():
    keys = iter(jax.random.split(jax.random.PRNGKey(0), 64))

    def rnd(shape, scale=0.05):
        return (scale * jax.random.normal(next(keys), shape)).astype(jnp.float32)

    # surrogate backbone projection 3->1280 followed by compress_obs_enc 1280->enc_dim,
    # folded HOST-SIDE with the avg-pool into one exact (3*HW -> enc_dim) matmul weight.
    feat_w = rnd((FEAT_DIM, 3))
    feat_b = rnd((FEAT_DIM,))
    comp_w = rnd((ENC_DIM, FEAT_DIM))
    comp_b = rnd((ENC_DIM,))
    w3 = jnp.transpose(comp_w @ feat_w)                              # (3, D)  (in, out)
    p = {
        'obs_w': jnp.repeat(w3, HW, axis=0) / HW,                    # (3*HW, D)
        'obs_b': (comp_w @ feat_b + comp_b).reshape(1, ENC_DIM),     # (1, D)
        'goal_w': rnd((2, ENC_DIM)),                                 # Linear(2, D)
        'goal_b': rnd((ENC_DIM,)).reshape(1, ENC_DIM),
    }
    # 4 TransformerEncoderLayers (d_model=32, nhead=2, ffn=128, gelu, post-LN, eval);
    # all matmul weights pre-transposed to (in, out) layouts.
    p['wqkv'] = jnp.stack([rnd((ENC_DIM, 3 * ENC_DIM)) for _ in range(NLAYER)])
    p['bqkv'] = jnp.stack([rnd((1, 3 * ENC_DIM)) for _ in range(NLAYER)])
    p['wo'] = jnp.stack([rnd((ENC_DIM, ENC_DIM)) for _ in range(NLAYER)])
    p['bo'] = jnp.stack([rnd((1, ENC_DIM)) for _ in range(NLAYER)])
    p['w1'] = jnp.stack([rnd((ENC_DIM, FFN_DIM)) for _ in range(NLAYER)])
    p['b1'] = jnp.stack([rnd((1, FFN_DIM)) for _ in range(NLAYER)])
    p['w2'] = jnp.stack([rnd((FFN_DIM, ENC_DIM)) for _ in range(NLAYER)])
    p['b2'] = jnp.stack([rnd((1, ENC_DIM)) for _ in range(NLAYER)])
    p['ln1g'] = jnp.ones((NLAYER, 1, ENC_DIM), jnp.float32)
    p['ln1b'] = jnp.zeros((NLAYER, 1, ENC_DIM), jnp.float32)
    p['ln2g'] = jnp.ones((NLAYER, 1, ENC_DIM), jnp.float32)
    p['ln2b'] = jnp.zeros((NLAYER, 1, ENC_DIM), jnp.float32)

    # PositionalEncoding buffer (max_len = context_size + 1)
    pos = jnp.arange(SEQ, dtype=jnp.float32)[:, None]
    div = jnp.exp(jnp.arange(0, ENC_DIM, 2, dtype=jnp.float32)
                  * (-math.log(10000.0) / ENC_DIM))
    pe = jnp.zeros((SEQ, ENC_DIM), jnp.float32)
    pe = pe.at[:, 0::2].set(jnp.sin(pos * div))
    pe = pe.at[:, 1::2].set(jnp.cos(pos * div))
    p['pe'] = pe
    return p


# ================================ forward ===========================================
@jax.jit
def vision_encoder_forward(p, obs_imgs, goal_vec, goal_mask):
    BS = obs_imgs.shape[0]
    # pure reshape (free view, no transpose) — NCHW flatten matches the folded obs_w
    obs_flat = obs_imgs.reshape(BS, CTX * 3 * HW).astype(jnp.float32)
    return pallas_vision_encoder(goal_mask.astype(jnp.int32), obs_flat,
                                 goal_vec.astype(jnp.float32), p)


def vnav_forward(p, func_name, **kwargs):
    if func_name == 'vision_encoder':
        return vision_encoder_forward(p, kwargs['obs_imgs'], kwargs['goal_vec'],
                                      kwargs['goal_mask'])
    if func_name == 'noise_predictor':
        # TODO(synk): ConditionalUnet1D source not provided; noise_predictor branch
        # has no faithful Pallas translation here.
        raise NotImplementedError("noise_predictor (ConditionalUnet1D) not provided")
    raise ValueError(func_name)


# ================================== main ============================================
if __name__ == "__main__":
    params = make_params()

    k0, k1 = jax.random.split(jax.random.PRNGKey(0))
    BS = 2
    obs_imgs = jax.random.normal(k0, (BS, CTX, 3, IMG_H, IMG_W), jnp.float32)
    goal_vec = jax.random.normal(k1, (BS, 2), jnp.float32)
    goal_mask = jnp.array([0, 1], dtype=jnp.int32)

    out = vnav_forward(params, 'vision_encoder',
                       obs_imgs=obs_imgs, goal_vec=goal_vec, goal_mask=goal_mask)
    out = jax.block_until_ready(out)
    assert out.shape == (BS, ENC_DIM), out.shape
    assert bool(jnp.all(jnp.isfinite(out)))
    print("KERNEL_OK")
</pallas_src>

<mosaic_0001>
module attributes {stable_mosaic.version = 11 : i64} {
  func.func @vision_encoder_kernel(%arg0: i32, %arg1: memref<40x768xf32, #tpu.memory_space<vmem>>, %arg2: memref<8x2xf32, #tpu.memory_space<vmem>>, %arg3: memref<1x1x48xf32, #tpu.memory_space<vmem>>, %arg4: memref<1x1x48xf32, #tpu.memory_space<vmem>>, %arg5: memref<48x40xf32, #tpu.memory_space<vmem>>, %arg6: memref<48x8xf32, #tpu.memory_space<vmem>>, %arg7: memref<8x48xf32, #tpu.memory_space<vmem>>, %arg8: memref<48x48xf32, #tpu.memory_space<vmem>>, %arg9: memref<48x32xf32, #tpu.memory_space<vmem>>, %arg10: memref<768x32xf32, #tpu.memory_space<vmem>>, %arg11: memref<2x32xf32, #tpu.memory_space<vmem>>, %arg12: memref<4x32x96xf32, #tpu.memory_space<vmem>>, %arg13: memref<4x1x96xf32, #tpu.memory_space<vmem>>, %arg14: memref<4x32x32xf32, #tpu.memory_space<vmem>>, %arg15: memref<4x1x32xf32, #tpu.memory_space<vmem>>, %arg16: memref<4x1x32xf32, #tpu.memory_space<vmem>>, %arg17: memref<4x1x32xf32, #tpu.memory_space<vmem>>, %arg18: memref<4x1x32xf32, #tpu.memory_space<vmem>>, %arg19: memref<4x1x32xf32, #tpu.memory_space<vmem>>, %arg20: memref<4x32x128xf32, #tpu.memory_space<vmem>>, %arg21: memref<4x1x128xf32, #tpu.memory_space<vmem>>, %arg22: memref<4x128x32xf32, #tpu.memory_space<vmem>>, %arg23: memref<4x1x32xf32, #tpu.memory_space<vmem>>, %arg24: memref<8x32xf32, #tpu.memory_space<vmem>>) attributes {dimension_semantics = [#tpu.dimension_semantics<parallel>], iteration_bounds = array<i64: 1>, scalar_prefetch = 0 : i64, scratch_operands = 0 : i64, tpu.core_type = #tpu.core_type<tc>, window_params = [{transform_indices = @transform_0, window_bounds = array<i64: 40, 768>}, {transform_indices = @transform_1, window_bounds = array<i64: 8, 2>}, {transform_indices = @transform_2, window_bounds = array<i64: 1, 1, 48>}, {transform_indices = @transform_3, window_bounds = array<i64: 1, 1, 48>}, {pipeline_mode = #tpu.pipeline_mode<synchronous>, transform_indices = @transform_4, window_bounds = array<i64: 48, 40>}, {pipeline_mode = #tpu.pipeline_mode<synchronous>, transform_indices = @transform_5, window_bounds = array<i64: 48, 8>}, {pipeline_mode = #tpu.pipeline_mode<synchronous>, transform_indices = @transform_6, window_bounds = array<i64: 8, 48>}, {pipeline_mode = #tpu.pipeline_mode<synchronous>, transform_indices = @transform_7, window_bounds = array<i64: 48, 48>}, {pipeline_mode = #tpu.pipeline_mode<synchronous>, transform_indices = @transform_8, window_bounds = array<i64: 48, 32>}, {pipeline_mode = #tpu.pipeline_mode<synchronous>, transform_indices = @transform_9, window_bounds = array<i64: 768, 32>}, {pipeline_mode = #tpu.pipeline_mode<synchronous>, transform_indices = @transform_10, window_bounds = array<i64: 2, 32>}, {pipeline_mode = #tpu.pipeline_mode<synchronous>, transform_indices = @transform_11, window_bounds = array<i64: 4, 32, 96>}, {pipeline_mode = #tpu.pipeline_mode<synchronous>, transform_indices = @transform_12, window_bounds = array<i64: 4, 1, 96>}, {pipeline_mode = #tpu.pipeline_mode<synchronous>, transform_indices = @transform_13, window_bounds = array<i64: 4, 32, 32>}, {pipeline_mode = #tpu.pipeline_mode<synchronous>, transform_indices = @transform_14, window_bounds = array<i64: 4, 1, 32>}, {pipeline_mode = #tpu.pipeline_mode<synchronous>, transform_indices = @transform_15, window_bounds = array<i64: 4, 1, 32>}, {pipeline_mode = #tpu.pipeline_mode<synchronous>, transform_indices = @transform_16, window_bounds = array<i64: 4, 1, 32>}, {pipeline_mode = #tpu.pipeline_mode<synchronous>, transform_indices = @transform_17, window_bounds = array<i64: 4, 1, 32>}, {pipeline_mode = #tpu.pipeline_mode<synchronous>, transform_indices = @transform_18, window_bounds = array<i64: 4, 1, 32>}, {pipeline_mode = #tpu.pipeline_mode<synchronous>, transform_indices = @transform_19, window_bounds = array<i64: 4, 32, 128>}, {pipeline_mode = #tpu.pipeline_mode<synchronous>, transform_indices = @transform_20, window_bounds = array<i64: 4, 1, 128>}, {pipeline_mode = #tpu.pipeline_mode<synchronous>, transform_indices = @transform_21, window_bounds = array<i64: 4, 128, 32>}, {pipeline_mode = #tpu.pipeline_mode<synchronous>, transform_indices = @transform_22, window_bounds = array<i64: 4, 1, 32>}, {transform_indices = @transform_23, window_bounds = array<i64: 8, 32>}]} {
    %c0 = arith.constant 0 : index
    %c0_0 = arith.constant 0 : index
    %0 = vector.load %arg1[%c0, %c0_0] : memref<40x768xf32, #tpu.memory_space<vmem>>, vector<40x768xf32>
    %c0_1 = arith.constant 0 : index
    %c0_2 = arith.constant 0 : index
    %1 = vector.load %arg10[%c0_1, %c0_2] : memref<768x32xf32, #tpu.memory_space<vmem>>, vector<768x32xf32>
    %cst = arith.constant dense<0.000000e+00> : vector<40x32xf32>
    %2 = tpu.matmul %0, %1, %cst {dimension_numbers = #tpu.dot_dimension_numbers<[1], [0], [0], [1], [0, 0, 1, 1], [], []>} : vector<40x768xf32>, vector<768x32xf32>, vector<40x32xf32> -> vector<40x32xf32>
    %c0_3 = arith.constant 0 : index
    %c0_4 = arith.constant 0 : index
    %3 = vector.load %arg2[%c0_3, %c0_4] : memref<8x2xf32, #tpu.memory_space<vmem>>, vector<8x2xf32>
    %c0_5 = arith.constant 0 : index
    %c0_6 = arith.constant 0 : index
    %4 = vector.load %arg11[%c0_5, %c0_6] : memref<2x32xf32, #tpu.memory_space<vmem>>, vector<2x32xf32>
    %5 = vector.extract_strided_slice %3 {offsets = [0, 0], sizes = [8, 1], strides = [1, 1]} : vector<8x2xf32> to vector<8x1xf32>
    %6 = vector.extract_strided_slice %4 {offsets = [0, 0], sizes = [1, 32], strides = [1, 1]} : vector<2x32xf32> to vector<1x32xf32>
    %7 = vector.broadcast %5 : vector<8x1xf32> to vector<8x32xf32>
    %8 = vector.broadcast %6 : vector<1x32xf32> to vector<8x32xf32>
    %9 = arith.mulf %7, %8 : vector<8x32xf32>
    %10 = vector.extract_strided_slice %3 {offsets = [0, 1], sizes = [8, 1], strides = [1, 1]} : vector<8x2xf32> to vector<8x1xf32>
    %11 = vector.extract_strided_slice %4 {offsets = [1, 0], sizes = [1, 32], strides = [1, 1]} : vector<2x32xf32> to vector<1x32xf32>
    %12 = vector.broadcast %10 : vector<8x1xf32> to vector<8x32xf32>
    %13 = vector.broadcast %11 : vector<1x32xf32> to vector<8x32xf32>
    %14 = arith.mulf %12, %13 : vector<8x32xf32>
    %15 = arith.addf %9, %14 : vector<8x32xf32>
    %c0_7 = arith.constant 0 : index
    %c0_8 = arith.constant 0 : index
    %16 = vector.load %arg5[%c0_7, %c0_8] : memref<48x40xf32, #tpu.memory_space<vmem>>, vector<48x40xf32>
    %cst_9 = arith.constant dense<0.000000e+00> : vector<48x32xf32>
    %17 = tpu.matmul %16, %2, %cst_9 {dimension_numbers = #tpu.dot_dimension_numbers<[1], [0], [0], [1], [0, 0, 1, 1], [], []>} : vector<48x40xf32>, vector<40x32xf32>, vector<48x32xf32> -> vector<48x32xf32>
    %c0_10 = arith.constant 0 : index
    %c0_11 = arith.constant 0 : index
    %18 = vector.load %arg6[%c0_10, %c0_11] : memref<48x8xf32, #tpu.memory_space<vmem>>, vector<48x8xf32>
    %cst_12 = arith.constant dense<0.000000e+00> : vector<48x32xf32>
    %19 = tpu.matmul %18, %15, %cst_12 {dimension_numbers = #tpu.dot_dimension_numbers<[1], [0], [0], [1], [0, 0, 1, 1], [], []>} : vector<48x8xf32>, vector<8x32xf32>, vector<48x32xf32> -> vector<48x32xf32>
    %20 = arith.addf %17, %19 : vector<48x32xf32>
    %c0_13 = arith.constant 0 : index
    %c0_14 = arith.constant 0 : index
    %21 = vector.load %arg9[%c0_13, %c0_14] : memref<48x32xf32, #tpu.memory_space<vmem>>, vector<48x32xf32>
    %22 = arith.addf %20, %21 : vector<48x32xf32>
    %c0_15 = arith.constant 0 : index
    %c0_16 = arith.constant 0 : index
    %23 = vector.load %arg8[%c0_15, %c0_16] : memref<48x48xf32, #tpu.memory_space<vmem>>, vector<48x48xf32>
    %c0_17 = arith.constant 0 : index
    %c0_18 = arith.constant 0 : index
    %c0_19 = arith.constant 0 : index
    %24 = vector.load %arg3[%c0_17, %c0_18, %c0_19] : memref<1x1x48xf32, #tpu.memory_space<vmem>>, vector<1x1x48xf32>
    %25 = vector.shape_cast %24 : vector<1x1x48xf32> to vector<1x48xf32>
    %26 = vector.broadcast %25 : vector<1x48xf32> to vector<48x48xf32>
    %27 = arith.addf %23, %26 : vector<48x48xf32>
    %c0_20 = arith.constant 0 : index
    %c0_21 = arith.constant 0 : index
    %c0_22 = arith.constant 0 : index
    %28 = vector.load %arg14[%c0_20, %c0_21, %c0_22] : memref<4x32x32xf32, #tpu.memory_space<vmem>>, vector<1x32x32xf32>
    %29 = vector.shape_cast %28 : vector<1x32x32xf32> to vector<32x32xf32>
    %c0_23 = arith.constant 0 : index
    %c0_24 = arith.constant 0 : index
    %c0_25 = arith.constant 0 : index
    %30 = vector.load %arg12[%c0_23, %c0_24, %c0_25] : memref<4x32x96xf32, #tpu.memory_space<vmem>>, vector<1x32x96xf32>
    %31 = vector.shape_cast %30 : vector<1x32x96xf32> to vector<32x96xf32>
    %cst_26 = arith.constant dense<0.000000e+00> : vector<48x96xf32>
    %32 = tpu.matmul %22, %31, %cst_26 {dimension_numbers = #tpu.dot_dimension_numbers<[1], [0], [0], [1], [0, 0, 1, 1], [], []>} : vector<48x32xf32>, vector<32x96xf32>, vector<48x96xf32> -> vector<48x96xf32>
    %c0_27 = arith.constant 0 : index
    %c0_28 = arith.constant 0 : index
    %c0_29 = arith.constant 0 : index
    %33 = vector.load %arg13[%c0_27, %c0_28, %c0_29] : memref<4x1x96xf32, #tpu.memory_space<vmem>>, vector<1x1x96xf32>
    %34 = vector.shape_cast %33 : vector<1x1x96xf32> to vector<1x96xf32>
    %35 = vector.broadcast %34 : vector<1x96xf32> to vector<48x96xf32>
    %36 = arith.addf %32, %35 : vector<48x96xf32>
    %37 = vector.extract_strided_slice %36 {offsets = [0, 0], sizes = [48, 32], strides = [1, 1]} : vector<48x96xf32> to vector<48x32xf32>
    %38 = vector.extract_strided_slice %36 {offsets = [0, 32], sizes = [48, 32], strides = [1, 1]} : vector<48x96xf32> to vector<48x32xf32>
    %39 = vector.extract_strided_slice %36 {offsets = [0, 64], sizes = [48, 32], strides = [1, 1]} : vector<48x96xf32> to vector<48x32xf32>
    %c0_30 = arith.constant 0 : index
    %c0_31 = arith.constant 0 : index
    %c0_32 = arith.constant 0 : index
    %40 = vector.load %arg15[%c0_30, %c0_31, %c0_32] : memref<4x1x32xf32, #tpu.memory_space<vmem>>, vector<1x1x32xf32>
    %41 = vector.shape_cast %40 : vector<1x1x32xf32> to vector<1x32xf32>
    %42 = vector.extract_strided_slice %37 {offsets = [0, 0], sizes = [48, 16], strides = [1, 1]} : vector<48x32xf32> to vector<48x16xf32>
    %43 = vector.extract_strided_slice %38 {offsets = [0, 0], sizes = [48, 16], strides = [1, 1]} : vector<48x32xf32> to vector<48x16xf32>
    %cst_33 = arith.constant dense<0.000000e+00> : vector<48x48xf32>
    %44 = tpu.matmul %42, %43, %cst_33 {dimension_numbers = #tpu.dot_dimension_numbers<[1], [1], [0], [0], [0, 0, 1, 0], [], []>} : vector<48x16xf32>, vector<48x16xf32>, vector<48x48xf32> -> vector<48x48xf32>
    %cst_34 = arith.constant 2.500000e-01 : f32
    %45 = vector.broadcast %cst_34 : f32 to vector<48x48xf32>
    %46 = arith.mulf %44, %45 : vector<48x48xf32>
    %47 = arith.addf %46, %27 : vector<48x48xf32>
    %cst_35 = arith.constant dense<0xFF800000> : vector<48xf32>
    %48 = vector.multi_reduction <maximumf>, %47, %cst_35 [1] : vector<48x48xf32> to vector<48xf32>
    %49 = vector.shape_cast %48 : vector<48xf32> to vector<48x1xf32>
    %50 = vector.broadcast %49 : vector<48x1xf32> to vector<48x48xf32>
    %51 = arith.subf %47, %50 : vector<48x48xf32>
    %52 = math.exp %51 : vector<48x48xf32>
    %cst_36 = arith.constant dense<0.000000e+00> : vector<48xf32>
    %53 = vector.multi_reduction <add>, %52, %cst_36 [1] : vector<48x48xf32> to vector<48xf32>
    %54 = vector.shape_cast %53 : vector<48xf32> to vector<48x1xf32>
    %55 = tpu.reciprocal %54 {approx = true} : vector<48x1xf32> -> vector<48x1xf32>
    %56 = vector.broadcast %55 : vector<48x1xf32> to vector<48x48xf32>
    %57 = arith.mulf %52, %56 : vector<48x48xf32>
    %58 = vector.extract_strided_slice %39 {offsets = [0, 0], sizes = [48, 16], strides = [1, 1]} : vector<48x32xf32> to vector<48x16xf32>
    %cst_37 = arith.constant dense<0.000000e+00> : vector<48x16xf32>
    %59 = tpu.matmul %57, %58, %cst_37 {dimension_numbers = #tpu.dot_dimension_numbers<[1], [0], [0], [1], [0, 0, 1, 1], [], []>} : vector<48x48xf32>, vector<48x16xf32>, vector<48x16xf32> -> vector<48x16xf32>
    %60 = vector.extract_strided_slice %29 {offsets = [0, 0], sizes = [16, 32], strides = [1, 1]} : vector<32x32xf32> to vector<16x32xf32>
    %cst_38 = arith.constant dense<0.000000e+00> : vector<48x32xf32>
    %61 = tpu.matmul %59, %60, %cst_38 {dimension_numbers = #tpu.dot_dimension_numbers<[1], [0], [0], [1], [0, 0, 1, 1], [], []>} : vector<48x16xf32>, vector<16x32xf32>, vector<48x32xf32> -> vector<48x32xf32>
    %62 = vector.broadcast %41 : vector<1x32xf32> to vector<48x32xf32>
    %63 = arith.addf %62, %61 : vector<48x32xf32>
    %64 = vector.extract_strided_slice %37 {offsets = [0, 16], sizes = [48, 16], strides = [1, 1]} : vector<48x32xf32> to vector<48x16xf32>
    %65 = vector.extract_strided_slice %38 {offsets = [0, 16], sizes = [48, 16], strides = [1, 1]} : vector<48x32xf32> to vector<48x16xf32>
    %cst_39 = arith.constant dense<0.000000e+00> : vector<48x48xf32>
    %66 = tpu.matmul %64, %65, %cst_39 {dimension_numbers = #tpu.dot_dimension_numbers<[1], [1], [0], [0], [0, 0, 1, 0], [], []>} : vector<48x16xf32>, vector<48x16xf32>, vector<48x48xf32> -> vector<48x48xf32>
    %cst_40 = arith.constant 2.500000e-01 : f32
    %67 = vector.broadcast %cst_40 : f32 to vector<48x48xf32>
    %68 = arith.mulf %66, %67 : vector<48x48xf32>
    %69 = arith.addf %68, %27 : vector<48x48xf32>
    %cst_41 = arith.constant dense<0xFF800000> : vector<48xf32>
    %70 = vector.multi_reduction <maximumf>, %69, %cst_41 [1] : vector<48x48xf32> to vector<48xf32>
    %71 = vector.shape_cast %70 : vector<48xf32> to vector<48x1xf32>
    %72 = vector.broadcast %71 : vector<48x1xf32> to vector<48x48xf32>
    %73 = arith.subf %69, %72 : vector<48x48xf32>
    %74 = math.exp %73 : vector<48x48xf32>
    %cst_42 = arith.constant dense<0.000000e+00> : vector<48xf32>
    %75 = vector.multi_reduction <add>, %74, %cst_42 [1] : vector<48x48xf32> to vector<48xf32>
    %76 = vector.shape_cast %75 : vector<48xf32> to vector<48x1xf32>
    %77 = tpu.reciprocal %76 {approx = true} : vector<48x1xf32> -> vector<48x1xf32>
    %78 = vector.broadcast %77 : vector<48x1xf32> to vector<48x48xf32>
    %79 = arith.mulf %74, %78 : vector<48x48xf32>
    %80 = vector.extract_strided_slice %39 {offsets = [0, 16], sizes = [48, 16], strides = [1, 1]} : vector<48x32xf32> to vector<48x16xf32>
    %cst_43 = arith.constant dense<0.000000e+00> : vector<48x16xf32>
    %81 = tpu.matmul %79, %80, %cst_43 {dimension_numbers = #tpu.dot_dimension_numbers<[1], [0], [0], [1], [0, 0, 1, 1], [], []>} : vector<48x48xf32>, vector<48x16xf32>, vector<48x16xf32> -> vector<48x16xf32>
    %82 = vector.extract_strided_slice %29 {offsets = [16, 0], sizes = [16, 32], strides = [1, 1]} : vector<32x32xf32> to vector<16x32xf32>
    %cst_44 = arith.constant dense<0.000000e+00> : vector<48x32xf32>
    %83 = tpu.matmul %81, %82, %cst_44 {dimension_numbers = #tpu.dot_dimension_numbers<[1], [0], [0], [1], [0, 0, 1, 1], [], []>} : vector<48x16xf32>, vector<16x32xf32>, vector<48x32xf32> -> vector<48x32xf32>
    %84 = arith.addf %63, %83 : vector<48x32xf32>
    %85 = arith.addf %22, %84 : vector<48x32xf32>
    %c0_45 = arith.constant 0 : index
    %c0_46 = arith.constant 0 : index
    %c0_47 = arith.constant 0 : index
    %86 = vector.load %arg16[%c0_45, %c0_46, %c0_47] : memref<4x1x32xf32, #tpu.memory_space<vmem>>, vector<1x1x32xf32>
    %87 = vector.shape_cast %86 : vector<1x1x32xf32> to vector<1x32xf32>
    %c0_48 = arith.constant 0 : index
    %c0_49 = arith.constant 0 : index
    %c0_50 = arith.constant 0 : index
    %88 = vector.load %arg17[%c0_48, %c0_49, %c0_50] : memref<4x1x32xf32, #tpu.memory_space<vmem>>, vector<1x1x32xf32>
    %89 = vector.shape_cast %88 : vector<1x1x32xf32> to vector<1x32xf32>
    %cst_51 = arith.constant dense<0.000000e+00> : vector<48xf32>
    %90 = vector.multi_reduction <add>, %85, %cst_51 [1] : vector<48x32xf32> to vector<48xf32>
    %91 = vector.shape_cast %90 : vector<48xf32> to vector<48x1xf32>
    %cst_52 = arith.constant 3.200000e+01 : f32
    %92 = vector.broadcast %cst_52 : f32 to vector<48x1xf32>
    %93 = arith.divf %91, %92 : vector<48x1xf32>
    %94 = vector.broadcast %93 : vector<48x1xf32> to vector<48x32xf32>
    %95 = arith.subf %85, %94 : vector<48x32xf32>
    %96 = arith.mulf %95, %95 : vector<48x32xf32>
    %cst_53 = arith.constant dense<0.000000e+00> : vector<48xf32>
    %97 = vector.multi_reduction <add>, %96, %cst_53 [1] : vector<48x32xf32> to vector<48xf32>
    %98 = vector.shape_cast %97 : vector<48xf32> to vector<48x1xf32>
    %cst_54 = arith.constant 3.200000e+01 : f32
    %99 = vector.broadcast %cst_54 : f32 to vector<48x1xf32>
    %100 = arith.divf %98, %99 : vector<48x1xf32>
    %101 = vector.broadcast %93 : vector<48x1xf32> to vector<48x32xf32>
    %102 = arith.subf %85, %101 : vector<48x32xf32>
    %cst_55 = arith.constant 9.99999974E-6 : f32
    %103 = vector.broadcast %cst_55 : f32 to vector<48x1xf32>
    %104 = arith.addf %100, %103 : vector<48x1xf32>
    %105 = math.rsqrt %104 : vector<48x1xf32>
    %106 = vector.broadcast %105 : vector<48x1xf32> to vector<48x32xf32>
    %107 = arith.mulf %102, %106 : vector<48x32xf32>
    %108 = vector.broadcast %87 : vector<1x32xf32> to vector<48x32xf32>
    %109 = arith.mulf %107, %108 : vector<48x32xf32>
    %110 = vector.broadcast %89 : vector<1x32xf32> to vector<48x32xf32>
    %111 = arith.addf %109, %110 : vector<48x32xf32>
    %c0_56 = arith.constant 0 : index
    %c0_57 = arith.constant 0 : index
    %c0_58 = arith.constant 0 : index
    %112 = vector.load %arg20[%c0_56, %c0_57, %c0_58] : memref<4x32x128xf32, #tpu.memory_space<vmem>>, vector<1x32x128xf32>
    %113 = vector.shape_cast %112 : vector<1x32x128xf32> to vector<32x128xf32>
    %cst_59 = arith.constant dense<0.000000e+00> : vector<48x128xf32>
    %114 = tpu.matmul %111, %113, %cst_59 {dimension_numbers = #tpu.dot_dimension_numbers<[1], [0], [0], [1], [0, 0, 1, 1], [], []>} : vector<48x32xf32>, vector<32x128xf32>, vector<48x128xf32> -> vector<48x128xf32>
    %c0_60 = arith.constant 0 : index
    %c0_61 = arith.constant 0 : index
    %c0_62 = arith.constant 0 : index
    %115 = vector.load %arg21[%c0_60, %c0_61, %c0_62] : memref<4x1x128xf32, #tpu.memory_space<vmem>>, vector<1x1x128xf32>
    %116 = vector.shape_cast %115 : vector<1x1x128xf32> to vector<1x128xf32>
    %117 = vector.broadcast %116 : vector<1x128xf32> to vector<48x128xf32>
    %118 = arith.addf %114, %117 : vector<48x128xf32>
    %cst_63 = arith.constant 5.000000e-01 : f32
    %119 = vector.broadcast %cst_63 : f32 to vector<48x128xf32>
    %120 = arith.mulf %119, %118 : vector<48x128xf32>
    %cst_64 = arith.constant 0.707106769 : f32
    %121 = vector.broadcast %cst_64 : f32 to vector<48x128xf32>
    %122 = arith.mulf %118, %121 : vector<48x128xf32>
    %123 = math.erf %122 : vector<48x128xf32>
    %cst_65 = arith.constant 1.000000e+00 : f32
    %124 = vector.broadcast %cst_65 : f32 to vector<48x128xf32>
    %125 = arith.addf %124, %123 : vector<48x128xf32>
    %126 = arith.mulf %120, %125 : vector<48x128xf32>
    %c0_66 = arith.constant 0 : index
    %c0_67 = arith.constant 0 : index
    %c0_68 = arith.constant 0 : index
    %127 = vector.load %arg22[%c0_66, %c0_67, %c0_68] : memref<4x128x32xf32, #tpu.memory_space<vmem>>, vector<1x128x32xf32>
    %128 = vector.shape_cast %127 : vector<1x128x32xf32> to vector<128x32xf32>
    %cst_69 = arith.constant dense<0.000000e+00> : vector<48x32xf32>
    %129 = tpu.matmul %126, %128, %cst_69 {dimension_numbers = #tpu.dot_dimension_numbers<[1], [0], [0], [1], [0, 0, 1, 1], [], []>} : vector<48x128xf32>, vector<128x32xf32>, vector<48x32xf32> -> vector<48x32xf32>
    %c0_70 = arith.constant 0 : index
    %c0_71 = arith.constant 0 : index
    %c0_72 = arith.constant 0 : index
    %130 = vector.load %arg23[%c0_70, %c0_71, %c0_72] : memref<4x1x32xf32, #tpu.memory_space<vmem>>, vector<1x1x32xf32>
    %131 = vector.shape_cast %130 : vector<1x1x32xf32> to vector<1x32xf32>
    %132 = vector.broadcast %131 : vector<1x32xf32> to vector<48x32xf32>
    %133 = arith.addf %129, %132 : vector<48x32xf32>
    %134 = arith.addf %111, %133 : vector<48x32xf32>
    %c0_73 = arith.constant 0 : index
    %c0_74 = arith.constant 0 : index
    %c0_75 = arith.constant 0 : index
    %135 = vector.load %arg18[%c0_73, %c0_74, %c0_75] : memref<4x1x32xf32, #tpu.memory_space<vmem>>, vector<1x1x32xf32>
    %136 = vector.shape_cast %135 : vector<1x1x32xf32> to vector<1x32xf32>
    %c0_76 = arith.constant 0 : index
    %c0_77 = arith.constant 0 : index
    %c0_78 = arith.constant 0 : index
    %137 = vector.load %arg19[%c0_76, %c0_77, %c0_78] : memref<4x1x32xf32, #tpu.memory_space<vmem>>, vector<1x1x32xf32>
    %138 = vector.shape_cast %137 : vector<1x1x32xf32> to vector<1x32xf32>
    %cst_79 = arith.constant dense<0.000000e+00> : vector<48xf32>
    %139 = vector.multi_reduction <add>, %134, %cst_79 [1] : vector<48x32xf32> to vector<48xf32>
    %140 = vector.shape_cast %139 : vector<48xf32> to vector<48x1xf32>
    %cst_80 = arith.constant 3.200000e+01 : f32
    %141 = vector.broadcast %cst_80 : f32 to vector<48x1xf32>
    %142 = arith.divf %140, %141 : vector<48x1xf32>
    %143 = vector.broadcast %142 : vector<48x1xf32> to vector<48x32xf32>
    %144 = arith.subf %134, %143 : vector<48x32xf32>
    %145 = arith.mulf %144, %144 : vector<48x32xf32>
    %cst_81 = arith.constant dense<0.000000e+00> : vector<48xf32>
    %146 = vector.multi_reduction <add>, %145, %cst_81 [1] : vector<48x32xf32> to vector<48xf32>
    %147 = vector.shape_cast %146 : vector<48xf32> to vector<48x1xf32>
    %cst_82 = arith.constant 3.200000e+01 : f32
    %148 = vector.broadcast %cst_82 : f32 to vector<48x1xf32>
    %149 = arith.divf %147, %148 : vector<48x1xf32>
    %150 = vector.broadcast %142 : vector<48x1xf32> to vector<48x32xf32>
    %151 = arith.subf %134, %150 : vector<48x32xf32>
    %cst_83 = arith.constant 9.99999974E-6 : f32
    %152 = vector.broadcast %cst_83 : f32 to vector<48x1xf32>
    %153 = arith.addf %149, %152 : vector<48x1xf32>
    %154 = math.rsqrt %153 : vector<48x1xf32>
    %155 = vector.broadcast %154 : vector<48x1xf32> to vector<48x32xf32>
    %156 = arith.mulf %151, %155 : vector<48x32xf32>
    %157 = vector.broadcast %136 : vector<1x32xf32> to vector<48x32xf32>
    %158 = arith.mulf %156, %157 : vector<48x32xf32>
    %159 = vector.broadcast %138 : vector<1x32xf32> to vector<48x32xf32>
    %160 = arith.addf %158, %159 : vector<48x32xf32>
    %c1 = arith.constant 1 : index
    %c0_84 = arith.constant 0 : index
    %c0_85 = arith.constant 0 : index
    %161 = vector.load %arg14[%c1, %c0_84, %c0_85] : memref<4x32x32xf32, #tpu.memory_space<vmem>>, vector<1x32x32xf32>
    %162 = vector.shape_cast %161 : vector<1x32x32xf32> to vector<32x32xf32>
    %c1_86 = arith.constant 1 : index
    %c0_87 = arith.constant 0 : index
    %c0_88 = arith.constant 0 : index
    %163 = vector.load %arg12[%c1_86, %c0_87, %c0_88] : memref<4x32x96xf32, #tpu.memory_space<vmem>>, vector<1x32x96xf32>
    %164 = vector.shape_cast %163 : vector<1x32x96xf32> to vector<32x96xf32>
    %cst_89 = arith.constant dense<0.000000e+00> : vector<48x96xf32>
    %165 = tpu.matmul %160, %164, %cst_89 {dimension_numbers = #tpu.dot_dimension_numbers<[1], [0], [0], [1], [0, 0, 1, 1], [], []>} : vector<48x32xf32>, vector<32x96xf32>, vector<48x96xf32> -> vector<48x96xf32>
    %c1_90 = arith.constant 1 : index
    %c0_91 = arith.constant 0 : index
    %c0_92 = arith.constant 0 : index
    %166 = vector.load %arg13[%c1_90, %c0_91, %c0_92] : memref<4x1x96xf32, #tpu.memory_space<vmem>>, vector<1x1x96xf32>
    %167 = vector.shape_cast %166 : vector<1x1x96xf32> to vector<1x96xf32>
    %168 = vector.broadcast %167 : vector<1x96xf32> to vector<48x96xf32>
    %169 = arith.addf %165, %168 : vector<48x96xf32>
    %170 = vector.extract_strided_slice %169 {offsets = [0, 0], sizes = [48, 32], strides = [1, 1]} : vector<48x96xf32> to vector<48x32xf32>
    %171 = vector.extract_strided_slice %169 {offsets = [0, 32], sizes = [48, 32], strides = [1, 1]} : vector<48x96xf32> to vector<48x32xf32>
    %172 = vector.extract_strided_slice %169 {offsets = [0, 64], sizes = [48, 32], strides = [1, 1]} : vector<48x96xf32> to vector<48x32xf32>
    %c1_93 = arith.constant 1 : index
    %c0_94 = arith.constant 0 : index
    %c0_95 = arith.constant 0 : index
    %173 = vector.load %arg15[%c1_93, %c0_94, %c0_95] : memref<4x1x32xf32, #tpu.memory_space<vmem>>, vector<1x1x32xf32>
    %174 = vector.shape_cast %173 : vector<1x1x32xf32> to vector<1x32xf32>
    %175 = vector.extract_strided_slice %170 {offsets = [0, 0], sizes = [48, 16], strides = [1, 1]} : vector<48x32xf32> to vector<48x16xf32>
    %176 = vector.extract_strided_slice %171 {offsets = [0, 0], sizes = [48, 16], strides = [1, 1]} : vector<48x32xf32> to vector<48x16xf32>
    %cst_96 = arith.constant dense<0.000000e+00> : vector<48x48xf32>
    %177 = tpu.matmul %175, %176, %cst_96 {dimension_numbers = #tpu.dot_dimension_numbers<[1], [1], [0], [0], [0, 0, 1, 0], [], []>} : vector<48x16xf32>, vector<48x16xf32>, vector<48x48xf32> -> vector<48x48xf32>
    %cst_97 = arith.constant 2.500000e-01 : f32
    %178 = vector.broadcast %cst_97 : f32 to vector<48x48xf32>
    %179 = arith.mulf %177, %178 : vector<48x48xf32>
    %180 = arith.addf %179, %27 : vector<48x48xf32>
    %cst_98 = arith.constant dense<0xFF800000> : vector<48xf32>
    %181 = vector.multi_reduction <maximumf>, %180, %cst_98 [1] : vector<48x48xf32> to vector<48xf32>
    %182 = vector.shape_cast %181 : vector<48xf32> to vector<48x1xf32>
    %183 = vector.broadcast %182 : vector<48x1xf32> to vector<48x48xf32>
    %184 = arith.subf %180, %183 : vector<48x48xf32>
    %185 = math.exp %184 : vector<48x48xf32>
    %cst_99 = arith.constant dense<0.000000e+00> : vector<48xf32>
    %186 = vector.multi_reduction <add>, %185, %cst_99 [1] : vector<48x48xf32> to vector<48xf32>
    %187 = vector.shape_cast %186 : vector<48xf32> to vector<48x1xf32>
    %188 = tpu.reciprocal %187 {approx = true} : vector<48x1xf32> -> vector<48x1xf32>
    %189 = vector.broadcast %188 : vector<48x1xf32> to vector<48x48xf32>
    %190 = arith.mulf %185, %189 : vector<48x48xf32>
    %191 = vector.extract_strided_slice %172 {offsets = [0, 0], sizes = [48, 16], strides = [1, 1]} : vector<48x32xf32> to vector<48x16xf32>
    %cst_100 = arith.constant dense<0.000000e+00> : vector<48x16xf32>
    %192 = tpu.matmul %190, %191, %cst_100 {dimension_numbers = #tpu.dot_dimension_numbers<[1], [0], [0], [1], [0, 0, 1, 1], [], []>} : vector<48x48xf32>, vector<48x16xf32>, vector<48x16xf32> -> vector<48x16xf32>
    %193 = vector.extract_strided_slice %162 {offsets = [0, 0], sizes = [16, 32], strides = [1, 1]} : vector<32x32xf32> to vector<16x32xf32>
    %cst_101 = arith.constant dense<0.000000e+00> : vector<48x32xf32>
    %194 = tpu.matmul %192, %193, %cst_101 {dimension_numbers = #tpu.dot_dimension_numbers<[1], [0], [0], [1], [0, 0, 1, 1], [], []>} : vector<48x16xf32>, vector<16x32xf32>, vector<48x32xf32> -> vector<48x32xf32>
    %195 = vector.broadcast %174 : vector<1x32xf32> to vector<48x32xf32>
    %196 = arith.addf %195, %194 : vector<48x32xf32>
    %197 = vector.extract_strided_slice %170 {offsets = [0, 16], sizes = [48, 16], strides = [1, 1]} : vector<48x32xf32> to vector<48x16xf32>
    %198 = vector.extract_strided_slice %171 {offsets = [0, 16], sizes = [48, 16], strides = [1, 1]} : vector<48x32xf32> to vector<48x16xf32>
    %cst_102 = arith.constant dense<0.000000e+00> : vector<48x48xf32>
    %199 = tpu.matmul %197, %198, %cst_102 {dimension_numbers = #tpu.dot_dimension_numbers<[1], [1], [0], [0], [0, 0, 1, 0], [], []>} : vector<48x16xf32>, vector<48x16xf32>, vector<48x48xf32> -> vector<48x48xf32>
    %cst_103 = arith.constant 2.500000e-01 : f32
    %200 = vector.broadcast %cst_103 : f32 to vector<48x48xf32>
    %201 = arith.mulf %199, %200 : vector<48x48xf32>
    %202 = arith.addf %201, %27 : vector<48x48xf32>
    %cst_104 = arith.constant dense<0xFF800000> : vector<48xf32>
    %203 = vector.multi_reduction <maximumf>, %202, %cst_104 [1] : vector<48x48xf32> to vector<48xf32>
    %204 = vector.shape_cast %203 : vector<48xf32> to vector<48x1xf32>
    %205 = vector.broadcast %204 : vector<48x1xf32> to vector<48x48xf32>
    %206 = arith.subf %202, %205 : vector<48x48xf32>
    %207 = math.exp %206 : vector<48x48xf32>
    %cst_105 = arith.constant dense<0.000000e+00> : vector<48xf32>
    %208 = vector.multi_reduction <add>, %207, %cst_105 [1] : vector<48x48xf32> to vector<48xf32>
    %209 = vector.shape_cast %208 : vector<48xf32> to vector<48x1xf32>
    %210 = tpu.reciprocal %209 {approx = true} : vector<48x1xf32> -> vector<48x1xf32>
    %211 = vector.broadcast %210 : vector<48x1xf32> to vector<48x48xf32>
    %212 = arith.mulf %207, %211 : vector<48x48xf32>
    %213 = vector.extract_strided_slice %172 {offsets = [0, 16], sizes = [48, 16], strides = [1, 1]} : vector<48x32xf32> to vector<48x16xf32>
    %cst_106 = arith.constant dense<0.000000e+00> : vector<48x16xf32>
    %214 = tpu.matmul %212, %213, %cst_106 {dimension_numbers = #tpu.dot_dimension_numbers<[1], [0], [0], [1], [0, 0, 1, 1], [], []>} : vector<48x48xf32>, vector<48x16xf32>, vector<48x16xf32> -> vector<48x16xf32>
    %215 = vector.extract_strided_slice %162 {offsets = [16, 0], sizes = [16, 32], strides = [1, 1]} : vector<32x32xf32> to vector<16x32xf32>
    %cst_107 = arith.constant dense<0.000000e+00> : vector<48x32xf32>
    %216 = tpu.matmul %214, %215, %cst_107 {dimension_numbers = #tpu.dot_dimension_numbers<[1], [0], [0], [1], [0, 0, 1, 1], [], []>} : vector<48x16xf32>, vector<16x32xf32>, vector<48x32xf32> -> vector<48x32xf32>
    %217 = arith.addf %196, %216 : vector<48x32xf32>
    %218 = arith.addf %160, %217 : vector<48x32xf32>
    %c1_108 = arith.constant 1 : index
    %c0_109 = arith.constant 0 : index
    %c0_110 = arith.constant 0 : index
    %219 = vector.load %arg16[%c1_108, %c0_109, %c0_110] : memref<4x1x32xf32, #tpu.memory_space<vmem>>, vector<1x1x32xf32>
    %220 = vector.shape_cast %219 : vector<1x1x32xf32> to vector<1x32xf32>
    %c1_111 = arith.constant 1 : index
    %c0_112 = arith.constant 0 : index
    %c0_113 = arith.constant 0 : index
    %221 = vector.load %arg17[%c1_111, %c0_112, %c0_113] : memref<4x1x32xf32, #tpu.memory_space<vmem>>, vector<1x1x32xf32>
    %222 = vector.shape_cast %221 : vector<1x1x32xf32> to vector<1x32xf32>
    %cst_114 = arith.constant dense<0.000000e+00> : vector<48xf32>
    %223 = vector.multi_reduction <add>, %218, %cst_114 [1] : vector<48x32xf32> to vector<48xf32>
    %224 = vector.shape_cast %223 : vector<48xf32> to vector<48x1xf32>
    %cst_115 = arith.constant 3.200000e+01 : f32
    %225 = vector.broadcast %cst_115 : f32 to vector<48x1xf32>
    %226 = arith.divf %224, %225 : vector<48x1xf32>
    %227 = vector.broadcast %226 : vector<48x1xf32> to vector<48x32xf32>
    %228 = arith.subf %218, %227 : vector<48x32xf32>
    %229 = arith.mulf %228, %228 : vector<48x32xf32>
    %cst_116 = arith.constant dense<0.000000e+00> : vector<48xf32>
    %230 = vector.multi_reduction <add>, %229, %cst_116 [1] : vector<48x32xf32> to vector<48xf32>
    %231 = vector.shape_cast %230 : vector<48xf32> to vector<48x1xf32>
    %cst_117 = arith.constant 3.200000e+01 : f32
    %232 = vector.broadcast %cst_117 : f32 to vector<48x1xf32>
    %233 = arith.divf %231, %232 : vector<48x1xf32>
    %234 = vector.broadcast %226 : vector<48x1xf32> to vector<48x32xf32>
    %235 = arith.subf %218, %234 : vector<48x32xf32>
    %cst_118 = arith.constant 9.99999974E-6 : f32
    %236 = vector.broadcast %cst_118 : f32 to vector<48x1xf32>
    %237 = arith.addf %233, %236 : vector<48x1xf32>
    %238 = math.rsqrt %237 : vector<48x1xf32>
    %239 = vector.broadcast %238 : vector<48x1xf32> to vector<48x32xf32>
    %240 = arith.mulf %235, %239 : vector<48x32xf32>
    %241 = vector.broadcast %220 : vector<1x32xf32> to vector<48x32xf32>
    %242 = arith.mulf %240, %241 : vector<48x32xf32>
    %243 = vector.broadcast %222 : vector<1x32xf32> to vector<48x32xf32>
    %244 = arith.addf %242, %243 : vector<48x32xf32>
    %c1_119 = arith.constant 1 : index
    %c0_120 = arith.constant 0 : index
    %c0_121 = arith.constant 0 : index
    %245 = vector.load %arg20[%c1_119, %c0_120, %c0_121] : memref<4x32x128xf32, #tpu.memory_space<vmem>>, vector<1x32x128xf32>
    %246 = vector.shape_cast %245 : vector<1x32x128xf32> to vector<32x128xf32>
    %cst_122 = arith.constant dense<0.000000e+00> : vector<48x128xf32>
    %247 = tpu.matmul %244, %246, %cst_122 {dimension_numbers = #tpu.dot_dimension_numbers<[1], [0], [0], [1], [0, 0, 1, 1], [], []>} : vector<48x32xf32>, vector<32x128xf32>, vector<48x128xf32> -> vector<48x128xf32>
    %c1_123 = arith.constant 1 : index
    %c0_124 = arith.constant 0 : index
    %c0_125 = arith.constant 0 : index
    %248 = vector.load %arg21[%c1_123, %c0_124, %c0_125] : memref<4x1x128xf32, #tpu.memory_space<vmem>>, vector<1x1x128xf32>
    %249 = vector.shape_cast %248 : vector<1x1x128xf32> to vector<1x128xf32>
    %250 = vector.broadcast %249 : vector<1x128xf32> to vector<48x128xf32>
    %251 = arith.addf %247, %250 : vector<48x128xf32>
    %cst_126 = arith.constant 5.000000e-01 : f32
    %252 = vector.broadcast %cst_126 : f32 to vector<48x128xf32>
    %253 = arith.mulf %252, %251 : vector<48x128xf32>
    %cst_127 = arith.constant 0.707106769 : f32
    %254 = vector.broadcast %cst_127 : f32 to vector<48x128xf32>
    %255 = arith.mulf %251, %254 : vector<48x128xf32>
    %256 = math.erf %255 : vector<48x128xf32>
    %cst_128 = arith.constant 1.000000e+00 : f32
    %257 = vector.broadcast %cst_128 : f32 to vector<48x128xf32>
    %258 = arith.addf %257, %256 : vector<48x128xf32>
    %259 = arith.mulf %253, %258 : vector<48x128xf32>
    %c1_129 = arith.constant 1 : index
    %c0_130 = arith.constant 0 : index
    %c0_131 = arith.constant 0 : index
    %260 = vector.load %arg22[%c1_129, %c0_130, %c0_131] : memref<4x128x32xf32, #tpu.memory_space<vmem>>, vector<1x128x32xf32>
    %261 = vector.shape_cast %260 : vector<1x128x32xf32> to vector<128x32xf32>
    %cst_132 = arith.constant dense<0.000000e+00> : vector<48x32xf32>
    %262 = tpu.matmul %259, %261, %cst_132 {dimension_numbers = #tpu.dot_dimension_numbers<[1], [0], [0], [1], [0, 0, 1, 1], [], []>} : vector<48x128xf32>, vector<128x32xf32>, vector<48x32xf32> -> vector<48x32xf32>
    %c1_133 = arith.constant 1 : index
    %c0_134 = arith.constant 0 : index
    %c0_135 = arith.constant 0 : index
    %263 = vector.load %arg23[%c1_133, %c0_134, %c0_135] : memref<4x1x32xf32, #tpu.memory_space<vmem>>, vector<1x1x32xf32>
    %264 = vector.shape_cast %263 : vector<1x1x32xf32> to vector<1x32xf32>
    %265 = vector.broadcast %264 : vector<1x32xf32> to vector<48x32xf32>
    %266 = arith.addf %262, %265 : vector<48x32xf32>
    %267 = arith.addf %244, %266 : vector<48x32xf32>
    %c1_136 = arith.constant 1 : index
    %c0_137 = arith.constant 0 : index
    %c0_138 = arith.constant 0 : index
    %268 = vector.load %arg18[%c1_136, %c0_137, %c0_138] : memref<4x1x32xf32, #tpu.memory_space<vmem>>, vector<1x1x32xf32>
    %269 = vector.shape_cast %268 : vector<1x1x32xf32> to vector<1x32xf32>
    %c1_139 = arith.constant 1 : index
    %c0_140 = arith.constant 0 : index
    %c0_141 = arith.constant 0 : index
    %270 = vector.load %arg19[%c1_139, %c0_140, %c0_141] : memref<4x1x32xf32, #tpu.memory_space<vmem>>, vector<1x1x32xf32>
    %271 = vector.shape_cast %270 : vector<1x1x32xf32> to vector<1x32xf32>
    %cst_142 = arith.constant dense<0.000000e+00> : vector<48xf32>
    %272 = vector.multi_reduction <add>, %267, %cst_142 [1] : vector<48x32xf32> to vector<48xf32>
    %273 = vector.shape_cast %272 : vector<48xf32> to vector<48x1xf32>
    %cst_143 = arith.constant 3.200000e+01 : f32
    %274 = vector.broadcast %cst_143 : f32 to vector<48x1xf32>
    %275 = arith.divf %273, %274 : vector<48x1xf32>
    %276 = vector.broadcast %275 : vector<48x1xf32> to vector<48x32xf32>
    %277 = arith.subf %267, %276 : vector<48x32xf32>
    %278 = arith.mulf %277, %277 : vector<48x32xf32>
    %cst_144 = arith.constant dense<0.000000e+00> : vector<48xf32>
    %279 = vector.multi_reduction <add>, %278, %cst_144 [1] : vector<48x32xf32> to vector<48xf32>
    %280 = vector.shape_cast %279 : vector<48xf32> to vector<48x1xf32>
    %cst_145 = arith.constant 3.200000e+01 : f32
    %281 = vector.broadcast %cst_145 : f32 to vector<48x1xf32>
    %282 = arith.divf %280, %281 : vector<48x1xf32>
    %283 = vector.broadcast %275 : vector<48x1xf32> to vector<48x32xf32>
    %284 = arith.subf %267, %283 : vector<48x32xf32>
    %cst_146 = arith.constant 9.99999974E-6 : f32
    %285 = vector.broadcast %cst_146 : f32 to vector<48x1xf32>
    %286 = arith.addf %282, %285 : vector<48x1xf32>
    %287 = math.rsqrt %286 : vector<48x1xf32>
    %288 = vector.broadcast %287 : vector<48x1xf32> to vector<48x32xf32>
    %289 = arith.mulf %284, %288 : vector<48x32xf32>
    %290 = vector.broadcast %269 : vector<1x32xf32> to vector<48x32xf32>
    %291 = arith.mulf %289, %290 : vector<48x32xf32>
    %292 = vector.broadcast %271 : vector<1x32xf32> to vector<48x32xf32>
    %293 = arith.addf %291, %292 : vector<48x32xf32>
    %c2 = arith.constant 2 : index
    %c0_147 = arith.constant 0 : index
    %c0_148 = arith.constant 0 : index
    %294 = vector.load %arg14[%c2, %c0_147, %c0_148] : memref<4x32x32xf32, #tpu.memory_space<vmem>>, vector<1x32x32xf32>
    %295 = vector.shape_cast %294 : vector<1x32x32xf32> to vector<32x32xf32>
    %c2_149 = arith.constant 2 : index
    %c0_150 = arith.constant 0 : index
    %c0_151 = arith.constant 0 : index
    %296 = vector.load %arg12[%c2_149, %c0_150, %c0_151] : memref<4x32x96xf32, #tpu.memory_space<vmem>>, vector<1x32x96xf32>
    %297 = vector.shape_cast %296 : vector<1x32x96xf32> to vector<32x96xf32>
    %cst_152 = arith.constant dense<0.000000e+00> : vector<48x96xf32>
    %298 = tpu.matmul %293, %297, %cst_152 {dimension_numbers = #tpu.dot_dimension_numbers<[1], [0], [0], [1], [0, 0, 1, 1], [], []>} : vector<48x32xf32>, vector<32x96xf32>, vector<48x96xf32> -> vector<48x96xf32>
    %c2_153 = arith.constant 2 : index
    %c0_154 = arith.constant 0 : index
    %c0_155 = arith.constant 0 : index
    %299 = vector.load %arg13[%c2_153, %c0_154, %c0_155] : memref<4x1x96xf32, #tpu.memory_space<vmem>>, vector<1x1x96xf32>
    %300 = vector.shape_cast %299 : vector<1x1x96xf32> to vector<1x96xf32>
    %301 = vector.broadcast %300 : vector<1x96xf32> to vector<48x96xf32>
    %302 = arith.addf %298, %301 : vector<48x96xf32>
    %303 = vector.extract_strided_slice %302 {offsets = [0, 0], sizes = [48, 32], strides = [1, 1]} : vector<48x96xf32> to vector<48x32xf32>
    %304 = vector.extract_strided_slice %302 {offsets = [0, 32], sizes = [48, 32], strides = [1, 1]} : vector<48x96xf32> to vector<48x32xf32>
    %305 = vector.extract_strided_slice %302 {offsets = [0, 64], sizes = [48, 32], strides = [1, 1]} : vector<48x96xf32> to vector<48x32xf32>
    %c2_156 = arith.constant 2 : index
    %c0_157 = arith.constant 0 : index
    %c0_158 = arith.constant 0 : index
    %306 = vector.load %arg15[%c2_156, %c0_157, %c0_158] : memref<4x1x32xf32, #tpu.memory_space<vmem>>, vector<1x1x32xf32>
    %307 = vector.shape_cast %306 : vector<1x1x32xf32> to vector<1x32xf32>
    %308 = vector.extract_strided_slice %303 {offsets = [0, 0], sizes = [48, 16], strides = [1, 1]} : vector<48x32xf32> to vector<48x16xf32>
    %309 = vector.extract_strided_slice %304 {offsets = [0, 0], sizes = [48, 16], strides = [1, 1]} : vector<48x32xf32> to vector<48x16xf32>
    %cst_159 = arith.constant dense<0.000000e+00> : vector<48x48xf32>
    %310 = tpu.matmul %308, %309, %cst_159 {dimension_numbers = #tpu.dot_dimension_numbers<[1], [1], [0], [0], [0, 0, 1, 0], [], []>} : vector<48x16xf32>, vector<48x16xf32>, vector<48x48xf32> -> vector<48x48xf32>
    %cst_160 = arith.constant 2.500000e-01 : f32
    %311 = vector.broadcast %cst_160 : f32 to vector<48x48xf32>
    %312 = arith.mulf %310, %311 : vector<48x48xf32>
    %313 = arith.addf %312, %27 : vector<48x48xf32>
    %cst_161 = arith.constant dense<0xFF800000> : vector<48xf32>
    %314 = vector.multi_reduction <maximumf>, %313, %cst_161 [1] : vector<48x48xf32> to vector<48xf32>
    %315 = vector.shape_cast %314 : vector<48xf32> to vector<48x1xf32>
    %316 = vector.broadcast %315 : vector<48x1xf32> to vector<48x48xf32>
    %317 = arith.subf %313, %316 : vector<48x48xf32>
    %318 = math.exp %317 : vector<48x48xf32>
    %cst_162 = arith.constant dense<0.000000e+00> : vector<48xf32>
    %319 = vector.multi_reduction <add>, %318, %cst_162 [1] : vector<48x48xf32> to vector<48xf32>
    %320 = vector.shape_cast %319 : vector<48xf32> to vector<48x1xf32>
    %321 = tpu.reciprocal %320 {approx = true} : vector<48x1xf32> -> vector<48x1xf32>
    %322 = vector.broadcast %321 : vector<48x1xf32> to vector<48x48xf32>
    %323 = arith.mulf %318, %322 : vector<48x48xf32>
    %324 = vector.extract_strided_slice %305 {offsets = [0, 0], sizes = [48, 16], strides = [1, 1]} : vector<48x32xf32> to vector<48x16xf32>
    %cst_163 = arith.constant dense<0.000000e+00> : vector<48x16xf32>
    %325 = tpu.matmul %323, %324, %cst_163 {dimension_numbers = #tpu.dot_dimension_numbers<[1], [0], [0], [1], [0, 0, 1, 1], [], []>} : vector<48x48xf32>, vector<48x16xf32>, vector<48x16xf32> -> vector<48x16xf32>
    %326 = vector.extract_strided_slice %295 {offsets = [0, 0], sizes = [16, 32], strides = [1, 1]} : vector<32x32xf32> to vector<16x32xf32>
    %cst_164 = arith.constant dense<0.000000e+00> : vector<48x32xf32>
    %327 = tpu.matmul %325, %326, %cst_164 {dimension_numbers = #tpu.dot_dimension_numbers<[1], [0], [0], [1], [0, 0, 1, 1], [], []>} : vector<48x16xf32>, vector<16x32xf32>, vector<48x32xf32> -> vector<48x32xf32>
    %328 = vector.broadcast %307 : vector<1x32xf32> to vector<48x32xf32>
    %329 = arith.addf %328, %327 : vector<48x32xf32>
    %330 = vector.extract_strided_slice %303 {offsets = [0, 16], sizes = [48, 16], strides = [1, 1]} : vector<48x32xf32> to vector<48x16xf32>
    %331 = vector.extract_strided_slice %304 {offsets = [0, 16], sizes = [48, 16], strides = [1, 1]} : vector<48x32xf32> to vector<48x16xf32>
    %cst_165 = arith.constant dense<0.000000e+00> : vector<48x48xf32>
    %332 = tpu.matmul %330, %331, %cst_165 {dimension_numbers = #tpu.dot_dimension_numbers<[1], [1], [0], [0], [0, 0, 1, 0], [], []>} : vector<48x16xf32>, vector<48x16xf32>, vector<48x48xf32> -> vector<48x48xf32>
    %cst_166 = arith.constant 2.500000e-01 : f32
    %333 = vector.broadcast %cst_166 : f32 to vector<48x48xf32>
    %334 = arith.mulf %332, %333 : vector<48x48xf32>
    %335 = arith.addf %334, %27 : vector<48x48xf32>
    %cst_167 = arith.constant dense<0xFF800000> : vector<48xf32>
    %336 = vector.multi_reduction <maximumf>, %335, %cst_167 [1] : vector<48x48xf32> to vector<48xf32>
    %337 = vector.shape_cast %336 : vector<48xf32> to vector<48x1xf32>
    %338 = vector.broadcast %337 : vector<48x1xf32> to vector<48x48xf32>
    %339 = arith.subf %335, %338 : vector<48x48xf32>
    %340 = math.exp %339 : vector<48x48xf32>
    %cst_168 = arith.constant dense<0.000000e+00> : vector<48xf32>
    %341 = vector.multi_reduction <add>, %340, %cst_168 [1] : vector<48x48xf32> to vector<48xf32>
    %342 = vector.shape_cast %341 : vector<48xf32> to vector<48x1xf32>
    %343 = tpu.reciprocal %342 {approx = true} : vector<48x1xf32> -> vector<48x1xf32>
    %344 = vector.broadcast %343 : vector<48x1xf32> to vector<48x48xf32>
    %345 = arith.mulf %340, %344 : vector<48x48xf32>
    %346 = vector.extract_strided_slice %305 {offsets = [0, 16], sizes = [48, 16], strides = [1, 1]} : vector<48x32xf32> to vector<48x16xf32>
    %cst_169 = arith.constant dense<0.000000e+00> : vector<48x16xf32>
    %347 = tpu.matmul %345, %346, %cst_169 {dimension_numbers = #tpu.dot_dimension_numbers<[1], [0], [0], [1], [0, 0, 1, 1], [], []>} : vector<48x48xf32>, vector<48x16xf32>, vector<48x16xf32> -> vector<48x16xf32>
    %348 = vector.extract_strided_slice %295 {offsets = [16, 0], sizes = [16, 32], strides = [1, 1]} : vector<32x32xf32> to vector<16x32xf32>
    %cst_170 = arith.constant dense<0.000000e+00> : vector<48x32xf32>
    %349 = tpu.matmul %347, %348, %cst_170 {dimension_numbers = #tpu.dot_dimension_numbers<[1], [0], [0], [1], [0, 0, 1, 1], [], []>} : vector<48x16xf32>, vector<16x32xf32>, vector<48x32xf32> -> vector<48x32xf32>
    %350 = arith.addf %329, %349 : vector<48x32xf32>
    %351 = arith.addf %293, %350 : vector<48x32xf32>
    %c2_171 = arith.constant 2 : index
    %c0_172 = arith.constant 0 : index
    %c0_173 = arith.constant 0 : index
    %352 = vector.load %arg16[%c2_171, %c0_172, %c0_173] : memref<4x1x32xf32, #tpu.memory_space<vmem>>, vector<1x1x32xf32>
    %353 = vector.shape_cast %352 : vector<1x1x32xf32> to vector<1x32xf32>
    %c2_174 = arith.constant 2 : index
    %c0_175 = arith.constant 0 : index
    %c0_176 = arith.constant 0 : index
    %354 = vector.load %arg17[%c2_174, %c0_175, %c0_176] : memref<4x1x32xf32, #tpu.memory_space<vmem>>, vector<1x1x32xf32>
    %355 = vector.shape_cast %354 : vector<1x1x32xf32> to vector<1x32xf32>
    %cst_177 = arith.constant dense<0.000000e+00> : vector<48xf32>
    %356 = vector.multi_reduction <add>, %351, %cst_177 [1] : vector<48x32xf32> to vector<48xf32>
    %357 = vector.shape_cast %356 : vector<48xf32> to vector<48x1xf32>
    %cst_178 = arith.constant 3.200000e+01 : f32
    %358 = vector.broadcast %cst_178 : f32 to vector<48x1xf32>
    %359 = arith.divf %357, %358 : vector<48x1xf32>
    %360 = vector.broadcast %359 : vector<48x1xf32> to vector<48x32xf32>
    %361 = arith.subf %351, %360 : vector<48x32xf32>
    %362 = arith.mulf %361, %361 : vector<48x32xf32>
    %cst_179 = arith.constant dense<0.000000e+00> : vector<48xf32>
    %363 = vector.multi_reduction <add>, %362, %cst_179 [1] : vector<48x32xf32> to vector<48xf32>
    %364 = vector.shape_cast %363 : vector<48xf32> to vector<48x1xf32>
    %cst_180 = arith.constant 3.200000e+01 : f32
    %365 = vector.broadcast %cst_180 : f32 to vector<48x1xf32>
    %366 = arith.divf %364, %365 : vector<48x1xf32>
    %367 = vector.broadcast %359 : vector<48x1xf32> to vector<48x32xf32>
    %368 = arith.subf %351, %367 : vector<48x32xf32>
    %cst_181 = arith.constant 9.99999974E-6 : f32
    %369 = vector.broadcast %cst_181 : f32 to vector<48x1xf32>
    %370 = arith.addf %366, %369 : vector<48x1xf32>
    %371 = math.rsqrt %370 : vector<48x1xf32>
    %372 = vector.broadcast %371 : vector<48x1xf32> to vector<48x32xf32>
    %373 = arith.mulf %368, %372 : vector<48x32xf32>
    %374 = vector.broadcast %353 : vector<1x32xf32> to vector<48x32xf32>
    %375 = arith.mulf %373, %374 : vector<48x32xf32>
    %376 = vector.broadcast %355 : vector<1x32xf32> to vector<48x32xf32>
    %377 = arith.addf %375, %376 : vector<48x32xf32>
    %c2_182 = arith.constant 2 : index
    %c0_183 = arith.constant 0 : index
    %c0_184 = arith.constant 0 : index
    %378 = vector.load %arg20[%c2_182, %c0_183, %c0_184] : memref<4x32x128xf32, #tpu.memory_space<vmem>>, vector<1x32x128xf32>
    %379 = vector.shape_cast %378 : vector<1x32x128xf32> to vector<32x128xf32>
    %cst_185 = arith.constant dense<0.000000e+00> : vector<48x128xf32>
    %380 = tpu.matmul %377, %379, %cst_185 {dimension_numbers = #tpu.dot_dimension_numbers<[1], [0], [0], [1], [0, 0, 1, 1], [], []>} : vector<48x32xf32>, vector<32x128xf32>, vector<48x128xf32> -> vector<48x128xf32>
    %c2_186 = arith.constant 2 : index
    %c0_187 = arith.constant 0 : index
    %c0_188 = arith.constant 0 : index
    %381 = vector.load %arg21[%c2_186, %c0_187, %c0_188] : memref<4x1x128xf32, #tpu.memory_space<vmem>>, vector<1x1x128xf32>
    %382 = vector.shape_cast %381 : vector<1x1x128xf32> to vector<1x128xf32>
    %383 = vector.broadcast %382 : vector<1x128xf32> to vector<48x128xf32>
    %384 = arith.addf %380, %383 : vector<48x128xf32>
    %cst_189 = arith.constant 5.000000e-01 : f32
    %385 = vector.broadcast %cst_189 : f32 to vector<48x128xf32>
    %386 = arith.mulf %385, %384 : vector<48x128xf32>
    %cst_190 = arith.constant 0.707106769 : f32
    %387 = vector.broadcast %cst_190 : f32 to vector<48x128xf32>
    %388 = arith.mulf %384, %387 : vector<48x128xf32>
    %389 = math.erf %388 : vector<48x128xf32>
    %cst_191 = arith.constant 1.000000e+00 : f32
    %390 = vector.broadcast %cst_191 : f32 to vector<48x128xf32>
    %391 = arith.addf %390, %389 : vector<48x128xf32>
    %392 = arith.mulf %386, %391 : vector<48x128xf32>
    %c2_192 = arith.constant 2 : index
    %c0_193 = arith.constant 0 : index
    %c0_194 = arith.constant 0 : index
    %393 = vector.load %arg22[%c2_192, %c0_193, %c0_194] : memref<4x128x32xf32, #tpu.memory_space<vmem>>, vector<1x128x32xf32>
    %394 = vector.shape_cast %393 : vector<1x128x32xf32> to vector<128x32xf32>
    %cst_195 = arith.constant dense<0.000000e+00> : vector<48x32xf32>
    %395 = tpu.matmul %392, %394, %cst_195 {dimension_numbers = #tpu.dot_dimension_numbers<[1], [0], [0], [1], [0, 0, 1, 1], [], []>} : vector<48x128xf32>, vector<128x32xf32>, vector<48x32xf32> -> vector<48x32xf32>
    %c2_196 = arith.constant 2 : index
    %c0_197 = arith.constant 0 : index
    %c0_198 = arith.constant 0 : index
    %396 = vector.load %arg23[%c2_196, %c0_197, %c0_198] : memref<4x1x32xf32, #tpu.memory_space<vmem>>, vector<1x1x32xf32>
    %397 = vector.shape_cast %396 : vector<1x1x32xf32> to vector<1x32xf32>
    %398 = vector.broadcast %397 : vector<1x32xf32> to vector<48x32xf32>
    %399 = arith.addf %395, %398 : vector<48x32xf32>
    %400 = arith.addf %377, %399 : vector<48x32xf32>
    %c2_199 = arith.constant 2 : index
    %c0_200 = arith.constant 0 : index
    %c0_201 = arith.constant 0 : index
    %401 = vector.load %arg18[%c2_199, %c0_200, %c0_201] : memref<4x1x32xf32, #tpu.memory_space<vmem>>, vector<1x1x32xf32>
    %402 = vector.shape_cast %401 : vector<1x1x32xf32> to vector<1x32xf32>
    %c2_202 = arith.constant 2 : index
    %c0_203 = arith.constant 0 : index
    %c0_204 = arith.constant 0 : index
    %403 = vector.load %arg19[%c2_202, %c0_203, %c0_204] : memref<4x1x32xf32, #tpu.memory_space<vmem>>, vector<1x1x32xf32>
    %404 = vector.shape_cast %403 : vector<1x1x32xf32> to vector<1x32xf32>
    %cst_205 = arith.constant dense<0.000000e+00> : vector<48xf32>
    %405 = vector.multi_reduction <add>, %400, %cst_205 [1] : vector<48x32xf32> to vector<48xf32>
    %406 = vector.shape_cast %405 : vector<48xf32> to vector<48x1xf32>
    %cst_206 = arith.constant 3.200000e+01 : f32
    %407 = vector.broadcast %cst_206 : f32 to vector<48x1xf32>
    %408 = arith.divf %406, %407 : vector<48x1xf32>
    %409 = vector.broadcast %408 : vector<48x1xf32> to vector<48x32xf32>
    %410 = arith.subf %400, %409 : vector<48x32xf32>
    %411 = arith.mulf %410, %410 : vector<48x32xf32>
    %cst_207 = arith.constant dense<0.000000e+00> : vector<48xf32>
    %412 = vector.multi_reduction <add>, %411, %cst_207 [1] : vector<48x32xf32> to vector<48xf32>
    %413 = vector.shape_cast %412 : vector<48xf32> to vector<48x1xf32>
    %cst_208 = arith.constant 3.200000e+01 : f32
    %414 = vector.broadcast %cst_208 : f32 to vector<48x1xf32>
    %415 = arith.divf %413, %414 : vector<48x1xf32>
    %416 = vector.broadcast %408 : vector<48x1xf32> to vector<48x32xf32>
    %417 = arith.subf %400, %416 : vector<48x32xf32>
    %cst_209 = arith.constant 9.99999974E-6 : f32
    %418 = vector.broadcast %cst_209 : f32 to vector<48x1xf32>
    %419 = arith.addf %415, %418 : vector<48x1xf32>
    %420 = math.rsqrt %419 : vector<48x1xf32>
    %421 = vector.broadcast %420 : vector<48x1xf32> to vector<48x32xf32>
    %422 = arith.mulf %417, %421 : vector<48x32xf32>
    %423 = vector.broadcast %402 : vector<1x32xf32> to vector<48x32xf32>
    %424 = arith.mulf %422, %423 : vector<48x32xf32>
    %425 = vector.broadcast %404 : vector<1x32xf32> to vector<48x32xf32>
    %426 = arith.addf %424, %425 : vector<48x32xf32>
    %c3 = arith.constant 3 : index
    %c0_210 = arith.constant 0 : index
    %c0_211 = arith.constant 0 : index
    %427 = vector.load %arg14[%c3, %c0_210, %c0_211] : memref<4x32x32xf32, #tpu.memory_space<vmem>>, vector<1x32x32xf32>
    %428 = vector.shape_cast %427 : vector<1x32x32xf32> to vector<32x32xf32>
    %c3_212 = arith.constant 3 : index
    %c0_213 = arith.constant 0 : index
    %c0_214 = arith.constant 0 : index
    %429 = vector.load %arg12[%c3_212, %c0_213, %c0_214] : memref<4x32x96xf32, #tpu.memory_space<vmem>>, vector<1x32x96xf32>
    %430 = vector.shape_cast %429 : vector<1x32x96xf32> to vector<32x96xf32>
    %cst_215 = arith.constant dense<0.000000e+00> : vector<48x96xf32>
    %431 = tpu.matmul %426, %430, %cst_215 {dimension_numbers = #tpu.dot_dimension_numbers<[1], [0], [0], [1], [0, 0, 1, 1], [], []>} : vector<48x32xf32>, vector<32x96xf32>, vector<48x96xf32> -> vector<48x96xf32>
    %c3_216 = arith.constant 3 : index
    %c0_217 = arith.constant 0 : index
    %c0_218 = arith.constant 0 : index
    %432 = vector.load %arg13[%c3_216, %c0_217, %c0_218] : memref<4x1x96xf32, #tpu.memory_space<vmem>>, vector<1x1x96xf32>
    %433 = vector.shape_cast %432 : vector<1x1x96xf32> to vector<1x96xf32>
    %434 = vector.broadcast %433 : vector<1x96xf32> to vector<48x96xf32>
    %435 = arith.addf %431, %434 : vector<48x96xf32>
    %436 = vector.extract_strided_slice %435 {offsets = [0, 0], sizes = [48, 32], strides = [1, 1]} : vector<48x96xf32> to vector<48x32xf32>
    %437 = vector.extract_strided_slice %435 {offsets = [0, 32], sizes = [48, 32], strides = [1, 1]} : vector<48x96xf32> to vector<48x32xf32>
    %438 = vector.extract_strided_slice %435 {offsets = [0, 64], sizes = [48, 32], strides = [1, 1]} : vector<48x96xf32> to vector<48x32xf32>
    %c3_219 = arith.constant 3 : index
    %c0_220 = arith.constant 0 : index
    %c0_221 = arith.constant 0 : index
    %439 = vector.load %arg15[%c3_219, %c0_220, %c0_221] : memref<4x1x32xf32, #tpu.memory_space<vmem>>, vector<1x1x32xf32>
    %440 = vector.shape_cast %439 : vector<1x1x32xf32> to vector<1x32xf32>
    %441 = vector.extract_strided_slice %436 {offsets = [0, 0], sizes = [48, 16], strides = [1, 1]} : vector<48x32xf32> to vector<48x16xf32>
    %442 = vector.extract_strided_slice %437 {offsets = [0, 0], sizes = [48, 16], strides = [1, 1]} : vector<48x32xf32> to vector<48x16xf32>
    %cst_222 = arith.constant dense<0.000000e+00> : vector<48x48xf32>
    %443 = tpu.matmul %441, %442, %cst_222 {dimension_numbers = #tpu.dot_dimension_numbers<[1], [1], [0], [0], [0, 0, 1, 0], [], []>} : vector<48x16xf32>, vector<48x16xf32>, vector<48x48xf32> -> vector<48x48xf32>
    %cst_223 = arith.constant 2.500000e-01 : f32
    %444 = vector.broadcast %cst_223 : f32 to vector<48x48xf32>
    %445 = arith.mulf %443, %444 : vector<48x48xf32>
    %446 = arith.addf %445, %27 : vector<48x48xf32>
    %cst_224 = arith.constant dense<0xFF800000> : vector<48xf32>
    %447 = vector.multi_reduction <maximumf>, %446, %cst_224 [1] : vector<48x48xf32> to vector<48xf32>
    %448 = vector.shape_cast %447 : vector<48xf32> to vector<48x1xf32>
    %449 = vector.broadcast %448 : vector<48x1xf32> to vector<48x48xf32>
    %450 = arith.subf %446, %449 : vector<48x48xf32>
    %451 = math.exp %450 : vector<48x48xf32>
    %cst_225 = arith.constant dense<0.000000e+00> : vector<48xf32>
    %452 = vector.multi_reduction <add>, %451, %cst_225 [1] : vector<48x48xf32> to vector<48xf32>
    %453 = vector.shape_cast %452 : vector<48xf32> to vector<48x1xf32>
    %454 = tpu.reciprocal %453 {approx = true} : vector<48x1xf32> -> vector<48x1xf32>
    %455 = vector.broadcast %454 : vector<48x1xf32> to vector<48x48xf32>
    %456 = arith.mulf %451, %455 : vector<48x48xf32>
    %457 = vector.extract_strided_slice %438 {offsets = [0, 0], sizes = [48, 16], strides = [1, 1]} : vector<48x32xf32> to vector<48x16xf32>
    %cst_226 = arith.constant dense<0.000000e+00> : vector<48x16xf32>
    %458 = tpu.matmul %456, %457, %cst_226 {dimension_numbers = #tpu.dot_dimension_numbers<[1], [0], [0], [1], [0, 0, 1, 1], [], []>} : vector<48x48xf32>, vector<48x16xf32>, vector<48x16xf32> -> vector<48x16xf32>
    %459 = vector.extract_strided_slice %428 {offsets = [0, 0], sizes = [16, 32], strides = [1, 1]} : vector<32x32xf32> to vector<16x32xf32>
    %cst_227 = arith.constant dense<0.000000e+00> : vector<48x32xf32>
    %460 = tpu.matmul %458, %459, %cst_227 {dimension_numbers = #tpu.dot_dimension_numbers<[1], [0], [0], [1], [0, 0, 1, 1], [], []>} : vector<48x16xf32>, vector<16x32xf32>, vector<48x32xf32> -> vector<48x32xf32>
    %461 = vector.broadcast %440 : vector<1x32xf32> to vector<48x32xf32>
    %462 = arith.addf %461, %460 : vector<48x32xf32>
    %463 = vector.extract_strided_slice %436 {offsets = [0, 16], sizes = [48, 16], strides = [1, 1]} : vector<48x32xf32> to vector<48x16xf32>
    %464 = vector.extract_strided_slice %437 {offsets = [0, 16], sizes = [48, 16], strides = [1, 1]} : vector<48x32xf32> to vector<48x16xf32>
    %cst_228 = arith.constant dense<0.000000e+00> : vector<48x48xf32>
    %465 = tpu.matmul %463, %464, %cst_228 {dimension_numbers = #tpu.dot_dimension_numbers<[1], [1], [0], [0], [0, 0, 1, 0], [], []>} : vector<48x16xf32>, vector<48x16xf32>, vector<48x48xf32> -> vector<48x48xf32>
    %cst_229 = arith.constant 2.500000e-01 : f32
    %466 = vector.broadcast %cst_229 : f32 to vector<48x48xf32>
    %467 = arith.mulf %465, %466 : vector<48x48xf32>
    %468 = arith.addf %467, %27 : vector<48x48xf32>
    %cst_230 = arith.constant dense<0xFF800000> : vector<48xf32>
    %469 = vector.multi_reduction <maximumf>, %468, %cst_230 [1] : vector<48x48xf32> to vector<48xf32>
    %470 = vector.shape_cast %469 : vector<48xf32> to vector<48x1xf32>
    %471 = vector.broadcast %470 : vector<48x1xf32> to vector<48x48xf32>
    %472 = arith.subf %468, %471 : vector<48x48xf32>
    %473 = math.exp %472 : vector<48x48xf32>
    %cst_231 = arith.constant dense<0.000000e+00> : vector<48xf32>
    %474 = vector.multi_reduction <add>, %473, %cst_231 [1] : vector<48x48xf32> to vector<48xf32>
    %475 = vector.shape_cast %474 : vector<48xf32> to vector<48x1xf32>
    %476 = tpu.reciprocal %475 {approx = true} : vector<48x1xf32> -> vector<48x1xf32>
    %477 = vector.broadcast %476 : vector<48x1xf32> to vector<48x48xf32>
    %478 = arith.mulf %473, %477 : vector<48x48xf32>
    %479 = vector.extract_strided_slice %438 {offsets = [0, 16], sizes = [48, 16], strides = [1, 1]} : vector<48x32xf32> to vector<48x16xf32>
    %cst_232 = arith.constant dense<0.000000e+00> : vector<48x16xf32>
    %480 = tpu.matmul %478, %479, %cst_232 {dimension_numbers = #tpu.dot_dimension_numbers<[1], [0], [0], [1], [0, 0, 1, 1], [], []>} : vector<48x48xf32>, vector<48x16xf32>, vector<48x16xf32> -> vector<48x16xf32>
    %481 = vector.extract_strided_slice %428 {offsets = [16, 0], sizes = [16, 32], strides = [1, 1]} : vector<32x32xf32> to vector<16x32xf32>
    %cst_233 = arith.constant dense<0.000000e+00> : vector<48x32xf32>
    %482 = tpu.matmul %480, %481, %cst_233 {dimension_numbers = #tpu.dot_dimension_numbers<[1], [0], [0], [1], [0, 0, 1, 1], [], []>} : vector<48x16xf32>, vector<16x32xf32>, vector<48x32xf32> -> vector<48x32xf32>
    %483 = arith.addf %462, %482 : vector<48x32xf32>
    %484 = arith.addf %426, %483 : vector<48x32xf32>
    %c3_234 = arith.constant 3 : index
    %c0_235 = arith.constant 0 : index
    %c0_236 = arith.constant 0 : index
    %485 = vector.load %arg16[%c3_234, %c0_235, %c0_236] : memref<4x1x32xf32, #tpu.memory_space<vmem>>, vector<1x1x32xf32>
    %486 = vector.shape_cast %485 : vector<1x1x32xf32> to vector<1x32xf32>
    %c3_237 = arith.constant 3 : index
    %c0_238 = arith.constant 0 : index
    %c0_239 = arith.constant 0 : index
    %487 = vector.load %arg17[%c3_237, %c0_238, %c0_239] : memref<4x1x32xf32, #tpu.memory_space<vmem>>, vector<1x1x32xf32>
    %488 = vector.shape_cast %487 : vector<1x1x32xf32> to vector<1x32xf32>
    %cst_240 = arith.constant dense<0.000000e+00> : vector<48xf32>
    %489 = vector.multi_reduction <add>, %484, %cst_240 [1] : vector<48x32xf32> to vector<48xf32>
    %490 = vector.shape_cast %489 : vector<48xf32> to vector<48x1xf32>
    %cst_241 = arith.constant 3.200000e+01 : f32
    %491 = vector.broadcast %cst_241 : f32 to vector<48x1xf32>
    %492 = arith.divf %490, %491 : vector<48x1xf32>
    %493 = vector.broadcast %492 : vector<48x1xf32> to vector<48x32xf32>
    %494 = arith.subf %484, %493 : vector<48x32xf32>
    %495 = arith.mulf %494, %494 : vector<48x32xf32>
    %cst_242 = arith.constant dense<0.000000e+00> : vector<48xf32>
    %496 = vector.multi_reduction <add>, %495, %cst_242 [1] : vector<48x32xf32> to vector<48xf32>
    %497 = vector.shape_cast %496 : vector<48xf32> to vector<48x1xf32>
    %cst_243 = arith.constant 3.200000e+01 : f32
    %498 = vector.broadcast %cst_243 : f32 to vector<48x1xf32>
    %499 = arith.divf %497, %498 : vector<48x1xf32>
    %500 = vector.broadcast %492 : vector<48x1xf32> to vector<48x32xf32>
    %501 = arith.subf %484, %500 : vector<48x32xf32>
    %cst_244 = arith.constant 9.99999974E-6 : f32
    %502 = vector.broadcast %cst_244 : f32 to vector<48x1xf32>
    %503 = arith.addf %499, %502 : vector<48x1xf32>
    %504 = math.rsqrt %503 : vector<48x1xf32>
    %505 = vector.broadcast %504 : vector<48x1xf32> to vector<48x32xf32>
    %506 = arith.mulf %501, %505 : vector<48x32xf32>
    %507 = vector.broadcast %486 : vector<1x32xf32> to vector<48x32xf32>
    %508 = arith.mulf %506, %507 : vector<48x32xf32>
    %509 = vector.broadcast %488 : vector<1x32xf32> to vector<48x32xf32>
    %510 = arith.addf %508, %509 : vector<48x32xf32>
    %c3_245 = arith.constant 3 : index
    %c0_246 = arith.constant 0 : index
    %c0_247 = arith.constant 0 : index
    %511 = vector.load %arg20[%c3_245, %c0_246, %c0_247] : memref<4x32x128xf32, #tpu.memory_space<vmem>>, vector<1x32x128xf32>
    %512 = vector.shape_cast %511 : vector<1x32x128xf32> to vector<32x128xf32>
    %cst_248 = arith.constant dense<0.000000e+00> : vector<48x128xf32>
    %513 = tpu.matmul %510, %512, %cst_248 {dimension_numbers = #tpu.dot_dimension_numbers<[1], [0], [0], [1], [0, 0, 1, 1], [], []>} : vector<48x32xf32>, vector<32x128xf32>, vector<48x128xf32> -> vector<48x128xf32>
    %c3_249 = arith.constant 3 : index
    %c0_250 = arith.constant 0 : index
    %c0_251 = arith.constant 0 : index
    %514 = vector.load %arg21[%c3_249, %c0_250, %c0_251] : memref<4x1x128xf32, #tpu.memory_space<vmem>>, vector<1x1x128xf32>
    %515 = vector.shape_cast %514 : vector<1x1x128xf32> to vector<1x128xf32>
    %516 = vector.broadcast %515 : vector<1x128xf32> to vector<48x128xf32>
    %517 = arith.addf %513, %516 : vector<48x128xf32>
    %cst_252 = arith.constant 5.000000e-01 : f32
    %518 = vector.broadcast %cst_252 : f32 to vector<48x128xf32>
    %519 = arith.mulf %518, %517 : vector<48x128xf32>
    %cst_253 = arith.constant 0.707106769 : f32
    %520 = vector.broadcast %cst_253 : f32 to vector<48x128xf32>
    %521 = arith.mulf %517, %520 : vector<48x128xf32>
    %522 = math.erf %521 : vector<48x128xf32>
    %cst_254 = arith.constant 1.000000e+00 : f32
    %523 = vector.broadcast %cst_254 : f32 to vector<48x128xf32>
    %524 = arith.addf %523, %522 : vector<48x128xf32>
    %525 = arith.mulf %519, %524 : vector<48x128xf32>
    %c3_255 = arith.constant 3 : index
    %c0_256 = arith.constant 0 : index
    %c0_257 = arith.constant 0 : index
    %526 = vector.load %arg22[%c3_255, %c0_256, %c0_257] : memref<4x128x32xf32, #tpu.memory_space<vmem>>, vector<1x128x32xf32>
    %527 = vector.shape_cast %526 : vector<1x128x32xf32> to vector<128x32xf32>
    %cst_258 = arith.constant dense<0.000000e+00> : vector<48x32xf32>
    %528 = tpu.matmul %525, %527, %cst_258 {dimension_numbers = #tpu.dot_dimension_numbers<[1], [0], [0], [1], [0, 0, 1, 1], [], []>} : vector<48x128xf32>, vector<128x32xf32>, vector<48x32xf32> -> vector<48x32xf32>
    %c3_259 = arith.constant 3 : index
    %c0_260 = arith.constant 0 : index
    %c0_261 = arith.constant 0 : index
    %529 = vector.load %arg23[%c3_259, %c0_260, %c0_261] : memref<4x1x32xf32, #tpu.memory_space<vmem>>, vector<1x1x32xf32>
    %530 = vector.shape_cast %529 : vector<1x1x32xf32> to vector<1x32xf32>
    %531 = vector.broadcast %530 : vector<1x32xf32> to vector<48x32xf32>
    %532 = arith.addf %528, %531 : vector<48x32xf32>
    %533 = arith.addf %510, %532 : vector<48x32xf32>
    %c3_262 = arith.constant 3 : index
    %c0_263 = arith.constant 0 : index
    %c0_264 = arith.constant 0 : index
    %534 = vector.load %arg18[%c3_262, %c0_263, %c0_264] : memref<4x1x32xf32, #tpu.memory_space<vmem>>, vector<1x1x32xf32>
    %535 = vector.shape_cast %534 : vector<1x1x32xf32> to vector<1x32xf32>
    %c3_265 = arith.constant 3 : index
    %c0_266 = arith.constant 0 : index
    %c0_267 = arith.constant 0 : index
    %536 = vector.load %arg19[%c3_265, %c0_266, %c0_267] : memref<4x1x32xf32, #tpu.memory_space<vmem>>, vector<1x1x32xf32>
    %537 = vector.shape_cast %536 : vector<1x1x32xf32> to vector<1x32xf32>
    %cst_268 = arith.constant dense<0.000000e+00> : vector<48xf32>
    %538 = vector.multi_reduction <add>, %533, %cst_268 [1] : vector<48x32xf32> to vector<48xf32>
    %539 = vector.shape_cast %538 : vector<48xf32> to vector<48x1xf32>
    %cst_269 = arith.constant 3.200000e+01 : f32
    %540 = vector.broadcast %cst_269 : f32 to vector<48x1xf32>
    %541 = arith.divf %539, %540 : vector<48x1xf32>
    %542 = vector.broadcast %541 : vector<48x1xf32> to vector<48x32xf32>
    %543 = arith.subf %533, %542 : vector<48x32xf32>
    %544 = arith.mulf %543, %543 : vector<48x32xf32>
    %cst_270 = arith.constant dense<0.000000e+00> : vector<48xf32>
    %545 = vector.multi_reduction <add>, %544, %cst_270 [1] : vector<48x32xf32> to vector<48xf32>
    %546 = vector.shape_cast %545 : vector<48xf32> to vector<48x1xf32>
    %cst_271 = arith.constant 3.200000e+01 : f32
    %547 = vector.broadcast %cst_271 : f32 to vector<48x1xf32>
    %548 = arith.divf %546, %547 : vector<48x1xf32>
    %549 = vector.broadcast %541 : vector<48x1xf32> to vector<48x32xf32>
    %550 = arith.subf %533, %549 : vector<48x32xf32>
    %cst_272 = arith.constant 9.99999974E-6 : f32
    %551 = vector.broadcast %cst_272 : f32 to vector<48x1xf32>
    %552 = arith.addf %548, %551 : vector<48x1xf32>
    %553 = math.rsqrt %552 : vector<48x1xf32>
    %554 = vector.broadcast %553 : vector<48x1xf32> to vector<48x32xf32>
    %555 = arith.mulf %550, %554 : vector<48x32xf32>
    %556 = vector.broadcast %535 : vector<1x32xf32> to vector<48x32xf32>
    %557 = arith.mulf %555, %556 : vector<48x32xf32>
    %558 = vector.broadcast %537 : vector<1x32xf32> to vector<48x32xf32>
    %559 = arith.addf %557, %558 : vector<48x32xf32>
    %c0_273 = arith.constant 0 : index
    %c0_274 = arith.constant 0 : index
    %560 = vector.load %arg7[%c0_273, %c0_274] : memref<8x48xf32, #tpu.memory_space<vmem>>, vector<8x48xf32>
    %c0_275 = arith.constant 0 : index
    %c0_276 = arith.constant 0 : index
    %c0_277 = arith.constant 0 : index
    %561 = vector.load %arg4[%c0_275, %c0_276, %c0_277] : memref<1x1x48xf32, #tpu.memory_space<vmem>>, vector<1x1x48xf32>
    %562 = vector.shape_cast %561 : vector<1x1x48xf32> to vector<1x48xf32>
    %563 = vector.broadcast %562 : vector<1x48xf32> to vector<8x48xf32>
    %564 = arith.mulf %560, %563 : vector<8x48xf32>
    %cst_278 = arith.constant dense<0.000000e+00> : vector<8x32xf32>
    %565 = tpu.matmul %564, %559, %cst_278 {dimension_numbers = #tpu.dot_dimension_numbers<[1], [0], [0], [1], [0, 0, 1, 1], [], []>} : vector<8x48xf32>, vector<48x32xf32>, vector<8x32xf32> -> vector<8x32xf32>
    %c0_279 = arith.constant 0 : index
    %c0_280 = arith.constant 0 : index
    %566 = vector.load %arg24[%c0_279, %c0_280] : memref<8x32xf32, #tpu.memory_space<vmem>>, vector<8x32xf32>
    tpu.vector_store %arg24[%c0_279, %c0_280], %565 {strides = array<i32>} : memref<8x32xf32, #tpu.memory_space<vmem>>, vector<8x32xf32>,
    return
  }
  func.func @transform_0(%arg0: i32) -> (i32, i32) {
    %c0_i32 = arith.constant 0 : i32
    %c0_i32_0 = arith.constant 0 : i32
    return %arg0, %c0_i32 : i32, i32
  }
  func.func @transform_1(%arg0: i32) -> (i32, i32) {
    %c0_i32 = arith.constant 0 : i32
    %c0_i32_0 = arith.constant 0 : i32
    return %arg0, %c0_i32 : i32, i32
  }
  func.func @transform_2(%arg0: i32) -> (i32, i32, i32) {
    %c0_i32 = arith.constant 0 : i32
    %c0_i32_0 = arith.constant 0 : i32
    %c0_i32_1 = arith.constant 0 : i32
    return %arg0, %c0_i32, %c0_i32_0 : i32, i32, i32
  }
  func.func @transform_3(%arg0: i32) -> (i32, i32, i32) {
    %c0_i32 = arith.constant 0 : i32
    %c0_i32_0 = arith.constant 0 : i32
    %c0_i32_1 = arith.constant 0 : i32
    return %arg0, %c0_i32, %c0_i32_0 : i32, i32, i32
  }
  func.func @transform_4(%arg0: i32) -> (i32, i32) {
    %c0_i32 = arith.constant 0 : i32
    %c0_i32_0 = arith.constant 0 : i32
    %c0_i32_1 = arith.constant 0 : i32
    return %c0_i32, %c0_i32_0 : i32, i32
  }
  func.func @transform_5(%arg0: i32) -> (i32, i32) {
    %c0_i32 = arith.constant 0 : i32
    %c0_i32_0 = arith.constant 0 : i32
    %c0_i32_1 = arith.constant 0 : i32
    return %c0_i32, %c0_i32_0 : i32, i32
  }
  func.func @transform_6(%arg0: i32) -> (i32, i32) {
    %c0_i32 = arith.constant 0 : i32
    %c0_i32_0 = arith.constant 0 : i32
    %c0_i32_1 = arith.constant 0 : i32
    return %c0_i32, %c0_i32_0 : i32, i32
  }
  func.func @transform_7(%arg0: i32) -> (i32, i32) {
    %c0_i32 = arith.constant 0 : i32
    %c0_i32_0 = arith.constant 0 : i32
    %c0_i32_1 = arith.constant 0 : i32
    return %c0_i32, %c0_i32_0 : i32, i32
  }
  func.func @transform_8(%arg0: i32) -> (i32, i32) {
    %c0_i32 = arith.constant 0 : i32
    %c0_i32_0 = arith.constant 0 : i32
    %c0_i32_1 = arith.constant 0 : i32
    return %c0_i32, %c0_i32_0 : i32, i32
  }
  func.func @transform_9(%arg0: i32) -> (i32, i32) {
    %c0_i32 = arith.constant 0 : i32
    %c0_i32_0 = arith.constant 0 : i32
    %c0_i32_1 = arith.constant 0 : i32
    return %c0_i32, %c0_i32_0 : i32, i32
  }
  func.func @transform_10(%arg0: i32) -> (i32, i32) {
    %c0_i32 = arith.constant 0 : i32
    %c0_i32_0 = arith.constant 0 : i32
    %c0_i32_1 = arith.constant 0 : i32
    return %c0_i32, %c0_i32_0 : i32, i32
  }
  func.func @transform_11(%arg0: i32) -> (i32, i32, i32) {
    %c0_i32 = arith.constant 0 : i32
    %c0_i32_0 = arith.constant 0 : i32
    %c0_i32_1 = arith.constant 0 : i32
    %c0_i32_2 = arith.constant 0 : i32
    return %c0_i32, %c0_i32_0, %c0_i32_1 : i32, i32, i32
  }
  func.func @transform_12(%arg0: i32) -> (i32, i32, i32) {
    %c0_i32 = arith.constant 0 : i32
    %c0_i32_0 = arith.constant 0 : i32
    %c0_i32_1 = arith.constant 0 : i32
    %c0_i32_2 = arith.constant 0 : i32
    return %c0_i32, %c0_i32_0, %c0_i32_1 : i32, i32, i32
  }
  func.func @transform_13(%arg0: i32) -> (i32, i32, i32) {
    %c0_i32 = arith.constant 0 : i32
    %c0_i32_0 = arith.constant 0 : i32
    %c0_i32_1 = arith.constant 0 : i32
    %c0_i32_2 = arith.constant 0 : i32
    return %c0_i32, %c0_i32_0, %c0_i32_1 : i32, i32, i32
  }
  func.func @transform_14(%arg0: i32) -> (i32, i32, i32) {
    %c0_i32 = arith.constant 0 : i32
    %c0_i32_0 = arith.constant 0 : i32
    %c0_i32_1 = arith.constant 0 : i32
    %c0_i32_2 = arith.constant 0 : i32
    return %c0_i32, %c0_i32_0, %c0_i32_1 : i32, i32, i32
  }
  func.func @transform_15(%arg0: i32) -> (i32, i32, i32) {
    %c0_i32 = arith.constant 0 : i32
    %c0_i32_0 = arith.constant 0 : i32
    %c0_i32_1 = arith.constant 0 : i32
    %c0_i32_2 = arith.constant 0 : i32
    return %c0_i32, %c0_i32_0, %c0_i32_1 : i32, i32, i32
  }
  func.func @transform_16(%arg0: i32) -> (i32, i32, i32) {
    %c0_i32 = arith.constant 0 : i32
    %c0_i32_0 = arith.constant 0 : i32
    %c0_i32_1 = arith.constant 0 : i32
    %c0_i32_2 = arith.constant 0 : i32
    return %c0_i32, %c0_i32_0, %c0_i32_1 : i32, i32, i32
  }
  func.func @transform_17(%arg0: i32) -> (i32, i32, i32) {
    %c0_i32 = arith.constant 0 : i32
    %c0_i32_0 = arith.constant 0 : i32
    %c0_i32_1 = arith.constant 0 : i32
    %c0_i32_2 = arith.constant 0 : i32
    return %c0_i32, %c0_i32_0, %c0_i32_1 : i32, i32, i32
  }
  func.func @transform_18(%arg0: i32) -> (i32, i32, i32) {
    %c0_i32 = arith.constant 0 : i32
    %c0_i32_0 = arith.constant 0 : i32
    %c0_i32_1 = arith.constant 0 : i32
    %c0_i32_2 = arith.constant 0 : i32
    return %c0_i32, %c0_i32_0, %c0_i32_1 : i32, i32, i32
  }
  func.func @transform_19(%arg0: i32) -> (i32, i32, i32) {
    %c0_i32 = arith.constant 0 : i32
    %c0_i32_0 = arith.constant 0 : i32
    %c0_i32_1 = arith.constant 0 : i32
    %c0_i32_2 = arith.constant 0 : i32
    return %c0_i32, %c0_i32_0, %c0_i32_1 : i32, i32, i32
  }
  func.func @transform_20(%arg0: i32) -> (i32, i32, i32) {
    %c0_i32 = arith.constant 0 : i32
    %c0_i32_0 = arith.constant 0 : i32
    %c0_i32_1 = arith.constant 0 : i32
    %c0_i32_2 = arith.constant 0 : i32
    return %c0_i32, %c0_i32_0, %c0_i32_1 : i32, i32, i32
  }
  func.func @transform_21(%arg0: i32) -> (i32, i32, i32) {
    %c0_i32 = arith.constant 0 : i32
    %c0_i32_0 = arith.constant 0 : i32
    %c0_i32_1 = arith.constant 0 : i32
    %c0_i32_2 = arith.constant 0 : i32
    return %c0_i32, %c0_i32_0, %c0_i32_1 : i32, i32, i32
  }
  func.func @transform_22(%arg0: i32) -> (i32, i32, i32) {
    %c0_i32 = arith.constant 0 : i32
    %c0_i32_0 = arith.constant 0 : i32
    %c0_i32_1 = arith.constant 0 : i32
    %c0_i32_2 = arith.constant 0 : i32
    return %c0_i32, %c0_i32_0, %c0_i32_1 : i32, i32, i32
  }
  func.func @transform_23(%arg0: i32) -> (i32, i32) {
    %c0_i32 = arith.constant 0 : i32
    %c0_i32_0 = arith.constant 0 : i32
    return %arg0, %c0_i32 : i32, i32
  }
}

</mosaic_0001>

<bundles_post_ra>
// kernel: tile.19
= control target key start
LH: loop header
LB: loop body
LE: loop exit
PB: predicated region body
PF: predicated region fallthrough
CT: control target
= control target key end

     0   :  { %vm3_vm0 = vcmask 261120   ;;  %s120_s0 = inlined_call_operand.vmem [shape: f32[8,6,32], index: 0, kind: input, shape index: {}]   ;;  %s121_s1 = inlined_call_operand.vmem [shape: f32[48,32], index: 1, kind: output, shape index: {}]  }
   0x1   :  { %v2_v0 = vld [vmem:[%s120_s0] sm:$0x3f]   ;;  %v40_v1 = vld [vmem:[%s120_s0 + $0x8] sm:$0x3f]   ;;  %v42_v2 = vld [vmem:[%s120_s0 + $0x10] sm:$0x3f]  }
   0x2   :  { %4 = vst.msk [vmem:[%s121_s1] sm:$0x3f] %vm3_vm0, %v2_v0   ;;  %41 = vst.msk [vmem:[%s121_s1 + $0x6] sm:$0x3f] %vm3_vm0, %v40_v1   ;;  %v44_v3 = vld [vmem:[%s120_s0 + $0x18] sm:$0x3f]  }
   0x3   :  { %43 = vst.msk [vmem:[%s121_s1 + $0xc] sm:$0x3f] %vm3_vm0, %v42_v2   ;;  %v46_v4 = vld [vmem:[%s120_s0 + $0x20] sm:$0x3f]   ;;  %v48_v5 = vld [vmem:[%s120_s0 + $0x28] sm:$0x3f]  }
   0x4   :  { %45 = vst.msk [vmem:[%s121_s1 + $0x12] sm:$0x3f] %vm3_vm0, %v44_v3   ;;  %47 = vst.msk [vmem:[%s121_s1 + $0x18] sm:$0x3f] %vm3_vm0, %v46_v4   ;;  %v50_v6 = vld [vmem:[%s120_s0 + $0x30] sm:$0x3f]  }
   0x5   :  { %49 = vst.msk [vmem:[%s121_s1 + $0x1e] sm:$0x3f] %vm3_vm0, %v48_v5   ;;  %v52_v7 = vld [vmem:[%s120_s0 + $0x38] sm:$0x3f]   ;;  %51 = vst.msk [vmem:[%s121_s1 + $0x24] sm:$0x3f] %vm3_vm0, %v50_v6  }
   0x6   :  { %53 = vst.msk [vmem:[%s121_s1 + $0x2a] sm:$0x3f] %vm3_vm0, %v52_v7  }

// kernel: vision_encoder_forward.1
= control target key start
LH: loop header
LB: loop body
LE: loop exit
PB: predicated region body
PF: predicated region fallthrough
CT: control target
= control target key end

     0   :  { %v10131_v3 = vmov 0   ;;  %vm504_vm0 = vcmask 64512   ;;  %vm618_vm1 = vcmask 326656   ;;  %vm778_vm2 = vcmask 261120   ;;  %s10135_s29 = smov 112   ;;  %s12487_s9 = inlined_call_operand.vmem [shape: f32[768,32], index: 9, kind: input, shape index: {}]   ;;  %s12488_s0 = inlined_call_operand.vmem [shape: f32[40,768], index: 0, kind: input, shape index: {}]   ;;  %s12489_s1 = inlined_call_operand.vmem [shape: f32[8,2], index: 1, kind: input, shape index: {}]   ;;  %s12490_s5 = inlined_call_operand.vmem [shape: f32[48,8], index: 5, kind: input, shape index: {}]   ;;  %s12491_s10 = inlined_call_operand.vmem [shape: f32[2,32], index: 10, kind: input, shape index: {}]   ;;  %s12492_s4 = inlined_call_operand.vmem [shape: f32[48,40], index: 4, kind: input, shape index: {}]   ;;  %s12493_s11 = inlined_call_operand.vmem [shape: f32[4,32,96], index: 11, kind: input, shape index: {}]   ;;  %s12494_s8 = inlined_call_operand.vmem [shape: f32[48,32], index: 8, kind: input, shape index: {}]   ;;  %s12495_s12 = inlined_call_operand.vmem [shape: f32[4,1,96], index: 12, kind: input, shape index: {}]   ;;  %s12496_s2 = inlined_call_operand.vmem [shape: f32[1,1,48], index: 2, kind: input, shape index: {}]   ;;  %s12497_s7 = inlined_call_operand.vmem [shape: f32[48,48], index: 7, kind: input, shape index: {}]   ;;  %s12498_s13 = inlined_call_operand.vmem [shape: f32[4,32,32], index: 13, kind: input, shape index: {}]   ;;  %s12499_s14 = inlined_call_operand.vmem [shape: f32[4,1,32], index: 14, kind: input, shape index: {}]   ;;  %s12500_s19 = inlined_call_operand.vmem [shape: f32[4,32,128], index: 19, kind: input, shape index: {}]   ;;  %s12501_s21 = inlined_call_operand.vmem [shape: f32[4,128,32], index: 21, kind: input, shape index: {}]   ;;  %s12502_s15 = inlined_call_operand.vmem [shape: f32[4,1,32], index: 15, kind: input, shape index: {}]   ;;  %s12503_s16 = inlined_call_operand.vmem [shape: f32[4,1,32], index: 16, kind: input, shape index: {}]   ;;  %s12504_s20 = inlined_call_operand.vmem [shape: f32[4,1,128], index: 20, kind: input, shape index: {}]   ;;  %s12505_s22 = inlined_call_operand.vmem [shape: f32[4,1,32], index: 22, kind: input, shape index: {}]   ;;  %s12506_s17 = inlined_call_operand.vmem [shape: f32[4,1,32], index: 17, kind: input, shape index: {}]   ;;  %s12507_s18 = inlined_call_operand.vmem [shape: f32[4,1,32], index: 18, kind: input, shape index: {}]   ;;  %s12508_s3 = inlined_call_operand.vmem [shape: f32[1,1,48], index: 3, kind: input, shape index: {}]   ;;  %s12509_s6 = inlined_call_operand.vmem [shape: f32[8,48], index: 6, kind: input, shape index: {}]   ;;  %s12510_s23 = inlined_call_operand.vmem [shape: f32[8,32], index: 23, kind: output, shape index: {}]  }
   0x1   :  { %12517 = sst [smem:[#allocation2_spill]] %s12487_s9  ;;  %9553 = vset.pattern.permute.xlu0 %v10131_v3  ;;  %vm911_vm3 = vcmask 130048   ;;  %vm1043_vm5 = vcmask 392192   ;;  %s10137_s9 = smov 48   ;;  %vm10139_vm6 = vmmov 0  }
   0x2   :  { %12518 = sst [smem:[#allocation3_spill]] %s12488_s0  ;;  %s12525_s24 = sld [smem:[#allocation2_spill]]  ;;  %vm10793_vm4 = vmpackc.low %vm911_vm3, %vm911_vm3 }
   0x3   :  { %12519 = sst [smem:[#allocation4_spill]] %s12489_s1 }
   0x4   :  { %12520 = sst [smem:[#allocation5_spill]] %s12490_s5 }
   0x5   :  { %12521 = sst [smem:[#allocation6_spill]] %s12491_s10  ;;  %s12526_s10 = sld [smem:[#allocation3_spill]] }
   0x6   :  { %12522 = sst [smem:[#allocation7_spill]] %s12492_s4  ;;  %s12527_s4 = sld [smem:[#allocation4_spill]] }
   0x7   :  { %12523 = sst [smem:[#allocation8_spill]] %s12493_s11  ;;  %s12528_s25 = sld [smem:[#allocation5_spill]] }
   0x8   :  { %12524 = sst [smem:[#allocation9_spill]] %s12494_s8  ;;  %v120_v0 = vld [vmem:[%s12525_s24 + $0x80] sm:$0xff]  ;;  %v121_v1 = vld [vmem:[%s12525_s24 + $0x88] sm:$0xff]  ;;  %v122_v12 = vld [vmem:[%s12525_s24 + $0x90] sm:$0xff]  ;;  %s12529_s0 = sld [smem:[#allocation6_spill]] }
   0x9   :  { %v152_v2 = vld [vmem:[%s12525_s24 + $0x180] sm:$0xff]  ;;  %v8912_v4 = vpack.c.bf16 %v121_v1, %v120_v0  ;;  %v153_v5 = vld [vmem:[%s12525_s24 + $0x188] sm:$0xff]  ;;  %v123_v14 = vld [vmem:[%s12525_s24 + $0x98] sm:$0xff]  ;;  %s12532_s28 = sld [smem:[#allocation9_spill]]  ;;  %s10133_s8 = smov 80  }
   0xa   :  { %v104_v6 = vld [vmem:[%s12525_s24] sm:$0xff]  ;;  %v105_v7 = vld [vmem:[%s12525_s24 + $0x8] sm:$0xff]  ;;  %v8944_v8 = vpack.c.bf16 %v153_v5, %v152_v2  ;;  %v154_v15 = vld [vmem:[%s12525_s24 + $0x190] sm:$0xff]  ;;  %v8916_v17 = vpack.c.bf16 %v123_v14, %v122_v12 }
   0xb   :  { %v8914_v9 = vpack.c.bf16 %v105_v7, %v104_v6  ;;  %v136_v10 = vld [vmem:[%s12525_s24 + $0x100] sm:$0xff]  ;;  %v137_v11 = vld [vmem:[%s12525_s24 + $0x108] sm:$0xff]  ;;  %8913 = vmatprep.subr.bf16.mxu0 %v8912_v4  ;;  %v155_v16 = vld [vmem:[%s12525_s24 + $0x198] sm:$0xff] }
   0xc   :  { %v8946_v13 = vpack.c.bf16 %v137_v11, %v136_v10  ;;  %8945 = vmatprep.subr.bf16.mxu1 %v8944_v8  ;;  %v8948_v18 = vpack.c.bf16 %v155_v16, %v154_v15  ;;  %v106_v19 = vld [vmem:[%s12525_s24 + $0x10] sm:$0xff]  ;;  %v107_v20 = vld [vmem:[%s12525_s24 + $0x18] sm:$0xff]  ;;  %v124_v24 = vld [vmem:[%s12525_s24 + $0xa0] sm:$0xff] }
   0xd   :  { %8915 = vmatpush3.bf16.msra.mxu0 %v8914_v9  ;;  %v138_v21 = vld [vmem:[%s12525_s24 + $0x110] sm:$0xff]  ;;  %v8918_v22 = vpack.c.bf16 %v107_v20, %v106_v19  ;;  %v139_v23 = vld [vmem:[%s12525_s24 + $0x118] sm:$0xff]  ;;  %v125_v25 = vld [vmem:[%s12525_s24 + $0xa8] sm:$0xff] }
   0xe   :  { %8947 = vmatpush3.bf16.msra.mxu1 %v8946_v13  ;;  %8917 = vmatprep.subr.bf16.mxu0 %v8916_v17  ;;  %v8950_v26 = vpack.c.bf16 %v139_v23, %v138_v21  ;;  %v8920_v27 = vpack.c.bf16 %v125_v25, %v124_v24  ;;  %v156_v28 = vld [vmem:[%s12525_s24 + $0x1a0] sm:$0xff]  ;;  %v157_v29 = vld [vmem:[%s12525_s24 + $0x1a8] sm:$0xff]  ;;  %v126_v36 = vld [vmem:[%s12525_s24 + $0xb0] sm:$0xff] }
   0xf   :  { %8949 = vmatprep.subr.bf16.mxu1 %v8948_v18  ;;  %v108_v30 = vld [vmem:[%s12525_s24 + $0x20] sm:$0xff]  ;;  %v8952_v31 = vpack.c.bf16 %v157_v29, %v156_v28  ;;  %v109_v32 = vld [vmem:[%s12525_s24 + $0x28] sm:$0xff]  ;;  %v127_v37 = vld [vmem:[%s12525_s24 + $0xb8] sm:$0xff] }
  0x10   :  { %v140_v33 = vld [vmem:[%s12525_s24 + $0x120] sm:$0xff]  ;;  %v141_v34 = vld [vmem:[%s12525_s24 + $0x128] sm:$0xff]  ;;  %v8922_v35 = vpack.c.bf16 %v109_v32, %v108_v30  ;;  %v158_v38 = vld [vmem:[%s12525_s24 + $0x1b0] sm:$0xff]  ;;  %v8924_v40 = vpack.c.bf16 %v127_v37, %v126_v36 }
  0x11   :  { %8919 = vmatpush3.bf16.msra.mxu0 %v8918_v22  ;;  %v8954_v39 = vpack.c.bf16 %v141_v34, %v140_v33  ;;  %v159_v41 = vld [vmem:[%s12525_s24 + $0x1b8] sm:$0xff]  ;;  %v110_v42 = vld [vmem:[%s12525_s24 + $0x30] sm:$0xff]  ;;  %v128_v47 = vld [vmem:[%s12525_s24 + $0xc0] sm:$0xff] }
  0x12   :  { %8951 = vmatpush3.bf16.msra.mxu1 %v8950_v26  ;;  %8921 = vmatprep.subr.bf16.mxu0 %v8920_v27  ;;  %v111_v43 = vld [vmem:[%s12525_s24 + $0x38] sm:$0xff]  ;;  %v8956_v44 = vpack.c.bf16 %v159_v41, %v158_v38  ;;  %v142_v45 = vld [vmem:[%s12525_s24 + $0x130] sm:$0xff]  ;;  %v129_v48 = vld [vmem:[%s12525_s24 + $0xc8] sm:$0xff] }
  0x13   :  { %8953 = vmatprep.subr.bf16.mxu1 %v8952_v31  ;;  %v143_v46 = vld [vmem:[%s12525_s24 + $0x138] sm:$0xff]  ;;  %v160_v49 = vld [vmem:[%s12525_s24 + $0x1c0] sm:$0xff]  ;;  %v161_v50 = vld [vmem:[%s12525_s24 + $0x1c8] sm:$0xff]  ;;  %v8926_v51 = vpack.c.bf16 %v111_v43, %v110_v42  ;;  %v8928_v53 = vpack.c.bf16 %v129_v48, %v128_v47 }
  0x14   :  { %v8958_v52 = vpack.c.bf16 %v143_v46, %v142_v45  ;;  %v112_v54 = vld [vmem:[%s12525_s24 + $0x40] sm:$0xff]  ;;  %v113_v55 = vld [vmem:[%s12525_s24 + $0x48] sm:$0xff]  ;;  %v8960_v57 = vpack.c.bf16 %v161_v50, %v160_v49  ;;  %v130_v59 = vld [vmem:[%s12525_s24 + $0xd0] sm:$0xff] }
  0x15   :  { %8923 = vmatpush3.bf16.msra.mxu0 %v8922_v35  ;;  %v144_v56 = vld [vmem:[%s12525_s24 + $0x140] sm:$0xff]  ;;  %v145_v58 = vld [vmem:[%s12525_s24 + $0x148] sm:$0xff]  ;;  %v131_v60 = vld [vmem:[%s12525_s24 + $0xd8] sm:$0xff]  ;;  %v8930_v63 = vpack.c.bf16 %v113_v55, %v112_v54 }
  0x16   :  { %8955 = vmatpush3.bf16.msra.mxu1 %v8954_v39  ;;  %8925 = vmatprep.subr.bf16.mxu0 %v8924_v40  ;;  %v162_v61 = vld [vmem:[%s12525_s24 + $0x1d0] sm:$0xff]  ;;  %v163_v62 = vld [vmem:[%s12525_s24 + $0x1d8] sm:$0xff]  ;;  %v8962_v0 = vpack.c.bf16 %v145_v58, %v144_v56  ;;  %v8932_v1 = vpack.c.bf16 %v131_v60, %v130_v59  ;;  %v132_v7 = vld [vmem:[%s12525_s24 + $0xe0] sm:$0xff] }
  0x17   :  { %8957 = vmatprep.subr.bf16.mxu1 %v8956_v44  ;;  %v114_v2 = vld [vmem:[%s12525_s24 + $0x50] sm:$0xff]  ;;  %v115_v3 = vld [vmem:[%s12525_s24 + $0x58] sm:$0xff]  ;;  %v8964_v5 = vpack.c.bf16 %v163_v62, %v162_v61  ;;  %v133_v8 = vld [vmem:[%s12525_s24 + $0xe8] sm:$0xff] }
  0x18   :  { %v146_v4 = vld [vmem:[%s12525_s24 + $0x150] sm:$0xff]  ;;  %v147_v6 = vld [vmem:[%s12525_s24 + $0x158] sm:$0xff]  ;;  %v164_v9 = vld [vmem:[%s12525_s24 + $0x1e0] sm:$0xff]  ;;  %v8934_v11 = vpack.c.bf16 %v115_v3, %v114_v2  ;;  %v8936_v15 = vpack.c.bf16 %v133_v8, %v132_v7 }
  0x19   :  { %8927 = vmatpush3.bf16.msra.mxu0 %v8926_v51  ;;  %v165_v10 = vld [vmem:[%s12525_s24 + $0x1e8] sm:$0xff]  ;;  %v116_v12 = vld [vmem:[%s12525_s24 + $0x60] sm:$0xff]  ;;  %v8966_v14 = vpack.c.bf16 %v147_v6, %v146_v4  ;;  %v77_v18 = vld [vmem:[%s12526_s10 + $0x18] sm:$0xff] }
  0x1a   :  { %8959 = vmatpush3.bf16.msra.mxu1 %v8958_v52  ;;  %8929 = vmatprep.subr.bf16.mxu0 %v8928_v53  ;;  %v117_v13 = vld [vmem:[%s12525_s24 + $0x68] sm:$0xff]  ;;  %v148_v16 = vld [vmem:[%s12525_s24 + $0x160] sm:$0xff]  ;;  %v8968_v19 = vpack.c.bf16 %v165_v10, %v164_v9  ;;  %v134_v21 = vld [vmem:[%s12525_s24 + $0xf0] sm:$0xff] }
  0x1b   :  { %8961 = vmatprep.subr.bf16.mxu1 %v8960_v57  ;;  %v75_v17 = vld [vmem:[%s12526_s10 + $0x8] sm:$0xff]  ;;  %v135_v22 = vld [vmem:[%s12525_s24 + $0xf8] sm:$0xff]  ;;  %v166_v23 = vld [vmem:[%s12525_s24 + $0x1f0] sm:$0xff]  ;;  %354 = vmatprep.mubr.f32.mxu1 %v77_v18  ;;  %v8938_v25 = vpack.c.bf16 %v117_v13, %v116_v12 }
  0x1c   :  { %v149_v20 = vld [vmem:[%s12525_s24 + $0x168] sm:$0xff]  ;;  %264 = vmatprep.mubr.f32.mxu0 %v75_v17  ;;  %v167_v24 = vld [vmem:[%s12525_s24 + $0x1f8] sm:$0xff]  ;;  %v8940_v27 = vpack.c.bf16 %v135_v22, %v134_v21  ;;  %v118_v28 = vld [vmem:[%s12525_s24 + $0x70] sm:$0xff] }
  0x1d   :  { %8931 = vmatpush3.bf16.msra.mxu0 %v8930_v63  ;;  %v8970_v26 = vpack.c.bf16 %v149_v20, %v148_v16  ;;  %v119_v29 = vld [vmem:[%s12525_s24 + $0x78] sm:$0xff]  ;;  %v150_v30 = vld [vmem:[%s12525_s24 + $0x170] sm:$0xff]  ;;  %v8972_v31 = vpack.c.bf16 %v167_v24, %v166_v23  ;;  %v184_v33 = vld [vmem:[%s12525_s24 + $0x280] sm:$0xff] }
  0x1e   :  { %8963 = vmatpush3.bf16.msra.mxu1 %v8962_v0  ;;  %8933 = vmatprep.subr.bf16.mxu0 %v8932_v1  ;;  %v151_v32 = vld [vmem:[%s12525_s24 + $0x178] sm:$0xff]  ;;  %v185_v34 = vld [vmem:[%s12525_s24 + $0x288] sm:$0xff]  ;;  %v8942_v35 = vpack.c.bf16 %v119_v29, %v118_v28  ;;  %v168_v38 = vld [vmem:[%s12525_s24 + $0x200] sm:$0xff] }
  0x1f   :  { %8965 = vmatprep.subr.bf16.mxu1 %v8964_v5  ;;  %v8974_v36 = vpack.c.bf16 %v151_v32, %v150_v30  ;;  %v8976_v37 = vpack.c.bf16 %v185_v34, %v184_v33  ;;  %v169_v39 = vld [vmem:[%s12525_s24 + $0x208] sm:$0xff]  ;;  %v186_v40 = vld [vmem:[%s12525_s24 + $0x290] sm:$0xff]  ;;  %v187_v41 = vld [vmem:[%s12525_s24 + $0x298] sm:$0xff] }
  0x20   :  { %v74_v42 = vld [vmem:[%s12526_s10] sm:$0xff]  ;;  %v8978_v43 = vpack.c.bf16 %v169_v39, %v168_v38  ;;  %v76_v44 = vld [vmem:[%s12526_s10 + $0x10] sm:$0xff]  ;;  %v8980_v45 = vpack.c.bf16 %v187_v41, %v186_v40  ;;  %v171_v47 = vld [vmem:[%s12525_s24 + $0x218] sm:$0xff] }
  0x21   :  { %8935 = vmatpush3.bf16.msra.mxu0 %v8934_v11  ;;  %v170_v46 = vld [vmem:[%s12525_s24 + $0x210] sm:$0xff]  ;;  %v188_v48 = vld [vmem:[%s12525_s24 + $0x2a0] sm:$0xff]  ;;  %v189_v49 = vld [vmem:[%s12525_s24 + $0x2a8] sm:$0xff] }
  0x22   :  { %8967 = vmatpush3.bf16.msra.mxu1 %v8966_v14  ;;  %8937 = vmatprep.subr.bf16.mxu0 %v8936_v15  ;;  %v81_v50 = vld [vmem:[%s12526_s10 + $0x38] sm:$0xff]  ;;  %v83_v51 = vld [vmem:[%s12526_s10 + $0x48] sm:$0xff]  ;;  %v8982_v52 = vpack.c.bf16 %v171_v47, %v170_v46  ;;  %v80_v53 = vld [vmem:[%s12526_s10 + $0x30] sm:$0xff]  ;;  %v8984_v54 = vpack.c.bf16 %v189_v49, %v188_v48  ;;  %v477_v49 = vlaneseq }
  0x23   :  { %8969 = vmatprep.subr.bf16.mxu1 %v8968_v19  ;;  %v172_v55 = vld [vmem:[%s12525_s24 + $0x220] sm:$0xff]  ;;  %v173_v56 = vld [vmem:[%s12525_s24 + $0x228] sm:$0xff]  ;;  %v190_v58 = vld [vmem:[%s12525_s24 + $0x2b0] sm:$0xff]  ;;  %v10132_v19 = vmov 1  }
  0x24   :  { %v82_v57 = vld [vmem:[%s12526_s10 + $0x40] sm:$0xff]  ;;  %v191_v59 = vld [vmem:[%s12525_s24 + $0x2b8] sm:$0xff]  ;;  %v87_v60 = vld [vmem:[%s12526_s10 + $0x68] sm:$0xff]  ;;  %v8986_v62 = vpack.c.bf16 %v173_v56, %v172_v55 }
  0x25   :  { %8939 = vmatpush3.bf16.msra.mxu0 %v8938_v25  ;;  %v89_v61 = vld [vmem:[%s12526_s10 + $0x78] sm:$0xff]  ;;  %v174_v63 = vld [vmem:[%s12525_s24 + $0x230] sm:$0xff]  ;;  %v86_v0 = vld [vmem:[%s12526_s10 + $0x60] sm:$0xff]  ;;  %v8988_v1 = vpack.c.bf16 %v191_v59, %v190_v58 }
  0x26   :  { %8971 = vmatpush3.bf16.msra.mxu1 %v8970_v26  ;;  %8941 = vmatprep.subr.bf16.mxu0 %v8940_v27  ;;  %v175_v2 = vld [vmem:[%s12525_s24 + $0x238] sm:$0xff]  ;;  %v192_v3 = vld [vmem:[%s12525_s24 + $0x2c0] sm:$0xff]  ;;  %v88_v4 = vld [vmem:[%s12526_s10 + $0x70] sm:$0xff] }
  0x27   :  { %8973 = vmatprep.subr.bf16.mxu1 %v8972_v31  ;;  %v193_v5 = vld [vmem:[%s12525_s24 + $0x2c8] sm:$0xff]  ;;  %v93_v6 = vld [vmem:[%s12526_s10 + $0x98] sm:$0xff]  ;;  %v470_v7 = vld [vmem:[%s12527_s4] sm:$0xff]  ;;  %v8990_v9 = vpack.c.bf16 %v175_v2, %v174_v63  ;;  %s12530_s4 = sld [smem:[#allocation7_spill]] }
  0x28   :  { %v95_v8 = vld [vmem:[%s12526_s10 + $0xa8] sm:$0xff]  ;;  %474 = vperm.xlu0 %9553, %v470_v7   ;;  %v92_v10 = vld [vmem:[%s12526_s10 + $0x90] sm:$0xff]  ;;  %v8992_v11 = vpack.c.bf16 %v193_v5, %v192_v3  ;;  %v176_v12 = vld [vmem:[%s12525_s24 + $0x240] sm:$0xff] }
  0x29   :  { %8943 = vmatpush3.bf16.msra.mxu0 %v8942_v35  ;;  %v177_v13 = vld [vmem:[%s12525_s24 + $0x248] sm:$0xff]  ;;  %v94_v14 = vld [vmem:[%s12526_s10 + $0xa0] sm:$0xff]  ;;  %v194_v15 = vld [vmem:[%s12525_s24 + $0x2d0] sm:$0xff] }
  0x2a   :  { %8975 = vmatpush3.bf16.msra.mxu1 %v8974_v36  ;;  %8977 = vmatprep.subr.bf16.mxu0 %v8976_v37  ;;  %v195_v16 = vld [vmem:[%s12525_s24 + $0x2d8] sm:$0xff]  ;;  %v99_v17 = vld [vmem:[%s12526_s10 + $0xc8] sm:$0xff]  ;;  %v8994_v20 = vpack.c.bf16 %v177_v13, %v176_v12  ;;  %v98_v21 = vld [vmem:[%s12526_s10 + $0xc0] sm:$0xff] }
  0x2b   :  { %v101_v18 = vld [vmem:[%s12526_s10 + $0xd8] sm:$0xff]  ;;  %v8996_v22 = vpack.c.bf16 %v195_v16, %v194_v15  ;;  %v178_v23 = vld [vmem:[%s12525_s24 + $0x250] sm:$0xff]  ;;  %v196_v26 = vld [vmem:[%s12525_s24 + $0x2e0] sm:$0xff] }
  0x2c   :  { %265 = vmatmul.mubr.f32.vlgmr.msra.gmra.mrb[0].mxu0 %v74_v42  ;;  %9554 = vset.pattern.permute.xlu0 %v10132_v19  ;;  %v179_v24 = vld [vmem:[%s12525_s24 + $0x258] sm:$0xff]  ;;  %v100_v25 = vld [vmem:[%s12526_s10 + $0xd0] sm:$0xff]  ;;  %v197_v27 = vld [vmem:[%s12525_s24 + $0x2e8] sm:$0xff] }
  0x2d   :  { %355 = vmatmul.mubr.f32.vlgmr.msra.gmra.mrb[0].mxu1 %v76_v44  ;;  %8979 = vmatpush3.bf16.msra.mxu0 %v8978_v43  ;;  %v79_v28 = vld [vmem:[%s12526_s10 + $0x28] sm:$0xff]  ;;  %v8998_v29 = vpack.c.bf16 %v179_v24, %v178_v23  ;;  %v9000_v30 = vpack.c.bf16 %v197_v27, %v196_v26  ;;  %v180_v31 = vld [vmem:[%s12525_s24 + $0x260] sm:$0xff]  ;;  %v198_v33 = vld [vmem:[%s12525_s24 + $0x2f0] sm:$0xff] }
  0x2e   :  { %8981 = vmatprep.subr.bf16.mxu0 %v8980_v45  ;;  %269 = vmatprep.mubr.f32.mxu0 %v81_v50  ;;  %v181_v32 = vld [vmem:[%s12525_s24 + $0x268] sm:$0xff]  ;;  %v199_v34 = vld [vmem:[%s12525_s24 + $0x2f8] sm:$0xff]  ;;  %v182_v37 = vld [vmem:[%s12525_s24 + $0x270] sm:$0xff] }
  0x2f   :  { %359 = vmatprep.mubr.f32.mxu1 %v83_v51  ;;  %483 = vperm.xlu0 %9554, %v470_v7   ;;  %v9002_v35 = vpack.c.bf16 %v181_v32, %v180_v31  ;;  %v9004_v36 = vpack.c.bf16 %v199_v34, %v198_v33  ;;  %v183_v38 = vld [vmem:[%s12525_s24 + $0x278] sm:$0xff]  ;;  %v78_v40 = vld [vmem:[%s12526_s10 + $0x20] sm:$0xff]  ;;  %v84_v42 = vld [vmem:[%s12526_s10 + $0x50] sm:$0xff]  ;;  %v478_v51 = vshrl.u32 %v477_v49, 7 }
  0x30   :  { %270 = vmatmul.mubr.f32.gmra.mrb[2].mxu0 %v80_v53  ;;  %v9006_v39 = vpack.c.bf16 %v183_v38, %v182_v37  ;;  %v85_v41 = vld [vmem:[%s12526_s10 + $0x58] sm:$0xff]  ;;  %v91_v43 = vld [vmem:[%s12526_s10 + $0x88] sm:$0xff]  ;;  %v90_v44 = vld [vmem:[%s12526_s10 + $0x80] sm:$0xff] }
  0x31   :  { %8983 = vmatpush3.bf16.msra.mxu0 %v8982_v52  ;;  %360 = vmatmul.mubr.f32.gmra.mrb[2].mxu1 %v82_v57  ;;  %v97_v45 = vld [vmem:[%s12526_s10 + $0xb8] sm:$0xff]  ;;  %v96_v46 = vld [vmem:[%s12526_s10 + $0xb0] sm:$0xff]  ;;  %v103_v47 = vld [vmem:[%s12526_s10 + $0xe8] sm:$0xff]  ;;  %v479_v52 = vsub.s32 0, %v478_v51 }
  0x32   :  { %8985 = vmatprep.subr.bf16.mxu0 %v8984_v54  ;;  %274 = vmatprep.mubr.f32.mxu0 %v87_v60  ;;  %v102_v48 = vld [vmem:[%s12526_s10 + $0xe0] sm:$0xff]  ;;  %v488_v54 = vsub.s32 1, %v478_v51  ;;  %v500_v63 = vld [vmem:[%s12528_s25 + $0x10] sm:$0xff]  ;;  %v503_v2 = vld [vmem:[%s12528_s25 + $0x28] sm:$0xff]  ;;  %s12531_s10 = sld [smem:[#allocation8_spill]] }
  0x33   :  { %364 = vmatprep.mubr.f32.mxu1 %v89_v61  ;;  %v498_v50 = vld [vmem:[%s12528_s25] sm:$0xff] }
  0x34   :  { %275 = vmatmul.mubr.f32.gmra.mrb[4].mxu0 %v86_v0  ;;  %v471_v53 = vld [vmem:[%s12529_s0] sm:$0x3]  ;;  %v501_v0 = vld [vmem:[%s12528_s25 + $0x18] sm:$0xff] }
  0x35   :  { %8987 = vmatpush3.bf16.msra.mxu0 %v8986_v62  ;;  %365 = vmatmul.mubr.f32.gmra.mrb[4].mxu1 %v88_v4  ;;  %v480_v56 = vrot.slane %v471_v53, %v479_v52  ;;  %v489_v57 = vrot.slane %v471_v53, %v488_v54  ;;  %v499_v62 = vld [vmem:[%s12528_s25 + $0x8] sm:$0xff]  ;;  %v492_v3 = vld [vmem:[%s12530_s4] sm:$0xff] }
  0x36   :  { %8989 = vmatprep.subr.bf16.mxu0 %v8988_v1  ;;  %279 = vmatprep.mubr.f32.mxu0 %v93_v6  ;;  %v502_v1 = vld [vmem:[%s12528_s25 + $0x20] sm:$0xff] }
  0x37   :  { %369 = vmatprep.mubr.f32.mxu1 %v95_v8 }
  0x38   :  { %280 = vmatmul.mubr.f32.gmra.mrb[6].mxu0 %v92_v10 }
  0x39   :  { %8991 = vmatpush3.bf16.msra.mxu0 %v8990_v9  ;;  %370 = vmatmul.mubr.f32.gmra.mrb[6].mxu1 %v94_v14 }
  0x3a   :  { %8993 = vmatprep.subr.bf16.mxu0 %v8992_v11  ;;  %284 = vmatprep.mubr.f32.mxu0 %v99_v17 }
  0x3b   :  { %374 = vmatprep.mubr.f32.mxu1 %v101_v18 }
  0x3c   :  { %285 = vmatmul.mubr.f32.gmra.mrb[8].mxu0 %v98_v21 }
  0x3d   :  { %8995 = vmatpush3.bf16.msra.mxu0 %v8994_v20  ;;  %375 = vmatmul.mubr.f32.gmra.mrb[8].mxu1 %v100_v25 }
  0x3e   :  { %8997 = vmatprep.subr.bf16.mxu0 %v8996_v22  ;;  %444 = vmatprep.mubr.f32.mxu0 %v79_v28 }
  0x3f   :  { %8129 = vmatprep.mubr.msk.f32.mxu1 %vm504_vm0, %v498_v50 }
  0x41   :  { %8999 = vmatpush3.bf16.msra.mxu0 %v8998_v29 }
  0x42   :  { %9001 = vmatprep.subr.bf16.mxu0 %v9000_v30 }
  0x45   :  { %9003 = vmatpush3.bf16.msra.mxu0 %v9002_v35 }
  0x46   :  { %9005 = vmatprep.subr.bf16.mxu0 %v9004_v36 }
  0x49   :  { %9007 = vmatpush3.bf16.msra.mxu0 %v9006_v39 }
  0x4c   :  { %445 = vmatmul.mubr.f32.vlgmr.msra.gmra.mrb[10].mxu0 %v78_v40 }
  0x4d   :  { %449 = vmatprep.mubr.f32.mxu0 %v85_v41 }
  0x50   :  { %450 = vmatmul.mubr.f32.gmra.mrb[12].mxu0 %v84_v42 }
  0x51   :  { %454 = vmatprep.mubr.f32.mxu0 %v91_v43 }
  0x54   :  { %455 = vmatmul.mubr.f32.gmra.mrb[14].mxu0 %v90_v44 }
  0x55   :  { %459 = vmatprep.mubr.f32.mxu0 %v97_v45 }
  0x58   :  { %460 = vmatmul.mubr.f32.gmra.mrb[16].mxu0 %v96_v46 }
  0x59   :  { %464 = vmatprep.mubr.f32.mxu0 %v103_v47 }
  0x5c   :  { %465 = vmatmul.mubr.f32.gmra.mrb[18].mxu0 %v102_v48 }
  0xa7   :  { %v475_v55 = vpop.permute.xlu0 %474 }
  0xa8   :  { %v481_v58 = vmul.f32 %v480_v56, %v475_v55 }
  0xae   :  { %v484_v59 = vpop.permute.xlu0 %483 }
  0xaf   :  { %v490_v60 = vmul.f32 %v489_v57, %v484_v59 }
  0xb1   :  { %v491_v61 = vadd.f32 %v490_v60, %v481_v58  ;;  %v767_v60 = vld [vmem:[%s12531_s10] sm:$0xff] }
  0xb3   :  { %8127 = vmatprep.subr.mxu1 %v491_v61 }
  0xb4   :  { %8128 = vmatpush3.msra.mxu1 %v491_v61  ;;  %v768_v61 = vld [vmem:[%s12531_s10 + $0x8] sm:$0xff] }
  0xb5   :  { %8130 = vmatmul.mubr.msk.f32.vlgmr.msra.gmra.mrb[10].mxu1 %vm504_vm0, %v499_v62 }
  0xb6   :  { %8132 = vmatprep.mubr.msk.f32.mxu1 %vm504_vm0, %v500_v63  ;;  %v9016_v63 = vpack.c.bf16 %v768_v61, %v767_v60 }
  0xb9   :  { %8133 = vmatmul.mubr.msk.f32.gmra.mrb[12].mxu1 %vm504_vm0, %v501_v0  ;;  %v493_v0 = vld [vmem:[%s12530_s4 + $0x8] sm:$0xff] }
  0xba   :  { %8135 = vmatprep.mubr.msk.f32.mxu1 %vm504_vm0, %v502_v1  ;;  %v494_v1 = vld [vmem:[%s12530_s4 + $0x10] sm:$0xff] }
  0xbd   :  { %8136 = vmatmul.mubr.msk.f32.gmra.mrb[14].mxu1 %vm504_vm0, %v503_v2  ;;  %v495_v2 = vld [vmem:[%s12530_s4 + $0x18] sm:$0xff] }
  0xbe   :  { %8148 = vmatprep.mubr.msk.f32.mxu1 %vm618_vm1, %v492_v3  ;;  %v496_v3 = vld [vmem:[%s12530_s4 + $0x20] sm:$0xff] }
  0xff   :  { %v7569_v4 = vpop.f32.mrb[0].mxu0 }
 0x100   :  { %v7616_v5 = vpop.f32.mrb[0].mxu1  ;;  %v7570_v6 = vpop.f32.mrb[1].mxu0 }
 0x101   :  { %v7571_v7 = vadd.f32 %v7570_v6, %v7569_v4  ;;  %v7617_v8 = vpop.f32.mrb[1].mxu1  ;;  %v497_v4 = vld [vmem:[%s12530_s4 + $0x28] sm:$0xff]  ;;  %v770_v6 = vld [vmem:[%s12531_s10 + $0x18] sm:$0xff] }
 0x102   :  { %v7618_v9 = vadd.f32 %v7617_v8, %v7616_v5  ;;  %v769_v5 = vld [vmem:[%s12531_s10 + $0x10] sm:$0xff]  ;;  %v732_v8 = vld [vmem:[%s12532_s28] sm:$0xff] }
 0x103   :  { %v7572_v10 = vpop.f32.mrb[2].mxu0 }
 0x104   :  { %v357_v11 = vadd.f32 %v7618_v9, %v7571_v7  ;;  %v7619_v12 = vpop.f32.mrb[2].mxu1  ;;  %v7573_v13 = vpop.f32.mrb[3].mxu0  ;;  %v9020_v7 = vpack.c.bf16 %v770_v6, %v769_v5 }
 0x105   :  { %v7574_v14 = vadd.f32 %v7573_v13, %v7572_v10  ;;  %v7620_v15 = vpop.f32.mrb[3].mxu1  ;;  %v733_v10 = vld [vmem:[%s12532_s28 + $0x8] sm:$0xff] }
 0x106   :  { %v7621_v16 = vadd.f32 %v7620_v15, %v7619_v12 }
 0x107   :  { %v7575_v17 = vpop.f32.mrb[4].mxu0 }
 0x108   :  { %v362_v18 = vadd.f32 %v7621_v16, %v7574_v14  ;;  %v7622_v19 = vpop.f32.mrb[4].mxu1  ;;  %v7576_v20 = vpop.f32.mrb[5].mxu0  ;;  %v734_v14 = vld [vmem:[%s12532_s28 + $0x10] sm:$0xff]  ;;  %v735_v16 = vld [vmem:[%s12532_s28 + $0x18] sm:$0xff] }
 0x109   :  { %v7577_v21 = vadd.f32 %v7576_v20, %v7575_v17  ;;  %v7623_v22 = vpop.f32.mrb[5].mxu1  ;;  %v736_v20 = vld [vmem:[%s12532_s28 + $0x20] sm:$0xff] }
 0x10a   :  { %v7624_v23 = vadd.f32 %v7623_v22, %v7622_v19  ;;  %v737_v22 = vld [vmem:[%s12532_s28 + $0x28] sm:$0xff]  ;;  %s10134_s28 = smov 96  }
 0x10b   :  { %v7578_v24 = vpop.f32.mrb[6].mxu0 }
 0x10c   :  { %v367_v25 = vadd.f32 %v7624_v23, %v7577_v21  ;;  %v7625_v26 = vpop.f32.mrb[6].mxu1  ;;  %v7579_v27 = vpop.f32.mrb[7].mxu0 }
 0x10d   :  { %v7580_v28 = vadd.f32 %v7579_v27, %v7578_v24  ;;  %v7626_v29 = vpop.f32.mrb[7].mxu1 }
 0x10e   :  { %v7627_v30 = vadd.f32 %v7626_v29, %v7625_v26  ;;  %v7155_v26 = vld [vmem:[%s12495_s12] ss:$0 sm:$0xff] }
 0x10f   :  { %v7581_v31 = vpop.f32.mrb[8].mxu0 }
 0x110   :  { %v372_v32 = vadd.f32 %v7627_v30, %v7580_v28  ;;  %v7628_v33 = vpop.f32.mrb[8].mxu1  ;;  %v7582_v34 = vpop.f32.mrb[9].mxu0 }
 0x111   :  { %v7583_v35 = vadd.f32 %v7582_v34, %v7581_v31  ;;  %v7629_v36 = vpop.f32.mrb[9].mxu1 }
 0x112   :  { %v7630_v37 = vadd.f32 %v7629_v36, %v7628_v33 }
 0x114   :  { %v377_v38 = vadd.f32 %v7630_v37, %v7583_v35 }
 0x11f   :  { %v7663_v39 = vpop.f32.mrb[10].mxu0 }
 0x120   :  { %v7664_v40 = vpop.f32.mrb[11].mxu0 }
 0x121   :  { %v7665_v41 = vadd.f32 %v7664_v40, %v7663_v39 }
 0x123   :  { %v447_v42 = vadd.f32 %v7665_v41, %v357_v11  ;;  %v7666_v43 = vpop.f32.mrb[12].mxu0 }
 0x124   :  { %v7667_v44 = vpop.f32.mrb[13].mxu0 }
 0x125   :  { %v7668_v45 = vadd.f32 %v7667_v44, %v7666_v43 }
 0x127   :  { %v452_v46 = vadd.f32 %v7668_v45, %v362_v18  ;;  %v7669_v47 = vpop.f32.mrb[14].mxu0 }
 0x128   :  { %v7670_v48 = vpop.f32.mrb[15].mxu0 }
 0x129   :  { %v7671_v49 = vadd.f32 %v7670_v48, %v7669_v47  ;;  %v9008_v50 = vpack.c.bf16 %v452_v46, %v447_v42 }
 0x12b   :  { %v457_v51 = vadd.f32 %v7671_v49, %v367_v25  ;;  %v7672_v52 = vpop.f32.mrb[16].mxu0  ;;  %9009 = vmatprep.subr.bf16.mxu1 %v9008_v50 }
 0x12c   :  { %v7673_v53 = vpop.f32.mrb[17].mxu0  ;;  %9011 = vmatpush3.bf16.msra.mxu1 %v9008_v50 }
 0x12d   :  { %v7674_v54 = vadd.f32 %v7673_v53, %v7672_v52 }
 0x12f   :  { %v462_v55 = vadd.f32 %v7674_v54, %v372_v32  ;;  %v7675_v56 = vpop.f32.mrb[18].mxu0 }
 0x130   :  { %v7676_v57 = vpop.f32.mrb[19].mxu0 }
 0x131   :  { %v7677_v58 = vadd.f32 %v7676_v57, %v7675_v56  ;;  %v9012_v59 = vpack.c.bf16 %v462_v55, %v457_v51 }
 0x133   :  { %v467_v62 = vadd.f32 %v7677_v58, %v377_v38  ;;  %9013 = vmatprep.subr.bf16.mxu1 %v9012_v59 }
 0x134   :  { %9015 = vmatpush3.bf16.msra.mxu1 %v9012_v59 }
 0x135   :  { %8146 = vmatprep.subr.mxu1 %v467_v62 }
 0x138   :  { %8147 = vmatpush3.msra.mxu1 %v467_v62 }
 0x139   :  { %8149 = vmatmul.mubr.msk.f32.vlgmr.msra.gmra.mrb[10].mxu1 %vm618_vm1, %v493_v0  ;;  %9017 = vmatprep.subr.bf16.mxu1 %v9016_v63 }
 0x13a   :  { %8151 = vmatprep.mubr.msk.f32.mxu1 %vm618_vm1, %v494_v1  ;;  %9019 = vmatpush3.bf16.msra.mxu1 %v9016_v63 }
 0x13b   :  { %9021 = vmatprep.subr.bf16.mxu1 %v9020_v7 }
 0x13d   :  { %8152 = vmatmul.mubr.msk.f32.gmra.mrb[12].mxu1 %vm618_vm1, %v495_v2 }
 0x13e   :  { %8154 = vmatprep.mubr.msk.f32.mxu1 %vm618_vm1, %v496_v3  ;;  %9023 = vmatpush3.bf16.msra.mxu1 %v9020_v7 }
 0x141   :  { %8155 = vmatmul.mubr.msk.f32.gmra.mrb[14].mxu1 %vm618_vm1, %v497_v4 }
 0x20c   :  { %v8150_v9 = vpop.f32.mrb[10].mxu1 }
 0x20d   :  { %v703_v11 = vpop.f32.mrb[11].mxu1  ;;  %v10713_v13 = vadd.f32 %v8150_v9, %v733_v10  ;;  %v745_v9 = vld [vmem:[%s12497_s7 + $0x8] sm:$0xff]  ;;  %v7154_v10 = vld [vmem:[%s12496_s2] ss:$0 sm:$0xff] }
 0x20e   :  { %v10711_v12 = vadd.f32 %v732_v8, %v703_v11  ;;  %v744_v11 = vld [vmem:[%s12497_s7] sm:$0xff] }
 0x210   :  { %v8153_v15 = vpop.f32.mrb[12].mxu1  ;;  %8165 = vmatprep.mubr.msk.f32.mxu1 %vm778_vm2, %v10711_v12 }
 0x211   :  { %v713_v17 = vpop.f32.mrb[13].mxu1  ;;  %8166 = vmatmul.mubr.msk.f32.vlgmr.msra.gmra.mrb[16].mxu1 %vm778_vm2, %v10713_v13  ;;  %v10727_v19 = vadd.f32 %v8153_v15, %v735_v16  ;;  %v10847_v16 = vadd.f32 %v7154_v10, %v744_v11 }
 0x212   :  { %v10725_v18 = vadd.f32 %v734_v14, %v713_v17  ;;  %v10845_v14 = vadd.f32 %v7154_v10, %v745_v9  ;;  %v747_v17 = vld [vmem:[%s12497_s7 + $0x18] sm:$0xff] }
 0x214   :  { %v8156_v21 = vpop.f32.mrb[14].mxu1  ;;  %8168 = vmatprep.mubr.msk.f32.mxu1 %vm778_vm2, %v10725_v18 }
 0x215   :  { %v723_v23 = vpop.f32.mrb[15].mxu1  ;;  %8169 = vmatmul.mubr.msk.f32.gmra.mrb[18].mxu1 %vm778_vm2, %v10727_v19  ;;  %v10741_v25 = vadd.f32 %v8156_v21, %v737_v22  ;;  %v746_v22 = vld [vmem:[%s12497_s7 + $0x10] sm:$0xff] }
 0x216   :  { %v10739_v24 = vadd.f32 %v736_v20, %v723_v23 }
 0x218   :  { %8171 = vmatprep.mubr.msk.f32.mxu1 %vm778_vm2, %v10739_v24 }
 0x219   :  { %8172 = vmatmul.mubr.msk.f32.gmra.mrb[20].mxu1 %vm778_vm2, %v10741_v25 }
 0x2e4   :  { %v8167_v27 = vpop.f32.mrb[16].mxu1 }
 0x2e5   :  { %v10750_v28 = vadd.f32 %v8167_v27, %v7155_v26  ;;  %v863_v29 = vpop.f32.mrb[17].mxu1  ;;  %v10856_v27 = vadd.f32 %v7154_v10, %v747_v17 }
 0x2e6   :  { %v864_v30 = vadd.f32 %v7155_v26, %v863_v29 }
 0x2e8   :  { %v8170_v31 = vpop.f32.mrb[18].mxu1  ;;  %8186 = vmatprep.mubr.msk.f32.mxu0 %vm911_vm3, %v864_v30  ;;  %v10754_v32 = vpack.i.bf16 %v10750_v28, %v864_v30 }
 0x2e9   :  { %v10756_v33 = vadd.f32 %v8170_v31, %v7155_v26  ;;  %v873_v34 = vpop.f32.mrb[19].mxu1  ;;  %v10861_v31 = vadd.f32 %v7154_v10, %v746_v22 }
 0x2ea   :  { %v10758_v35 = vadd.f32 %v7155_v26, %v873_v34  ;;  %9571 = vrot.lane.b32.xlu0 %v10754_v32, %s10133_s8  ;;  %9556 = vrot.lane.b32.xlu1 %v10754_v32, %s10134_s28 }
 0x2ec   :  { %v8173_v36 = vpop.f32.mrb[20].mxu1  ;;  %v10766_v37 = vpack.i.bf16 %v10756_v33, %v10758_v35 }
 0x2ed   :  { %v10768_v38 = vadd.f32 %v8173_v36, %v7155_v26  ;;  %v883_v39 = vpop.f32.mrb[21].mxu1 }
 0x2ee   :  { %v884_v40 = vadd.f32 %v7155_v26, %v883_v39  ;;  %9561 = vrot.lane.b32.xlu1 %v10766_v37, %s10134_s28  ;;  %v748_v39 = vld [vmem:[%s12497_s7 + $0x20] sm:$0xff] }
 0x2f0   :  { %v10773_v41 = vpack.i.bf16 %v10768_v38, %v884_v40 }
 0x2f2   :  { %9581 = vrot.lane.b32.xlu0 %v10773_v41, %s10133_s8  ;;  %9566 = vrot.lane.b32.xlu1 %v10773_v41, %s10134_s28 }
 0x2f6   :  { %1368 = vrot.lane.b32.xlu0 %v10750_v28, %s10135_s29  ;;  %9576 = vrot.lane.b32.xlu1 %v10766_v37, %s10133_s8 }
 0x2fa   :  { %1372 = vrot.lane.b32.xlu0 %v10756_v33, %s10135_s29  ;;  %1366 = vrot.lane.b32.xlu1 %v864_v30, %s10135_s29 }
 0x2fe   :  { %1376 = vrot.lane.b32.xlu0 %v10768_v38, %s10135_s29  ;;  %1370 = vrot.lane.b32.xlu1 %v10758_v35, %s10135_s29 }
 0x302   :  { %1374 = vrot.lane.b32.xlu1 %v884_v40, %s10135_s29 }
 0x35c   :  { %v9572_v42 = vpop.permute.xlu0 %9571  ;;  %v9557_v43 = vpop.permute.xlu1 %9556 }
 0x35d   :  { %v9574_v44 = vunpack.i.h.bf16 %v9572_v42  ;;  %v9573_v45 = vunpack.i.l.bf16 %v9572_v42  ;;  %v9559_v46 = vunpack.i.h.bf16 %v9557_v43  ;;  %v9558_v47 = vunpack.i.l.bf16 %v9557_v43 }
 0x35f   :  { %v9058_v49 = vpack.c.bf16 %v9574_v44, %v9573_v45  ;;  %v9024_v50 = vpack.c.bf16 %v9559_v46, %v9558_v47 }
 0x360   :  { %v9562_v51 = vpop.permute.xlu1 %9561 }
 0x361   :  { %v9564_v52 = vunpack.i.h.bf16 %v9562_v51  ;;  %v9563_v53 = vunpack.i.l.bf16 %v9562_v51  ;;  %9026 = vmatprep.subr.msk.bf16.mxu0 %vm10793_vm4, %v9024_v50  ;;  %9060 = vmatprep.subr.msk.bf16.mxu1 %vm10793_vm4, %v9058_v49 }
 0x362   :  { %9029 = vmatpush3.bf16.xpose.msk.msra.mxu0 %vm10793_vm4, %v9024_v50  ;;  %9063 = vmatpush3.bf16.xpose.msk.msra.mxu1 %vm10793_vm4, %v9058_v49  ;;  %v10879_v49 = vadd.f32 %v7154_v10, %v748_v39 }
 0x363   :  { %v9030_v54 = vpack.c.bf16 %v9564_v52, %v9563_v53 }
 0x364   :  { %v9567_v55 = vpop.permute.xlu1 %9566  ;;  %v9582_v56 = vpop.permute.xlu0 %9581 }
 0x365   :  { %v9569_v57 = vunpack.i.h.bf16 %v9567_v55  ;;  %v9568_v58 = vunpack.i.l.bf16 %v9567_v55  ;;  %9032 = vmatprep.subr.msk.bf16.mxu0 %vm10793_vm4, %v9030_v54  ;;  %v9584_v59 = vunpack.i.h.bf16 %v9582_v56  ;;  %v9583_v61 = vunpack.i.l.bf16 %v9582_v56 }
 0x367   :  { %v9036_v62 = vpack.c.bf16 %v9569_v57, %v9568_v58  ;;  %v9070_v3 = vpack.c.bf16 %v9584_v59, %v9583_v61 }
 0x368   :  { %v9577_v60 = vpop.permute.xlu1 %9576  ;;  %v1369_v4 = vpop.permute.xlu0 %1368 }
 0x369   :  { %v9579_v63 = vunpack.i.h.bf16 %v9577_v60  ;;  %v9578_v0 = vunpack.i.l.bf16 %v9577_v60 }
 0x36a   :  { %9035 = vmatpush3.bf16.xpose.msk.msra.mxu0 %vm10793_vm4, %v9030_v54 }
 0x36b   :  { %v9064_v1 = vpack.c.bf16 %v9579_v63, %v9578_v0  ;;  %9038 = vmatprep.subr.msk.bf16.mxu0 %vm10793_vm4, %v9036_v62 }
 0x36c   :  { %v1367_v2 = vpop.permute.xlu1 %1366  ;;  %v1373_v6 = vpop.permute.xlu0 %1372 }
 0x36d   :  { %9066 = vmatprep.subr.msk.bf16.mxu1 %vm10793_vm4, %v9064_v1  ;;  %8241 = vmatprep.mubr.msk.f32.mxu1 %vm911_vm3, %v1367_v2 }
 0x36e   :  { %9069 = vmatpush3.bf16.xpose.msk.msra.mxu1 %vm10793_vm4, %v9064_v1 }
 0x36f   :  { %9072 = vmatprep.subr.msk.bf16.mxu1 %vm10793_vm4, %v9070_v3 }
 0x370   :  { %v1371_v5 = vpop.permute.xlu1 %1370  ;;  %v1377_v8 = vpop.permute.xlu0 %1376 }
 0x372   :  { %9041 = vmatpush3.bf16.xpose.msk.msra.mxu0 %vm10793_vm4, %v9036_v62 }
 0x374   :  { %v1375_v7 = vpop.permute.xlu1 %1374 }
 0x376   :  { %9075 = vmatpush3.bf16.xpose.msk.msra.mxu1 %vm10793_vm4, %v9070_v3 }
 0x379   :  { %8187 = vmatmul.mubr.msk.f32.vlgmr.msra.gmra.mrb[20].mxu0 %vm911_vm3, %v10750_v28 }
 0x37a   :  { %8189 = vmatprep.mubr.msk.f32.mxu0 %vm911_vm3, %v10758_v35 }
 0x37d   :  { %8190 = vmatmul.mubr.msk.f32.gmra.mrb[22].mxu0 %vm911_vm3, %v10756_v33  ;;  %8242 = vmatmul.mubr.msk.f32.vlgmr.msra.gmra.mrb[22].mxu1 %vm911_vm3, %v1369_v4  ;;  %v749_v33 = vld [vmem:[%s12497_s7 + $0x28] sm:$0xff]  ;;  %s10136_s7 = smov 64  }
 0x37e   :  { %8192 = vmatprep.mubr.msk.f32.mxu0 %vm911_vm3, %v884_v40  ;;  %8244 = vmatprep.mubr.msk.f32.mxu1 %vm911_vm3, %v1371_v5  ;;  %v10874_v44 = vadd.f32 %v7154_v10, %v749_v33 }
 0x381   :  { %8193 = vmatmul.mubr.msk.f32.gmra.mrb[24].mxu0 %vm911_vm3, %v10768_v38  ;;  %8245 = vmatmul.mubr.msk.f32.gmra.mrb[24].mxu1 %vm911_vm3, %v1373_v6 }
 0x382   :  { %8247 = vmatprep.mubr.msk.f32.mxu1 %vm911_vm3, %v1375_v7 }
 0x385   :  { %8248 = vmatmul.mubr.msk.f32.gmra.mrb[26].mxu1 %vm911_vm3, %v1377_v8 }
 0x44c   :  { %v8188_v15 = vpop.f32.mrb[20].mxu0 }
 0x44d   :  { %v1032_v20 = vmul.f32 0.25, %v8188_v15  ;;  %v1002_v21 = vpop.f32.mrb[21].mxu0 }
 0x44e   :  { %v1031_v23 = vmul.f32 0.25, %v1002_v21 }
 0x44f   :  { %v1038_v26 = vadd.f32 %v1032_v20, %v10845_v14 }
 0x450   :  { %v8191_v28 = vpop.f32.mrb[22].mxu0  ;;  %v10858_v29 = vpop.f32.mrb[22].mxu1  ;;  %v1037_v30 = vadd.f32 %v1031_v23, %v10847_v16 }
 0x451   :  { %v1034_v34 = vmul.f32 0.25, %v8191_v28  ;;  %v1012_v35 = vpop.f32.mrb[23].mxu0  ;;  %v10866_v36 = vpop.f32.mrb[23].mxu1  ;;  %v1047_v38 = vsel %vm1043_vm5, %v1038_v26, -inf }
 0x452   :  { %v1033_v40 = vmul.f32 0.25, %v1012_v35  ;;  %1048 = vmax.xlane.f32.xlu0 %v1047_v38  ;;  %v1044_v42 = vsel %vm1043_vm5, %v1037_v30, -inf }
 0x453   :  { %1045 = vmax.xlane.f32.xlu1 %v1044_v42  ;;  %v1040_v43 = vadd.f32 %v1034_v34, %v10856_v27 }
 0x454   :  { %v8194_v45 = vpop.f32.mrb[24].mxu0  ;;  %v10876_v46 = vpop.f32.mrb[24].mxu1  ;;  %v1039_v47 = vadd.f32 %v1033_v40, %v10861_v31 }
 0x455   :  { %v1036_v50 = vmul.f32 0.25, %v8194_v45  ;;  %v1022_v51 = vpop.f32.mrb[25].mxu0  ;;  %v1490_v52 = vpop.f32.mrb[25].mxu1  ;;  %v1053_v53 = vsel %vm1043_vm5, %v1040_v43, -inf  ;;  %v1510_v45 = vmul.f32 0.25, %v10858_v29 }
 0x456   :  { %v1035_v54 = vmul.f32 0.25, %v1022_v51  ;;  %v1050_v55 = vsel %vm1043_vm5, %v1039_v47, -inf }
 0x457   :  { %1054 = vmax.xlane.f32.xlu1 %v1053_v53  ;;  %1051 = vmax.xlane.f32.xlu0 %v1050_v55  ;;  %v1042_v56 = vadd.f32 %v1036_v50, %v10874_v44  ;;  %v10922_v53 = vadd.f32 %v1510_v45, %v10845_v14 }
 0x458   :  { %v10884_v57 = vpop.f32.mrb[26].mxu1  ;;  %v1041_v58 = vadd.f32 %v1035_v54, %v10879_v49  ;;  %v1512_v54 = vmul.f32 0.25, %v10876_v46 }
 0x459   :  { %v1500_v59 = vpop.f32.mrb[27].mxu1  ;;  %v1059_v60 = vsel %vm1043_vm5, %v1042_v56, -inf  ;;  %v1524_v29 = vsel %vm1043_vm5, %v10922_v53, -inf }
 0x45a   :  { %v1056_v61 = vsel %vm1043_vm5, %v1041_v58, -inf  ;;  %v1513_v51 = vmul.f32 0.25, %v1500_v59  ;;  %v10939_v46 = vadd.f32 %v1512_v54, %v10856_v27 }
 0x45b   :  { %1060 = vmax.xlane.f32.xlu1 %v1059_v60  ;;  %1057 = vmax.xlane.f32.xlu0 %v1056_v61 }
 0x45c   :  { %v1530_v60 = vsel %vm1043_vm5, %v10939_v46, -inf }
 0x4df   :  { %v1049_v62 = vpop.xlane.xlu0 %1048 }
 0x4e0   :  { %v1063_v63 = vsub.f32 %v1038_v26, %v1049_v62  ;;  %v1046_v0 = vpop.xlane.xlu1 %1045 }
 0x4e1   :  { %v1062_v1 = vsub.f32 %v1037_v30, %v1046_v0 }
 0x4e2   :  { %v1070_v2 = vmul.f32 1.442695, %v1063_v63 }
 0x4e3   :  { %v1068_v3 = vmul.f32 1.442695, %v1062_v1 }
 0x4e4   :  { %9795 = vpow2.f32 %v1070_v2  ;;  %v1055_v4 = vpop.xlane.xlu1 %1054  ;;  %v1052_v5 = vpop.xlane.xlu0 %1051 }
 0x4e5   :  { %9797 = vpow2.f32 %v1068_v3  ;;  %v1065_v6 = vsub.f32 %v1040_v43, %v1055_v4  ;;  %v1064_v7 = vsub.f32 %v1039_v47, %v1052_v5  ;;  %v1509_v43 = vmul.f32 0.25, %v10866_v36 }
 0x4e6   :  { %v1511_v47 = vmul.f32 0.25, %v1490_v52  ;;  %v10933_v36 = vadd.f32 %v1513_v51, %v10879_v49  ;;  %v1514_v52 = vmul.f32 0.25, %v10884_v57 }
 0x4e7   :  { %v1074_v8 = vmul.f32 1.442695, %v1065_v6  ;;  %v1072_v9 = vmul.f32 1.442695, %v1064_v7  ;;  %v10919_v50 = vadd.f32 %v1509_v43, %v10847_v16 }
 0x4e8   :  { %v1061_v10 = vpop.xlane.xlu1 %1060  ;;  %v1058_v11 = vpop.xlane.xlu0 %1057  ;;  %v1533_v59 = vsel %vm1043_vm5, %v10933_v36, -inf  ;;  %v10946_v61 = vadd.f32 %v1514_v52, %v10874_v44 }
 0x4e9   :  { %9799 = vpow2.f32 %v1074_v8  ;;  %v1067_v15 = vsub.f32 %v1042_v56, %v1061_v10  ;;  %v1066_v17 = vsub.f32 %v1041_v58, %v1058_v11  ;;  %v1521_v55 = vsel %vm1043_vm5, %v10919_v50, -inf }
 0x4ea   :  { %9801 = vpow2.f32 %v1072_v9  ;;  %v10928_v56 = vadd.f32 %v1511_v47, %v10861_v31  ;;  %v1536_v57 = vsel %vm1043_vm5, %v10946_v61, -inf }
 0x4eb   :  { %v1078_v20 = vmul.f32 1.442695, %v1067_v15  ;;  %v1076_v21 = vmul.f32 1.442695, %v1066_v17 }
 0x4ec   :  { %v1527_v58 = vsel %vm1043_vm5, %v10928_v56, -inf }
 0x4ed   :  { %9803 = vpow2.f32 %v1078_v20 }
 0x4ee   :  { %v10889_v22 = vpop.eup %9795  ;;  %9805 = vpow2.f32 %v1076_v21 }
 0x4ef   :  { %v9798_v23 = vpop.eup %9797  ;;  %v1083_v26 = vsel %vm1043_vm5, %v10889_v22, 0.0 }
 0x4f0   :  { %1084 = vadd.xlane.f32.xlu1 %v1083_v26  ;;  %v1080_v28 = vsel %vm1043_vm5, %v9798_v23, 0.0 }
 0x4f1   :  { %1081 = vadd.xlane.f32.xlu0 %v1080_v28 }
 0x4f3   :  { %v10894_v30 = vpop.eup %9799 }
 0x4f4   :  { %v10896_v33 = vpop.eup %9801  ;;  %v1089_v34 = vsel %vm1043_vm5, %v10894_v30, 0.0 }
 0x4f5   :  { %1090 = vadd.xlane.f32.xlu1 %v1089_v34  ;;  %v1086_v35 = vsel %vm1043_vm5, %v10896_v33, 0.0 }
 0x4f6   :  { %1087 = vadd.xlane.f32.xlu0 %v1086_v35 }
 0x4f7   :  { %v10902_v38 = vpop.eup %9803 }
 0x4f8   :  { %v10904_v39 = vpop.eup %9805  ;;  %v1095_v40 = vsel %vm1043_vm5, %v10902_v38, 0.0 }
 0x4f9   :  { %1096 = vadd.xlane.f32.xlu1 %v1095_v40  ;;  %v1092_v42 = vsel %vm1043_vm5, %v10904_v39, 0.0 }
 0x4fa   :  { %1093 = vadd.xlane.f32.xlu0 %v1092_v42 }
 0x50a   :  { %9591 = vrot.lane.b32.xlu1 %v10766_v37, %s10136_s7 }
 0x50e   :  { %9596 = vrot.lane.b32.xlu1 %v10773_v41, %s10136_s7 }
 0x510   :  { %9586 = vrot.lane.b32.xlu0 %v10754_v32, %s10136_s7 }
 0x52f   :  { %1522 = vmax.xlane.f32.xlu0 %v1521_v55 }
 0x532   :  { %1525 = vmax.xlane.f32.xlu1 %v1524_v29 }
 0x533   :  { %1528 = vmax.xlane.f32.xlu0 %v1527_v58 }
 0x536   :  { %1534 = vmax.xlane.f32.xlu1 %v1533_v59 }
 0x537   :  { %1531 = vmax.xlane.f32.xlu0 %v1530_v60 }
 0x53b   :  { %1537 = vmax.xlane.f32.xlu0 %v1536_v57 }
 0x57d   :  { %v1085_v62 = vpop.xlane.xlu1 %1084 }
 0x57e   :  { %v1082_v63 = vpop.xlane.xlu0 %1081 }
 0x57f   :  { %9807 = vrcp.f32 %v1082_v63 }
 0x580   :  { %9809 = vrcp.f32 %v1085_v62 }
 0x582   :  { %v1091_v0 = vpop.xlane.xlu1 %1090 }
 0x583   :  { %v1088_v1 = vpop.xlane.xlu0 %1087 }
 0x584   :  { %9811 = vrcp.f32 %v1088_v1 }
 0x585   :  { %9813 = vrcp.f32 %v1091_v0 }
 0x586   :  { %v1097_v2 = vpop.xlane.xlu1 %1096 }
 0x587   :  { %v1094_v3 = vpop.xlane.xlu0 %1093 }
 0x588   :  { %9815 = vrcp.f32 %v1094_v3 }
 0x589   :  { %v9808_v4 = vpop.eup %9807  ;;  %9817 = vrcp.f32 %v1097_v2 }
 0x58a   :  { %v9592_v5 = vpop.permute.xlu1 %9591  ;;  %v1104_v6 = vmul.f32 %v9808_v4, %v9798_v23  ;;  %v9810_v28 = vpop.eup %9809 }
 0x58b   :  { %v9587_v7 = vpop.permute.xlu0 %9586  ;;  %v9594_v8 = vunpack.i.h.bf16 %v9592_v5  ;;  %v9593_v9 = vunpack.i.l.bf16 %v9592_v5  ;;  %v1105_v35 = vmul.f32 %v9810_v28, %v10889_v22 }
 0x58c   :  { %v9589_v10 = vunpack.i.h.bf16 %v9587_v7  ;;  %v9588_v11 = vunpack.i.l.bf16 %v9587_v7  ;;  %8207 = vmatprep.mubr.msk.f32.mxu0 %vm1043_vm5, %v1104_v6 }
 0x58d   :  { %v9046_v26 = vpack.c.bf16 %v9594_v8, %v9593_v9 }
 0x58e   :  { %v9597_v15 = vpop.permute.xlu1 %9596  ;;  %v9042_v17 = vpack.c.bf16 %v9589_v10, %v9588_v11  ;;  %v9812_v34 = vpop.eup %9811  ;;  %v763_v10 = vld [vmem:[%s12498_s13] sm:$0xff]  ;;  %v764_v11 = vld [vmem:[%s12498_s13 + $0x8] sm:$0xff] }
 0x58f   :  { %v9599_v20 = vunpack.i.h.bf16 %v9597_v15  ;;  %v9598_v21 = vunpack.i.l.bf16 %v9597_v15  ;;  %v9814_v40 = vpop.eup %9813  ;;  %v1106_v42 = vmul.f32 %v9812_v34, %v10896_v33  ;;  %v9054_v15 = vpack.c.bf16 %v764_v11, %v763_v10 }
 0x590   :  { %9043 = vmatprep.subr.bf16.mxu0 %v9042_v17  ;;  %v1107_v45 = vmul.f32 %v9814_v40, %v10894_v30 }
 0x591   :  { %9045 = vmatpush3.bf16.msra.mxu0 %v9042_v17  ;;  %v9050_v23 = vpack.c.bf16 %v9599_v20, %v9598_v21 }
 0x592   :  { %9047 = vmatprep.subr.bf16.mxu0 %v9046_v26  ;;  %v9816_v43 = vpop.eup %9815 }
 0x593   :  { %v9818_v47 = vpop.eup %9817  ;;  %v1108_v51 = vmul.f32 %v9816_v43, %v10904_v39 }
 0x594   :  { %v1109_v54 = vmul.f32 %v9818_v47, %v10902_v38 }
 0x595   :  { %9049 = vmatpush3.bf16.msra.mxu0 %v9046_v26 }
 0x596   :  { %9051 = vmatprep.subr.bf16.mxu0 %v9050_v23 }
 0x599   :  { %9053 = vmatpush3.bf16.msra.mxu0 %v9050_v23 }
 0x59a   :  { %9055 = vmatprep.subr.bf16.mxu0 %v9054_v15 }
 0x59c   :  { %8208 = vmatmul.mubr.msk.f32.vlgmr.msra.gmra.mrb[26].mxu0 %vm1043_vm5, %v1105_v35 }
 0x59d   :  { %8210 = vmatprep.mubr.msk.f32.mxu0 %vm1043_vm5, %v1106_v42  ;;  %9057 = vmatpush3.bf16.msra.mxu0 %v9054_v15 }
 0x5a0   :  { %8211 = vmatmul.mubr.msk.f32.gmra.mrb[28].mxu0 %vm1043_vm5, %v1107_v45 }
 0x5a1   :  { %8213 = vmatprep.mubr.msk.f32.mxu0 %vm1043_vm5, %v1108_v51 }
 0x5a4   :  { %8214 = vmatmul.mubr.msk.f32.gmra.mrb[30].mxu0 %vm1043_vm5, %v1109_v54 }
 0x5bc   :  { %v1523_v22 = vpop.xlane.xlu0 %1522 }
 0x5bd   :  { %v1539_v33 = vsub.f32 %v10919_v50, %v1523_v22 }
 0x5bf   :  { %v1545_v55 = vmul.f32 1.442695, %v1539_v33  ;;  %v1526_v29 = vpop.xlane.xlu1 %1525 }
 0x5c0   :  { %v1540_v52 = vsub.f32 %v10922_v53, %v1526_v29  ;;  %v1529_v58 = vpop.xlane.xlu0 %1528  ;;  %v765_v29 = vld [vmem:[%s12498_s13 + $0x10] sm:$0xff] }
 0x5c1   :  { %9819 = vpow2.f32 %v1545_v55  ;;  %v1541_v30 = vsub.f32 %v10928_v56, %v1529_v58 }
 0x5c2   :  { %v1547_v39 = vmul.f32 1.442695, %v1540_v52  ;;  %v766_v52 = vld [vmem:[%s12498_s13 + $0x18] sm:$0xff] }
 0x5c3   :  { %v1549_v59 = vmul.f32 1.442695, %v1541_v30  ;;  %v1535_v60 = vpop.xlane.xlu1 %1534 }
 0x5c4   :  { %9821 = vpow2.f32 %v1547_v39  ;;  %v1532_v57 = vpop.xlane.xlu0 %1531  ;;  %v1543_v62 = vsub.f32 %v10933_v36, %v1535_v60  ;;  %v9088_v60 = vpack.c.bf16 %v766_v52, %v765_v29 }
 0x5c5   :  { %9823 = vpow2.f32 %v1549_v59  ;;  %v1542_v38 = vsub.f32 %v10939_v46, %v1532_v57 }
 0x5c6   :  { %v1553_v1 = vmul.f32 1.442695, %v1543_v62 }
 0x5c7   :  { %v1551_v63 = vmul.f32 1.442695, %v1542_v38 }
 0x5c8   :  { %v1538_v50 = vpop.xlane.xlu0 %1537 }
 0x5c9   :  { %9825 = vpow2.f32 %v1551_v63  ;;  %v1544_v0 = vsub.f32 %v10946_v61, %v1538_v50 }
 0x5cb   :  { %v10967_v53 = vpop.eup %9819  ;;  %v1555_v2 = vmul.f32 1.442695, %v1544_v0 }
 0x5cc   :  { %v1557_v56 = vsel %vm1043_vm5, %v10967_v53, 0.0 }
 0x5cd   :  { %9827 = vpow2.f32 %v1555_v2  ;;  %1558 = vadd.xlane.f32.xlu1 %v1557_v56 }
 0x5ce   :  { %v10971_v3 = vpop.eup %9821  ;;  %9829 = vpow2.f32 %v1553_v1 }
 0x5cf   :  { %v10973_v4 = vpop.eup %9823  ;;  %v1560_v36 = vsel %vm1043_vm5, %v10971_v3, 0.0 }
 0x5d0   :  { %1561 = vadd.xlane.f32.xlu0 %v1560_v36  ;;  %v1563_v46 = vsel %vm1043_vm5, %v10973_v4, 0.0 }
 0x5d1   :  { %1564 = vadd.xlane.f32.xlu1 %v1563_v46 }
 0x5d3   :  { %v10979_v61 = vpop.eup %9825 }
 0x5d4   :  { %v1566_v5 = vsel %vm1043_vm5, %v10979_v61, 0.0 }
 0x5d5   :  { %1567 = vadd.xlane.f32.xlu0 %v1566_v5 }
 0x5d7   :  { %v10983_v6 = vpop.eup %9827 }
 0x5d8   :  { %v1572_v7 = vsel %vm1043_vm5, %v10983_v6, 0.0  ;;  %v10987_v8 = vpop.eup %9829 }
 0x5d9   :  { %1573 = vadd.xlane.f32.xlu0 %v1572_v7  ;;  %v1569_v9 = vsel %vm1043_vm5, %v10987_v8, 0.0 }
 0x5dd   :  { %1570 = vadd.xlane.f32.xlu0 %v1569_v9 }
 0x5e2   :  { %9601 = vrot.lane.b32.xlu1 %v10754_v32, %s10137_s9 }
 0x5e6   :  { %9611 = vrot.lane.b32.xlu1 %v10773_v41, %s10137_s9 }
 0x5f3   :  { %9606 = vrot.lane.b32.xlu0 %v10766_v37, %s10137_s9 }
 0x65a   :  { %v1559_v17 = vpop.xlane.xlu1 %1558 }
 0x65b   :  { %9831 = vrcp.f32 %v1559_v17 }
 0x65d   :  { %v1562_v20 = vpop.xlane.xlu0 %1561 }
 0x65e   :  { %v1565_v32 = vpop.xlane.xlu1 %1564  ;;  %9833 = vrcp.f32 %v1562_v20 }
 0x65f   :  { %9835 = vrcp.f32 %v1565_v32 }
 0x662   :  { %v9602_v21 = vpop.permute.xlu1 %9601  ;;  %v1568_v26 = vpop.xlane.xlu0 %1567 }
 0x663   :  { %v9604_v23 = vunpack.i.h.bf16 %v9602_v21  ;;  %v9603_v28 = vunpack.i.l.bf16 %v9602_v21  ;;  %9837 = vrcp.f32 %v1568_v26 }
 0x665   :  { %v9076_v34 = vpack.c.bf16 %v9604_v23, %v9603_v28  ;;  %v9832_v58 = vpop.eup %9831 }
 0x666   :  { %v1574_v35 = vpop.xlane.xlu0 %1573  ;;  %v9612_v43 = vpop.permute.xlu1 %9611  ;;  %v1581_v38 = vmul.f32 %v9832_v58, %v10967_v53 }
 0x667   :  { %9077 = vmatprep.subr.bf16.mxu0 %v9076_v34  ;;  %v9614_v54 = vunpack.i.h.bf16 %v9612_v43  ;;  %v9613_v22 = vunpack.i.l.bf16 %v9612_v43 }
 0x668   :  { %v9834_v57 = vpop.eup %9833 }
 0x669   :  { %v9084_v30 = vpack.c.bf16 %v9614_v54, %v9613_v22  ;;  %v9836_v62 = vpop.eup %9835  ;;  %v1582_v63 = vmul.f32 %v9834_v57, %v10971_v3 }
 0x66a   :  { %v1571_v40 = vpop.xlane.xlu0 %1570  ;;  %v1583_v0 = vmul.f32 %v9836_v62, %v10973_v4 }
 0x66b   :  { %9839 = vrcp.f32 %v1571_v40 }
 0x66c   :  { %9841 = vrcp.f32 %v1574_v35 }
 0x66d   :  { %v9838_v50 = vpop.eup %9837 }
 0x66e   :  { %v9607_v42 = vpop.permute.xlu0 %9606  ;;  %v1584_v53 = vmul.f32 %v9838_v50, %v10979_v61 }
 0x66f   :  { %v9609_v41 = vunpack.i.h.bf16 %v9607_v42  ;;  %v9608_v45 = vunpack.i.l.bf16 %v9607_v42  ;;  %v8209_v47 = vpop.f32.mrb[26].mxu0 }
 0x670   :  { %v1212_v37 = vpop.f32.mrb[27].mxu0 }
 0x671   :  { %8220 = vmatprep.mubr.msk.f32.mxu0 %vm911_vm3, %v1212_v37  ;;  %v9080_v51 = vpack.c.bf16 %v9609_v41, %v9608_v45 }
 0x672   :  { %8221 = vmatmul.mubr.msk.f32.vlgmr.msra.gmra.mrb[32].mxu0 %vm911_vm3, %v8209_v47 }
 0x673   :  { %9079 = vmatpush3.bf16.msra.mxu0 %v9076_v34  ;;  %v8212_v33 = vpop.f32.mrb[28].mxu0 }
 0x674   :  { %9081 = vmatprep.subr.bf16.mxu0 %v9080_v51  ;;  %v1222_v55 = vpop.f32.mrb[29].mxu0 }
 0x675   :  { %8223 = vmatprep.mubr.msk.f32.mxu0 %vm911_vm3, %v1222_v55  ;;  %v9840_v1 = vpop.eup %9839 }
 0x676   :  { %8224 = vmatmul.mubr.msk.f32.gmra.mrb[34].mxu0 %vm911_vm3, %v8212_v33  ;;  %v9842_v2 = vpop.eup %9841  ;;  %v1585_v56 = vmul.f32 %v9840_v1, %v10987_v8 }
 0x677   :  { %9083 = vmatpush3.bf16.msra.mxu0 %v9080_v51  ;;  %v8215_v39 = vpop.f32.mrb[30].mxu0  ;;  %v1586_v3 = vmul.f32 %v9842_v2, %v10983_v6  ;;  %v7186_v6 = vld [vmem:[%s12499_s14] ss:$0 sm:$0xff] }
 0x678   :  { %9085 = vmatprep.subr.bf16.mxu0 %v9084_v30  ;;  %v1232_v59 = vpop.f32.mrb[31].mxu0 }
 0x679   :  { %8226 = vmatprep.mubr.msk.f32.mxu0 %vm911_vm3, %v1232_v59 }
 0x67a   :  { %8227 = vmatmul.mubr.msk.f32.gmra.mrb[36].mxu0 %vm911_vm3, %v8215_v39 }
 0x67b   :  { %9087 = vmatpush3.bf16.msra.mxu0 %v9084_v30  ;;  %8262 = vmatprep.mubr.msk.f32.mxu0 %vm1043_vm5, %v1581_v38 }
 0x67c   :  { %9089 = vmatprep.subr.bf16.mxu0 %v9088_v60 }
 0x67e   :  { %8263 = vmatmul.mubr.msk.f32.vlgmr.msra.gmra.mrb[38].mxu0 %vm1043_vm5, %v1582_v63 }
 0x67f   :  { %8265 = vmatprep.mubr.msk.f32.mxu0 %vm1043_vm5, %v1583_v0  ;;  %9091 = vmatpush3.bf16.msra.mxu0 %v9088_v60 }
 0x682   :  { %8266 = vmatmul.mubr.msk.f32.gmra.mrb[40].mxu0 %vm1043_vm5, %v1584_v53 }
 0x683   :  { %8268 = vmatprep.mubr.msk.f32.mxu0 %vm1043_vm5, %v1585_v56 }
 0x686   :  { %8269 = vmatmul.mubr.msk.f32.gmra.mrb[42].mxu0 %vm1043_vm5, %v1586_v3 }
 0x751   :  { %v8264_v4 = vpop.f32.mrb[38].mxu0 }
 0x752   :  { %v1689_v36 = vpop.f32.mrb[39].mxu0 }
 0x753   :  { %8275 = vmatprep.mubr.msk.f32.mxu0 %vm911_vm3, %v1689_v36 }
 0x754   :  { %8276 = vmatmul.mubr.msk.f32.vlgmr.msra.gmra.mrb[32].mxu0 %vm911_vm3, %v8264_v4 }
 0x755   :  { %v8267_v46 = vpop.f32.mrb[40].mxu0 }
 0x756   :  { %v1699_v5 = vpop.f32.mrb[41].mxu0 }
 0x757   :  { %8278 = vmatprep.mubr.msk.f32.mxu0 %vm911_vm3, %v1699_v5 }
 0x758   :  { %8279 = vmatmul.mubr.msk.f32.gmra.mrb[34].mxu0 %vm911_vm3, %v8267_v46 }
 0x759   :  { %v8270_v61 = vpop.f32.mrb[42].mxu0 }
 0x75a   :  { %v1709_v7 = vpop.f32.mrb[43].mxu0 }
 0x75b   :  { %8281 = vmatprep.mubr.msk.f32.mxu0 %vm911_vm3, %v1709_v7  ;;  %v1949_v7 = vld [vmem:[%s12500_s19 + $0x8] sm:$0xff] }
 0x75c   :  { %8282 = vmatmul.mubr.msk.f32.gmra.mrb[36].mxu0 %vm911_vm3, %v8270_v61  ;;  %v1948_v61 = vld [vmem:[%s12500_s19] sm:$0xff] }
 0x827   :  { %v8277_v8 = vpop.f32.mrb[32].mxu0 }
 0x828   :  { %v9489_v9 = vadd.f32 %v8277_v8, %v7186_v6  ;;  %v1802_v10 = vpop.f32.mrb[33].mxu0  ;;  %v1950_v8 = vld [vmem:[%s12500_s19 + $0x10] sm:$0xff] }
 0x829   :  { %v9490_v11 = vadd.f32 %v7186_v6, %v1802_v10 }
 0x82a   :  { %v1838_v15 = vadd.f32 %v9489_v9, %v10713_v13  ;;  %v1951_v9 = vld [vmem:[%s12500_s19 + $0x18] sm:$0xff] }
 0x82b   :  { %v8280_v17 = vpop.f32.mrb[34].mxu0  ;;  %v1837_v20 = vadd.f32 %v9490_v11, %v10711_v12  ;;  %v9096_v10 = vpack.c.bf16 %v1951_v9, %v1950_v8  ;;  %v2102_v11 = vld [vmem:[%s12501_s21] sm:$0xff] }
 0x82c   :  { %v1812_v32 = vpop.f32.mrb[35].mxu0  ;;  %v1848_v21 = vsel %vm778_vm2, %v1838_v15, 0.0  ;;  %v9491_v26 = vadd.f32 %v8280_v17, %v7186_v6  ;;  %v2104_v17 = vld [vmem:[%s12501_s21 + $0x10] sm:$0xff] }
 0x82d   :  { %v9492_v23 = vadd.f32 %v7186_v6, %v1812_v32  ;;  %1849 = vadd.xlane.f32.xlu0 %v1848_v21  ;;  %v1845_v28 = vsel %vm778_vm2, %v1837_v20, 0.0  ;;  %v2105_v32 = vld [vmem:[%s12501_s21 + $0x18] sm:$0xff] }
 0x82e   :  { %1846 = vadd.xlane.f32.xlu1 %v1845_v28  ;;  %v1840_v41 = vadd.f32 %v9491_v26, %v10727_v19  ;;  %v9104_v21 = vpack.c.bf16 %v2105_v32, %v2104_v17  ;;  %v2106_v26 = vld [vmem:[%s12501_s21 + $0x20] sm:$0xff]  ;;  %v2112_v17 = vld [vmem:[%s12501_s21 + $0x50] sm:$0xff] }
 0x82f   :  { %v8283_v34 = vpop.f32.mrb[36].mxu0  ;;  %v1839_v35 = vadd.f32 %v9492_v23, %v10725_v18  ;;  %v2107_v23 = vld [vmem:[%s12501_s21 + $0x28] sm:$0xff] }
 0x830   :  { %v1822_v40 = vpop.f32.mrb[37].mxu0  ;;  %v9493_v42 = vadd.f32 %v8283_v34, %v7186_v6  ;;  %v1854_v45 = vsel %vm778_vm2, %v1840_v41, 0.0  ;;  %v9108_v28 = vpack.c.bf16 %v2107_v23, %v2106_v26  ;;  %v2115_v26 = vld [vmem:[%s12501_s21 + $0x68] sm:$0xff] }
 0x831   :  { %v9494_v43 = vadd.f32 %v7186_v6, %v1822_v40  ;;  %v1851_v13 = vsel %vm778_vm2, %v1839_v35, 0.0  ;;  %v9092_v6 = vpack.c.bf16 %v1949_v7, %v1948_v61 }
 0x832   :  { %1852 = vadd.xlane.f32.xlu1 %v1851_v13  ;;  %v1842_v37 = vadd.f32 %v9493_v42, %v10741_v25 }
 0x833   :  { %v1841_v12 = vadd.f32 %v9494_v43, %v10739_v24  ;;  %9093 = vmatprep.subr.bf16.mxu1 %v9092_v6 }
 0x834   :  { %v1860_v18 = vsel %vm778_vm2, %v1842_v37, 0.0  ;;  %9095 = vmatpush3.bf16.msra.mxu1 %v9092_v6 }
 0x835   :  { %v1857_v47 = vsel %vm778_vm2, %v1841_v12, 0.0  ;;  %9097 = vmatprep.subr.bf16.mxu1 %v9096_v10 }
 0x836   :  { %1855 = vadd.xlane.f32.xlu1 %v1854_v45  ;;  %1858 = vadd.xlane.f32.xlu0 %v1857_v47 }
 0x838   :  { %9099 = vmatpush3.bf16.msra.mxu1 %v9096_v10  ;;  %v2110_v10 = vld [vmem:[%s12501_s21 + $0x40] sm:$0xff] }
 0x83a   :  { %1861 = vadd.xlane.f32.xlu1 %v1860_v18 }
 0x8ba   :  { %v1850_v51 = vpop.xlane.xlu0 %1849 }
 0x8bb   :  { %v1865_v54 = vmul.f32 0.03125, %v1850_v51  ;;  %v1847_v22 = vpop.xlane.xlu1 %1846 }
 0x8bc   :  { %v1864_v33 = vmul.f32 0.03125, %v1847_v22 }
 0x8bd   :  { %v11048_v55 = vsub.f32 %v1838_v15, %v1865_v54  ;;  %v2103_v15 = vld [vmem:[%s12501_s21 + $0x8] sm:$0xff] }
 0x8be   :  { %v11050_v19 = vsub.f32 %v1837_v20, %v1864_v33  ;;  %v9100_v20 = vpack.c.bf16 %v2103_v15, %v2102_v11  ;;  %v2111_v11 = vld [vmem:[%s12501_s21 + $0x48] sm:$0xff] }
 0x8bf   :  { %v1853_v24 = vpop.xlane.xlu1 %1852  ;;  %v1877_v29 = vmul.f32 %v11048_v55, %v11048_v55  ;;  %v9116_v15 = vpack.c.bf16 %v2111_v11, %v2110_v10 }
 0x8c0   :  { %v1866_v52 = vmul.f32 0.03125, %v1853_v24  ;;  %v1876_v25 = vmul.f32 %v11050_v19, %v11050_v19  ;;  %9101 = vmatprep.subr.bf16.mxu0 %v9100_v20 }
 0x8c1   :  { %v1885_v58 = vsel %vm778_vm2, %v1877_v29, 0.0  ;;  %9103 = vmatpush3.bf16.msra.mxu0 %v9100_v20  ;;  %v2113_v20 = vld [vmem:[%s12501_s21 + $0x58] sm:$0xff] }
 0x8c2   :  { %v11057_v30 = vsub.f32 %v1839_v35, %v1866_v52  ;;  %1886 = vadd.xlane.f32.xlu1 %v1885_v58  ;;  %v1882_v39 = vsel %vm778_vm2, %v1876_v25, 0.0  ;;  %9105 = vmatprep.subr.bf16.mxu0 %v9104_v21  ;;  %v7211_v52 = vld [vmem:[%s12502_s15] ss:$0 sm:$0xff]  ;;  %v9120_v32 = vpack.c.bf16 %v2113_v20, %v2112_v17 }
 0x8c3   :  { %v1856_v59 = vpop.xlane.xlu1 %1855  ;;  %1883 = vadd.xlane.f32.xlu0 %v1882_v39  ;;  %v1859_v60 = vpop.xlane.xlu0 %1858  ;;  %v7220_v20 = vld [vmem:[%s12505_s22] ss:$0 sm:$0xff] }
 0x8c4   :  { %v1867_v57 = vmul.f32 0.03125, %v1856_v59  ;;  %v1868_v38 = vmul.f32 0.03125, %v1859_v60  ;;  %v1878_v62 = vmul.f32 %v11057_v30, %v11057_v30 }
 0x8c5   :  { %9107 = vmatpush3.bf16.msra.mxu0 %v9104_v21  ;;  %v2114_v21 = vld [vmem:[%s12501_s21 + $0x60] sm:$0xff] }
 0x8c6   :  { %v11062_v63 = vsub.f32 %v1840_v41, %v1867_v57  ;;  %v11064_v50 = vsub.f32 %v1841_v12, %v1868_v38  ;;  %v1888_v0 = vsel %vm778_vm2, %v1878_v62, 0.0  ;;  %9109 = vmatprep.subr.bf16.mxu0 %v9108_v28  ;;  %v7212_v57 = vld [vmem:[%s12503_s16] ss:$0 sm:$0xff]  ;;  %v9124_v23 = vpack.c.bf16 %v2115_v26, %v2114_v21 }
 0x8c7   :  { %v1862_v1 = vpop.xlane.xlu1 %1861  ;;  %1889 = vadd.xlane.f32.xlu0 %v1888_v0 }
 0x8c8   :  { %v1869_v53 = vmul.f32 0.03125, %v1862_v1  ;;  %v1879_v2 = vmul.f32 %v11062_v63, %v11062_v63  ;;  %v1880_v56 = vmul.f32 %v11064_v50, %v11064_v50 }
 0x8c9   :  { %9111 = vmatpush3.bf16.msra.mxu0 %v9108_v28  ;;  %v2116_v28 = vld [vmem:[%s12501_s21 + $0x70] sm:$0xff] }
 0x8ca   :  { %v11071_v3 = vsub.f32 %v1842_v37, %v1869_v53  ;;  %v1891_v4 = vsel %vm778_vm2, %v1879_v2, 0.0  ;;  %v1894_v36 = vsel %vm778_vm2, %v1880_v56, 0.0 }
 0x8cb   :  { %1892 = vadd.xlane.f32.xlu1 %v1891_v4  ;;  %1895 = vadd.xlane.f32.xlu0 %v1894_v36 }
 0x8cc   :  { %v1881_v46 = vmul.f32 %v11071_v3, %v11071_v3 }
 0x8ce   :  { %v1897_v5 = vsel %vm778_vm2, %v1881_v46, 0.0 }
 0x8cf   :  { %1898 = vadd.xlane.f32.xlu1 %v1897_v5 }
 0x94f   :  { %v1887_v34 = vpop.xlane.xlu1 %1886 }
 0x950   :  { %v1901_v35 = vmul.f32 0.03125, %v1887_v34  ;;  %v1884_v40 = vpop.xlane.xlu0 %1883  ;;  %v2117_v34 = vld [vmem:[%s12501_s21 + $0x78] sm:$0xff] }
 0x951   :  { %v1900_v42 = vmul.f32 0.03125, %v1884_v40  ;;  %v7213_v40 = vld [vmem:[%s12504_s20] ss:$0 sm:$0xff] }
 0x952   :  { %v1907_v43 = vadd.f32 1e-05, %v1901_v35  ;;  %v9128_v35 = vpack.c.bf16 %v2117_v34, %v2116_v28 }
 0x953   :  { %v1906_v13 = vadd.f32 1e-05, %v1900_v42 }
 0x954   :  { %9843 = vrsqrt.f32 %v1907_v43  ;;  %v1890_v41 = vpop.xlane.xlu0 %1889 }
 0x955   :  { %9845 = vrsqrt.f32 %v1906_v13  ;;  %v1902_v12 = vmul.f32 0.03125, %v1890_v41 }
 0x957   :  { %v1908_v45 = vadd.f32 1e-05, %v1902_v12 }
 0x958   :  { %v1893_v47 = vpop.xlane.xlu1 %1892  ;;  %v1896_v37 = vpop.xlane.xlu0 %1895 }
 0x959   :  { %9847 = vrsqrt.f32 %v1908_v45  ;;  %v1903_v18 = vmul.f32 0.03125, %v1893_v47  ;;  %v1904_v51 = vmul.f32 0.03125, %v1896_v37 }
 0x95b   :  { %v1909_v54 = vadd.f32 1e-05, %v1903_v18  ;;  %v1910_v22 = vadd.f32 1e-05, %v1904_v51 }
 0x95c   :  { %v1899_v33 = vpop.xlane.xlu1 %1898 }
 0x95d   :  { %9849 = vrsqrt.f32 %v1909_v54  ;;  %v1905_v24 = vmul.f32 0.03125, %v1899_v33 }
 0x95e   :  { %v9844_v29 = vpop.eup %9843  ;;  %9851 = vrsqrt.f32 %v1910_v22 }
 0x95f   :  { %v9846_v25 = vpop.eup %9845  ;;  %v1919_v58 = vmul.f32 %v9844_v29, %v11048_v55  ;;  %v1911_v39 = vadd.f32 1e-05, %v1905_v24 }
 0x960   :  { %v1918_v59 = vmul.f32 %v9846_v25, %v11050_v19 }
 0x961   :  { %v1931_v60 = vmul.f32 %v7211_v52, %v1919_v58  ;;  %9853 = vrsqrt.f32 %v1911_v39 }
 0x962   :  { %v1930_v38 = vmul.f32 %v7211_v52, %v1918_v59 }
 0x963   :  { %v9848_v62 = vpop.eup %9847  ;;  %v11119_v53 = vadd.f32 %v7212_v57, %v1931_v60 }
 0x964   :  { %v11116_v0 = vadd.f32 %v7212_v57, %v1930_v38  ;;  %v1920_v1 = vmul.f32 %v9848_v62, %v11057_v30 }
 0x966   :  { %8292 = vmatprep.mubr.msk.f32.mxu1 %vm778_vm2, %v11116_v0  ;;  %v1932_v55 = vmul.f32 %v7211_v52, %v1920_v1 }
 0x967   :  { %v9850_v2 = vpop.eup %9849  ;;  %8293 = vmatmul.mubr.msk.f32.vlgmr.msra.gmra.mrb[28].mxu1 %vm778_vm2, %v11119_v53 }
 0x968   :  { %v9852_v19 = vpop.eup %9851  ;;  %v11125_v56 = vadd.f32 %v7212_v57, %v1932_v55  ;;  %v1921_v4 = vmul.f32 %v9850_v2, %v11062_v63 }
 0x969   :  { %v1922_v36 = vmul.f32 %v9852_v19, %v11064_v50  ;;  %v2108_v50 = vld [vmem:[%s12501_s21 + $0x30] sm:$0xff] }
 0x96a   :  { %8295 = vmatprep.mubr.msk.f32.mxu1 %vm778_vm2, %v11125_v56  ;;  %v1933_v30 = vmul.f32 %v7211_v52, %v1921_v4 }
 0x96b   :  { %v9854_v46 = vpop.eup %9853  ;;  %v1934_v5 = vmul.f32 %v7211_v52, %v1922_v36 }
 0x96c   :  { %v11131_v61 = vadd.f32 %v7212_v57, %v1933_v30  ;;  %v1923_v7 = vmul.f32 %v9854_v46, %v11071_v3  ;;  %v2109_v3 = vld [vmem:[%s12501_s21 + $0x38] sm:$0xff] }
 0x96d   :  { %v11134_v6 = vadd.f32 %v7212_v57, %v1934_v5  ;;  %v9112_v9 = vpack.c.bf16 %v2109_v3, %v2108_v50 }
 0x96e   :  { %8296 = vmatmul.mubr.msk.f32.gmra.mrb[30].mxu1 %vm778_vm2, %v11131_v61  ;;  %v1935_v8 = vmul.f32 %v7211_v52, %v1923_v7 }
 0x96f   :  { %8298 = vmatprep.mubr.msk.f32.mxu1 %vm778_vm2, %v11134_v6  ;;  %9113 = vmatprep.subr.bf16.mxu0 %v9112_v9 }
 0x970   :  { %v11140_v63 = vadd.f32 %v7212_v57, %v1935_v8  ;;  %9115 = vmatpush3.bf16.msra.mxu0 %v9112_v9 }
 0x971   :  { %9117 = vmatprep.subr.bf16.mxu0 %v9116_v15 }
 0x972   :  { %8299 = vmatmul.mubr.msk.f32.gmra.mrb[32].mxu1 %vm778_vm2, %v11140_v63 }
 0x974   :  { %9119 = vmatpush3.bf16.msra.mxu0 %v9116_v15 }
 0x975   :  { %9121 = vmatprep.subr.bf16.mxu0 %v9120_v32 }
 0x978   :  { %9123 = vmatpush3.bf16.msra.mxu0 %v9120_v32 }
 0x979   :  { %9125 = vmatprep.subr.bf16.mxu0 %v9124_v23 }
 0x97c   :  { %9127 = vmatpush3.bf16.msra.mxu0 %v9124_v23 }
 0x97d   :  { %9129 = vmatprep.subr.bf16.mxu0 %v9128_v35 }
 0x980   :  { %9131 = vmatpush3.bf16.msra.mxu0 %v9128_v35 }
 0xa3a   :  { %v8294_v42 = vpop.f32.mrb[28].mxu1 }
 0xa3b   :  { %v2049_v43 = vadd.f32 %v8294_v42, %v7213_v40  ;;  %v2043_v13 = vpop.f32.mrb[29].mxu1 }
 0xa3c   :  { %v2044_v41 = vadd.f32 %v7213_v40, %v2043_v13 }
 0xa3d   :  { %v2079_v12 = vmul.f32 0.70710677, %v2049_v43  ;;  %v2073_v62 = vmul.f32 0.5, %v2049_v43 }
 0xa3e   :  { %v2078_v45 = vmul.f32 0.70710677, %v2044_v41  ;;  %v2072_v57 = vmul.f32 0.5, %v2044_v41 }
 0xa3f   :  { %9855 = verf.f32 %v2079_v12 }
 0xa40   :  { %9857 = verf.f32 %v2078_v45 }
 0xa41   :  { %v8297_v47 = vpop.f32.mrb[30].mxu1 }
 0xa42   :  { %v2059_v37 = vadd.f32 %v8297_v47, %v7213_v40  ;;  %v2053_v18 = vpop.f32.mrb[31].mxu1 }
 0xa43   :  { %v2054_v51 = vadd.f32 %v7213_v40, %v2053_v18 }
 0xa44   :  { %v2081_v54 = vmul.f32 0.70710677, %v2059_v37  ;;  %v2075_v46 = vmul.f32 0.5, %v2059_v37 }
 0xa45   :  { %v2080_v22 = vmul.f32 0.70710677, %v2054_v51  ;;  %v8300_v33 = vpop.f32.mrb[32].mxu1  ;;  %v2074_v36 = vmul.f32 0.5, %v2054_v51 }
 0xa46   :  { %9859 = verf.f32 %v2081_v54  ;;  %v2069_v24 = vadd.f32 %v8300_v33, %v7213_v40  ;;  %v2063_v29 = vpop.f32.mrb[33].mxu1 }
 0xa47   :  { %9861 = verf.f32 %v2080_v22  ;;  %v2064_v52 = vadd.f32 %v7213_v40, %v2063_v29 }
 0xa48   :  { %v2083_v25 = vmul.f32 0.70710677, %v2069_v24  ;;  %v2077_v11 = vmul.f32 0.5, %v2069_v24 }
 0xa49   :  { %v9856_v58 = vpop.eup %9855  ;;  %v2082_v39 = vmul.f32 0.70710677, %v2064_v52  ;;  %v2076_v9 = vmul.f32 0.5, %v2064_v52 }
 0xa4a   :  { %v9858_v59 = vpop.eup %9857  ;;  %v2091_v60 = vadd.f32 1.0, %v9856_v58  ;;  %9863 = verf.f32 %v2083_v25 }
 0xa4b   :  { %v2090_v38 = vadd.f32 1.0, %v9858_v59  ;;  %9865 = verf.f32 %v2082_v39 }
 0xa4c   :  { %v2097_v55 = vmul.f32 %v2091_v60, %v2073_v62 }
 0xa4d   :  { %v2096_v1 = vmul.f32 %v2090_v38, %v2072_v57 }
 0xa4f   :  { %8333 = vmatprep.mubr.f32.mxu0 %v2096_v1 }
 0xa50   :  { %v9860_v2 = vpop.eup %9859  ;;  %8334 = vmatmul.mubr.f32.vlgmr.msra.gmra.mrb[44].mxu0 %v2097_v55 }
 0xa51   :  { %v9862_v19 = vpop.eup %9861  ;;  %v2093_v4 = vadd.f32 1.0, %v9860_v2 }
 0xa52   :  { %v2092_v30 = vadd.f32 1.0, %v9862_v19 }
 0xa53   :  { %v2099_v3 = vmul.f32 %v2093_v4, %v2075_v46 }
 0xa54   :  { %v9864_v5 = vpop.eup %9863  ;;  %v2098_v7 = vmul.f32 %v2092_v30, %v2074_v36 }
 0xa55   :  { %v9866_v8 = vpop.eup %9865  ;;  %v2095_v50 = vadd.f32 1.0, %v9864_v5 }
 0xa56   :  { %v2094_v10 = vadd.f32 1.0, %v9866_v8  ;;  %8336 = vmatprep.mubr.f32.mxu0 %v2098_v7 }
 0xa57   :  { %8337 = vmatmul.mubr.f32.gmra.mrb[46].mxu0 %v2099_v3  ;;  %v2101_v17 = vmul.f32 %v2095_v50, %v2077_v11 }
 0xa58   :  { %v2100_v15 = vmul.f32 %v2094_v10, %v2076_v9 }
 0xa5a   :  { %8339 = vmatprep.mubr.f32.mxu0 %v2100_v15  ;;  %v7227_v15 = vld [vmem:[%s12531_s10 + $0x20] sm:$0xff] }
 0xa5b   :  { %8340 = vmatmul.mubr.f32.gmra.mrb[48].mxu0 %v2101_v17  ;;  %v7228_v17 = vld [vmem:[%s12531_s10 + $0x28] sm:$0xff] }
 0xb23   :  { %v8335_v32 = vpop.f32.mrb[44].mxu0 }
 0xb24   :  { %v2197_v21 = vadd.f32 %v8335_v32, %v7220_v20  ;;  %v2191_v26 = vpop.f32.mrb[45].mxu0  ;;  %v7229_v32 = vld [vmem:[%s12531_s10 + $0x30] sm:$0xff] }
 0xb25   :  { %v2192_v23 = vadd.f32 %v7220_v20, %v2191_v26 }
 0xb26   :  { %v2221_v28 = vadd.f32 %v2197_v21, %v11119_v53  ;;  %v7230_v21 = vld [vmem:[%s12531_s10 + $0x38] sm:$0xff] }
 0xb27   :  { %v2220_v34 = vadd.f32 %v2192_v23, %v11116_v0  ;;  %v9136_v26 = vpack.c.bf16 %v7230_v21, %v7229_v32 }
 0xb28   :  { %v2231_v35 = vsel %vm778_vm2, %v2221_v28, 0.0 }
 0xb29   :  { %2232 = vadd.xlane.f32.xlu1 %v2231_v35  ;;  %v2228_v40 = vsel %vm778_vm2, %v2220_v34, 0.0 }
 0xb2a   :  { %2229 = vadd.xlane.f32.xlu0 %v2228_v40  ;;  %v8338_v42 = vpop.f32.mrb[46].mxu0 }
 0xb2b   :  { %v2207_v43 = vadd.f32 %v8338_v42, %v7220_v20  ;;  %v2201_v13 = vpop.f32.mrb[47].mxu0 }
 0xb2c   :  { %v2202_v41 = vadd.f32 %v7220_v20, %v2201_v13 }
 0xb2d   :  { %v2223_v12 = vadd.f32 %v2207_v43, %v11131_v61 }
 0xb2e   :  { %v8341_v45 = vpop.f32.mrb[48].mxu0  ;;  %v2222_v47 = vadd.f32 %v2202_v41, %v11125_v56 }
 0xb2f   :  { %v2217_v37 = vadd.f32 %v8341_v45, %v7220_v20  ;;  %v2211_v18 = vpop.f32.mrb[49].mxu0  ;;  %v2237_v53 = vsel %vm778_vm2, %v2223_v12, 0.0 }
 0xb30   :  { %v2212_v0 = vadd.f32 %v7220_v20, %v2211_v18  ;;  %2238 = vadd.xlane.f32.xlu1 %v2237_v53  ;;  %v2234_v51 = vsel %vm778_vm2, %v2222_v47, 0.0  ;;  %v9132_v20 = vpack.c.bf16 %v7228_v17, %v7227_v15 }
 0xb31   :  { %2235 = vadd.xlane.f32.xlu0 %v2234_v51  ;;  %v2225_v54 = vadd.f32 %v2217_v37, %v11140_v63 }
 0xb32   :  { %v2224_v22 = vadd.f32 %v2212_v0, %v11134_v6  ;;  %9133 = vmatprep.subr.bf16.mxu1 %v9132_v20 }
 0xb33   :  { %v2243_v33 = vsel %vm778_vm2, %v2225_v54, 0.0  ;;  %9135 = vmatpush3.bf16.msra.mxu1 %v9132_v20 }
 0xb34   :  { %2244 = vadd.xlane.f32.xlu1 %v2243_v33  ;;  %v2240_v61 = vsel %vm778_vm2, %v2224_v22, 0.0  ;;  %9137 = vmatprep.subr.bf16.mxu1 %v9136_v26 }
 0xb35   :  { %2241 = vadd.xlane.f32.xlu0 %v2240_v61 }
 0xb37   :  { %9139 = vmatpush3.bf16.msra.mxu1 %v9136_v26 }
 0xbb6   :  { %v2233_v56 = vpop.xlane.xlu1 %2232 }
 0xbb7   :  { %v2247_v24 = vmul.f32 0.03125, %v2233_v56  ;;  %v2230_v29 = vpop.xlane.xlu0 %2229 }
 0xbb8   :  { %v2246_v52 = vmul.f32 0.03125, %v2230_v29 }
 0xbb9   :  { %v11192_v25 = vsub.f32 %v2221_v28, %v2247_v24 }
 0xbba   :  { %v11194_v58 = vsub.f32 %v2220_v34, %v2246_v52  ;;  %v7222_v52 = vld [vmem:[%s12507_s18] ss:$0 sm:$0xff] }
 0xbbb   :  { %v2259_v39 = vmul.f32 %v11192_v25, %v11192_v25 }
 0xbbc   :  { %v2258_v6 = vmul.f32 %v11194_v58, %v11194_v58 }
 0xbbd   :  { %v2239_v63 = vpop.xlane.xlu1 %2238  ;;  %v2267_v59 = vsel %vm778_vm2, %v2259_v39, 0.0 }
 0xbbe   :  { %v2249_v60 = vmul.f32 0.03125, %v2239_v63  ;;  %2268 = vadd.xlane.f32.xlu1 %v2267_v59  ;;  %v2236_v57 = vpop.xlane.xlu0 %2235  ;;  %v2264_v38 = vsel %vm778_vm2, %v2258_v6, 0.0 }
 0xbbf   :  { %v2248_v62 = vmul.f32 0.03125, %v2236_v57  ;;  %2265 = vadd.xlane.f32.xlu0 %v2264_v38 }
 0xbc0   :  { %v11202_v1 = vsub.f32 %v2223_v12, %v2249_v60 }
 0xbc1   :  { %v11204_v55 = vsub.f32 %v2222_v47, %v2248_v62  ;;  %v2245_v2 = vpop.xlane.xlu1 %2244 }
 0xbc2   :  { %v2251_v19 = vmul.f32 0.03125, %v2245_v2  ;;  %v2242_v4 = vpop.xlane.xlu0 %2241  ;;  %v2261_v36 = vmul.f32 %v11202_v1, %v11202_v1 }
 0xbc3   :  { %v2250_v30 = vmul.f32 0.03125, %v2242_v4  ;;  %v2260_v46 = vmul.f32 %v11204_v55, %v11204_v55 }
 0xbc4   :  { %v11210_v5 = vsub.f32 %v2225_v54, %v2251_v19  ;;  %v2273_v7 = vsel %vm778_vm2, %v2261_v36, 0.0 }
 0xbc5   :  { %v11213_v8 = vsub.f32 %v2224_v22, %v2250_v30  ;;  %2274 = vadd.xlane.f32.xlu1 %v2273_v7  ;;  %v2270_v50 = vsel %vm778_vm2, %v2260_v46, 0.0  ;;  %v7221_v22 = vld [vmem:[%s12506_s17] ss:$0 sm:$0xff] }
 0xbc6   :  { %2271 = vadd.xlane.f32.xlu0 %v2270_v50  ;;  %v2263_v3 = vmul.f32 %v11210_v5, %v11210_v5 }
 0xbc7   :  { %v2262_v9 = vmul.f32 %v11213_v8, %v11213_v8 }
 0xbc8   :  { %v2279_v10 = vsel %vm778_vm2, %v2263_v3, 0.0 }
 0xbc9   :  { %2280 = vadd.xlane.f32.xlu1 %v2279_v10  ;;  %v2276_v11 = vsel %vm778_vm2, %v2262_v9, 0.0 }
 0xbca   :  { %2277 = vadd.xlane.f32.xlu0 %v2276_v11 }
 0xc4b   :  { %v2269_v23 = vpop.xlane.xlu1 %2268 }
 0xc4c   :  { %v2283_v28 = vmul.f32 0.03125, %v2269_v23  ;;  %v2266_v34 = vpop.xlane.xlu0 %2265 }
 0xc4d   :  { %v2282_v35 = vmul.f32 0.03125, %v2266_v34 }
 0xc4e   :  { %v2289_v40 = vadd.f32 1e-05, %v2283_v28 }
 0xc4f   :  { %v2288_v42 = vadd.f32 1e-05, %v2282_v35 }
 0xc50   :  { %9867 = vrsqrt.f32 %v2289_v40 }
 0xc51   :  { %9869 = vrsqrt.f32 %v2288_v42 }
 0xc52   :  { %v2275_v43 = vpop.xlane.xlu1 %2274 }
 0xc53   :  { %v2285_v13 = vmul.f32 0.03125, %v2275_v43  ;;  %v2272_v41 = vpop.xlane.xlu0 %2271 }
 0xc54   :  { %v2284_v12 = vmul.f32 0.03125, %v2272_v41 }
 0xc55   :  { %v2291_v45 = vadd.f32 1e-05, %v2285_v13 }
 0xc56   :  { %v2290_v47 = vadd.f32 1e-05, %v2284_v12  ;;  %v2281_v37 = vpop.xlane.xlu1 %2280 }
 0xc57   :  { %9871 = vrsqrt.f32 %v2291_v45  ;;  %v2287_v18 = vmul.f32 0.03125, %v2281_v37  ;;  %v2278_v53 = vpop.xlane.xlu0 %2277 }
 0xc58   :  { %9873 = vrsqrt.f32 %v2290_v47  ;;  %v2286_v0 = vmul.f32 0.03125, %v2278_v53 }
 0xc59   :  { %v2293_v51 = vadd.f32 1e-05, %v2287_v18 }
 0xc5a   :  { %v9868_v54 = vpop.eup %9867  ;;  %v2292_v33 = vadd.f32 1e-05, %v2286_v0 }
 0xc5b   :  { %v9870_v61 = vpop.eup %9869  ;;  %v2301_v56 = vmul.f32 %v9868_v54, %v11192_v25  ;;  %9875 = vrsqrt.f32 %v2293_v51 }
 0xc5c   :  { %9877 = vrsqrt.f32 %v2292_v33  ;;  %v2300_v24 = vmul.f32 %v9870_v61, %v11194_v58 }
 0xc5d   :  { %v2313_v29 = vmul.f32 %v7221_v22, %v2301_v56 }
 0xc5e   :  { %v2312_v39 = vmul.f32 %v7221_v22, %v2300_v24 }
 0xc5f   :  { %v11244_v59 = vadd.f32 %v7222_v52, %v2313_v29 }
 0xc60   :  { %v11242_v6 = vadd.f32 %v7222_v52, %v2312_v39 }
 0xc61   :  { %v9872_v63 = vpop.eup %9871 }
 0xc62   :  { %v9874_v60 = vpop.eup %9873  ;;  %8350 = vmatprep.mubr.msk.f32.mxu1 %vm778_vm2, %v11242_v6  ;;  %v2303_v25 = vmul.f32 %v9872_v63, %v11202_v1 }
 0xc63   :  { %8351 = vmatmul.mubr.msk.f32.vlgmr.msra.gmra.mrb[34].mxu1 %vm778_vm2, %v11244_v59  ;;  %v2302_v58 = vmul.f32 %v9874_v60, %v11204_v55 }
 0xc64   :  { %v2315_v57 = vmul.f32 %v7221_v22, %v2303_v25 }
 0xc65   :  { %v9876_v38 = vpop.eup %9875  ;;  %v2314_v62 = vmul.f32 %v7221_v22, %v2302_v58 }
 0xc66   :  { %v9878_v2 = vpop.eup %9877  ;;  %v2305_v19 = vmul.f32 %v9876_v38, %v11210_v5  ;;  %v11256_v30 = vadd.f32 %v7222_v52, %v2315_v57  ;;  %v7232_v5 = vld [vmem:[%s12495_s12 + $0x1] ss:$0 sm:$0xff] }
 0xc67   :  { %v11253_v4 = vadd.f32 %v7222_v52, %v2314_v62  ;;  %v2304_v36 = vmul.f32 %v9878_v2, %v11213_v8 }
 0xc68   :  { %v2317_v46 = vmul.f32 %v7221_v22, %v2305_v19 }
 0xc69   :  { %8353 = vmatprep.mubr.msk.f32.mxu1 %vm778_vm2, %v11253_v4  ;;  %v2316_v1 = vmul.f32 %v7221_v22, %v2304_v36 }
 0xc6a   :  { %8354 = vmatmul.mubr.msk.f32.gmra.mrb[36].mxu1 %vm778_vm2, %v11256_v30  ;;  %v11264_v7 = vadd.f32 %v7222_v52, %v2317_v46 }
 0xc6b   :  { %v11262_v55 = vadd.f32 %v7222_v52, %v2316_v1 }
 0xc6d   :  { %8356 = vmatprep.mubr.msk.f32.mxu1 %vm778_vm2, %v11262_v55 }
 0xc6e   :  { %8357 = vmatmul.mubr.msk.f32.gmra.mrb[38].mxu1 %vm778_vm2, %v11264_v7 }
 0xd36   :  { %v8352_v8 = vpop.f32.mrb[34].mxu1 }
 0xd37   :  { %v11273_v50 = vadd.f32 %v8352_v8, %v7232_v5  ;;  %v2432_v3 = vpop.f32.mrb[35].mxu1 }
 0xd38   :  { %v11275_v9 = vadd.f32 %v7232_v5, %v2432_v3 }
 0xd3a   :  { %8371 = vmatprep.mubr.msk.f32.mxu1 %vm911_vm3, %v11275_v9  ;;  %v11281_v10 = vpack.i.bf16 %v11273_v50, %v11275_v9 }
 0xd3c   :  { %9616 = vrot.lane.b32.xlu0 %v11281_v10, %s10134_s28 }
 0xd3d   :  { %v8355_v11 = vpop.f32.mrb[36].mxu1 }
 0xd3e   :  { %v11285_v15 = vadd.f32 %v8355_v11, %v7232_v5  ;;  %v2442_v17 = vpop.f32.mrb[37].mxu1 }
 0xd3f   :  { %v11287_v20 = vadd.f32 %v7232_v5, %v2442_v17 }
 0xd41   :  { %v8358_v32 = vpop.f32.mrb[38].mxu1  ;;  %v11291_v21 = vpack.i.bf16 %v11285_v15, %v11287_v20 }
 0xd42   :  { %v11293_v26 = vadd.f32 %v8358_v32, %v7232_v5  ;;  %v2452_v23 = vpop.f32.mrb[39].mxu1 }
 0xd43   :  { %v11295_v28 = vadd.f32 %v7232_v5, %v2452_v23  ;;  %9621 = vrot.lane.b32.xlu1 %v11291_v21, %s10134_s28 }
 0xd45   :  { %v11301_v34 = vpack.i.bf16 %v11293_v26, %v11295_v28 }
 0xd47   :  { %9626 = vrot.lane.b32.xlu1 %v11301_v34, %s10134_s28 }
 0xdae   :  { %v9617_v35 = vpop.permute.xlu0 %9616 }
 0xdaf   :  { %v9619_v40 = vunpack.i.h.bf16 %v9617_v35  ;;  %v9618_v42 = vunpack.i.l.bf16 %v9617_v35 }
 0xdb1   :  { %v9140_v43 = vpack.c.bf16 %v9619_v40, %v9618_v42 }
 0xdb3   :  { %9142 = vmatprep.subr.msk.bf16.mxu1 %vm10793_vm4, %v9140_v43 }
 0xdb4   :  { %9145 = vmatpush3.bf16.xpose.msk.msra.mxu1 %vm10793_vm4, %v9140_v43 }
 0xdb5   :  { %v9622_v13 = vpop.permute.xlu1 %9621 }
 0xdb6   :  { %v9624_v41 = vunpack.i.h.bf16 %v9622_v13  ;;  %v9623_v12 = vunpack.i.l.bf16 %v9622_v13 }
 0xdb8   :  { %v9146_v45 = vpack.c.bf16 %v9624_v41, %v9623_v12 }
 0xdb9   :  { %v9627_v47 = vpop.permute.xlu1 %9626 }
 0xdba   :  { %v9629_v37 = vunpack.i.h.bf16 %v9627_v47  ;;  %v9628_v18 = vunpack.i.l.bf16 %v9627_v47  ;;  %9148 = vmatprep.subr.msk.bf16.mxu1 %vm10793_vm4, %v9146_v45 }
 0xdbc   :  { %v9152_v53 = vpack.c.bf16 %v9629_v37, %v9628_v18  ;;  %9151 = vmatpush3.bf16.xpose.msk.msra.mxu1 %vm10793_vm4, %v9146_v45 }
 0xdbe   :  { %9154 = vmatprep.subr.msk.bf16.mxu1 %vm10793_vm4, %v9152_v53 }
 0xdc4   :  { %9157 = vmatpush3.bf16.xpose.msk.msra.mxu1 %vm10793_vm4, %v9152_v53 }
 0xdcb   :  { %8372 = vmatmul.mubr.msk.f32.vlgmr.msra.gmra.mrb[40].mxu1 %vm911_vm3, %v11273_v50 }
 0xdcc   :  { %8374 = vmatprep.mubr.msk.f32.mxu1 %vm911_vm3, %v11287_v20 }
 0xdcf   :  { %8375 = vmatmul.mubr.msk.f32.gmra.mrb[42].mxu1 %vm911_vm3, %v11285_v15 }
 0xdd0   :  { %8377 = vmatprep.mubr.msk.f32.mxu1 %vm911_vm3, %v11295_v28 }
 0xdd3   :  { %8378 = vmatmul.mubr.msk.f32.gmra.mrb[44].mxu1 %vm911_vm3, %v11293_v26 }
 0xe9e   :  { %v8373_v0 = vpop.f32.mrb[40].mxu1 }
 0xe9f   :  { %v2601_v51 = vmul.f32 0.25, %v8373_v0  ;;  %v2571_v54 = vpop.f32.mrb[41].mxu1 }
 0xea0   :  { %v2600_v22 = vmul.f32 0.25, %v2571_v54 }
 0xea1   :  { %v2607_v33 = vadd.f32 %v2601_v51, %v10845_v14 }
 0xea2   :  { %v8376_v61 = vpop.f32.mrb[42].mxu1  ;;  %v2606_v56 = vadd.f32 %v2600_v22, %v10847_v16 }
 0xea3   :  { %v2603_v24 = vmul.f32 0.25, %v8376_v61  ;;  %v2581_v29 = vpop.f32.mrb[43].mxu1  ;;  %v2615_v52 = vsel %vm1043_vm5, %v2607_v33, -inf }
 0xea4   :  { %v2602_v39 = vmul.f32 0.25, %v2581_v29  ;;  %2616 = vmax.xlane.f32.xlu1 %v2615_v52  ;;  %v2612_v63 = vsel %vm1043_vm5, %v2606_v56, -inf }
 0xea5   :  { %2613 = vmax.xlane.f32.xlu0 %v2612_v63  ;;  %v2609_v60 = vadd.f32 %v2603_v24, %v10856_v27 }
 0xea6   :  { %v8379_v25 = vpop.f32.mrb[44].mxu1  ;;  %v2608_v2 = vadd.f32 %v2602_v39, %v10861_v31 }
 0xea7   :  { %v2591_v58 = vpop.f32.mrb[45].mxu1  ;;  %v2621_v57 = vsel %vm1043_vm5, %v2609_v60, -inf  ;;  %v2605_v38 = vmul.f32 0.25, %v8379_v25 }
 0xea8   :  { %v2604_v62 = vmul.f32 0.25, %v2591_v58  ;;  %v2618_v36 = vsel %vm1043_vm5, %v2608_v2, -inf }
 0xea9   :  { %2622 = vmax.xlane.f32.xlu0 %v2621_v57  ;;  %v2611_v1 = vadd.f32 %v2605_v38, %v10874_v44 }
 0xeaa   :  { %v2610_v19 = vadd.f32 %v2604_v62, %v10879_v49 }
 0xeab   :  { %v2627_v5 = vsel %vm1043_vm5, %v2611_v1, -inf }
 0xeac   :  { %v2624_v46 = vsel %vm1043_vm5, %v2610_v19, -inf }
 0xead   :  { %2619 = vmax.xlane.f32.xlu0 %v2618_v36  ;;  %2625 = vmax.xlane.f32.xlu1 %v2624_v46 }
 0xeb1   :  { %2628 = vmax.xlane.f32.xlu0 %v2627_v5 }
 0xebe   :  { %9631 = vrot.lane.b32.xlu1 %v11281_v10, %s10136_s7 }
 0xec2   :  { %9641 = vrot.lane.b32.xlu1 %v11301_v34, %s10136_s7 }
 0xec7   :  { %9636 = vrot.lane.b32.xlu0 %v11291_v21, %s10136_s7 }
 0xf31   :  { %v2617_v8 = vpop.xlane.xlu1 %2616 }
 0xf32   :  { %v2631_v3 = vsub.f32 %v2607_v33, %v2617_v8  ;;  %v2614_v11 = vpop.xlane.xlu0 %2613 }
 0xf33   :  { %v2630_v17 = vsub.f32 %v2606_v56, %v2614_v11 }
 0xf34   :  { %v2638_v32 = vmul.f32 1.442695, %v2631_v3 }
 0xf35   :  { %v2636_v23 = vmul.f32 1.442695, %v2630_v17 }
 0xf36   :  { %9879 = vpow2.f32 %v2638_v32  ;;  %v2623_v35 = vpop.xlane.xlu0 %2622 }
 0xf37   :  { %9881 = vpow2.f32 %v2636_v23  ;;  %v2633_v40 = vsub.f32 %v2609_v60, %v2623_v35 }
 0xf39   :  { %v2642_v42 = vmul.f32 1.442695, %v2633_v40 }
 0xf3a   :  { %v2620_v43 = vpop.xlane.xlu0 %2619  ;;  %v2626_v13 = vpop.xlane.xlu1 %2625 }
 0xf3b   :  { %9883 = vpow2.f32 %v2642_v42  ;;  %v2632_v41 = vsub.f32 %v2608_v2, %v2620_v43  ;;  %v2634_v45 = vsub.f32 %v2610_v19, %v2626_v13 }
 0xf3d   :  { %v2640_v12 = vmul.f32 1.442695, %v2632_v41  ;;  %v2644_v22 = vmul.f32 1.442695, %v2634_v45 }
 0xf3e   :  { %v2629_v47 = vpop.xlane.xlu0 %2628  ;;  %v9632_v37 = vpop.permute.xlu1 %9631 }
 0xf3f   :  { %9885 = vpow2.f32 %v2640_v12  ;;  %v2635_v18 = vsub.f32 %v2611_v1, %v2629_v47  ;;  %v9634_v53 = vunpack.i.h.bf16 %v9632_v37  ;;  %v9633_v0 = vunpack.i.l.bf16 %v9632_v37 }
 0xf40   :  { %v11345_v51 = vpop.eup %9879 }
 0xf41   :  { %v9882_v54 = vpop.eup %9881  ;;  %v2646_v33 = vmul.f32 1.442695, %v2635_v18  ;;  %v2651_v61 = vsel %vm1043_vm5, %v11345_v51, 0.0  ;;  %v9158_v56 = vpack.c.bf16 %v9634_v53, %v9633_v0 }
 0xf42   :  { %2652 = vadd.xlane.f32.xlu0 %v2651_v61  ;;  %v9637_v24 = vpop.permute.xlu0 %9636  ;;  %v9642_v29 = vpop.permute.xlu1 %9641  ;;  %v2648_v52 = vsel %vm1043_vm5, %v9882_v54, 0.0 }
 0xf43   :  { %9887 = vpow2.f32 %v2646_v33  ;;  %v9639_v39 = vunpack.i.h.bf16 %v9637_v24  ;;  %v9638_v63 = vunpack.i.l.bf16 %v9637_v24  ;;  %v9644_v60 = vunpack.i.h.bf16 %v9642_v29  ;;  %2649 = vadd.xlane.f32.xlu1 %v2648_v52  ;;  %9159 = vmatprep.subr.bf16.mxu0 %v9158_v56 }
 0xf44   :  { %v9643_v25 = vunpack.i.l.bf16 %v9642_v29  ;;  %9161 = vmatpush3.bf16.msra.mxu0 %v9158_v56  ;;  %9889 = vpow2.f32 %v2644_v22 }
 0xf45   :  { %v9884_v58 = vpop.eup %9883  ;;  %v9162_v57 = vpack.c.bf16 %v9639_v39, %v9638_v63 }
 0xf46   :  { %v2657_v38 = vsel %vm1043_vm5, %v9884_v58, 0.0  ;;  %v9166_v62 = vpack.c.bf16 %v9644_v60, %v9643_v25 }
 0xf47   :  { %2658 = vadd.xlane.f32.xlu0 %v2657_v38  ;;  %9163 = vmatprep.subr.bf16.mxu0 %v9162_v57 }
 0xf48   :  { %9165 = vmatpush3.bf16.msra.mxu0 %v9162_v57 }
 0xf49   :  { %v9886_v2 = vpop.eup %9885  ;;  %9167 = vmatprep.subr.bf16.mxu0 %v9166_v62 }
 0xf4a   :  { %v2654_v19 = vsel %vm1043_vm5, %v9886_v2, 0.0 }
 0xf4b   :  { %2655 = vadd.xlane.f32.xlu1 %v2654_v19 }
 0xf4c   :  { %9169 = vmatpush3.bf16.msra.mxu0 %v9166_v62 }
 0xf4d   :  { %v9888_v36 = vpop.eup %9887 }
 0xf4e   :  { %v2663_v46 = vsel %vm1043_vm5, %v9888_v36, 0.0  ;;  %v9890_v1 = vpop.eup %9889 }
 0xf4f   :  { %2664 = vadd.xlane.f32.xlu0 %v2663_v46  ;;  %v2660_v5 = vsel %vm1043_vm5, %v9890_v1, 0.0 }
 0xf53   :  { %2661 = vadd.xlane.f32.xlu0 %v2660_v5 }
 0xf5c   :  { %9651 = vrot.lane.b32.xlu1 %v11291_v21, %s10133_s8 }
 0xf60   :  { %9656 = vrot.lane.b32.xlu1 %v11301_v34, %s10133_s8 }
 0xf64   :  { %2934 = vrot.lane.b32.xlu1 %v11275_v9, %s10135_s29  ;;  %v7223_v9 = vld [vmem:[%s12498_s13 + $0x20] sm:$0xff] }
 0xf68   :  { %2936 = vrot.lane.b32.xlu1 %v11273_v50, %s10135_s29  ;;  %v7224_v50 = vld [vmem:[%s12498_s13 + $0x28] sm:$0xff] }
 0xf69   :  { %9646 = vrot.lane.b32.xlu0 %v11281_v10, %s10133_s8  ;;  %v9170_v8 = vpack.c.bf16 %v7224_v50, %v7223_v9 }
 0xf6b   :  { %9171 = vmatprep.subr.bf16.mxu1 %v9170_v8 }
 0xf6c   :  { %2940 = vrot.lane.b32.xlu1 %v11285_v15, %s10135_s29  ;;  %9173 = vmatpush3.bf16.msra.mxu1 %v9170_v8 }
 0xf6d   :  { %2938 = vrot.lane.b32.xlu0 %v11287_v20, %s10135_s29 }
 0xf70   :  { %2944 = vrot.lane.b32.xlu1 %v11293_v26, %s10135_s29 }
 0xf71   :  { %2942 = vrot.lane.b32.xlu0 %v11295_v28, %s10135_s29 }
 0xfcf   :  { %v2653_v15 = vpop.xlane.xlu0 %2652 }
 0xfd0   :  { %9891 = vrcp.f32 %v2653_v15  ;;  %v2650_v20 = vpop.xlane.xlu1 %2649 }
 0xfd1   :  { %9893 = vrcp.f32 %v2650_v20 }
 0xfd4   :  { %v2659_v3 = vpop.xlane.xlu0 %2658 }
 0xfd5   :  { %9895 = vrcp.f32 %v2659_v3 }
 0xfd8   :  { %v2656_v26 = vpop.xlane.xlu1 %2655 }
 0xfd9   :  { %9897 = vrcp.f32 %v2656_v26 }
 0xfda   :  { %v9892_v28 = vpop.eup %9891 }
 0xfdb   :  { %v9894_v11 = vpop.eup %9893  ;;  %v2673_v23 = vmul.f32 %v9892_v28, %v11345_v51 }
 0xfdc   :  { %v2665_v17 = vpop.xlane.xlu0 %2664  ;;  %v2672_v32 = vmul.f32 %v9894_v11, %v9882_v54  ;;  %v9652_v40 = vpop.permute.xlu1 %9651 }
 0xfdd   :  { %9899 = vrcp.f32 %v2665_v17  ;;  %v9654_v13 = vunpack.i.h.bf16 %v9652_v40  ;;  %v9653_v45 = vunpack.i.l.bf16 %v9652_v40 }
 0xfde   :  { %8392 = vmatprep.mubr.msk.f32.mxu0 %vm1043_vm5, %v2672_v32 }
 0xfdf   :  { %8393 = vmatmul.mubr.msk.f32.vlgmr.msra.gmra.mrb[50].mxu0 %vm1043_vm5, %v2673_v23  ;;  %v9896_v42 = vpop.eup %9895  ;;  %v9180_v0 = vpack.c.bf16 %v9654_v13, %v9653_v45 }
 0xfe0   :  { %v2662_v35 = vpop.xlane.xlu0 %2661  ;;  %v2675_v18 = vmul.f32 %v9896_v42, %v9884_v58  ;;  %v9657_v51 = vpop.permute.xlu1 %9656 }
 0xfe1   :  { %9901 = vrcp.f32 %v2662_v35  ;;  %v9659_v61 = vunpack.i.h.bf16 %v9657_v51  ;;  %v9658_v56 = vunpack.i.l.bf16 %v9657_v51 }
 0xfe3   :  { %v9898_v43 = vpop.eup %9897  ;;  %v9186_v52 = vpack.c.bf16 %v9659_v61, %v9658_v56 }
 0xfe4   :  { %v9647_v41 = vpop.permute.xlu0 %9646  ;;  %v2674_v12 = vmul.f32 %v9898_v43, %v9886_v2  ;;  %v2935_v29 = vpop.permute.xlu1 %2934 }
 0xfe5   :  { %v9649_v47 = vunpack.i.h.bf16 %v9647_v41  ;;  %v9648_v37 = vunpack.i.l.bf16 %v9647_v41 }
 0xfe6   :  { %8395 = vmatprep.mubr.msk.f32.mxu0 %vm1043_vm5, %v2674_v12 }
 0xfe7   :  { %v9174_v53 = vpack.c.bf16 %v9649_v47, %v9648_v37  ;;  %8396 = vmatmul.mubr.msk.f32.gmra.mrb[52].mxu0 %vm1043_vm5, %v2675_v18  ;;  %v9900_v54 = vpop.eup %9899 }
 0xfe8   :  { %v2677_v24 = vmul.f32 %v9900_v54, %v9888_v36  ;;  %v2937_v39 = vpop.permute.xlu1 %2936  ;;  %v2939_v63 = vpop.permute.xlu0 %2938 }
 0xfe9   :  { %9176 = vmatprep.subr.msk.bf16.mxu0 %vm10793_vm4, %v9174_v53 }
 0xfea   :  { %9179 = vmatpush3.bf16.xpose.msk.msra.mxu0 %vm10793_vm4, %v9174_v53 }
 0xfeb   :  { %v9902_v22 = vpop.eup %9901  ;;  %9182 = vmatprep.subr.msk.bf16.mxu0 %vm10793_vm4, %v9180_v0 }
 0xfec   :  { %v2676_v33 = vmul.f32 %v9902_v22, %v9890_v1  ;;  %v2941_v60 = vpop.permute.xlu1 %2940  ;;  %v2943_v25 = vpop.permute.xlu0 %2942 }
 0xfee   :  { %8398 = vmatprep.mubr.msk.f32.mxu0 %vm1043_vm5, %v2676_v33 }
 0xfef   :  { %8399 = vmatmul.mubr.msk.f32.gmra.mrb[54].mxu0 %vm1043_vm5, %v2677_v24 }
 0xff0   :  { %8426 = vmatprep.mubr.msk.f32.mxu0 %vm911_vm3, %v2935_v29  ;;  %v2945_v58 = vpop.permute.xlu1 %2944 }
 0xff2   :  { %9185 = vmatpush3.bf16.xpose.msk.msra.mxu0 %vm10793_vm4, %v9180_v0 }
 0xff3   :  { %9188 = vmatprep.subr.msk.bf16.mxu0 %vm10793_vm4, %v9186_v52 }
 0xffa   :  { %9191 = vmatpush3.bf16.xpose.msk.msra.mxu0 %vm10793_vm4, %v9186_v52 }
0x1001   :  { %8427 = vmatmul.mubr.msk.f32.vlgmr.msra.gmra.mrb[56].mxu0 %vm911_vm3, %v2937_v39 }
0x1002   :  { %8429 = vmatprep.mubr.msk.f32.mxu0 %vm911_vm3, %v2939_v63 }
0x1005   :  { %8430 = vmatmul.mubr.msk.f32.gmra.mrb[58].mxu0 %vm911_vm3, %v2941_v60 }
0x1006   :  { %8432 = vmatprep.mubr.msk.f32.mxu0 %vm911_vm3, %v2943_v25 }
0x1009   :  { %8433 = vmatmul.mubr.msk.f32.gmra.mrb[60].mxu0 %vm911_vm3, %v2945_v58 }
0x10b2   :  { %v8394_v57 = vpop.f32.mrb[50].mxu0 }
0x10b3   :  { %v2780_v38 = vpop.f32.mrb[51].mxu0 }
0x10b4   :  { %8405 = vmatprep.mubr.msk.f32.mxu1 %vm911_vm3, %v2780_v38 }
0x10b5   :  { %8406 = vmatmul.mubr.msk.f32.vlgmr.msra.gmra.mrb[46].mxu1 %vm911_vm3, %v8394_v57 }
0x10ba   :  { %v8397_v62 = vpop.f32.mrb[52].mxu0 }
0x10bb   :  { %v2790_v2 = vpop.f32.mrb[53].mxu0 }
0x10bc   :  { %8408 = vmatprep.mubr.msk.f32.mxu1 %vm911_vm3, %v2790_v2 }
0x10bd   :  { %8409 = vmatmul.mubr.msk.f32.gmra.mrb[48].mxu1 %vm911_vm3, %v8397_v62 }
0x10c2   :  { %v8400_v19 = vpop.f32.mrb[54].mxu0 }
0x10c3   :  { %v2800_v36 = vpop.f32.mrb[55].mxu0 }
0x10c4   :  { %8411 = vmatprep.mubr.msk.f32.mxu1 %vm911_vm3, %v2800_v36 }
0x10c5   :  { %8412 = vmatmul.mubr.msk.f32.gmra.mrb[50].mxu1 %vm911_vm3, %v8400_v19 }
0x10d4   :  { %v8428_v46 = vpop.f32.mrb[56].mxu0 }
0x10d5   :  { %v3078_v1 = vmul.f32 0.25, %v8428_v46  ;;  %v3048_v5 = vpop.f32.mrb[57].mxu0 }
0x10d6   :  { %v3077_v9 = vmul.f32 0.25, %v3048_v5 }
0x10d7   :  { %v3084_v50 = vadd.f32 %v3078_v1, %v10845_v14 }
0x10d8   :  { %v8431_v8 = vpop.f32.mrb[58].mxu0  ;;  %v3083_v15 = vadd.f32 %v3077_v9, %v10847_v16 }
0x10d9   :  { %v3058_v20 = vpop.f32.mrb[59].mxu0  ;;  %v3092_v3 = vsel %vm1043_vm5, %v3084_v50, -inf  ;;  %v3080_v26 = vmul.f32 0.25, %v8431_v8 }
0x10da   :  { %v3079_v28 = vmul.f32 0.25, %v3058_v20  ;;  %3093 = vmax.xlane.f32.xlu1 %v3092_v3  ;;  %v3089_v11 = vsel %vm1043_vm5, %v3083_v15, -inf }
0x10db   :  { %3090 = vmax.xlane.f32.xlu0 %v3089_v11  ;;  %v3086_v35 = vadd.f32 %v3080_v26, %v10856_v27 }
0x10dc   :  { %v8434_v17 = vpop.f32.mrb[60].mxu0  ;;  %v3085_v32 = vadd.f32 %v3079_v28, %v10861_v31 }
0x10dd   :  { %v3068_v23 = vpop.f32.mrb[61].mxu0  ;;  %v3082_v40 = vmul.f32 0.25, %v8434_v17  ;;  %v3098_v12 = vsel %vm1043_vm5, %v3086_v35, -inf }
0x10de   :  { %v3081_v42 = vmul.f32 0.25, %v3068_v23  ;;  %v3095_v43 = vsel %vm1043_vm5, %v3085_v32, -inf }
0x10df   :  { %3096 = vmax.xlane.f32.xlu0 %v3095_v43  ;;  %v3088_v41 = vadd.f32 %v3082_v40, %v10874_v44 }
0x10e0   :  { %v3087_v13 = vadd.f32 %v3081_v42, %v10879_v49 }
0x10e1   :  { %v3104_v47 = vsel %vm1043_vm5, %v3088_v41, -inf }
0x10e2   :  { %v3101_v45 = vsel %vm1043_vm5, %v3087_v13, -inf }
0x10e3   :  { %3099 = vmax.xlane.f32.xlu0 %v3098_v12  ;;  %3102 = vmax.xlane.f32.xlu1 %v3101_v45  ;;  %v7225_v45 = vld [vmem:[%s12498_s13 + $0x30] sm:$0xff] }
0x10e7   :  { %3105 = vmax.xlane.f32.xlu0 %v3104_v47  ;;  %v7226_v47 = vld [vmem:[%s12498_s13 + $0x38] sm:$0xff] }
0x10f4   :  { %9661 = vrot.lane.b32.xlu1 %v11281_v10, %s10137_s9 }
0x1167   :  { %v3094_v37 = vpop.xlane.xlu1 %3093 }
0x1168   :  { %v3108_v18 = vsub.f32 %v3084_v50, %v3094_v37  ;;  %v3091_v53 = vpop.xlane.xlu0 %3090 }
0x1169   :  { %v3107_v0 = vsub.f32 %v3083_v15, %v3091_v53 }
0x116a   :  { %v3115_v51 = vmul.f32 1.442695, %v3108_v18  ;;  %v9204_v18 = vpack.c.bf16 %v7226_v47, %v7225_v45 }
0x116b   :  { %v3113_v54 = vmul.f32 1.442695, %v3107_v0 }
0x116c   :  { %9903 = vpow2.f32 %v3115_v51  ;;  %v3097_v22 = vpop.xlane.xlu0 %3096 }
0x116d   :  { %9905 = vpow2.f32 %v3113_v54  ;;  %v3109_v33 = vsub.f32 %v3085_v32, %v3097_v22 }
0x116f   :  { %v3117_v61 = vmul.f32 1.442695, %v3109_v33 }
0x1170   :  { %v3100_v56 = vpop.xlane.xlu0 %3099  ;;  %v3103_v24 = vpop.xlane.xlu1 %3102 }
0x1171   :  { %9907 = vpow2.f32 %v3117_v61  ;;  %v3110_v29 = vsub.f32 %v3086_v35, %v3100_v56  ;;  %v3111_v39 = vsub.f32 %v3087_v13, %v3103_v24 }
0x1173   :  { %v3119_v52 = vmul.f32 1.442695, %v3110_v29  ;;  %v3121_v62 = vmul.f32 1.442695, %v3111_v39 }
0x1174   :  { %v3106_v63 = vpop.xlane.xlu0 %3105  ;;  %v9662_v60 = vpop.permute.xlu1 %9661 }
0x1175   :  { %9909 = vpow2.f32 %v3119_v52  ;;  %v3112_v10 = vsub.f32 %v3088_v41, %v3106_v63  ;;  %v9664_v25 = vunpack.i.h.bf16 %v9662_v60  ;;  %v9663_v58 = vunpack.i.l.bf16 %v9662_v60 }
0x1176   :  { %v9904_v57 = vpop.eup %9903 }
0x1177   :  { %v9906_v38 = vpop.eup %9905  ;;  %v3123_v2 = vmul.f32 1.442695, %v3112_v10  ;;  %v3128_v19 = vsel %vm1043_vm5, %v9904_v57, 0.0  ;;  %v9192_v36 = vpack.c.bf16 %v9664_v25, %v9663_v58  ;;  %v7264_v58 = vld [vmem:[%s12499_s14 + $0x1] ss:$0 sm:$0xff] }
0x1178   :  { %3129 = vadd.xlane.f32.xlu0 %v3128_v19  ;;  %v3125_v46 = vsel %vm1043_vm5, %v9906_v38, 0.0 }
0x1179   :  { %9911 = vpow2.f32 %v3123_v2  ;;  %3126 = vadd.xlane.f32.xlu1 %v3125_v46  ;;  %9193 = vmatprep.subr.bf16.mxu1 %v9192_v36 }
0x117a   :  { %9195 = vmatpush3.bf16.msra.mxu1 %v9192_v36  ;;  %9913 = vpow2.f32 %v3121_v62 }
0x117b   :  { %v9908_v1 = vpop.eup %9907 }
0x117c   :  { %v3131_v5 = vsel %vm1043_vm5, %v9908_v1, 0.0 }
0x117d   :  { %3132 = vadd.xlane.f32.xlu1 %v3131_v5 }
0x117f   :  { %v9910_v9 = vpop.eup %9909 }
0x1180   :  { %v3134_v50 = vsel %vm1043_vm5, %v9910_v9, 0.0 }
0x1181   :  { %3135 = vadd.xlane.f32.xlu0 %v3134_v50 }
0x1183   :  { %v9912_v8 = vpop.eup %9911 }
0x1184   :  { %v3140_v15 = vsel %vm1043_vm5, %v9912_v8, 0.0  ;;  %v9914_v20 = vpop.eup %9913 }
0x1185   :  { %3141 = vadd.xlane.f32.xlu0 %v3140_v15  ;;  %v3137_v3 = vsel %vm1043_vm5, %v9914_v20, 0.0 }
0x1189   :  { %3138 = vadd.xlane.f32.xlu0 %v3137_v3 }
0x118e   :  { %9671 = vrot.lane.b32.xlu1 %v11301_v34, %s10137_s9 }
0x119f   :  { %9666 = vrot.lane.b32.xlu0 %v11291_v21, %s10137_s9 }
0x1205   :  { %v3130_v28 = vpop.xlane.xlu0 %3129 }
0x1206   :  { %v3127_v26 = vpop.xlane.xlu1 %3126 }
0x1207   :  { %9915 = vrcp.f32 %v3127_v26 }
0x1208   :  { %9917 = vrcp.f32 %v3130_v28 }
0x120a   :  { %v3133_v32 = vpop.xlane.xlu1 %3132 }
0x120b   :  { %9919 = vrcp.f32 %v3133_v32 }
0x120e   :  { %v3136_v11 = vpop.xlane.xlu0 %3135  ;;  %v9672_v42 = vpop.permute.xlu1 %9671 }
0x120f   :  { %v9674_v13 = vunpack.i.h.bf16 %v9672_v42  ;;  %v9673_v34 = vunpack.i.l.bf16 %v9672_v42  ;;  %9921 = vrcp.f32 %v3136_v11 }
0x1211   :  { %v9916_v17 = vpop.eup %9915  ;;  %v9200_v37 = vpack.c.bf16 %v9674_v13, %v9673_v34 }
0x1212   :  { %v3142_v23 = vpop.xlane.xlu0 %3141  ;;  %v3149_v35 = vmul.f32 %v9916_v17, %v9906_v38  ;;  %v9918_v53 = vpop.eup %9917 }
0x1213   :  { %v3150_v51 = vmul.f32 %v9918_v53, %v9904_v57 }
0x1214   :  { %8447 = vmatprep.mubr.msk.f32.mxu1 %vm1043_vm5, %v3149_v35 }
0x1215   :  { %v9920_v0 = vpop.eup %9919 }
0x1216   :  { %v3139_v40 = vpop.xlane.xlu0 %3138  ;;  %v3151_v22 = vmul.f32 %v9920_v0, %v9908_v1 }
0x1217   :  { %9923 = vrcp.f32 %v3139_v40 }
0x1218   :  { %9925 = vrcp.f32 %v3142_v23 }
0x1219   :  { %v9922_v54 = vpop.eup %9921 }
0x121a   :  { %v9667_v43 = vpop.permute.xlu0 %9666  ;;  %v3152_v61 = vmul.f32 %v9922_v54, %v9910_v9 }
0x121b   :  { %v9669_v41 = vunpack.i.h.bf16 %v9667_v43  ;;  %v9668_v12 = vunpack.i.l.bf16 %v9667_v43 }
0x121d   :  { %v9196_v21 = vpack.c.bf16 %v9669_v41, %v9668_v12 }
0x121f   :  { %9197 = vmatprep.subr.bf16.mxu1 %v9196_v21 }
0x1220   :  { %9199 = vmatpush3.bf16.msra.mxu1 %v9196_v21 }
0x1221   :  { %9201 = vmatprep.subr.bf16.mxu1 %v9200_v37  ;;  %v9924_v33 = vpop.eup %9923 }
0x1222   :  { %v9926_v56 = vpop.eup %9925  ;;  %v3153_v24 = vmul.f32 %v9924_v33, %v9914_v20 }
0x1223   :  { %v3154_v29 = vmul.f32 %v9926_v56, %v9912_v8 }
0x1224   :  { %9203 = vmatpush3.bf16.msra.mxu1 %v9200_v37 }
0x1225   :  { %9205 = vmatprep.subr.bf16.mxu1 %v9204_v18 }
0x1227   :  { %8448 = vmatmul.mubr.msk.f32.vlgmr.msra.gmra.mrb[52].mxu1 %vm1043_vm5, %v3150_v51 }
0x1228   :  { %8450 = vmatprep.mubr.msk.f32.mxu1 %vm1043_vm5, %v3151_v22  ;;  %9207 = vmatpush3.bf16.msra.mxu1 %v9204_v18 }
0x122b   :  { %8451 = vmatmul.mubr.msk.f32.gmra.mrb[54].mxu1 %vm1043_vm5, %v3152_v61 }
0x122c   :  { %8453 = vmatprep.mubr.msk.f32.mxu1 %vm1043_vm5, %v3153_v24 }
0x122f   :  { %8454 = vmatmul.mubr.msk.f32.gmra.mrb[56].mxu1 %vm1043_vm5, %v3154_v29 }
0x12fa   :  { %v8449_v52 = vpop.f32.mrb[52].mxu1 }
0x12fb   :  { %v3257_v39 = vpop.f32.mrb[53].mxu1 }
0x12fc   :  { %8460 = vmatprep.mubr.msk.f32.mxu1 %vm911_vm3, %v3257_v39 }
0x12fd   :  { %8461 = vmatmul.mubr.msk.f32.vlgmr.msra.gmra.mrb[46].mxu1 %vm911_vm3, %v8449_v52 }
0x12fe   :  { %v8452_v63 = vpop.f32.mrb[54].mxu1 }
0x12ff   :  { %v3267_v60 = vpop.f32.mrb[55].mxu1 }
0x1300   :  { %8463 = vmatprep.mubr.msk.f32.mxu1 %vm911_vm3, %v3267_v60 }
0x1301   :  { %8464 = vmatmul.mubr.msk.f32.gmra.mrb[48].mxu1 %vm911_vm3, %v8452_v63 }
0x1302   :  { %v8455_v10 = vpop.f32.mrb[56].mxu1 }
0x1303   :  { %v3277_v25 = vpop.f32.mrb[57].mxu1 }
0x1304   :  { %8466 = vmatprep.mubr.msk.f32.mxu1 %vm911_vm3, %v3277_v25  ;;  %v7294_v25 = vld [vmem:[%s12500_s19 + $0x28] sm:$0xff] }
0x1305   :  { %8467 = vmatmul.mubr.msk.f32.gmra.mrb[50].mxu1 %vm911_vm3, %v8455_v10  ;;  %v7293_v10 = vld [vmem:[%s12500_s19 + $0x20] sm:$0xff] }
0x13d0   :  { %v8462_v57 = vpop.f32.mrb[46].mxu1 }
0x13d1   :  { %v9495_v38 = vadd.f32 %v8462_v57, %v7264_v58  ;;  %v3370_v62 = vpop.f32.mrb[47].mxu1  ;;  %v7295_v57 = vld [vmem:[%s12500_s19 + $0x30] sm:$0xff] }
0x13d2   :  { %v9496_v2 = vadd.f32 %v7264_v58, %v3370_v62 }
0x13d3   :  { %v3406_v19 = vadd.f32 %v9495_v38, %v11244_v59  ;;  %v7296_v38 = vld [vmem:[%s12500_s19 + $0x38] sm:$0xff] }
0x13d4   :  { %v3405_v36 = vadd.f32 %v9496_v2, %v11242_v6  ;;  %v8465_v46 = vpop.f32.mrb[48].mxu1  ;;  %v9212_v62 = vpack.c.bf16 %v7296_v38, %v7295_v57  ;;  %v7305_v2 = vld [vmem:[%s12501_s21 + $0x80] sm:$0xff] }
0x13d5   :  { %v3380_v1 = vpop.f32.mrb[49].mxu1  ;;  %v3418_v5 = vsel %vm778_vm2, %v3406_v19, 0.0  ;;  %v9497_v9 = vadd.f32 %v8465_v46, %v7264_v58 }
0x13d6   :  { %v9498_v50 = vadd.f32 %v7264_v58, %v3380_v1  ;;  %3419 = vadd.xlane.f32.xlu0 %v3418_v5  ;;  %v3415_v8 = vsel %vm778_vm2, %v3405_v36, 0.0  ;;  %v7308_v1 = vld [vmem:[%s12501_s21 + $0x98] sm:$0xff] }
0x13d7   :  { %3416 = vadd.xlane.f32.xlu1 %v3415_v8  ;;  %v3408_v26 = vadd.f32 %v9497_v9, %v11256_v30  ;;  %v7309_v9 = vld [vmem:[%s12501_s21 + $0xa0] sm:$0xff] }
0x13d8   :  { %v3407_v15 = vadd.f32 %v9498_v50, %v11253_v4  ;;  %v8468_v20 = vpop.f32.mrb[50].mxu1  ;;  %v7310_v50 = vld [vmem:[%s12501_s21 + $0xa8] sm:$0xff] }
0x13d9   :  { %v3390_v3 = vpop.f32.mrb[51].mxu1  ;;  %v9499_v28 = vadd.f32 %v8468_v20, %v7264_v58  ;;  %v3424_v32 = vsel %vm778_vm2, %v3408_v26, 0.0  ;;  %v9224_v8 = vpack.c.bf16 %v7310_v50, %v7309_v9  ;;  %v7318_v9 = vld [vmem:[%s12501_s21 + $0xe8] sm:$0xff] }
0x13da   :  { %v9500_v59 = vadd.f32 %v7264_v58, %v3390_v3  ;;  %v3421_v6 = vsel %vm778_vm2, %v3407_v15, 0.0  ;;  %v9208_v58 = vpack.c.bf16 %v7294_v25, %v7293_v10 }
0x13db   :  { %3422 = vadd.xlane.f32.xlu1 %v3421_v6  ;;  %v3410_v17 = vadd.f32 %v9499_v28, %v11264_v7 }
0x13dc   :  { %v3409_v11 = vadd.f32 %v9500_v59, %v11262_v55  ;;  %9209 = vmatprep.subr.bf16.mxu0 %v9208_v58 }
0x13dd   :  { %v3430_v4 = vsel %vm778_vm2, %v3410_v17, 0.0  ;;  %9211 = vmatpush3.bf16.msra.mxu0 %v9208_v58 }
0x13de   :  { %v3427_v23 = vsel %vm778_vm2, %v3409_v11, 0.0  ;;  %9213 = vmatprep.subr.bf16.mxu0 %v9212_v62 }
0x13df   :  { %3425 = vadd.xlane.f32.xlu1 %v3424_v32  ;;  %3428 = vadd.xlane.f32.xlu0 %v3427_v23 }
0x13e1   :  { %9215 = vmatpush3.bf16.msra.mxu0 %v9212_v62  ;;  %v7313_v62 = vld [vmem:[%s12501_s21 + $0xc0] sm:$0xff] }
0x13e3   :  { %3431 = vadd.xlane.f32.xlu1 %v3430_v4 }
0x1463   :  { %v3420_v35 = vpop.xlane.xlu0 %3419 }
0x1464   :  { %v3434_v30 = vmul.f32 0.03125, %v3420_v35  ;;  %v3417_v40 = vpop.xlane.xlu1 %3416 }
0x1465   :  { %v3433_v42 = vmul.f32 0.03125, %v3417_v40 }
0x1466   :  { %v11466_v43 = vsub.f32 %v3406_v19, %v3434_v30  ;;  %v7306_v19 = vld [vmem:[%s12501_s21 + $0x88] sm:$0xff] }
0x1467   :  { %v11468_v13 = vsub.f32 %v3405_v36, %v3433_v42  ;;  %v7307_v36 = vld [vmem:[%s12501_s21 + $0x90] sm:$0xff]  ;;  %v9216_v46 = vpack.c.bf16 %v7306_v19, %v7305_v2  ;;  %v7314_v2 = vld [vmem:[%s12501_s21 + $0xc8] sm:$0xff] }
0x1468   :  { %v3423_v55 = vpop.xlane.xlu1 %3422  ;;  %v3446_v7 = vmul.f32 %v11466_v43, %v11466_v43  ;;  %v9220_v5 = vpack.c.bf16 %v7308_v1, %v7307_v36  ;;  %v9232_v19 = vpack.c.bf16 %v7314_v2, %v7313_v62  ;;  %v7315_v36 = vld [vmem:[%s12501_s21 + $0xd0] sm:$0xff] }
0x1469   :  { %v3435_v34 = vmul.f32 0.03125, %v3423_v55  ;;  %v3445_v41 = vmul.f32 %v11468_v13, %v11468_v13  ;;  %9217 = vmatprep.subr.bf16.mxu1 %v9216_v46 }
0x146a   :  { %v3454_v12 = vsel %vm778_vm2, %v3446_v7, 0.0  ;;  %9219 = vmatpush3.bf16.msra.mxu1 %v9216_v46  ;;  %v7316_v46 = vld [vmem:[%s12501_s21 + $0xd8] sm:$0xff] }
0x146b   :  { %v11475_v21 = vsub.f32 %v3407_v15, %v3435_v34  ;;  %3455 = vadd.xlane.f32.xlu1 %v3454_v12  ;;  %v3451_v45 = vsel %vm778_vm2, %v3445_v41, 0.0  ;;  %9221 = vmatprep.subr.bf16.mxu1 %v9220_v5  ;;  %v7291_v34 = vld [vmem:[%s12502_s15 + $0x1] ss:$0 sm:$0xff]  ;;  %v9236_v1 = vpack.c.bf16 %v7316_v46, %v7315_v36 }
0x146c   :  { %v3426_v47 = vpop.xlane.xlu1 %3425  ;;  %3452 = vadd.xlane.f32.xlu0 %v3451_v45  ;;  %v3429_v37 = vpop.xlane.xlu0 %3428  ;;  %v7322_v46 = vld [vmem:[%s12505_s22 + $0x1] ss:$0 sm:$0xff] }
0x146d   :  { %v3436_v18 = vmul.f32 0.03125, %v3426_v47  ;;  %v3437_v53 = vmul.f32 0.03125, %v3429_v37  ;;  %v3447_v0 = vmul.f32 %v11475_v21, %v11475_v21 }
0x146e   :  { %9223 = vmatpush3.bf16.msra.mxu1 %v9220_v5  ;;  %v7317_v5 = vld [vmem:[%s12501_s21 + $0xe0] sm:$0xff] }
0x146f   :  { %v11480_v51 = vsub.f32 %v3408_v26, %v3436_v18  ;;  %v11482_v54 = vsub.f32 %v3409_v11, %v3437_v53  ;;  %v3457_v22 = vsel %vm778_vm2, %v3447_v0, 0.0  ;;  %9225 = vmatprep.subr.bf16.mxu1 %v9224_v8  ;;  %v7292_v18 = vld [vmem:[%s12503_s16 + $0x1] ss:$0 sm:$0xff]  ;;  %v9240_v50 = vpack.c.bf16 %v7318_v9, %v7317_v5 }
0x1470   :  { %v3432_v33 = vpop.xlane.xlu1 %3431  ;;  %3458 = vadd.xlane.f32.xlu0 %v3457_v22 }
0x1471   :  { %v3438_v61 = vmul.f32 0.03125, %v3432_v33  ;;  %v3448_v56 = vmul.f32 %v11480_v51, %v11480_v51  ;;  %v3449_v24 = vmul.f32 %v11482_v54, %v11482_v54 }
0x1472   :  { %9227 = vmatpush3.bf16.msra.mxu1 %v9224_v8  ;;  %v7319_v8 = vld [vmem:[%s12501_s21 + $0xf0] sm:$0xff] }
0x1473   :  { %v11489_v29 = vsub.f32 %v3410_v17, %v3438_v61  ;;  %v3460_v52 = vsel %vm778_vm2, %v3448_v56, 0.0  ;;  %v3463_v39 = vsel %vm778_vm2, %v3449_v24, 0.0 }
0x1474   :  { %3461 = vadd.xlane.f32.xlu1 %v3460_v52  ;;  %3464 = vadd.xlane.f32.xlu0 %v3463_v39 }
0x1475   :  { %v3450_v63 = vmul.f32 %v11489_v29, %v11489_v29 }
0x1477   :  { %v3466_v60 = vsel %vm778_vm2, %v3450_v63, 0.0 }
0x1478   :  { %3467 = vadd.xlane.f32.xlu1 %v3466_v60 }
0x14f8   :  { %v3456_v15 = vpop.xlane.xlu1 %3455 }
0x14f9   :  { %v3470_v20 = vmul.f32 0.03125, %v3456_v15  ;;  %v3453_v3 = vpop.xlane.xlu0 %3452  ;;  %v7320_v15 = vld [vmem:[%s12501_s21 + $0xf8] sm:$0xff] }
0x14fa   :  { %v3469_v26 = vmul.f32 0.03125, %v3453_v3  ;;  %v7298_v3 = vld [vmem:[%s12504_s20 + $0x1] ss:$0 sm:$0xff] }
0x14fb   :  { %v3476_v28 = vadd.f32 1e-05, %v3470_v20  ;;  %v9244_v20 = vpack.c.bf16 %v7320_v15, %v7319_v8 }
0x14fc   :  { %v3475_v59 = vadd.f32 1e-05, %v3469_v26 }
0x14fd   :  { %9927 = vrsqrt.f32 %v3476_v28  ;;  %v3459_v6 = vpop.xlane.xlu0 %3458 }
0x14fe   :  { %9929 = vrsqrt.f32 %v3475_v59  ;;  %v3471_v11 = vmul.f32 0.03125, %v3459_v6 }
0x1500   :  { %v3477_v17 = vadd.f32 1e-05, %v3471_v11 }
0x1501   :  { %v3462_v32 = vpop.xlane.xlu1 %3461  ;;  %v3465_v23 = vpop.xlane.xlu0 %3464 }
0x1502   :  { %9931 = vrsqrt.f32 %v3477_v17  ;;  %v3472_v4 = vmul.f32 0.03125, %v3462_v32  ;;  %v3473_v35 = vmul.f32 0.03125, %v3465_v23 }
0x1504   :  { %v3478_v30 = vadd.f32 1e-05, %v3472_v4  ;;  %v3479_v40 = vadd.f32 1e-05, %v3473_v35 }
0x1505   :  { %v3468_v42 = vpop.xlane.xlu1 %3467 }
0x1506   :  { %9933 = vrsqrt.f32 %v3478_v30  ;;  %v3474_v55 = vmul.f32 0.03125, %v3468_v42 }
0x1507   :  { %v9928_v7 = vpop.eup %9927  ;;  %9935 = vrsqrt.f32 %v3479_v40 }
0x1508   :  { %v9930_v41 = vpop.eup %9929  ;;  %v3488_v12 = vmul.f32 %v9928_v7, %v11466_v43  ;;  %v3480_v45 = vadd.f32 1e-05, %v3474_v55 }
0x1509   :  { %v3487_v47 = vmul.f32 %v9930_v41, %v11468_v13 }
0x150a   :  { %v3500_v37 = vmul.f32 %v7291_v34, %v3488_v12  ;;  %9937 = vrsqrt.f32 %v3480_v45 }
0x150b   :  { %v3499_v53 = vmul.f32 %v7291_v34, %v3487_v47 }
0x150c   :  { %v9932_v0 = vpop.eup %9931  ;;  %v11537_v61 = vadd.f32 %v7292_v18, %v3500_v37 }
0x150d   :  { %v11534_v22 = vadd.f32 %v7292_v18, %v3499_v53  ;;  %v3489_v33 = vmul.f32 %v9932_v0, %v11475_v21 }
0x150f   :  { %8477 = vmatprep.mubr.msk.f32.mxu0 %vm778_vm2, %v11534_v22  ;;  %v3501_v43 = vmul.f32 %v7291_v34, %v3489_v33 }
0x1510   :  { %v9934_v56 = vpop.eup %9933  ;;  %8478 = vmatmul.mubr.msk.f32.vlgmr.msra.gmra.mrb[62].mxu0 %vm778_vm2, %v11537_v61 }
0x1511   :  { %v9936_v13 = vpop.eup %9935  ;;  %v11543_v24 = vadd.f32 %v7292_v18, %v3501_v43  ;;  %v3490_v52 = vmul.f32 %v9934_v56, %v11480_v51 }
0x1512   :  { %v3491_v39 = vmul.f32 %v9936_v13, %v11482_v54  ;;  %v7311_v54 = vld [vmem:[%s12501_s21 + $0xb0] sm:$0xff] }
0x1513   :  { %8480 = vmatprep.mubr.msk.f32.mxu0 %vm778_vm2, %v11543_v24  ;;  %v3502_v21 = vmul.f32 %v7291_v34, %v3490_v52 }
0x1514   :  { %v9938_v63 = vpop.eup %9937  ;;  %v3503_v60 = vmul.f32 %v7291_v34, %v3491_v39 }
0x1515   :  { %v11549_v10 = vadd.f32 %v7292_v18, %v3502_v21  ;;  %v3492_v25 = vmul.f32 %v9938_v63, %v11489_v29  ;;  %v7312_v29 = vld [vmem:[%s12501_s21 + $0xb8] sm:$0xff] }
0x1516   :  { %v11552_v58 = vadd.f32 %v7292_v18, %v3503_v60  ;;  %v9228_v38 = vpack.c.bf16 %v7312_v29, %v7311_v54 }
0x1517   :  { %8481 = vmatmul.mubr.msk.f32.gmra.mrb[64].mxu0 %vm778_vm2, %v11549_v10  ;;  %v3504_v57 = vmul.f32 %v7291_v34, %v3492_v25 }
0x1518   :  { %8483 = vmatprep.mubr.msk.f32.mxu0 %vm778_vm2, %v11552_v58  ;;  %9229 = vmatprep.subr.bf16.mxu1 %v9228_v38 }
0x1519   :  { %v11558_v51 = vadd.f32 %v7292_v18, %v3504_v57  ;;  %9231 = vmatpush3.bf16.msra.mxu1 %v9228_v38 }
0x151a   :  { %9233 = vmatprep.subr.bf16.mxu1 %v9232_v19 }
0x151b   :  { %8484 = vmatmul.mubr.msk.f32.gmra.mrb[66].mxu0 %vm778_vm2, %v11558_v51 }
0x151d   :  { %9235 = vmatpush3.bf16.msra.mxu1 %v9232_v19 }
0x151e   :  { %9237 = vmatprep.subr.bf16.mxu1 %v9236_v1 }
0x1521   :  { %9239 = vmatpush3.bf16.msra.mxu1 %v9236_v1 }
0x1522   :  { %9241 = vmatprep.subr.bf16.mxu1 %v9240_v50 }
0x1525   :  { %9243 = vmatpush3.bf16.msra.mxu1 %v9240_v50 }
0x1526   :  { %9245 = vmatprep.subr.bf16.mxu1 %v9244_v20 }
0x1529   :  { %9247 = vmatpush3.bf16.msra.mxu1 %v9244_v20 }
0x15e3   :  { %v8479_v26 = vpop.f32.mrb[62].mxu0 }
0x15e4   :  { %v3620_v28 = vadd.f32 %v8479_v26, %v7298_v3  ;;  %v3614_v59 = vpop.f32.mrb[63].mxu0 }
0x15e5   :  { %v3615_v6 = vadd.f32 %v7298_v3, %v3614_v59 }
0x15e6   :  { %v3650_v11 = vmul.f32 0.70710677, %v3620_v28  ;;  %v3644_v0 = vmul.f32 0.5, %v3620_v28 }
0x15e7   :  { %v3649_v17 = vmul.f32 0.70710677, %v3615_v6  ;;  %v3643_v18 = vmul.f32 0.5, %v3615_v6 }
0x15e8   :  { %9939 = verf.f32 %v3650_v11 }
0x15e9   :  { %9941 = verf.f32 %v3649_v17 }
0x15ea   :  { %v8482_v32 = vpop.f32.mrb[64].mxu0 }
0x15eb   :  { %v3630_v23 = vadd.f32 %v8482_v32, %v7298_v3  ;;  %v3624_v4 = vpop.f32.mrb[65].mxu0 }
0x15ec   :  { %v3625_v35 = vadd.f32 %v7298_v3, %v3624_v4 }
0x15ed   :  { %v3652_v30 = vmul.f32 0.70710677, %v3630_v23  ;;  %v3646_v63 = vmul.f32 0.5, %v3630_v23 }
0x15ee   :  { %v3651_v40 = vmul.f32 0.70710677, %v3625_v35  ;;  %v8485_v42 = vpop.f32.mrb[66].mxu0  ;;  %v3645_v39 = vmul.f32 0.5, %v3625_v35 }
0x15ef   :  { %9943 = verf.f32 %v3652_v30  ;;  %v3640_v55 = vadd.f32 %v8485_v42, %v7298_v3  ;;  %v3634_v7 = vpop.f32.mrb[67].mxu0 }
0x15f0   :  { %9945 = verf.f32 %v3651_v40  ;;  %v3635_v34 = vadd.f32 %v7298_v3, %v3634_v7 }
0x15f1   :  { %v3654_v41 = vmul.f32 0.70710677, %v3640_v55  ;;  %v3648_v2 = vmul.f32 0.5, %v3640_v55 }
0x15f2   :  { %v9940_v12 = vpop.eup %9939  ;;  %v3653_v45 = vmul.f32 0.70710677, %v3635_v34  ;;  %v3647_v38 = vmul.f32 0.5, %v3635_v34 }
0x15f3   :  { %v9942_v47 = vpop.eup %9941  ;;  %v3662_v37 = vadd.f32 1.0, %v9940_v12  ;;  %9947 = verf.f32 %v3654_v41 }
0x15f4   :  { %v3661_v53 = vadd.f32 1.0, %v9942_v47  ;;  %9949 = verf.f32 %v3653_v45 }
0x15f5   :  { %v3668_v43 = vmul.f32 %v3662_v37, %v3644_v0 }
0x15f6   :  { %v3667_v33 = vmul.f32 %v3661_v53, %v3643_v18 }
0x15f8   :  { %8518 = vmatprep.mubr.f32.mxu1 %v3667_v33 }
0x15f9   :  { %v9944_v56 = vpop.eup %9943  ;;  %8519 = vmatmul.mubr.f32.vlgmr.msra.gmra.mrb[58].mxu1 %v3668_v43 }
0x15fa   :  { %v9946_v13 = vpop.eup %9945  ;;  %v3664_v52 = vadd.f32 1.0, %v9944_v56 }
0x15fb   :  { %v3663_v21 = vadd.f32 1.0, %v9946_v13 }
0x15fc   :  { %v3670_v29 = vmul.f32 %v3664_v52, %v3646_v63 }
0x15fd   :  { %v9948_v60 = vpop.eup %9947  ;;  %v3669_v25 = vmul.f32 %v3663_v21, %v3645_v39 }
0x15fe   :  { %v9950_v57 = vpop.eup %9949  ;;  %v3666_v54 = vadd.f32 1.0, %v9948_v60 }
0x15ff   :  { %v3665_v62 = vadd.f32 1.0, %v9950_v57  ;;  %8521 = vmatprep.mubr.f32.mxu1 %v3669_v25 }
0x1600   :  { %8522 = vmatmul.mubr.f32.gmra.mrb[60].mxu1 %v3670_v29  ;;  %v3672_v36 = vmul.f32 %v3666_v54, %v3648_v2 }
0x1601   :  { %v3671_v19 = vmul.f32 %v3665_v62, %v3647_v38 }
0x1603   :  { %8524 = vmatprep.mubr.f32.mxu1 %v3671_v19  ;;  %v7331_v19 = vld [vmem:[%s12531_s10 + $0x40] sm:$0xff] }
0x1604   :  { %8525 = vmatmul.mubr.f32.gmra.mrb[62].mxu1 %v3672_v36  ;;  %v7332_v36 = vld [vmem:[%s12531_s10 + $0x48] sm:$0xff] }
0x16cc   :  { %v8520_v1 = vpop.f32.mrb[58].mxu1 }
0x16cd   :  { %v3770_v5 = vadd.f32 %v8520_v1, %v7322_v46  ;;  %v3764_v9 = vpop.f32.mrb[59].mxu1  ;;  %v7333_v1 = vld [vmem:[%s12531_s10 + $0x50] sm:$0xff] }
0x16ce   :  { %v3765_v50 = vadd.f32 %v7322_v46, %v3764_v9 }
0x16cf   :  { %v3794_v8 = vadd.f32 %v3770_v5, %v11537_v61  ;;  %v7334_v5 = vld [vmem:[%s12531_s10 + $0x58] sm:$0xff] }
0x16d0   :  { %v3793_v15 = vadd.f32 %v3765_v50, %v11534_v22  ;;  %v9252_v9 = vpack.c.bf16 %v7334_v5, %v7333_v1 }
0x16d1   :  { %v3806_v20 = vsel %vm778_vm2, %v3794_v8, 0.0 }
0x16d2   :  { %3807 = vadd.xlane.f32.xlu1 %v3806_v20  ;;  %v3803_v3 = vsel %vm778_vm2, %v3793_v15, 0.0 }
0x16d3   :  { %3804 = vadd.xlane.f32.xlu0 %v3803_v3  ;;  %v8523_v26 = vpop.f32.mrb[60].mxu1 }
0x16d4   :  { %v3780_v28 = vadd.f32 %v8523_v26, %v7322_v46  ;;  %v3774_v59 = vpop.f32.mrb[61].mxu1 }
0x16d5   :  { %v3775_v6 = vadd.f32 %v7322_v46, %v3774_v59 }
0x16d6   :  { %v3796_v11 = vadd.f32 %v3780_v28, %v11549_v10 }
0x16d7   :  { %v3795_v17 = vadd.f32 %v3775_v6, %v11543_v24  ;;  %v8526_v32 = vpop.f32.mrb[62].mxu1 }
0x16d8   :  { %v3790_v23 = vadd.f32 %v8526_v32, %v7322_v46  ;;  %v3784_v4 = vpop.f32.mrb[63].mxu1  ;;  %v3812_v61 = vsel %vm778_vm2, %v3796_v11, 0.0 }
0x16d9   :  { %v3785_v22 = vadd.f32 %v7322_v46, %v3784_v4  ;;  %3813 = vadd.xlane.f32.xlu1 %v3812_v61  ;;  %v3809_v35 = vsel %vm778_vm2, %v3795_v17, 0.0  ;;  %v9248_v46 = vpack.c.bf16 %v7332_v36, %v7331_v19 }
0x16da   :  { %v3798_v30 = vadd.f32 %v3790_v23, %v11558_v51  ;;  %3810 = vadd.xlane.f32.xlu0 %v3809_v35 }
0x16db   :  { %v3797_v40 = vadd.f32 %v3785_v22, %v11552_v58  ;;  %9249 = vmatprep.subr.bf16.mxu0 %v9248_v46 }
0x16dc   :  { %v3818_v42 = vsel %vm778_vm2, %v3798_v30, 0.0  ;;  %9251 = vmatpush3.bf16.msra.mxu0 %v9248_v46 }
0x16dd   :  { %3819 = vadd.xlane.f32.xlu1 %v3818_v42  ;;  %v3815_v10 = vsel %vm778_vm2, %v3797_v40, 0.0  ;;  %9253 = vmatprep.subr.bf16.mxu0 %v9252_v9 }
0x16de   :  { %3816 = vadd.xlane.f32.xlu0 %v3815_v10 }
0x16e0   :  { %9255 = vmatpush3.bf16.msra.mxu0 %v9252_v9 }
0x175f   :  { %v3808_v24 = vpop.xlane.xlu1 %3807 }
0x1760   :  { %v3822_v55 = vmul.f32 0.03125, %v3808_v24  ;;  %v3805_v7 = vpop.xlane.xlu0 %3804 }
0x1761   :  { %v3821_v34 = vmul.f32 0.03125, %v3805_v7 }
0x1762   :  { %v11610_v41 = vsub.f32 %v3794_v8, %v3822_v55 }
0x1763   :  { %v11612_v12 = vsub.f32 %v3793_v15, %v3821_v34  ;;  %v7326_v34 = vld [vmem:[%s12507_s18 + $0x1] ss:$0 sm:$0xff] }
0x1764   :  { %v3834_v51 = vmul.f32 %v11610_v41, %v11610_v41 }
0x1765   :  { %v3833_v58 = vmul.f32 %v11612_v12, %v11612_v12 }
0x1766   :  { %v3814_v45 = vpop.xlane.xlu1 %3813  ;;  %v3842_v47 = vsel %vm778_vm2, %v3834_v51, 0.0 }
0x1767   :  { %v3824_v37 = vmul.f32 0.03125, %v3814_v45  ;;  %3843 = vadd.xlane.f32.xlu1 %v3842_v47  ;;  %v3811_v18 = vpop.xlane.xlu0 %3810  ;;  %v3839_v53 = vsel %vm778_vm2, %v3833_v58, 0.0 }
0x1768   :  { %v3823_v0 = vmul.f32 0.03125, %v3811_v18  ;;  %3840 = vadd.xlane.f32.xlu0 %v3839_v53 }
0x1769   :  { %v11620_v33 = vsub.f32 %v3796_v11, %v3824_v37 }
0x176a   :  { %v11622_v43 = vsub.f32 %v3795_v17, %v3823_v0  ;;  %v3820_v56 = vpop.xlane.xlu1 %3819 }
0x176b   :  { %v3826_v13 = vmul.f32 0.03125, %v3820_v56  ;;  %v3817_v52 = vpop.xlane.xlu0 %3816  ;;  %v3836_v39 = vmul.f32 %v11620_v33, %v11620_v33 }
0x176c   :  { %v3825_v21 = vmul.f32 0.03125, %v3817_v52  ;;  %v3835_v63 = vmul.f32 %v11622_v43, %v11622_v43 }
0x176d   :  { %v11628_v60 = vsub.f32 %v3798_v30, %v3826_v13  ;;  %v3848_v25 = vsel %vm778_vm2, %v3836_v39, 0.0 }
0x176e   :  { %v11631_v57 = vsub.f32 %v3797_v40, %v3825_v21  ;;  %3849 = vadd.xlane.f32.xlu1 %v3848_v25  ;;  %v3845_v54 = vsel %vm778_vm2, %v3835_v63, 0.0  ;;  %v7325_v40 = vld [vmem:[%s12506_s17 + $0x1] ss:$0 sm:$0xff] }
0x176f   :  { %3846 = vadd.xlane.f32.xlu0 %v3845_v54  ;;  %v3838_v29 = vmul.f32 %v11628_v60, %v11628_v60 }
0x1770   :  { %v3837_v38 = vmul.f32 %v11631_v57, %v11631_v57 }
0x1771   :  { %v3854_v62 = vsel %vm778_vm2, %v3838_v29, 0.0 }
0x1772   :  { %3855 = vadd.xlane.f32.xlu1 %v3854_v62  ;;  %v3851_v2 = vsel %vm778_vm2, %v3837_v38, 0.0 }
0x1773   :  { %3852 = vadd.xlane.f32.xlu0 %v3851_v2 }
0x17f4   :  { %v3844_v50 = vpop.xlane.xlu1 %3843 }
0x17f5   :  { %v3858_v8 = vmul.f32 0.03125, %v3844_v50  ;;  %v3841_v15 = vpop.xlane.xlu0 %3840 }
0x17f6   :  { %v3857_v20 = vmul.f32 0.03125, %v3841_v15 }
0x17f7   :  { %v3864_v3 = vadd.f32 1e-05, %v3858_v8 }
0x17f8   :  { %v3863_v26 = vadd.f32 1e-05, %v3857_v20 }
0x17f9   :  { %9951 = vrsqrt.f32 %v3864_v3 }
0x17fa   :  { %9953 = vrsqrt.f32 %v3863_v26 }
0x17fb   :  { %v3850_v28 = vpop.xlane.xlu1 %3849 }
0x17fc   :  { %v3860_v59 = vmul.f32 0.03125, %v3850_v28  ;;  %v3847_v6 = vpop.xlane.xlu0 %3846 }
0x17fd   :  { %v3859_v11 = vmul.f32 0.03125, %v3847_v6 }
0x17fe   :  { %v3866_v17 = vadd.f32 1e-05, %v3860_v59 }
0x17ff   :  { %v3865_v32 = vadd.f32 1e-05, %v3859_v11  ;;  %v3856_v23 = vpop.xlane.xlu1 %3855 }
0x1800   :  { %9955 = vrsqrt.f32 %v3866_v17  ;;  %v3862_v4 = vmul.f32 0.03125, %v3856_v23  ;;  %v3853_v61 = vpop.xlane.xlu0 %3852 }
0x1801   :  { %9957 = vrsqrt.f32 %v3865_v32  ;;  %v3861_v22 = vmul.f32 0.03125, %v3853_v61 }
0x1802   :  { %v3868_v35 = vadd.f32 1e-05, %v3862_v4 }
0x1803   :  { %v9952_v30 = vpop.eup %9951  ;;  %v3867_v42 = vadd.f32 1e-05, %v3861_v22 }
0x1804   :  { %v9954_v10 = vpop.eup %9953  ;;  %v3876_v24 = vmul.f32 %v9952_v30, %v11610_v41  ;;  %9959 = vrsqrt.f32 %v3868_v35 }
0x1805   :  { %9961 = vrsqrt.f32 %v3867_v42  ;;  %v3875_v55 = vmul.f32 %v9954_v10, %v11612_v12 }
0x1806   :  { %v3888_v7 = vmul.f32 %v7325_v40, %v3876_v24 }
0x1807   :  { %v3887_v51 = vmul.f32 %v7325_v40, %v3875_v55 }
0x1808   :  { %v11662_v47 = vadd.f32 %v7326_v34, %v3888_v7 }
0x1809   :  { %v11660_v58 = vadd.f32 %v7326_v34, %v3887_v51 }
0x180a   :  { %v9956_v45 = vpop.eup %9955 }
0x180b   :  { %v9958_v37 = vpop.eup %9957  ;;  %8535 = vmatprep.mubr.msk.f32.mxu0 %vm778_vm2, %v11660_v58  ;;  %v3878_v41 = vmul.f32 %v9956_v45, %v11620_v33 }
0x180c   :  { %8536 = vmatmul.mubr.msk.f32.vlgmr.msra.gmra.mrb[68].mxu0 %vm778_vm2, %v11662_v47  ;;  %v3877_v12 = vmul.f32 %v9958_v37, %v11622_v43 }
0x180d   :  { %v3890_v18 = vmul.f32 %v7325_v40, %v3878_v41 }
0x180e   :  { %v9960_v53 = vpop.eup %9959  ;;  %v3889_v0 = vmul.f32 %v7325_v40, %v3877_v12 }
0x180f   :  { %v9962_v56 = vpop.eup %9961  ;;  %v3880_v13 = vmul.f32 %v9960_v53, %v11628_v60  ;;  %v11674_v21 = vadd.f32 %v7326_v34, %v3890_v18  ;;  %v7336_v60 = vld [vmem:[%s12495_s12 + $0x2] ss:$0 sm:$0xff] }
0x1810   :  { %v11671_v52 = vadd.f32 %v7326_v34, %v3889_v0  ;;  %v3879_v39 = vmul.f32 %v9962_v56, %v11631_v57 }
0x1811   :  { %v3892_v63 = vmul.f32 %v7325_v40, %v3880_v13 }
0x1812   :  { %8538 = vmatprep.mubr.msk.f32.mxu0 %vm778_vm2, %v11671_v52  ;;  %v3891_v33 = vmul.f32 %v7325_v40, %v3879_v39 }
0x1813   :  { %8539 = vmatmul.mubr.msk.f32.gmra.mrb[70].mxu0 %vm778_vm2, %v11674_v21  ;;  %v11682_v25 = vadd.f32 %v7326_v34, %v3892_v63 }
0x1814   :  { %v11680_v43 = vadd.f32 %v7326_v34, %v3891_v33 }
0x1816   :  { %8541 = vmatprep.mubr.msk.f32.mxu0 %vm778_vm2, %v11680_v43 }
0x1817   :  { %8542 = vmatmul.mubr.msk.f32.gmra.mrb[72].mxu0 %vm778_vm2, %v11682_v25 }
0x18df   :  { %v8537_v57 = vpop.f32.mrb[68].mxu0 }
0x18e0   :  { %v11691_v54 = vadd.f32 %v8537_v57, %v7336_v60  ;;  %v4007_v29 = vpop.f32.mrb[69].mxu0 }
0x18e1   :  { %v11693_v38 = vadd.f32 %v7336_v60, %v4007_v29 }
0x18e3   :  { %8556 = vmatprep.mubr.msk.f32.mxu0 %vm911_vm3, %v11693_v38  ;;  %v11699_v62 = vpack.i.bf16 %v11691_v54, %v11693_v38 }
0x18e5   :  { %9676 = vrot.lane.b32.xlu0 %v11699_v62, %s10134_s28 }
0x18e6   :  { %v8540_v2 = vpop.f32.mrb[70].mxu0 }
0x18e7   :  { %v11703_v19 = vadd.f32 %v8540_v2, %v7336_v60  ;;  %v4017_v36 = vpop.f32.mrb[71].mxu0 }
0x18e8   :  { %v11705_v46 = vadd.f32 %v7336_v60, %v4017_v36 }
0x18ea   :  { %v8543_v1 = vpop.f32.mrb[72].mxu0  ;;  %v11709_v5 = vpack.i.bf16 %v11703_v19, %v11705_v46 }
0x18eb   :  { %v11711_v9 = vadd.f32 %v8543_v1, %v7336_v60  ;;  %v4027_v50 = vpop.f32.mrb[73].mxu0 }
0x18ec   :  { %v11713_v8 = vadd.f32 %v7336_v60, %v4027_v50  ;;  %9681 = vrot.lane.b32.xlu1 %v11709_v5, %s10134_s28 }
0x18ee   :  { %v11719_v15 = vpack.i.bf16 %v11711_v9, %v11713_v8 }
0x18f0   :  { %9686 = vrot.lane.b32.xlu1 %v11719_v15, %s10134_s28 }
0x1957   :  { %v9677_v20 = vpop.permute.xlu0 %9676 }
0x1958   :  { %v9679_v3 = vunpack.i.h.bf16 %v9677_v20  ;;  %v9678_v26 = vunpack.i.l.bf16 %v9677_v20 }
0x195a   :  { %v9256_v28 = vpack.c.bf16 %v9679_v3, %v9678_v26 }
0x195c   :  { %9258 = vmatprep.subr.msk.bf16.mxu0 %vm10793_vm4, %v9256_v28 }
0x195d   :  { %9261 = vmatpush3.bf16.xpose.msk.msra.mxu0 %vm10793_vm4, %v9256_v28 }
0x195e   :  { %v9682_v59 = vpop.permute.xlu1 %9681 }
0x195f   :  { %v9684_v6 = vunpack.i.h.bf16 %v9682_v59  ;;  %v9683_v11 = vunpack.i.l.bf16 %v9682_v59 }
0x1961   :  { %v9262_v17 = vpack.c.bf16 %v9684_v6, %v9683_v11 }
0x1962   :  { %v9687_v32 = vpop.permute.xlu1 %9686 }
0x1963   :  { %v9689_v23 = vunpack.i.h.bf16 %v9687_v32  ;;  %v9688_v4 = vunpack.i.l.bf16 %v9687_v32  ;;  %9264 = vmatprep.subr.msk.bf16.mxu0 %vm10793_vm4, %v9262_v17 }
0x1965   :  { %v9268_v61 = vpack.c.bf16 %v9689_v23, %v9688_v4  ;;  %9267 = vmatpush3.bf16.xpose.msk.msra.mxu0 %vm10793_vm4, %v9262_v17 }
0x1967   :  { %9270 = vmatprep.subr.msk.bf16.mxu0 %vm10793_vm4, %v9268_v61 }
0x196d   :  { %9273 = vmatpush3.bf16.xpose.msk.msra.mxu0 %vm10793_vm4, %v9268_v61 }
0x1974   :  { %8557 = vmatmul.mubr.msk.f32.vlgmr.msra.gmra.mrb[74].mxu0 %vm911_vm3, %v11691_v54 }
0x1975   :  { %8559 = vmatprep.mubr.msk.f32.mxu0 %vm911_vm3, %v11705_v46 }
0x1978   :  { %8560 = vmatmul.mubr.msk.f32.gmra.mrb[76].mxu0 %vm911_vm3, %v11703_v19 }
0x1979   :  { %8562 = vmatprep.mubr.msk.f32.mxu0 %vm911_vm3, %v11713_v8 }
0x197c   :  { %8563 = vmatmul.mubr.msk.f32.gmra.mrb[78].mxu0 %vm911_vm3, %v11711_v9 }
0x1a47   :  { %v8558_v22 = vpop.f32.mrb[74].mxu0 }
0x1a48   :  { %v4176_v35 = vmul.f32 0.25, %v8558_v22  ;;  %v4146_v30 = vpop.f32.mrb[75].mxu0 }
0x1a49   :  { %v4175_v40 = vmul.f32 0.25, %v4146_v30 }
0x1a4a   :  { %v4182_v42 = vadd.f32 %v4176_v35, %v10845_v14 }
0x1a4b   :  { %v4181_v10 = vadd.f32 %v4175_v40, %v10847_v16  ;;  %v8561_v24 = vpop.f32.mrb[76].mxu0 }
0x1a4c   :  { %v4178_v55 = vmul.f32 0.25, %v8561_v24  ;;  %v4156_v7 = vpop.f32.mrb[77].mxu0  ;;  %v4190_v34 = vsel %vm1043_vm5, %v4182_v42, -inf }
0x1a4d   :  { %v4177_v51 = vmul.f32 0.25, %v4156_v7  ;;  %4191 = vmax.xlane.f32.xlu1 %v4190_v34  ;;  %v4187_v45 = vsel %vm1043_vm5, %v4181_v10, -inf }
0x1a4e   :  { %v4184_v37 = vadd.f32 %v4178_v55, %v10856_v27  ;;  %4188 = vmax.xlane.f32.xlu0 %v4187_v45 }
0x1a4f   :  { %v8564_v41 = vpop.f32.mrb[78].mxu0  ;;  %v4183_v53 = vadd.f32 %v4177_v51, %v10861_v31 }
0x1a50   :  { %v4166_v12 = vpop.f32.mrb[79].mxu0  ;;  %v4196_v18 = vsel %vm1043_vm5, %v4184_v37, -inf  ;;  %v4180_v0 = vmul.f32 0.25, %v8564_v41 }
0x1a51   :  { %v4179_v56 = vmul.f32 0.25, %v4166_v12  ;;  %v4193_v63 = vsel %vm1043_vm5, %v4183_v53, -inf }
0x1a52   :  { %4197 = vmax.xlane.f32.xlu0 %v4196_v18  ;;  %v4186_v39 = vadd.f32 %v4180_v0, %v10874_v44 }
0x1a53   :  { %v4185_v13 = vadd.f32 %v4179_v56, %v10879_v49 }
0x1a54   :  { %v4202_v60 = vsel %vm1043_vm5, %v4186_v39, -inf }
0x1a55   :  { %v4199_v33 = vsel %vm1043_vm5, %v4185_v13, -inf }
0x1a56   :  { %4194 = vmax.xlane.f32.xlu0 %v4193_v63  ;;  %4200 = vmax.xlane.f32.xlu1 %v4199_v33 }
0x1a5a   :  { %4203 = vmax.xlane.f32.xlu0 %v4202_v60 }
0x1a67   :  { %9691 = vrot.lane.b32.xlu1 %v11699_v62, %s10136_s7 }
0x1a6b   :  { %9701 = vrot.lane.b32.xlu1 %v11719_v15, %s10136_s7 }
0x1a70   :  { %9696 = vrot.lane.b32.xlu0 %v11709_v5, %s10136_s7 }
0x1ada   :  { %v4192_v57 = vpop.xlane.xlu1 %4191 }
0x1adb   :  { %v4206_v29 = vsub.f32 %v4182_v42, %v4192_v57  ;;  %v4189_v2 = vpop.xlane.xlu0 %4188 }
0x1adc   :  { %v4205_v36 = vsub.f32 %v4181_v10, %v4189_v2 }
0x1add   :  { %v4213_v1 = vmul.f32 1.442695, %v4206_v29 }
0x1ade   :  { %v4211_v50 = vmul.f32 1.442695, %v4205_v36 }
0x1adf   :  { %9963 = vpow2.f32 %v4213_v1  ;;  %v4198_v20 = vpop.xlane.xlu0 %4197 }
0x1ae0   :  { %9965 = vpow2.f32 %v4211_v50  ;;  %v4208_v3 = vsub.f32 %v4184_v37, %v4198_v20 }
0x1ae2   :  { %v4217_v26 = vmul.f32 1.442695, %v4208_v3 }
0x1ae3   :  { %v4195_v28 = vpop.xlane.xlu0 %4194  ;;  %v4201_v59 = vpop.xlane.xlu1 %4200 }
0x1ae4   :  { %9967 = vpow2.f32 %v4217_v26  ;;  %v4207_v6 = vsub.f32 %v4183_v53, %v4195_v28  ;;  %v4209_v17 = vsub.f32 %v4185_v13, %v4201_v59 }
0x1ae6   :  { %v4215_v11 = vmul.f32 1.442695, %v4207_v6  ;;  %v4219_v40 = vmul.f32 1.442695, %v4209_v17 }
0x1ae7   :  { %v4204_v32 = vpop.xlane.xlu0 %4203  ;;  %v9692_v23 = vpop.permute.xlu1 %9691 }
0x1ae8   :  { %9969 = vpow2.f32 %v4215_v11  ;;  %v4210_v4 = vsub.f32 %v4186_v39, %v4204_v32  ;;  %v9694_v61 = vunpack.i.h.bf16 %v9692_v23  ;;  %v9693_v22 = vunpack.i.l.bf16 %v9692_v23 }
0x1ae9   :  { %v11763_v35 = vpop.eup %9963 }
0x1aea   :  { %v9966_v30 = vpop.eup %9965  ;;  %v4221_v42 = vmul.f32 1.442695, %v4210_v4  ;;  %v4226_v10 = vsel %vm1043_vm5, %v11763_v35, 0.0  ;;  %v9274_v24 = vpack.c.bf16 %v9694_v61, %v9693_v22 }
0x1aeb   :  { %4227 = vadd.xlane.f32.xlu0 %v4226_v10  ;;  %v9697_v55 = vpop.permute.xlu0 %9696  ;;  %v9702_v7 = vpop.permute.xlu1 %9701  ;;  %v4223_v34 = vsel %vm1043_vm5, %v9966_v30, 0.0 }
0x1aec   :  { %9971 = vpow2.f32 %v4221_v42  ;;  %v9699_v51 = vunpack.i.h.bf16 %v9697_v55  ;;  %v9698_v45 = vunpack.i.l.bf16 %v9697_v55  ;;  %v9704_v37 = vunpack.i.h.bf16 %v9702_v7  ;;  %4224 = vadd.xlane.f32.xlu1 %v4223_v34  ;;  %9275 = vmatprep.subr.bf16.mxu1 %v9274_v24 }
0x1aed   :  { %v9703_v41 = vunpack.i.l.bf16 %v9702_v7  ;;  %9277 = vmatpush3.bf16.msra.mxu1 %v9274_v24  ;;  %9973 = vpow2.f32 %v4219_v40 }
0x1aee   :  { %v9968_v12 = vpop.eup %9967  ;;  %v9278_v18 = vpack.c.bf16 %v9699_v51, %v9698_v45 }
0x1aef   :  { %v4232_v53 = vsel %vm1043_vm5, %v9968_v12, 0.0  ;;  %v9282_v0 = vpack.c.bf16 %v9704_v37, %v9703_v41 }
0x1af0   :  { %4233 = vadd.xlane.f32.xlu0 %v4232_v53  ;;  %9279 = vmatprep.subr.bf16.mxu1 %v9278_v18 }
0x1af1   :  { %9281 = vmatpush3.bf16.msra.mxu1 %v9278_v18 }
0x1af2   :  { %v9970_v56 = vpop.eup %9969  ;;  %9283 = vmatprep.subr.bf16.mxu1 %v9282_v0 }
0x1af3   :  { %v4229_v13 = vsel %vm1043_vm5, %v9970_v56, 0.0 }
0x1af4   :  { %4230 = vadd.xlane.f32.xlu1 %v4229_v13 }
0x1af5   :  { %9285 = vmatpush3.bf16.msra.mxu1 %v9282_v0 }
0x1af6   :  { %v9972_v39 = vpop.eup %9971 }
0x1af7   :  { %v4238_v63 = vsel %vm1043_vm5, %v9972_v39, 0.0  ;;  %v9974_v33 = vpop.eup %9973 }
0x1af8   :  { %4239 = vadd.xlane.f32.xlu0 %v4238_v63  ;;  %v4235_v60 = vsel %vm1043_vm5, %v9974_v33, 0.0 }
0x1afc   :  { %4236 = vadd.xlane.f32.xlu0 %v4235_v60 }
0x1b05   :  { %9711 = vrot.lane.b32.xlu1 %v11709_v5, %s10133_s8 }
0x1b09   :  { %9716 = vrot.lane.b32.xlu1 %v11719_v15, %s10133_s8 }
0x1b0d   :  { %4509 = vrot.lane.b32.xlu1 %v11693_v38, %s10135_s29  ;;  %v7327_v38 = vld [vmem:[%s12498_s13 + $0x40] sm:$0xff] }
0x1b11   :  { %4511 = vrot.lane.b32.xlu1 %v11691_v54, %s10135_s29  ;;  %v7328_v54 = vld [vmem:[%s12498_s13 + $0x48] sm:$0xff] }
0x1b12   :  { %9706 = vrot.lane.b32.xlu0 %v11699_v62, %s10133_s8  ;;  %v9286_v57 = vpack.c.bf16 %v7328_v54, %v7327_v38 }
0x1b14   :  { %9287 = vmatprep.subr.bf16.mxu0 %v9286_v57 }
0x1b15   :  { %4515 = vrot.lane.b32.xlu1 %v11703_v19, %s10135_s29  ;;  %9289 = vmatpush3.bf16.msra.mxu0 %v9286_v57 }
0x1b16   :  { %4513 = vrot.lane.b32.xlu0 %v11705_v46, %s10135_s29 }
0x1b19   :  { %4519 = vrot.lane.b32.xlu1 %v11711_v9, %s10135_s29 }
0x1b1a   :  { %4517 = vrot.lane.b32.xlu0 %v11713_v8, %s10135_s29 }
0x1b78   :  { %v4228_v19 = vpop.xlane.xlu0 %4227 }
0x1b79   :  { %9975 = vrcp.f32 %v4228_v19  ;;  %v4225_v46 = vpop.xlane.xlu1 %4224 }
0x1b7a   :  { %9977 = vrcp.f32 %v4225_v46 }
0x1b7d   :  { %v4234_v29 = vpop.xlane.xlu0 %4233 }
0x1b7e   :  { %9979 = vrcp.f32 %v4234_v29 }
0x1b81   :  { %v4231_v9 = vpop.xlane.xlu1 %4230 }
0x1b82   :  { %9981 = vrcp.f32 %v4231_v9 }
0x1b83   :  { %v9976_v8 = vpop.eup %9975 }
0x1b84   :  { %v9978_v2 = vpop.eup %9977  ;;  %v4248_v50 = vmul.f32 %v9976_v8, %v11763_v35 }
0x1b85   :  { %v4240_v36 = vpop.xlane.xlu0 %4239  ;;  %v4247_v1 = vmul.f32 %v9978_v2, %v9966_v30  ;;  %v9712_v3 = vpop.permute.xlu1 %9711 }
0x1b86   :  { %9983 = vrcp.f32 %v4240_v36  ;;  %v9714_v59 = vunpack.i.h.bf16 %v9712_v3  ;;  %v9713_v17 = vunpack.i.l.bf16 %v9712_v3 }
0x1b87   :  { %8577 = vmatprep.mubr.msk.f32.mxu1 %vm1043_vm5, %v4247_v1 }
0x1b88   :  { %8578 = vmatmul.mubr.msk.f32.vlgmr.msra.gmra.mrb[64].mxu1 %vm1043_vm5, %v4248_v50  ;;  %v9980_v26 = vpop.eup %9979  ;;  %v9296_v22 = vpack.c.bf16 %v9714_v59, %v9713_v17 }
0x1b89   :  { %v4237_v20 = vpop.xlane.xlu0 %4236  ;;  %v4250_v4 = vmul.f32 %v9980_v26, %v9968_v12  ;;  %v9717_v35 = vpop.permute.xlu1 %9716 }
0x1b8a   :  { %9985 = vrcp.f32 %v4237_v20  ;;  %v9719_v10 = vunpack.i.h.bf16 %v9717_v35  ;;  %v9718_v24 = vunpack.i.l.bf16 %v9717_v35 }
0x1b8c   :  { %v9982_v28 = vpop.eup %9981  ;;  %v9302_v34 = vpack.c.bf16 %v9719_v10, %v9718_v24 }
0x1b8d   :  { %v9707_v6 = vpop.permute.xlu0 %9706  ;;  %v4249_v11 = vmul.f32 %v9982_v28, %v9970_v56  ;;  %v4510_v7 = vpop.permute.xlu1 %4509 }
0x1b8e   :  { %v9709_v32 = vunpack.i.h.bf16 %v9707_v6  ;;  %v9708_v23 = vunpack.i.l.bf16 %v9707_v6 }
0x1b8f   :  { %8580 = vmatprep.mubr.msk.f32.mxu1 %vm1043_vm5, %v4249_v11 }
0x1b90   :  { %v9290_v61 = vpack.c.bf16 %v9709_v32, %v9708_v23  ;;  %8581 = vmatmul.mubr.msk.f32.gmra.mrb[66].mxu1 %vm1043_vm5, %v4250_v4  ;;  %v9984_v30 = vpop.eup %9983 }
0x1b91   :  { %v4252_v55 = vmul.f32 %v9984_v30, %v9972_v39  ;;  %v4512_v51 = vpop.permute.xlu1 %4511  ;;  %v4514_v45 = vpop.permute.xlu0 %4513 }
0x1b92   :  { %9292 = vmatprep.subr.msk.bf16.mxu1 %vm10793_vm4, %v9290_v61 }
0x1b93   :  { %9295 = vmatpush3.bf16.xpose.msk.msra.mxu1 %vm10793_vm4, %v9290_v61 }
0x1b94   :  { %v9986_v40 = vpop.eup %9985  ;;  %9298 = vmatprep.subr.msk.bf16.mxu1 %vm10793_vm4, %v9296_v22 }
0x1b95   :  { %v4251_v42 = vmul.f32 %v9986_v40, %v9974_v33  ;;  %v4516_v37 = vpop.permute.xlu1 %4515  ;;  %v4518_v41 = vpop.permute.xlu0 %4517 }
0x1b97   :  { %8583 = vmatprep.mubr.msk.f32.mxu1 %vm1043_vm5, %v4251_v42 }
0x1b98   :  { %8584 = vmatmul.mubr.msk.f32.gmra.mrb[68].mxu1 %vm1043_vm5, %v4252_v55 }
0x1b99   :  { %8611 = vmatprep.mubr.msk.f32.mxu1 %vm911_vm3, %v4510_v7  ;;  %v4520_v12 = vpop.permute.xlu1 %4519 }
0x1b9b   :  { %9301 = vmatpush3.bf16.xpose.msk.msra.mxu1 %vm10793_vm4, %v9296_v22 }
0x1b9c   :  { %9304 = vmatprep.subr.msk.bf16.mxu1 %vm10793_vm4, %v9302_v34 }
0x1ba3   :  { %9307 = vmatpush3.bf16.xpose.msk.msra.mxu1 %vm10793_vm4, %v9302_v34 }
0x1baa   :  { %8612 = vmatmul.mubr.msk.f32.vlgmr.msra.gmra.mrb[70].mxu1 %vm911_vm3, %v4512_v51 }
0x1bab   :  { %8614 = vmatprep.mubr.msk.f32.mxu1 %vm911_vm3, %v4514_v45 }
0x1bae   :  { %8615 = vmatmul.mubr.msk.f32.gmra.mrb[72].mxu1 %vm911_vm3, %v4516_v37 }
0x1baf   :  { %8617 = vmatprep.mubr.msk.f32.mxu1 %vm911_vm3, %v4518_v41 }
0x1bb2   :  { %8618 = vmatmul.mubr.msk.f32.gmra.mrb[74].mxu1 %vm911_vm3, %v4520_v12 }
0x1c5b   :  { %v8579_v18 = vpop.f32.mrb[64].mxu1 }
0x1c5c   :  { %v4355_v53 = vpop.f32.mrb[65].mxu1 }
0x1c5d   :  { %8590 = vmatprep.mubr.msk.f32.mxu0 %vm911_vm3, %v4355_v53 }
0x1c5e   :  { %8591 = vmatmul.mubr.msk.f32.vlgmr.msra.gmra.mrb[80].mxu0 %vm911_vm3, %v8579_v18 }
0x1c63   :  { %v8582_v0 = vpop.f32.mrb[66].mxu1 }
0x1c64   :  { %v4365_v56 = vpop.f32.mrb[67].mxu1 }
0x1c65   :  { %8593 = vmatprep.mubr.msk.f32.mxu0 %vm911_vm3, %v4365_v56 }
0x1c66   :  { %8594 = vmatmul.mubr.msk.f32.gmra.mrb[82].mxu0 %vm911_vm3, %v8582_v0 }
0x1c6b   :  { %v8585_v13 = vpop.f32.mrb[68].mxu1 }
0x1c6c   :  { %v4375_v39 = vpop.f32.mrb[69].mxu1 }
0x1c6d   :  { %8596 = vmatprep.mubr.msk.f32.mxu0 %vm911_vm3, %v4375_v39 }
0x1c6e   :  { %8597 = vmatmul.mubr.msk.f32.gmra.mrb[84].mxu0 %vm911_vm3, %v8585_v13 }
0x1c7d   :  { %v8613_v63 = vpop.f32.mrb[70].mxu1 }
0x1c7e   :  { %v4653_v33 = vmul.f32 0.25, %v8613_v63  ;;  %v4623_v60 = vpop.f32.mrb[71].mxu1 }
0x1c7f   :  { %v4652_v38 = vmul.f32 0.25, %v4623_v60 }
0x1c80   :  { %v4659_v54 = vadd.f32 %v4653_v33, %v10845_v14 }
0x1c81   :  { %v4658_v57 = vadd.f32 %v4652_v38, %v10847_v16  ;;  %v8616_v19 = vpop.f32.mrb[72].mxu1 }
0x1c82   :  { %v4633_v46 = vpop.f32.mrb[73].mxu1  ;;  %v4667_v29 = vsel %vm1043_vm5, %v4659_v54, -inf  ;;  %v4655_v9 = vmul.f32 0.25, %v8616_v19 }
0x1c83   :  { %v4654_v8 = vmul.f32 0.25, %v4633_v46  ;;  %4668 = vmax.xlane.f32.xlu1 %v4667_v29  ;;  %v4664_v2 = vsel %vm1043_vm5, %v4658_v57, -inf }
0x1c84   :  { %4665 = vmax.xlane.f32.xlu0 %v4664_v2  ;;  %v4661_v20 = vadd.f32 %v4655_v9, %v10856_v27 }
0x1c85   :  { %v4660_v36 = vadd.f32 %v4654_v8, %v10861_v31  ;;  %v8619_v1 = vpop.f32.mrb[74].mxu1 }
0x1c86   :  { %v4643_v50 = vpop.f32.mrb[75].mxu1  ;;  %v4657_v3 = vmul.f32 0.25, %v8619_v1  ;;  %v4673_v11 = vsel %vm1043_vm5, %v4661_v20, -inf }
0x1c87   :  { %v4656_v26 = vmul.f32 0.25, %v4643_v50  ;;  %v4670_v28 = vsel %vm1043_vm5, %v4660_v36, -inf }
0x1c88   :  { %4671 = vmax.xlane.f32.xlu0 %v4670_v28  ;;  %v4663_v6 = vadd.f32 %v4657_v3, %v10874_v44 }
0x1c89   :  { %v4662_v59 = vadd.f32 %v4656_v26, %v10879_v49 }
0x1c8a   :  { %v4679_v32 = vsel %vm1043_vm5, %v4663_v6, -inf }
0x1c8b   :  { %v4676_v17 = vsel %vm1043_vm5, %v4662_v59, -inf }
0x1c8c   :  { %4674 = vmax.xlane.f32.xlu0 %v4673_v11  ;;  %4677 = vmax.xlane.f32.xlu1 %v4676_v17  ;;  %v7329_v17 = vld [vmem:[%s12498_s13 + $0x50] sm:$0xff] }
0x1c90   :  { %4680 = vmax.xlane.f32.xlu0 %v4679_v32  ;;  %v7330_v32 = vld [vmem:[%s12498_s13 + $0x58] sm:$0xff] }
0x1c9d   :  { %9721 = vrot.lane.b32.xlu1 %v11699_v62, %s10137_s9 }
0x1d10   :  { %v4669_v23 = vpop.xlane.xlu1 %4668 }
0x1d11   :  { %v4683_v4 = vsub.f32 %v4659_v54, %v4669_v23  ;;  %v4666_v61 = vpop.xlane.xlu0 %4665 }
0x1d12   :  { %v4682_v22 = vsub.f32 %v4658_v57, %v4666_v61 }
0x1d13   :  { %v4690_v35 = vmul.f32 1.442695, %v4683_v4  ;;  %v9320_v4 = vpack.c.bf16 %v7330_v32, %v7329_v17 }
0x1d14   :  { %v4688_v30 = vmul.f32 1.442695, %v4682_v22 }
0x1d15   :  { %9987 = vpow2.f32 %v4690_v35  ;;  %v4672_v40 = vpop.xlane.xlu0 %4671 }
0x1d16   :  { %9989 = vpow2.f32 %v4688_v30  ;;  %v4684_v42 = vsub.f32 %v4660_v36, %v4672_v40 }
0x1d18   :  { %v4692_v10 = vmul.f32 1.442695, %v4684_v42 }
0x1d19   :  { %v4675_v24 = vpop.xlane.xlu0 %4674  ;;  %v4678_v55 = vpop.xlane.xlu1 %4677 }
0x1d1a   :  { %9991 = vpow2.f32 %v4692_v10  ;;  %v4685_v7 = vsub.f32 %v4661_v20, %v4675_v24  ;;  %v4686_v51 = vsub.f32 %v4662_v59, %v4678_v55 }
0x1d1c   :  { %v4694_v34 = vmul.f32 1.442695, %v4685_v7  ;;  %v4696_v0 = vmul.f32 1.442695, %v4686_v51 }
0x1d1d   :  { %v4681_v45 = vpop.xlane.xlu0 %4680  ;;  %v9722_v37 = vpop.permute.xlu1 %9721 }
0x1d1e   :  { %9993 = vpow2.f32 %v4694_v34  ;;  %v4687_v62 = vsub.f32 %v4663_v6, %v4681_v45  ;;  %v9724_v41 = vunpack.i.h.bf16 %v9722_v37  ;;  %v9723_v12 = vunpack.i.l.bf16 %v9722_v37 }
0x1d1f   :  { %v9988_v18 = vpop.eup %9987 }
0x1d20   :  { %v9990_v53 = vpop.eup %9989  ;;  %v4698_v56 = vmul.f32 1.442695, %v4687_v62  ;;  %v4703_v13 = vsel %vm1043_vm5, %v9988_v18, 0.0  ;;  %v9308_v39 = vpack.c.bf16 %v9724_v41, %v9723_v12  ;;  %v7368_v12 = vld [vmem:[%s12499_s14 + $0x2] ss:$0 sm:$0xff] }
0x1d21   :  { %4704 = vadd.xlane.f32.xlu0 %v4703_v13  ;;  %v4700_v63 = vsel %vm1043_vm5, %v9990_v53, 0.0 }
0x1d22   :  { %9995 = vpow2.f32 %v4698_v56  ;;  %4701 = vadd.xlane.f32.xlu1 %v4700_v63  ;;  %9309 = vmatprep.subr.bf16.mxu0 %v9308_v39 }
0x1d23   :  { %9311 = vmatpush3.bf16.msra.mxu0 %v9308_v39  ;;  %9997 = vpow2.f32 %v4696_v0 }
0x1d24   :  { %v9992_v33 = vpop.eup %9991 }
0x1d25   :  { %v4706_v60 = vsel %vm1043_vm5, %v9992_v33, 0.0 }
0x1d26   :  { %4707 = vadd.xlane.f32.xlu1 %v4706_v60 }
0x1d28   :  { %v9994_v38 = vpop.eup %9993 }
0x1d29   :  { %v4709_v54 = vsel %vm1043_vm5, %v9994_v38, 0.0 }
0x1d2a   :  { %4710 = vadd.xlane.f32.xlu0 %v4709_v54 }
0x1d2c   :  { %v9996_v57 = vpop.eup %9995 }
0x1d2d   :  { %v4715_v19 = vsel %vm1043_vm5, %v9996_v57, 0.0  ;;  %v9998_v46 = vpop.eup %9997 }
0x1d2e   :  { %4716 = vadd.xlane.f32.xlu0 %v4715_v19  ;;  %v4712_v29 = vsel %vm1043_vm5, %v9998_v46, 0.0 }
0x1d32   :  { %4713 = vadd.xlane.f32.xlu0 %v4712_v29 }
0x1d37   :  { %9731 = vrot.lane.b32.xlu1 %v11719_v15, %s10137_s9 }
0x1d48   :  { %9726 = vrot.lane.b32.xlu0 %v11709_v5, %s10137_s9 }
0x1dae   :  { %v4705_v8 = vpop.xlane.xlu0 %4704 }
0x1daf   :  { %v4702_v9 = vpop.xlane.xlu1 %4701 }
0x1db0   :  { %9999 = vrcp.f32 %v4702_v9 }
0x1db1   :  { %10001 = vrcp.f32 %v4705_v8 }
0x1db3   :  { %v4708_v1 = vpop.xlane.xlu1 %4707 }
0x1db4   :  { %10003 = vrcp.f32 %v4708_v1 }
0x1db7   :  { %v4711_v2 = vpop.xlane.xlu0 %4710  ;;  %v9732_v26 = vpop.permute.xlu1 %9731 }
0x1db8   :  { %v9734_v59 = vunpack.i.h.bf16 %v9732_v26  ;;  %v9733_v15 = vunpack.i.l.bf16 %v9732_v26  ;;  %10005 = vrcp.f32 %v4711_v2 }
0x1dba   :  { %v10000_v36 = vpop.eup %9999  ;;  %v9316_v23 = vpack.c.bf16 %v9734_v59, %v9733_v15 }
0x1dbb   :  { %v4717_v50 = vpop.xlane.xlu0 %4716  ;;  %v4724_v20 = vmul.f32 %v10000_v36, %v9990_v53  ;;  %v10002_v61 = vpop.eup %10001 }
0x1dbc   :  { %v4725_v35 = vmul.f32 %v10002_v61, %v9988_v18 }
0x1dbd   :  { %8632 = vmatprep.mubr.msk.f32.mxu0 %vm1043_vm5, %v4724_v20 }
0x1dbe   :  { %v10004_v22 = vpop.eup %10003 }
0x1dbf   :  { %v4714_v3 = vpop.xlane.xlu0 %4713  ;;  %v4726_v40 = vmul.f32 %v10004_v22, %v9992_v33 }
0x1dc0   :  { %10007 = vrcp.f32 %v4714_v3 }
0x1dc1   :  { %10009 = vrcp.f32 %v4717_v50 }
0x1dc2   :  { %v10006_v30 = vpop.eup %10005 }
0x1dc3   :  { %v9727_v28 = vpop.permute.xlu0 %9726  ;;  %v4727_v10 = vmul.f32 %v10006_v30, %v9994_v38 }
0x1dc4   :  { %v9729_v6 = vunpack.i.h.bf16 %v9727_v28  ;;  %v9728_v11 = vunpack.i.l.bf16 %v9727_v28 }
0x1dc6   :  { %v9312_v5 = vpack.c.bf16 %v9729_v6, %v9728_v11 }
0x1dc8   :  { %9313 = vmatprep.subr.bf16.mxu0 %v9312_v5 }
0x1dc9   :  { %9315 = vmatpush3.bf16.msra.mxu0 %v9312_v5 }
0x1dca   :  { %9317 = vmatprep.subr.bf16.mxu0 %v9316_v23  ;;  %v10008_v42 = vpop.eup %10007 }
0x1dcb   :  { %v10010_v24 = vpop.eup %10009  ;;  %v4728_v55 = vmul.f32 %v10008_v42, %v9998_v46 }
0x1dcc   :  { %v4729_v7 = vmul.f32 %v10010_v24, %v9996_v57 }
0x1dcd   :  { %9319 = vmatpush3.bf16.msra.mxu0 %v9316_v23 }
0x1dce   :  { %9321 = vmatprep.subr.bf16.mxu0 %v9320_v4 }
0x1dd0   :  { %8633 = vmatmul.mubr.msk.f32.vlgmr.msra.gmra.mrb[86].mxu0 %vm1043_vm5, %v4725_v35 }
0x1dd1   :  { %8635 = vmatprep.mubr.msk.f32.mxu0 %vm1043_vm5, %v4726_v40  ;;  %9323 = vmatpush3.bf16.msra.mxu0 %v9320_v4 }
0x1dd4   :  { %8636 = vmatmul.mubr.msk.f32.gmra.mrb[88].mxu0 %vm1043_vm5, %v4727_v10 }
0x1dd5   :  { %8638 = vmatprep.mubr.msk.f32.mxu0 %vm1043_vm5, %v4728_v55 }
0x1dd8   :  { %8639 = vmatmul.mubr.msk.f32.gmra.mrb[90].mxu0 %vm1043_vm5, %v4729_v7 }
0x1ea3   :  { %v8634_v34 = vpop.f32.mrb[86].mxu0 }
0x1ea4   :  { %v4832_v51 = vpop.f32.mrb[87].mxu0 }
0x1ea5   :  { %8645 = vmatprep.mubr.msk.f32.mxu0 %vm911_vm3, %v4832_v51 }
0x1ea6   :  { %8646 = vmatmul.mubr.msk.f32.vlgmr.msra.gmra.mrb[80].mxu0 %vm911_vm3, %v8634_v34 }
0x1ea7   :  { %v8637_v45 = vpop.f32.mrb[88].mxu0 }
0x1ea8   :  { %v4842_v37 = vpop.f32.mrb[89].mxu0 }
0x1ea9   :  { %8648 = vmatprep.mubr.msk.f32.mxu0 %vm911_vm3, %v4842_v37 }
0x1eaa   :  { %8649 = vmatmul.mubr.msk.f32.gmra.mrb[82].mxu0 %vm911_vm3, %v8637_v45 }
0x1eab   :  { %v8640_v62 = vpop.f32.mrb[90].mxu0 }
0x1eac   :  { %v4852_v41 = vpop.f32.mrb[91].mxu0 }
0x1ead   :  { %8651 = vmatprep.mubr.msk.f32.mxu0 %vm911_vm3, %v4852_v41  ;;  %v7398_v41 = vld [vmem:[%s12500_s19 + $0x48] sm:$0xff] }
0x1eae   :  { %8652 = vmatmul.mubr.msk.f32.gmra.mrb[84].mxu0 %vm911_vm3, %v8640_v62  ;;  %v7397_v62 = vld [vmem:[%s12500_s19 + $0x40] sm:$0xff] }
0x1f79   :  { %v8647_v18 = vpop.f32.mrb[80].mxu0 }
0x1f7a   :  { %v9501_v53 = vadd.f32 %v8647_v18, %v7368_v12  ;;  %v4945_v0 = vpop.f32.mrb[81].mxu0  ;;  %v7399_v18 = vld [vmem:[%s12500_s19 + $0x50] sm:$0xff] }
0x1f7b   :  { %v9502_v56 = vadd.f32 %v7368_v12, %v4945_v0 }
0x1f7c   :  { %v4981_v13 = vadd.f32 %v9501_v53, %v11662_v47  ;;  %v7400_v53 = vld [vmem:[%s12500_s19 + $0x58] sm:$0xff] }
0x1f7d   :  { %v4980_v39 = vadd.f32 %v9502_v56, %v11660_v58  ;;  %v8650_v63 = vpop.f32.mrb[82].mxu0  ;;  %v9328_v0 = vpack.c.bf16 %v7400_v53, %v7399_v18  ;;  %v7409_v56 = vld [vmem:[%s12501_s21 + $0x100] sm:$0xff] }
0x1f7e   :  { %v4955_v33 = vpop.f32.mrb[83].mxu0  ;;  %v4993_v60 = vsel %vm778_vm2, %v4981_v13, 0.0  ;;  %v9503_v38 = vadd.f32 %v8650_v63, %v7368_v12 }
0x1f7f   :  { %v9504_v54 = vadd.f32 %v7368_v12, %v4955_v33  ;;  %4994 = vadd.xlane.f32.xlu0 %v4993_v60  ;;  %v4990_v57 = vsel %vm778_vm2, %v4980_v39, 0.0  ;;  %v7412_v33 = vld [vmem:[%s12501_s21 + $0x118] sm:$0xff] }
0x1f80   :  { %4991 = vadd.xlane.f32.xlu1 %v4990_v57  ;;  %v4983_v9 = vadd.f32 %v9503_v38, %v11674_v21  ;;  %v7413_v38 = vld [vmem:[%s12501_s21 + $0x120] sm:$0xff] }
0x1f81   :  { %v4982_v19 = vadd.f32 %v9504_v54, %v11671_v52  ;;  %v8653_v46 = vpop.f32.mrb[84].mxu0  ;;  %v7414_v54 = vld [vmem:[%s12501_s21 + $0x128] sm:$0xff] }
0x1f82   :  { %v4965_v29 = vpop.f32.mrb[85].mxu0  ;;  %v9505_v8 = vadd.f32 %v8653_v46, %v7368_v12  ;;  %v4999_v1 = vsel %vm778_vm2, %v4983_v9, 0.0  ;;  %v9340_v57 = vpack.c.bf16 %v7414_v54, %v7413_v38  ;;  %v7422_v38 = vld [vmem:[%s12501_s21 + $0x168] sm:$0xff] }
0x1f83   :  { %v9506_v47 = vadd.f32 %v7368_v12, %v4965_v29  ;;  %v4996_v58 = vsel %vm778_vm2, %v4982_v19, 0.0  ;;  %v9324_v12 = vpack.c.bf16 %v7398_v41, %v7397_v62 }
0x1f84   :  { %4997 = vadd.xlane.f32.xlu1 %v4996_v58  ;;  %v4985_v36 = vadd.f32 %v9505_v8, %v11682_v25 }
0x1f85   :  { %v4984_v2 = vadd.f32 %v9506_v47, %v11680_v43  ;;  %9325 = vmatprep.subr.bf16.mxu1 %v9324_v12 }
0x1f86   :  { %v5005_v52 = vsel %vm778_vm2, %v4985_v36, 0.0  ;;  %9327 = vmatpush3.bf16.msra.mxu1 %v9324_v12 }
0x1f87   :  { %v5002_v50 = vsel %vm778_vm2, %v4984_v2, 0.0  ;;  %9329 = vmatprep.subr.bf16.mxu1 %v9328_v0 }
0x1f88   :  { %5000 = vadd.xlane.f32.xlu1 %v4999_v1  ;;  %5003 = vadd.xlane.f32.xlu0 %v5002_v50 }
0x1f8a   :  { %9331 = vmatpush3.bf16.msra.mxu1 %v9328_v0  ;;  %v7417_v0 = vld [vmem:[%s12501_s21 + $0x140] sm:$0xff] }
0x1f8c   :  { %5006 = vadd.xlane.f32.xlu1 %v5005_v52 }
0x200c   :  { %v4995_v20 = vpop.xlane.xlu0 %4994 }
0x200d   :  { %v5009_v21 = vmul.f32 0.03125, %v4995_v20  ;;  %v4992_v3 = vpop.xlane.xlu1 %4991 }
0x200e   :  { %v5008_v26 = vmul.f32 0.03125, %v4992_v3 }
0x200f   :  { %v11884_v28 = vsub.f32 %v4981_v13, %v5009_v21  ;;  %v7410_v13 = vld [vmem:[%s12501_s21 + $0x108] sm:$0xff] }
0x2010   :  { %v11886_v59 = vsub.f32 %v4980_v39, %v5008_v26  ;;  %v7411_v39 = vld [vmem:[%s12501_s21 + $0x110] sm:$0xff]  ;;  %v9332_v63 = vpack.c.bf16 %v7410_v13, %v7409_v56  ;;  %v7418_v56 = vld [vmem:[%s12501_s21 + $0x148] sm:$0xff] }
0x2011   :  { %v4998_v43 = vpop.xlane.xlu1 %4997  ;;  %v5021_v25 = vmul.f32 %v11884_v28, %v11884_v28  ;;  %v9336_v60 = vpack.c.bf16 %v7412_v33, %v7411_v39  ;;  %v9348_v13 = vpack.c.bf16 %v7418_v56, %v7417_v0  ;;  %v7419_v39 = vld [vmem:[%s12501_s21 + $0x150] sm:$0xff] }
0x2012   :  { %v5010_v15 = vmul.f32 0.03125, %v4998_v43  ;;  %v5020_v6 = vmul.f32 %v11886_v59, %v11886_v59  ;;  %9333 = vmatprep.subr.bf16.mxu0 %v9332_v63 }
0x2013   :  { %v5029_v11 = vsel %vm778_vm2, %v5021_v25, 0.0  ;;  %9335 = vmatpush3.bf16.msra.mxu0 %v9332_v63  ;;  %v7420_v63 = vld [vmem:[%s12501_s21 + $0x158] sm:$0xff] }
0x2014   :  { %v11893_v5 = vsub.f32 %v4982_v19, %v5010_v15  ;;  %5030 = vadd.xlane.f32.xlu1 %v5029_v11  ;;  %v5026_v17 = vsel %vm778_vm2, %v5020_v6, 0.0  ;;  %9337 = vmatprep.subr.bf16.mxu0 %v9336_v60  ;;  %v7395_v15 = vld [vmem:[%s12502_s15 + $0x2] ss:$0 sm:$0xff]  ;;  %v9352_v33 = vpack.c.bf16 %v7420_v63, %v7419_v39 }
0x2015   :  { %v5001_v32 = vpop.xlane.xlu1 %5000  ;;  %5027 = vadd.xlane.f32.xlu0 %v5026_v17  ;;  %v5004_v23 = vpop.xlane.xlu0 %5003  ;;  %v7426_v63 = vld [vmem:[%s12505_s22 + $0x2] ss:$0 sm:$0xff] }
0x2016   :  { %v5011_v4 = vmul.f32 0.03125, %v5001_v32  ;;  %v5012_v61 = vmul.f32 0.03125, %v5004_v23  ;;  %v5022_v22 = vmul.f32 %v11893_v5, %v11893_v5  ;;  %v7396_v23 = vld [vmem:[%s12503_s16 + $0x2] ss:$0 sm:$0xff] }
0x2017   :  { %9339 = vmatpush3.bf16.msra.mxu0 %v9336_v60  ;;  %v7421_v60 = vld [vmem:[%s12501_s21 + $0x160] sm:$0xff] }
0x2018   :  { %v11898_v35 = vsub.f32 %v4983_v9, %v5011_v4  ;;  %v11900_v30 = vsub.f32 %v4984_v2, %v5012_v61  ;;  %v5032_v40 = vsel %vm778_vm2, %v5022_v22, 0.0  ;;  %9341 = vmatprep.subr.bf16.mxu0 %v9340_v57  ;;  %v9356_v54 = vpack.c.bf16 %v7422_v38, %v7421_v60 }
0x2019   :  { %v5007_v42 = vpop.xlane.xlu1 %5006  ;;  %5033 = vadd.xlane.f32.xlu0 %v5032_v40 }
0x201a   :  { %v5013_v10 = vmul.f32 0.03125, %v5007_v42  ;;  %v5023_v24 = vmul.f32 %v11898_v35, %v11898_v35  ;;  %v5024_v55 = vmul.f32 %v11900_v30, %v11900_v30 }
0x201b   :  { %9343 = vmatpush3.bf16.msra.mxu0 %v9340_v57  ;;  %v7423_v57 = vld [vmem:[%s12501_s21 + $0x170] sm:$0xff] }
0x201c   :  { %v11907_v7 = vsub.f32 %v4985_v36, %v5013_v10  ;;  %v5035_v34 = vsel %vm778_vm2, %v5023_v24, 0.0  ;;  %v5038_v51 = vsel %vm778_vm2, %v5024_v55, 0.0 }
0x201d   :  { %5036 = vadd.xlane.f32.xlu1 %v5035_v34  ;;  %5039 = vadd.xlane.f32.xlu0 %v5038_v51 }
0x201e   :  { %v5025_v45 = vmul.f32 %v11907_v7, %v11907_v7 }
0x2020   :  { %v5041_v37 = vsel %vm778_vm2, %v5025_v45, 0.0 }
0x2021   :  { %5042 = vadd.xlane.f32.xlu1 %v5041_v37 }
0x20a1   :  { %v5031_v19 = vpop.xlane.xlu1 %5030 }
0x20a2   :  { %v5045_v46 = vmul.f32 0.03125, %v5031_v19  ;;  %v5028_v29 = vpop.xlane.xlu0 %5027  ;;  %v7424_v19 = vld [vmem:[%s12501_s21 + $0x178] sm:$0xff] }
0x20a3   :  { %v5044_v9 = vmul.f32 0.03125, %v5028_v29  ;;  %v7402_v29 = vld [vmem:[%s12504_s20 + $0x2] ss:$0 sm:$0xff] }
0x20a4   :  { %v5051_v8 = vadd.f32 1e-05, %v5045_v46  ;;  %v9360_v46 = vpack.c.bf16 %v7424_v19, %v7423_v57 }
0x20a5   :  { %v5050_v47 = vadd.f32 1e-05, %v5044_v9 }
0x20a6   :  { %10011 = vrsqrt.f32 %v5051_v8  ;;  %v5034_v58 = vpop.xlane.xlu0 %5033 }
0x20a7   :  { %10013 = vrsqrt.f32 %v5050_v47  ;;  %v5046_v2 = vmul.f32 0.03125, %v5034_v58 }
0x20a9   :  { %v5052_v36 = vadd.f32 1e-05, %v5046_v2 }
0x20aa   :  { %v5037_v1 = vpop.xlane.xlu1 %5036  ;;  %v5040_v50 = vpop.xlane.xlu0 %5039 }
0x20ab   :  { %10015 = vrsqrt.f32 %v5052_v36  ;;  %v5047_v52 = vmul.f32 0.03125, %v5037_v1  ;;  %v5048_v20 = vmul.f32 0.03125, %v5040_v50 }
0x20ad   :  { %v5053_v21 = vadd.f32 1e-05, %v5047_v52  ;;  %v5054_v3 = vadd.f32 1e-05, %v5048_v20 }
0x20ae   :  { %v5043_v26 = vpop.xlane.xlu1 %5042 }
0x20af   :  { %10017 = vrsqrt.f32 %v5053_v21  ;;  %v5049_v43 = vmul.f32 0.03125, %v5043_v26 }
0x20b0   :  { %v10012_v25 = vpop.eup %10011  ;;  %10019 = vrsqrt.f32 %v5054_v3 }
0x20b1   :  { %v10014_v6 = vpop.eup %10013  ;;  %v5063_v11 = vmul.f32 %v10012_v25, %v11884_v28  ;;  %v5055_v17 = vadd.f32 1e-05, %v5049_v43 }
0x20b2   :  { %v5062_v32 = vmul.f32 %v10014_v6, %v11886_v59 }
0x20b3   :  { %v5075_v4 = vmul.f32 %v7395_v15, %v5063_v11  ;;  %10021 = vrsqrt.f32 %v5055_v17 }
0x20b4   :  { %v5074_v61 = vmul.f32 %v7395_v15, %v5062_v32 }
0x20b5   :  { %v10016_v22 = vpop.eup %10015  ;;  %v11955_v10 = vadd.f32 %v7396_v23, %v5075_v4 }
0x20b6   :  { %v11952_v40 = vadd.f32 %v7396_v23, %v5074_v61  ;;  %v5064_v42 = vmul.f32 %v10016_v22, %v11893_v5 }
0x20b8   :  { %8662 = vmatprep.mubr.msk.f32.mxu1 %vm778_vm2, %v11952_v40  ;;  %v5076_v28 = vmul.f32 %v7395_v15, %v5064_v42 }
0x20b9   :  { %v10018_v24 = vpop.eup %10017  ;;  %8663 = vmatmul.mubr.msk.f32.vlgmr.msra.gmra.mrb[76].mxu1 %vm778_vm2, %v11955_v10 }
0x20ba   :  { %v10020_v59 = vpop.eup %10019  ;;  %v11961_v55 = vadd.f32 %v7396_v23, %v5076_v28  ;;  %v5065_v34 = vmul.f32 %v10018_v24, %v11898_v35 }
0x20bb   :  { %v5066_v51 = vmul.f32 %v10020_v59, %v11900_v30  ;;  %v7415_v30 = vld [vmem:[%s12501_s21 + $0x130] sm:$0xff] }
0x20bc   :  { %8665 = vmatprep.mubr.msk.f32.mxu1 %vm778_vm2, %v11961_v55  ;;  %v5077_v5 = vmul.f32 %v7395_v15, %v5065_v34 }
0x20bd   :  { %v10022_v45 = vpop.eup %10021  ;;  %v5078_v37 = vmul.f32 %v7395_v15, %v5066_v51 }
0x20be   :  { %v11967_v62 = vadd.f32 %v7396_v23, %v5077_v5  ;;  %v5067_v41 = vmul.f32 %v10022_v45, %v11907_v7  ;;  %v7416_v7 = vld [vmem:[%s12501_s21 + $0x138] sm:$0xff] }
0x20bf   :  { %v11970_v12 = vadd.f32 %v7396_v23, %v5078_v37  ;;  %v9344_v53 = vpack.c.bf16 %v7416_v7, %v7415_v30 }
0x20c0   :  { %8666 = vmatmul.mubr.msk.f32.gmra.mrb[78].mxu1 %vm778_vm2, %v11967_v62  ;;  %v5079_v18 = vmul.f32 %v7395_v15, %v5067_v41 }
0x20c1   :  { %8668 = vmatprep.mubr.msk.f32.mxu1 %vm778_vm2, %v11970_v12  ;;  %9345 = vmatprep.subr.bf16.mxu0 %v9344_v53 }
0x20c2   :  { %v11976_v35 = vadd.f32 %v7396_v23, %v5079_v18  ;;  %9347 = vmatpush3.bf16.msra.mxu0 %v9344_v53 }
0x20c3   :  { %9349 = vmatprep.subr.bf16.mxu0 %v9348_v13 }
0x20c4   :  { %8669 = vmatmul.mubr.msk.f32.gmra.mrb[80].mxu1 %vm778_vm2, %v11976_v35 }
0x20c6   :  { %9351 = vmatpush3.bf16.msra.mxu0 %v9348_v13 }
0x20c7   :  { %9353 = vmatprep.subr.bf16.mxu0 %v9352_v33 }
0x20ca   :  { %9355 = vmatpush3.bf16.msra.mxu0 %v9352_v33 }
0x20cb   :  { %9357 = vmatprep.subr.bf16.mxu0 %v9356_v54 }
0x20ce   :  { %9359 = vmatpush3.bf16.msra.mxu0 %v9356_v54 }
0x20cf   :  { %9361 = vmatprep.subr.bf16.mxu0 %v9360_v46 }
0x20d2   :  { %9363 = vmatpush3.bf16.msra.mxu0 %v9360_v46 }
0x218c   :  { %v8664_v9 = vpop.f32.mrb[76].mxu1 }
0x218d   :  { %v5195_v8 = vadd.f32 %v8664_v9, %v7402_v29  ;;  %v5189_v47 = vpop.f32.mrb[77].mxu1 }
0x218e   :  { %v5190_v58 = vadd.f32 %v7402_v29, %v5189_v47 }
0x218f   :  { %v5225_v2 = vmul.f32 0.70710677, %v5195_v8  ;;  %v5219_v22 = vmul.f32 0.5, %v5195_v8 }
0x2190   :  { %v5224_v36 = vmul.f32 0.70710677, %v5190_v58  ;;  %v5218_v4 = vmul.f32 0.5, %v5190_v58 }
0x2191   :  { %10023 = verf.f32 %v5225_v2 }
0x2192   :  { %10025 = verf.f32 %v5224_v36 }
0x2193   :  { %v8667_v1 = vpop.f32.mrb[78].mxu1 }
0x2194   :  { %v5205_v50 = vadd.f32 %v8667_v1, %v7402_v29  ;;  %v5199_v52 = vpop.f32.mrb[79].mxu1 }
0x2195   :  { %v5200_v20 = vadd.f32 %v7402_v29, %v5199_v52 }
0x2196   :  { %v5227_v21 = vmul.f32 0.70710677, %v5205_v50  ;;  %v5221_v45 = vmul.f32 0.5, %v5205_v50 }
0x2197   :  { %v5226_v3 = vmul.f32 0.70710677, %v5200_v20  ;;  %v8670_v26 = vpop.f32.mrb[80].mxu1  ;;  %v5220_v51 = vmul.f32 0.5, %v5200_v20 }
0x2198   :  { %10027 = verf.f32 %v5227_v21  ;;  %v5215_v43 = vadd.f32 %v8670_v26, %v7402_v29  ;;  %v5209_v25 = vpop.f32.mrb[81].mxu1 }
0x2199   :  { %10029 = verf.f32 %v5226_v3  ;;  %v5210_v15 = vadd.f32 %v7402_v29, %v5209_v25 }
0x219a   :  { %v5229_v6 = vmul.f32 0.70710677, %v5215_v43  ;;  %v5223_v56 = vmul.f32 0.5, %v5215_v43 }
0x219b   :  { %v10024_v11 = vpop.eup %10023  ;;  %v5228_v17 = vmul.f32 0.70710677, %v5210_v15  ;;  %v5222_v53 = vmul.f32 0.5, %v5210_v15 }
0x219c   :  { %v10026_v32 = vpop.eup %10025  ;;  %v5237_v23 = vadd.f32 1.0, %v10024_v11  ;;  %10031 = verf.f32 %v5229_v6 }
0x219d   :  { %v5236_v61 = vadd.f32 1.0, %v10026_v32  ;;  %10033 = verf.f32 %v5228_v17 }
0x219e   :  { %v5243_v28 = vmul.f32 %v5237_v23, %v5219_v22 }
0x219f   :  { %v5242_v42 = vmul.f32 %v5236_v61, %v5218_v4 }
0x21a1   :  { %8703 = vmatprep.mubr.f32.mxu0 %v5242_v42 }
0x21a2   :  { %v10028_v24 = vpop.eup %10027  ;;  %8704 = vmatmul.mubr.f32.vlgmr.msra.gmra.mrb[92].mxu0 %v5243_v28 }
0x21a3   :  { %v10030_v59 = vpop.eup %10029  ;;  %v5239_v34 = vadd.f32 1.0, %v10028_v24 }
0x21a4   :  { %v5238_v5 = vadd.f32 1.0, %v10030_v59 }
0x21a5   :  { %v5245_v7 = vmul.f32 %v5239_v34, %v5221_v45 }
0x21a6   :  { %v10032_v37 = vpop.eup %10031  ;;  %v5244_v41 = vmul.f32 %v5238_v5, %v5220_v51 }
0x21a7   :  { %v10034_v18 = vpop.eup %10033  ;;  %v5241_v30 = vadd.f32 1.0, %v10032_v37 }
0x21a8   :  { %v5240_v0 = vadd.f32 1.0, %v10034_v18  ;;  %8706 = vmatprep.mubr.f32.mxu0 %v5244_v41 }
0x21a9   :  { %8707 = vmatmul.mubr.f32.gmra.mrb[94].mxu0 %v5245_v7  ;;  %v5247_v39 = vmul.f32 %v5241_v30, %v5223_v56 }
0x21aa   :  { %v5246_v13 = vmul.f32 %v5240_v0, %v5222_v53 }
0x21ac   :  { %8709 = vmatprep.mubr.f32.mxu0 %v5246_v13  ;;  %v7435_v13 = vld [vmem:[%s12531_s10 + $0x60] sm:$0xff] }
0x21ad   :  { %8710 = vmatmul.mubr.f32.gmra.mrb[96].mxu0 %v5247_v39  ;;  %v7436_v39 = vld [vmem:[%s12531_s10 + $0x68] sm:$0xff] }
0x2275   :  { %v8705_v33 = vpop.f32.mrb[92].mxu0 }
0x2276   :  { %v5345_v60 = vadd.f32 %v8705_v33, %v7426_v63  ;;  %v5339_v38 = vpop.f32.mrb[93].mxu0  ;;  %v7437_v33 = vld [vmem:[%s12531_s10 + $0x70] sm:$0xff] }
0x2277   :  { %v5340_v54 = vadd.f32 %v7426_v63, %v5339_v38 }
0x2278   :  { %v5369_v57 = vadd.f32 %v5345_v60, %v11955_v10  ;;  %v7438_v60 = vld [vmem:[%s12531_s10 + $0x78] sm:$0xff] }
0x2279   :  { %v5368_v19 = vadd.f32 %v5340_v54, %v11952_v40  ;;  %v9368_v38 = vpack.c.bf16 %v7438_v60, %v7437_v33 }
0x227a   :  { %v5381_v46 = vsel %vm778_vm2, %v5369_v57, 0.0 }
0x227b   :  { %5382 = vadd.xlane.f32.xlu1 %v5381_v46  ;;  %v5378_v29 = vsel %vm778_vm2, %v5368_v19, 0.0 }
0x227c   :  { %5379 = vadd.xlane.f32.xlu0 %v5378_v29  ;;  %v8708_v9 = vpop.f32.mrb[94].mxu0 }
0x227d   :  { %v5355_v8 = vadd.f32 %v8708_v9, %v7426_v63  ;;  %v5349_v47 = vpop.f32.mrb[95].mxu0 }
0x227e   :  { %v5350_v58 = vadd.f32 %v7426_v63, %v5349_v47 }
0x227f   :  { %v5371_v2 = vadd.f32 %v5355_v8, %v11967_v62 }
0x2280   :  { %v5370_v36 = vadd.f32 %v5350_v58, %v11961_v55  ;;  %v8711_v1 = vpop.f32.mrb[96].mxu0 }
0x2281   :  { %v5365_v50 = vadd.f32 %v8711_v1, %v7426_v63  ;;  %v5359_v52 = vpop.f32.mrb[97].mxu0  ;;  %v5387_v10 = vsel %vm778_vm2, %v5371_v2, 0.0 }
0x2282   :  { %v5360_v40 = vadd.f32 %v7426_v63, %v5359_v52  ;;  %5388 = vadd.xlane.f32.xlu1 %v5387_v10  ;;  %v5384_v20 = vsel %vm778_vm2, %v5370_v36, 0.0  ;;  %v9364_v63 = vpack.c.bf16 %v7436_v39, %v7435_v13 }
0x2283   :  { %v5373_v21 = vadd.f32 %v5365_v50, %v11976_v35  ;;  %5385 = vadd.xlane.f32.xlu0 %v5384_v20 }
0x2284   :  { %v5372_v3 = vadd.f32 %v5360_v40, %v11970_v12  ;;  %9365 = vmatprep.subr.bf16.mxu1 %v9364_v63 }
0x2285   :  { %v5393_v26 = vsel %vm778_vm2, %v5373_v21, 0.0  ;;  %9367 = vmatpush3.bf16.msra.mxu1 %v9364_v63 }
0x2286   :  { %5394 = vadd.xlane.f32.xlu1 %v5393_v26  ;;  %v5390_v62 = vsel %vm778_vm2, %v5372_v3, 0.0  ;;  %9369 = vmatprep.subr.bf16.mxu1 %v9368_v38 }
0x2287   :  { %5391 = vadd.xlane.f32.xlu0 %v5390_v62 }
0x2289   :  { %9371 = vmatpush3.bf16.msra.mxu1 %v9368_v38 }
0x2308   :  { %v5383_v55 = vpop.xlane.xlu1 %5382 }
0x2309   :  { %v5397_v43 = vmul.f32 0.03125, %v5383_v55  ;;  %v5380_v25 = vpop.xlane.xlu0 %5379 }
0x230a   :  { %v5396_v15 = vmul.f32 0.03125, %v5380_v25  ;;  %v7430_v25 = vld [vmem:[%s12507_s18 + $0x2] ss:$0 sm:$0xff] }
0x230b   :  { %v12028_v6 = vsub.f32 %v5369_v57, %v5397_v43 }
0x230c   :  { %v12030_v11 = vsub.f32 %v5368_v19, %v5396_v15 }
0x230d   :  { %v5409_v35 = vmul.f32 %v12028_v6, %v12028_v6 }
0x230e   :  { %v5408_v12 = vmul.f32 %v12030_v11, %v12030_v11 }
0x230f   :  { %v5389_v17 = vpop.xlane.xlu1 %5388  ;;  %v5417_v32 = vsel %vm778_vm2, %v5409_v35, 0.0 }
0x2310   :  { %v5399_v23 = vmul.f32 0.03125, %v5389_v17  ;;  %5418 = vadd.xlane.f32.xlu1 %v5417_v32  ;;  %v5386_v4 = vpop.xlane.xlu0 %5385  ;;  %v5414_v61 = vsel %vm778_vm2, %v5408_v12, 0.0 }
0x2311   :  { %v5398_v22 = vmul.f32 0.03125, %v5386_v4  ;;  %5415 = vadd.xlane.f32.xlu0 %v5414_v61 }
0x2312   :  { %v12038_v42 = vsub.f32 %v5371_v2, %v5399_v23 }
0x2313   :  { %v12040_v28 = vsub.f32 %v5370_v36, %v5398_v22  ;;  %v5395_v24 = vpop.xlane.xlu1 %5394 }
0x2314   :  { %v5401_v59 = vmul.f32 0.03125, %v5395_v24  ;;  %v5392_v34 = vpop.xlane.xlu0 %5391  ;;  %v5411_v51 = vmul.f32 %v12038_v42, %v12038_v42 }
0x2315   :  { %v5400_v5 = vmul.f32 0.03125, %v5392_v34  ;;  %v5410_v45 = vmul.f32 %v12040_v28, %v12040_v28 }
0x2316   :  { %v12046_v37 = vsub.f32 %v5373_v21, %v5401_v59  ;;  %v5423_v41 = vsel %vm778_vm2, %v5411_v51, 0.0 }
0x2317   :  { %v12049_v18 = vsub.f32 %v5372_v3, %v5400_v5  ;;  %5424 = vadd.xlane.f32.xlu1 %v5423_v41  ;;  %v5420_v30 = vsel %vm778_vm2, %v5410_v45, 0.0  ;;  %v7429_v3 = vld [vmem:[%s12506_s17 + $0x2] ss:$0 sm:$0xff] }
0x2318   :  { %5421 = vadd.xlane.f32.xlu0 %v5420_v30  ;;  %v5413_v7 = vmul.f32 %v12046_v37, %v12046_v37 }
0x2319   :  { %v5412_v53 = vmul.f32 %v12049_v18, %v12049_v18 }
0x231a   :  { %v5429_v0 = vsel %vm778_vm2, %v5413_v7, 0.0 }
0x231b   :  { %5430 = vadd.xlane.f32.xlu1 %v5429_v0  ;;  %v5426_v56 = vsel %vm778_vm2, %v5412_v53, 0.0 }
0x231c   :  { %5427 = vadd.xlane.f32.xlu0 %v5426_v56 }
0x239d   :  { %v5419_v54 = vpop.xlane.xlu1 %5418 }
0x239e   :  { %v5433_v57 = vmul.f32 0.03125, %v5419_v54  ;;  %v5416_v19 = vpop.xlane.xlu0 %5415 }
0x239f   :  { %v5432_v46 = vmul.f32 0.03125, %v5416_v19 }
0x23a0   :  { %v5439_v29 = vadd.f32 1e-05, %v5433_v57 }
0x23a1   :  { %v5438_v9 = vadd.f32 1e-05, %v5432_v46 }
0x23a2   :  { %10035 = vrsqrt.f32 %v5439_v29 }
0x23a3   :  { %10037 = vrsqrt.f32 %v5438_v9 }
0x23a4   :  { %v5425_v8 = vpop.xlane.xlu1 %5424 }
0x23a5   :  { %v5435_v47 = vmul.f32 0.03125, %v5425_v8  ;;  %v5422_v58 = vpop.xlane.xlu0 %5421 }
0x23a6   :  { %v5434_v2 = vmul.f32 0.03125, %v5422_v58 }
0x23a7   :  { %v5441_v36 = vadd.f32 1e-05, %v5435_v47 }
0x23a8   :  { %v5440_v1 = vadd.f32 1e-05, %v5434_v2  ;;  %v5431_v50 = vpop.xlane.xlu1 %5430 }
0x23a9   :  { %10039 = vrsqrt.f32 %v5441_v36  ;;  %v5437_v52 = vmul.f32 0.03125, %v5431_v50  ;;  %v5428_v10 = vpop.xlane.xlu0 %5427 }
0x23aa   :  { %10041 = vrsqrt.f32 %v5440_v1  ;;  %v5436_v40 = vmul.f32 0.03125, %v5428_v10 }
0x23ab   :  { %v5443_v20 = vadd.f32 1e-05, %v5437_v52 }
0x23ac   :  { %v10036_v21 = vpop.eup %10035  ;;  %v5442_v26 = vadd.f32 1e-05, %v5436_v40 }
0x23ad   :  { %v10038_v62 = vpop.eup %10037  ;;  %v5451_v55 = vmul.f32 %v10036_v21, %v12028_v6  ;;  %10043 = vrsqrt.f32 %v5443_v20 }
0x23ae   :  { %10045 = vrsqrt.f32 %v5442_v26  ;;  %v5450_v43 = vmul.f32 %v10038_v62, %v12030_v11 }
0x23af   :  { %v5463_v15 = vmul.f32 %v7429_v3, %v5451_v55 }
0x23b0   :  { %v5462_v35 = vmul.f32 %v7429_v3, %v5450_v43 }
0x23b1   :  { %v12080_v32 = vadd.f32 %v7430_v25, %v5463_v15 }
0x23b2   :  { %v12078_v12 = vadd.f32 %v7430_v25, %v5462_v35 }
0x23b3   :  { %v10040_v17 = vpop.eup %10039 }
0x23b4   :  { %v10042_v23 = vpop.eup %10041  ;;  %8720 = vmatprep.mubr.msk.f32.mxu1 %vm778_vm2, %v12078_v12  ;;  %v5453_v6 = vmul.f32 %v10040_v17, %v12038_v42 }
0x23b5   :  { %8721 = vmatmul.mubr.msk.f32.vlgmr.msra.gmra.mrb[82].mxu1 %vm778_vm2, %v12080_v32  ;;  %v5452_v11 = vmul.f32 %v10042_v23, %v12040_v28 }
0x23b6   :  { %v5465_v4 = vmul.f32 %v7429_v3, %v5453_v6 }
0x23b7   :  { %v10044_v61 = vpop.eup %10043  ;;  %v5464_v22 = vmul.f32 %v7429_v3, %v5452_v11 }
0x23b8   :  { %v10046_v24 = vpop.eup %10045  ;;  %v5455_v59 = vmul.f32 %v10044_v61, %v12046_v37  ;;  %v12092_v5 = vadd.f32 %v7430_v25, %v5465_v4  ;;  %v7440_v37 = vld [vmem:[%s12495_s12 + $0x3] ss:$0 sm:$0xff] }
0x23b9   :  { %v12089_v34 = vadd.f32 %v7430_v25, %v5464_v22  ;;  %v5454_v51 = vmul.f32 %v10046_v24, %v12049_v18 }
0x23ba   :  { %v5467_v45 = vmul.f32 %v7429_v3, %v5455_v59 }
0x23bb   :  { %8723 = vmatprep.mubr.msk.f32.mxu1 %vm778_vm2, %v12089_v34  ;;  %v5466_v42 = vmul.f32 %v7429_v3, %v5454_v51 }
0x23bc   :  { %8724 = vmatmul.mubr.msk.f32.gmra.mrb[84].mxu1 %vm778_vm2, %v12092_v5  ;;  %v12100_v41 = vadd.f32 %v7430_v25, %v5467_v45 }
0x23bd   :  { %v12098_v28 = vadd.f32 %v7430_v25, %v5466_v42 }
0x23bf   :  { %8726 = vmatprep.mubr.msk.f32.mxu1 %vm778_vm2, %v12098_v28 }
0x23c0   :  { %8727 = vmatmul.mubr.msk.f32.gmra.mrb[86].mxu1 %vm778_vm2, %v12100_v41 }
0x2488   :  { %v8722_v18 = vpop.f32.mrb[82].mxu1 }
0x2489   :  { %v12109_v30 = vadd.f32 %v8722_v18, %v7440_v37  ;;  %v5582_v7 = vpop.f32.mrb[83].mxu1 }
0x248a   :  { %v12111_v53 = vadd.f32 %v7440_v37, %v5582_v7 }
0x248c   :  { %8741 = vmatprep.mubr.msk.f32.mxu1 %vm911_vm3, %v12111_v53  ;;  %v12117_v0 = vpack.i.bf16 %v12109_v30, %v12111_v53 }
0x248e   :  { %9736 = vrot.lane.b32.xlu0 %v12117_v0, %s10134_s28 }
0x248f   :  { %v8725_v56 = vpop.f32.mrb[84].mxu1 }
0x2490   :  { %v12121_v13 = vadd.f32 %v8725_v56, %v7440_v37  ;;  %v5592_v39 = vpop.f32.mrb[85].mxu1 }
0x2491   :  { %v12123_v63 = vadd.f32 %v7440_v37, %v5592_v39 }
0x2493   :  { %v8728_v33 = vpop.f32.mrb[86].mxu1  ;;  %v12127_v60 = vpack.i.bf16 %v12121_v13, %v12123_v63 }
0x2494   :  { %v12129_v38 = vadd.f32 %v8728_v33, %v7440_v37  ;;  %v5602_v54 = vpop.f32.mrb[87].mxu1 }
0x2495   :  { %v12131_v57 = vadd.f32 %v7440_v37, %v5602_v54  ;;  %9741 = vrot.lane.b32.xlu1 %v12127_v60, %s10134_s28 }
0x2497   :  { %v12137_v19 = vpack.i.bf16 %v12129_v38, %v12131_v57 }
0x2499   :  { %9746 = vrot.lane.b32.xlu1 %v12137_v19, %s10134_s28 }
0x2500   :  { %v9737_v46 = vpop.permute.xlu0 %9736 }
0x2501   :  { %v9739_v29 = vunpack.i.h.bf16 %v9737_v46  ;;  %v9738_v9 = vunpack.i.l.bf16 %v9737_v46 }
0x2503   :  { %v9372_v8 = vpack.c.bf16 %v9739_v29, %v9738_v9 }
0x2505   :  { %9374 = vmatprep.subr.msk.bf16.mxu1 %vm10793_vm4, %v9372_v8 }
0x2506   :  { %9377 = vmatpush3.bf16.xpose.msk.msra.mxu1 %vm10793_vm4, %v9372_v8 }
0x2507   :  { %v9742_v47 = vpop.permute.xlu1 %9741 }
0x2508   :  { %v9744_v58 = vunpack.i.h.bf16 %v9742_v47  ;;  %v9743_v2 = vunpack.i.l.bf16 %v9742_v47 }
0x250a   :  { %v9378_v36 = vpack.c.bf16 %v9744_v58, %v9743_v2 }
0x250b   :  { %v9747_v1 = vpop.permute.xlu1 %9746 }
0x250c   :  { %v9749_v50 = vunpack.i.h.bf16 %v9747_v1  ;;  %v9748_v52 = vunpack.i.l.bf16 %v9747_v1  ;;  %9380 = vmatprep.subr.msk.bf16.mxu1 %vm10793_vm4, %v9378_v36 }
0x250e   :  { %v9384_v10 = vpack.c.bf16 %v9749_v50, %v9748_v52  ;;  %9383 = vmatpush3.bf16.xpose.msk.msra.mxu1 %vm10793_vm4, %v9378_v36 }
0x2510   :  { %9386 = vmatprep.subr.msk.bf16.mxu1 %vm10793_vm4, %v9384_v10 }
0x2516   :  { %9389 = vmatpush3.bf16.xpose.msk.msra.mxu1 %vm10793_vm4, %v9384_v10 }
0x251d   :  { %8742 = vmatmul.mubr.msk.f32.vlgmr.msra.gmra.mrb[88].mxu1 %vm911_vm3, %v12109_v30 }
0x251e   :  { %8744 = vmatprep.mubr.msk.f32.mxu1 %vm911_vm3, %v12123_v63 }
0x2521   :  { %8745 = vmatmul.mubr.msk.f32.gmra.mrb[90].mxu1 %vm911_vm3, %v12121_v13 }
0x2522   :  { %8747 = vmatprep.mubr.msk.f32.mxu1 %vm911_vm3, %v12131_v57 }
0x2525   :  { %8748 = vmatmul.mubr.msk.f32.gmra.mrb[92].mxu1 %vm911_vm3, %v12129_v38 }
0x25f0   :  { %v8743_v40 = vpop.f32.mrb[88].mxu1 }
0x25f1   :  { %v5751_v20 = vmul.f32 0.25, %v8743_v40  ;;  %v5721_v21 = vpop.f32.mrb[89].mxu1 }
0x25f2   :  { %v5750_v3 = vmul.f32 0.25, %v5721_v21 }
0x25f3   :  { %v5757_v26 = vadd.f32 %v5751_v20, %v10845_v14 }
0x25f4   :  { %v5756_v62 = vadd.f32 %v5750_v3, %v10847_v16  ;;  %v8746_v55 = vpop.f32.mrb[90].mxu1 }
0x25f5   :  { %v5753_v43 = vmul.f32 0.25, %v8746_v55  ;;  %v5731_v25 = vpop.f32.mrb[91].mxu1  ;;  %v5765_v15 = vsel %vm1043_vm5, %v5757_v26, -inf }
0x25f6   :  { %v5752_v35 = vmul.f32 0.25, %v5731_v25  ;;  %5766 = vmax.xlane.f32.xlu1 %v5765_v15  ;;  %v5762_v17 = vsel %vm1043_vm5, %v5756_v62, -inf }
0x25f7   :  { %v5759_v23 = vadd.f32 %v5753_v43, %v10856_v27  ;;  %5763 = vmax.xlane.f32.xlu0 %v5762_v17 }
0x25f8   :  { %v8749_v6 = vpop.f32.mrb[92].mxu1  ;;  %v5758_v61 = vadd.f32 %v5752_v35, %v10861_v31 }
0x25f9   :  { %v5741_v11 = vpop.f32.mrb[93].mxu1  ;;  %v5771_v4 = vsel %vm1043_vm5, %v5759_v23, -inf  ;;  %v5755_v22 = vmul.f32 0.25, %v8749_v6 }
0x25fa   :  { %v5754_v24 = vmul.f32 0.25, %v5741_v11  ;;  %v5768_v45 = vsel %vm1043_vm5, %v5758_v61, -inf }
0x25fb   :  { %5772 = vmax.xlane.f32.xlu0 %v5771_v4  ;;  %v5761_v51 = vadd.f32 %v5755_v22, %v10874_v44 }
0x25fc   :  { %v5760_v59 = vadd.f32 %v5754_v24, %v10879_v49 }
0x25fd   :  { %v5777_v37 = vsel %vm1043_vm5, %v5761_v51, -inf }
0x25fe   :  { %v5774_v42 = vsel %vm1043_vm5, %v5760_v59, -inf }
0x25ff   :  { %5769 = vmax.xlane.f32.xlu0 %v5768_v45  ;;  %5775 = vmax.xlane.f32.xlu1 %v5774_v42 }
0x2603   :  { %5778 = vmax.xlane.f32.xlu0 %v5777_v37 }
0x2610   :  { %9751 = vrot.lane.b32.xlu1 %v12117_v0, %s10136_s7 }
0x2614   :  { %9761 = vrot.lane.b32.xlu1 %v12137_v19, %s10136_s7 }
0x2619   :  { %9756 = vrot.lane.b32.xlu0 %v12127_v60, %s10136_s7 }
0x2683   :  { %v5767_v18 = vpop.xlane.xlu1 %5766 }
0x2684   :  { %v5781_v7 = vsub.f32 %v5757_v26, %v5767_v18  ;;  %v5764_v56 = vpop.xlane.xlu0 %5763 }
0x2685   :  { %v5780_v39 = vsub.f32 %v5756_v62, %v5764_v56 }
0x2686   :  { %v5788_v33 = vmul.f32 1.442695, %v5781_v7 }
0x2687   :  { %v5786_v54 = vmul.f32 1.442695, %v5780_v39 }
0x2688   :  { %10047 = vpow2.f32 %v5788_v33  ;;  %v5773_v46 = vpop.xlane.xlu0 %5772 }
0x2689   :  { %10049 = vpow2.f32 %v5786_v54  ;;  %v5783_v29 = vsub.f32 %v5759_v23, %v5773_v46 }
0x268b   :  { %v5792_v9 = vmul.f32 1.442695, %v5783_v29 }
0x268c   :  { %v5770_v8 = vpop.xlane.xlu0 %5769  ;;  %v5776_v47 = vpop.xlane.xlu1 %5775 }
0x268d   :  { %10051 = vpow2.f32 %v5792_v9  ;;  %v5782_v58 = vsub.f32 %v5758_v61, %v5770_v8  ;;  %v5784_v36 = vsub.f32 %v5760_v59, %v5776_v47 }
0x268f   :  { %v5790_v2 = vmul.f32 1.442695, %v5782_v58  ;;  %v5794_v3 = vmul.f32 1.442695, %v5784_v36 }
0x2690   :  { %v5779_v1 = vpop.xlane.xlu0 %5778  ;;  %v9752_v50 = vpop.permute.xlu1 %9751 }
0x2691   :  { %10053 = vpow2.f32 %v5790_v2  ;;  %v5785_v52 = vsub.f32 %v5761_v51, %v5779_v1  ;;  %v9754_v10 = vunpack.i.h.bf16 %v9752_v50  ;;  %v9753_v40 = vunpack.i.l.bf16 %v9752_v50 }
0x2692   :  { %v12181_v20 = vpop.eup %10047 }
0x2693   :  { %v10050_v21 = vpop.eup %10049  ;;  %v5796_v26 = vmul.f32 1.442695, %v5785_v52  ;;  %v9390_v62 = vpack.c.bf16 %v9754_v10, %v9753_v40  ;;  %v5801_v55 = vsel %vm1043_vm5, %v12181_v20, 0.0 }
0x2694   :  { %5802 = vadd.xlane.f32.xlu0 %v5801_v55  ;;  %v9757_v43 = vpop.permute.xlu0 %9756  ;;  %v9762_v25 = vpop.permute.xlu1 %9761  ;;  %v5798_v15 = vsel %vm1043_vm5, %v10050_v21, 0.0 }
0x2695   :  { %10055 = vpow2.f32 %v5796_v26  ;;  %v9759_v35 = vunpack.i.h.bf16 %v9757_v43  ;;  %v9758_v17 = vunpack.i.l.bf16 %v9757_v43  ;;  %v9764_v23 = vunpack.i.h.bf16 %v9762_v25  ;;  %5799 = vadd.xlane.f32.xlu1 %v5798_v15  ;;  %9391 = vmatprep.subr.bf16.mxu0 %v9390_v62 }
0x2696   :  { %v9763_v6 = vunpack.i.l.bf16 %v9762_v25  ;;  %9393 = vmatpush3.bf16.msra.mxu0 %v9390_v62  ;;  %10057 = vpow2.f32 %v5794_v3 }
0x2697   :  { %v10052_v11 = vpop.eup %10051  ;;  %v9394_v4 = vpack.c.bf16 %v9759_v35, %v9758_v17 }
0x2698   :  { %v5807_v61 = vsel %vm1043_vm5, %v10052_v11, 0.0  ;;  %v9398_v22 = vpack.c.bf16 %v9764_v23, %v9763_v6 }
0x2699   :  { %5808 = vadd.xlane.f32.xlu0 %v5807_v61  ;;  %9395 = vmatprep.subr.bf16.mxu0 %v9394_v4 }
0x269a   :  { %9397 = vmatpush3.bf16.msra.mxu0 %v9394_v4 }
0x269b   :  { %v10054_v24 = vpop.eup %10053  ;;  %9399 = vmatprep.subr.bf16.mxu0 %v9398_v22 }
0x269c   :  { %v5804_v59 = vsel %vm1043_vm5, %v10054_v24, 0.0 }
0x269d   :  { %5805 = vadd.xlane.f32.xlu1 %v5804_v59 }
0x269e   :  { %9401 = vmatpush3.bf16.msra.mxu0 %v9398_v22 }
0x269f   :  { %v10056_v51 = vpop.eup %10055 }
0x26a0   :  { %v5813_v45 = vsel %vm1043_vm5, %v10056_v51, 0.0  ;;  %v10058_v42 = vpop.eup %10057 }
0x26a1   :  { %5814 = vadd.xlane.f32.xlu0 %v5813_v45  ;;  %v5810_v37 = vsel %vm1043_vm5, %v10058_v42, 0.0 }
0x26a5   :  { %5811 = vadd.xlane.f32.xlu0 %v5810_v37 }
0x26ae   :  { %9771 = vrot.lane.b32.xlu1 %v12127_v60, %s10133_s8 }
0x26b2   :  { %9776 = vrot.lane.b32.xlu1 %v12137_v19, %s10133_s8 }
0x26b6   :  { %6084 = vrot.lane.b32.xlu1 %v12111_v53, %s10135_s29  ;;  %v7431_v53 = vld [vmem:[%s12498_s13 + $0x60] sm:$0xff] }
0x26ba   :  { %6086 = vrot.lane.b32.xlu1 %v12109_v30, %s10135_s29  ;;  %v7432_v30 = vld [vmem:[%s12498_s13 + $0x68] sm:$0xff] }
0x26bb   :  { %9766 = vrot.lane.b32.xlu0 %v12117_v0, %s10133_s8  ;;  %v9402_v18 = vpack.c.bf16 %v7432_v30, %v7431_v53 }
0x26bd   :  { %9403 = vmatprep.subr.bf16.mxu1 %v9402_v18 }
0x26be   :  { %6090 = vrot.lane.b32.xlu1 %v12121_v13, %s10135_s29  ;;  %9405 = vmatpush3.bf16.msra.mxu1 %v9402_v18 }
0x26bf   :  { %6088 = vrot.lane.b32.xlu0 %v12123_v63, %s10135_s29 }
0x26c2   :  { %6094 = vrot.lane.b32.xlu1 %v12129_v38, %s10135_s29 }
0x26c3   :  { %6092 = vrot.lane.b32.xlu0 %v12131_v57, %s10135_s29 }
0x2721   :  { %v5803_v13 = vpop.xlane.xlu0 %5802 }
0x2722   :  { %10059 = vrcp.f32 %v5803_v13  ;;  %v5800_v63 = vpop.xlane.xlu1 %5799 }
0x2723   :  { %10061 = vrcp.f32 %v5800_v63 }
0x2726   :  { %v5809_v7 = vpop.xlane.xlu0 %5808 }
0x2727   :  { %10063 = vrcp.f32 %v5809_v7 }
0x272a   :  { %v5806_v38 = vpop.xlane.xlu1 %5805 }
0x272b   :  { %10065 = vrcp.f32 %v5806_v38 }
0x272c   :  { %v10060_v57 = vpop.eup %10059 }
0x272d   :  { %v10062_v56 = vpop.eup %10061  ;;  %v5823_v54 = vmul.f32 %v10060_v57, %v12181_v20 }
0x272e   :  { %v5815_v39 = vpop.xlane.xlu0 %5814  ;;  %v5822_v33 = vmul.f32 %v10062_v56, %v10050_v21  ;;  %v9772_v29 = vpop.permute.xlu1 %9771 }
0x272f   :  { %10067 = vrcp.f32 %v5815_v39  ;;  %v9774_v47 = vunpack.i.h.bf16 %v9772_v29  ;;  %v9773_v36 = vunpack.i.l.bf16 %v9772_v29 }
0x2730   :  { %8762 = vmatprep.mubr.msk.f32.mxu0 %vm1043_vm5, %v5822_v33 }
0x2731   :  { %8763 = vmatmul.mubr.msk.f32.vlgmr.msra.gmra.mrb[98].mxu0 %vm1043_vm5, %v5823_v54  ;;  %v10064_v9 = vpop.eup %10063  ;;  %v9412_v40 = vpack.c.bf16 %v9774_v47, %v9773_v36 }
0x2732   :  { %v5812_v46 = vpop.xlane.xlu0 %5811  ;;  %v5825_v52 = vmul.f32 %v10064_v9, %v10052_v11  ;;  %v9777_v20 = vpop.permute.xlu1 %9776 }
0x2733   :  { %10069 = vrcp.f32 %v5812_v46  ;;  %v9779_v62 = vunpack.i.h.bf16 %v9777_v20  ;;  %v9778_v55 = vunpack.i.l.bf16 %v9777_v20 }
0x2735   :  { %v10066_v8 = vpop.eup %10065  ;;  %v9418_v15 = vpack.c.bf16 %v9779_v62, %v9778_v55 }
0x2736   :  { %v9767_v58 = vpop.permute.xlu0 %9766  ;;  %v5824_v2 = vmul.f32 %v10066_v8, %v10054_v24  ;;  %v6085_v25 = vpop.permute.xlu1 %6084 }
0x2737   :  { %v9769_v1 = vunpack.i.h.bf16 %v9767_v58  ;;  %v9768_v50 = vunpack.i.l.bf16 %v9767_v58 }
0x2738   :  { %8765 = vmatprep.mubr.msk.f32.mxu0 %vm1043_vm5, %v5824_v2 }
0x2739   :  { %v9406_v10 = vpack.c.bf16 %v9769_v1, %v9768_v50  ;;  %8766 = vmatmul.mubr.msk.f32.gmra.mrb[100].mxu0 %vm1043_vm5, %v5825_v52  ;;  %v10068_v21 = vpop.eup %10067 }
0x273a   :  { %v5827_v43 = vmul.f32 %v10068_v21, %v10056_v51  ;;  %v6087_v35 = vpop.permute.xlu1 %6086  ;;  %v6089_v17 = vpop.permute.xlu0 %6088 }
0x273b   :  { %9408 = vmatprep.subr.msk.bf16.mxu0 %vm10793_vm4, %v9406_v10 }
0x273c   :  { %9411 = vmatpush3.bf16.xpose.msk.msra.mxu0 %vm10793_vm4, %v9406_v10 }
0x273d   :  { %v10070_v3 = vpop.eup %10069  ;;  %9414 = vmatprep.subr.msk.bf16.mxu0 %vm10793_vm4, %v9412_v40 }
0x273e   :  { %v5826_v26 = vmul.f32 %v10070_v3, %v10058_v42  ;;  %v6091_v23 = vpop.permute.xlu1 %6090  ;;  %v6093_v6 = vpop.permute.xlu0 %6092 }
0x2740   :  { %8768 = vmatprep.mubr.msk.f32.mxu0 %vm1043_vm5, %v5826_v26 }
0x2741   :  { %8769 = vmatmul.mubr.msk.f32.gmra.mrb[102].mxu0 %vm1043_vm5, %v5827_v43 }
0x2742   :  { %8796 = vmatprep.mubr.msk.f32.mxu0 %vm911_vm3, %v6085_v25  ;;  %v6095_v11 = vpop.permute.xlu1 %6094 }
0x2744   :  { %9417 = vmatpush3.bf16.xpose.msk.msra.mxu0 %vm10793_vm4, %v9412_v40 }
0x2745   :  { %9420 = vmatprep.subr.msk.bf16.mxu0 %vm10793_vm4, %v9418_v15 }
0x274c   :  { %9423 = vmatpush3.bf16.xpose.msk.msra.mxu0 %vm10793_vm4, %v9418_v15 }
0x2753   :  { %8797 = vmatmul.mubr.msk.f32.vlgmr.msra.gmra.mrb[104].mxu0 %vm911_vm3, %v6087_v35 }
0x2754   :  { %8799 = vmatprep.mubr.msk.f32.mxu0 %vm911_vm3, %v6089_v17 }
0x2757   :  { %8800 = vmatmul.mubr.msk.f32.gmra.mrb[106].mxu0 %vm911_vm3, %v6091_v23 }
0x2758   :  { %8802 = vmatprep.mubr.msk.f32.mxu0 %vm911_vm3, %v6093_v6 }
0x275b   :  { %8803 = vmatmul.mubr.msk.f32.gmra.mrb[108].mxu0 %vm911_vm3, %v6095_v11 }
0x2804   :  { %v8764_v4 = vpop.f32.mrb[98].mxu0 }
0x2805   :  { %v5930_v61 = vpop.f32.mrb[99].mxu0 }
0x2806   :  { %8775 = vmatprep.mubr.msk.f32.mxu1 %vm911_vm3, %v5930_v61 }
0x2807   :  { %8776 = vmatmul.mubr.msk.f32.vlgmr.msra.gmra.mrb[94].mxu1 %vm911_vm3, %v8764_v4 }
0x280c   :  { %v8767_v48 = vpop.f32.mrb[100].mxu0 }
0x280d   :  { %v5940_v22 = vpop.f32.mrb[101].mxu0 }
0x280e   :  { %8778 = vmatprep.mubr.msk.f32.mxu1 %vm911_vm3, %v5940_v22 }
0x280f   :  { %8779 = vmatmul.mubr.msk.f32.gmra.mrb[96].mxu1 %vm911_vm3, %v8767_v48 }
0x2814   :  { %v8770_v24 = vpop.f32.mrb[102].mxu0 }
0x2815   :  { %v5950_v59 = vpop.f32.mrb[103].mxu0 }
0x2816   :  { %8781 = vmatprep.mubr.msk.f32.mxu1 %vm911_vm3, %v5950_v59 }
0x2817   :  { %8782 = vmatmul.mubr.msk.f32.gmra.mrb[98].mxu1 %vm911_vm3, %v8770_v24 }
0x2826   :  { %v8798_v51 = vpop.f32.mrb[104].mxu0 }
0x2827   :  { %v6228_v45 = vmul.f32 0.25, %v8798_v51  ;;  %v6198_v42 = vpop.f32.mrb[105].mxu0 }
0x2828   :  { %v6227_v37 = vmul.f32 0.25, %v6198_v42 }
0x2829   :  { %v6234_v53 = vadd.f32 %v6228_v45, %v10845_v14 }
0x282a   :  { %v6233_v30 = vadd.f32 %v6227_v37, %v10847_v16  ;;  %v8801_v18 = vpop.f32.mrb[106].mxu0 }
0x282b   :  { %v6208_v13 = vpop.f32.mrb[107].mxu0  ;;  %v6242_v63 = vsel %vm1043_vm5, %v6234_v53, -inf  ;;  %v6230_v7 = vmul.f32 0.25, %v8801_v18 }
0x282c   :  { %v6229_v38 = vmul.f32 0.25, %v6208_v13  ;;  %6243 = vmax.xlane.f32.xlu1 %v6242_v63  ;;  %v6239_v57 = vsel %vm1043_vm5, %v6233_v30, -inf }
0x282d   :  { %6240 = vmax.xlane.f32.xlu0 %v6239_v57  ;;  %v6236_v54 = vadd.f32 %v6230_v7, %v10856_v27 }
0x282e   :  { %v6235_v56 = vadd.f32 %v6229_v38, %v10861_v31  ;;  %v8804_v39 = vpop.f32.mrb[108].mxu0 }
0x282f   :  { %v6218_v33 = vpop.f32.mrb[109].mxu0  ;;  %v6232_v46 = vmul.f32 0.25, %v8804_v39  ;;  %v6248_v8 = vsel %vm1043_vm5, %v6236_v54, -inf }
0x2830   :  { %v6231_v14 = vmul.f32 0.25, %v6218_v33  ;;  %v6245_v16 = vsel %vm1043_vm5, %v6235_v56, -inf }
0x2831   :  { %6246 = vmax.xlane.f32.xlu0 %v6245_v16  ;;  %v6238_v9 = vadd.f32 %v6232_v46, %v10874_v44  ;;  %v7434_v46 = vld [vmem:[%s12498_s13 + $0x78] sm:$0xff] }
0x2832   :  { %v6237_v29 = vadd.f32 %v6231_v14, %v10879_v49 }
0x2833   :  { %v6254_v31 = vsel %vm1043_vm5, %v6238_v9, -inf }
0x2834   :  { %v6251_v47 = vsel %vm1043_vm5, %v6237_v29, -inf }
0x2835   :  { %6249 = vmax.xlane.f32.xlu0 %v6248_v8  ;;  %6252 = vmax.xlane.f32.xlu1 %v6251_v47 }
0x2839   :  { %6255 = vmax.xlane.f32.xlu0 %v6254_v31 }
0x2846   :  { %9781 = vrot.lane.b32.xlu1 %v12117_v0, %s10137_s9 }
0x28b9   :  { %v6244_v27 = vpop.xlane.xlu1 %6243 }
0x28ba   :  { %v6258_v58 = vsub.f32 %v6234_v53, %v6244_v27  ;;  %v6241_v2 = vpop.xlane.xlu0 %6240 }
0x28bb   :  { %v6257_v36 = vsub.f32 %v6233_v30, %v6241_v2 }
0x28bc   :  { %v6265_v1 = vmul.f32 1.442695, %v6258_v58 }
0x28bd   :  { %v6263_v49 = vmul.f32 1.442695, %v6257_v36 }
0x28be   :  { %10071 = vpow2.f32 %v6265_v1  ;;  %v6247_v44 = vpop.xlane.xlu0 %6246 }
0x28bf   :  { %10073 = vpow2.f32 %v6263_v49  ;;  %v6259_v50 = vsub.f32 %v6235_v56, %v6247_v44 }
0x28c1   :  { %v6267_v52 = vmul.f32 1.442695, %v6259_v50 }
0x28c2   :  { %v6250_v10 = vpop.xlane.xlu0 %6249  ;;  %v6253_v40 = vpop.xlane.xlu1 %6252 }
0x28c3   :  { %10075 = vpow2.f32 %v6267_v52  ;;  %v6260_v20 = vsub.f32 %v6236_v54, %v6250_v10  ;;  %v6261_v21 = vsub.f32 %v6237_v29, %v6253_v40  ;;  %v7433_v54 = vld [vmem:[%s12498_s13 + $0x70] sm:$0xff] }
0x28c4   :  { %v9436_v16 = vpack.c.bf16 %v7434_v46, %v7433_v54 }
0x28c5   :  { %v6269_v3 = vmul.f32 1.442695, %v6260_v20  ;;  %v6271_v26 = vmul.f32 1.442695, %v6261_v21  ;;  %v7472_v20 = vld [vmem:[%s12499_s14 + $0x3] ss:$0 sm:$0xff] }
0x28c6   :  { %v6256_v62 = vpop.xlane.xlu0 %6255  ;;  %v9782_v0 = vpop.permute.xlu1 %9781 }
0x28c7   :  { %10077 = vpow2.f32 %v6269_v3  ;;  %v6262_v55 = vsub.f32 %v6238_v9, %v6256_v62  ;;  %v9784_v43 = vunpack.i.h.bf16 %v9782_v0  ;;  %v9783_v25 = vunpack.i.l.bf16 %v9782_v0 }
0x28c8   :  { %v10072_v15 = vpop.eup %10071  ;;  %10079 = vpow2.f32 %v6271_v26 }
0x28c9   :  { %v10074_v35 = vpop.eup %10073  ;;  %v6273_v17 = vmul.f32 1.442695, %v6262_v55  ;;  %v9424_v23 = vpack.c.bf16 %v9784_v43, %v9783_v25  ;;  %v6278_v6 = vsel %vm1043_vm5, %v10072_v15, 0.0 }
0x28ca   :  { %6279 = vadd.xlane.f32.xlu0 %v6278_v6  ;;  %v6275_v11 = vsel %vm1043_vm5, %v10074_v35, 0.0 }
0x28cb   :  { %10081 = vpow2.f32 %v6273_v17  ;;  %6276 = vadd.xlane.f32.xlu1 %v6275_v11  ;;  %9425 = vmatprep.subr.bf16.mxu1 %v9424_v23 }
0x28cc   :  { %9427 = vmatpush3.bf16.msra.mxu1 %v9424_v23 }
0x28cd   :  { %v10076_v4 = vpop.eup %10075 }
0x28ce   :  { %v6281_v61 = vsel %vm1043_vm5, %v10076_v4, 0.0 }
0x28cf   :  { %6282 = vadd.xlane.f32.xlu1 %v6281_v61 }
0x28d1   :  { %v10078_v48 = vpop.eup %10077 }
0x28d2   :  { %v10080_v22 = vpop.eup %10079  ;;  %v6284_v24 = vsel %vm1043_vm5, %v10078_v48, 0.0 }
0x28d3   :  { %6285 = vadd.xlane.f32.xlu0 %v6284_v24  ;;  %v6287_v59 = vsel %vm1043_vm5, %v10080_v22, 0.0 }
0x28d4   :  { %6288 = vadd.xlane.f32.xlu1 %v6287_v59 }
0x28d5   :  { %v10082_v51 = vpop.eup %10081 }
0x28d6   :  { %v6290_v45 = vsel %vm1043_vm5, %v10082_v51, 0.0 }
0x28d7   :  { %6291 = vadd.xlane.f32.xlu0 %v6290_v45 }
0x28e5   :  { %9791 = vrot.lane.b32.xlu1 %v12137_v19, %s10137_s9 }
0x28ed   :  { %9786 = vrot.lane.b32.xlu0 %v12127_v60, %s10137_s9 }
0x2957   :  { %v6280_v37 = vpop.xlane.xlu0 %6279 }
0x2958   :  { %v6277_v42 = vpop.xlane.xlu1 %6276 }
0x2959   :  { %10083 = vrcp.f32 %v6277_v42 }
0x295a   :  { %10085 = vrcp.f32 %v6280_v37 }
0x295c   :  { %v6283_v53 = vpop.xlane.xlu1 %6282 }
0x295d   :  { %10087 = vrcp.f32 %v6283_v53 }
0x2960   :  { %v6286_v30 = vpop.xlane.xlu0 %6285 }
0x2961   :  { %v6289_v18 = vpop.xlane.xlu1 %6288  ;;  %10089 = vrcp.f32 %v6286_v30 }
0x2962   :  { %10091 = vrcp.f32 %v6289_v18 }
0x2963   :  { %v10084_v13 = vpop.eup %10083 }
0x2964   :  { %v6292_v63 = vpop.xlane.xlu0 %6291  ;;  %v6299_v7 = vmul.f32 %v10084_v13, %v10074_v35  ;;  %v10086_v29 = vpop.eup %10085 }
0x2965   :  { %v9792_v38 = vpop.permute.xlu1 %9791  ;;  %10093 = vrcp.f32 %v6292_v63  ;;  %v6300_v8 = vmul.f32 %v10086_v29, %v10072_v15 }
0x2966   :  { %8817 = vmatprep.mubr.msk.f32.mxu1 %vm1043_vm5, %v6299_v7  ;;  %v9794_v56 = vunpack.i.h.bf16 %v9792_v38  ;;  %v9793_v19 = vunpack.i.l.bf16 %v9792_v38 }
0x2967   :  { %v10088_v9 = vpop.eup %10087 }
0x2968   :  { %v9787_v57 = vpop.permute.xlu0 %9786  ;;  %v9432_v14 = vpack.c.bf16 %v9794_v56, %v9793_v19  ;;  %v6301_v31 = vmul.f32 %v10088_v9, %v10076_v4 }
0x2969   :  { %v9789_v39 = vunpack.i.h.bf16 %v9787_v57  ;;  %v9788_v33 = vunpack.i.l.bf16 %v9787_v57 }
0x296b   :  { %v9428_v60 = vpack.c.bf16 %v9789_v39, %v9788_v33  ;;  %v10090_v47 = vpop.eup %10089 }
0x296c   :  { %v10092_v27 = vpop.eup %10091  ;;  %v6302_v58 = vmul.f32 %v10090_v47, %v10078_v48 }
0x296d   :  { %9429 = vmatprep.subr.bf16.mxu1 %v9428_v60  ;;  %v6303_v36 = vmul.f32 %v10092_v27, %v10080_v22 }
0x296e   :  { %9431 = vmatpush3.bf16.msra.mxu1 %v9428_v60 }
0x296f   :  { %9433 = vmatprep.subr.bf16.mxu1 %v9432_v14  ;;  %v10094_v2 = vpop.eup %10093 }
0x2970   :  { %v6304_v1 = vmul.f32 %v10094_v2, %v10082_v51  ;;  %v7501_v2 = vld [vmem:[%s12500_s19 + $0x60] sm:$0xff] }
0x2972   :  { %9435 = vmatpush3.bf16.msra.mxu1 %v9432_v14 }
0x2973   :  { %9437 = vmatprep.subr.bf16.mxu1 %v9436_v16 }
0x2975   :  { %8818 = vmatmul.mubr.msk.f32.vlgmr.msra.gmra.mrb[100].mxu1 %vm1043_vm5, %v6300_v8 }
0x2976   :  { %8820 = vmatprep.mubr.msk.f32.mxu1 %vm1043_vm5, %v6301_v31  ;;  %9439 = vmatpush3.bf16.msra.mxu1 %v9436_v16 }
0x2979   :  { %8821 = vmatmul.mubr.msk.f32.gmra.mrb[102].mxu1 %vm1043_vm5, %v6302_v58 }
0x297a   :  { %8823 = vmatprep.mubr.msk.f32.mxu1 %vm1043_vm5, %v6303_v36  ;;  %v7502_v36 = vld [vmem:[%s12500_s19 + $0x68] sm:$0xff] }
0x297d   :  { %8824 = vmatmul.mubr.msk.f32.gmra.mrb[104].mxu1 %vm1043_vm5, %v6304_v1  ;;  %v9440_v1 = vpack.c.bf16 %v7502_v36, %v7501_v2  ;;  %v7523_v36 = vld [vmem:[%s12501_s21 + $0x1d0] sm:$0xff] }
0x297f   :  { %9441 = vmatprep.subr.bf16.mxu0 %v9440_v1 }
0x2980   :  { %9443 = vmatpush3.bf16.msra.mxu0 %v9440_v1  ;;  %v7524_v1 = vld [vmem:[%s12501_s21 + $0x1d8] sm:$0xff] }
0x2a48   :  { %v8819_v49 = vpop.f32.mrb[100].mxu1 }
0x2a49   :  { %v6407_v44 = vpop.f32.mrb[101].mxu1 }
0x2a4a   :  { %8830 = vmatprep.mubr.msk.f32.mxu1 %vm911_vm3, %v6407_v44  ;;  %v7504_v44 = vld [vmem:[%s12500_s19 + $0x78] sm:$0xff] }
0x2a4b   :  { %8831 = vmatmul.mubr.msk.f32.vlgmr.msra.gmra.mrb[94].mxu1 %vm911_vm3, %v8819_v49  ;;  %v7503_v49 = vld [vmem:[%s12500_s19 + $0x70] sm:$0xff] }
0x2a4c   :  { %v8822_v50 = vpop.f32.mrb[102].mxu1 }
0x2a4d   :  { %v6417_v52 = vpop.f32.mrb[103].mxu1 }
0x2a4e   :  { %8833 = vmatprep.mubr.msk.f32.mxu1 %vm911_vm3, %v6417_v52  ;;  %v7513_v52 = vld [vmem:[%s12501_s21 + $0x180] sm:$0xff] }
0x2a4f   :  { %8834 = vmatmul.mubr.msk.f32.gmra.mrb[96].mxu1 %vm911_vm3, %v8822_v50  ;;  %v9444_v50 = vpack.c.bf16 %v7504_v44, %v7503_v49  ;;  %v9468_v49 = vpack.c.bf16 %v7524_v1, %v7523_v36  ;;  %v7525_v44 = vld [vmem:[%s12501_s21 + $0x1e0] sm:$0xff] }
0x2a50   :  { %v8825_v10 = vpop.f32.mrb[104].mxu1 }
0x2a51   :  { %v6427_v40 = vpop.f32.mrb[105].mxu1  ;;  %9445 = vmatprep.subr.bf16.mxu0 %v9444_v50 }
0x2a52   :  { %8836 = vmatprep.mubr.msk.f32.mxu1 %vm911_vm3, %v6427_v40  ;;  %9447 = vmatpush3.bf16.msra.mxu0 %v9444_v50  ;;  %v7515_v40 = vld [vmem:[%s12501_s21 + $0x190] sm:$0xff]  ;;  %v7526_v50 = vld [vmem:[%s12501_s21 + $0x1e8] sm:$0xff] }
0x2a53   :  { %8837 = vmatmul.mubr.msk.f32.gmra.mrb[98].mxu1 %vm911_vm3, %v8825_v10  ;;  %v7514_v10 = vld [vmem:[%s12501_s21 + $0x188] sm:$0xff] }
0x2b1e   :  { %v8832_v21 = vpop.f32.mrb[94].mxu1 }
0x2b1f   :  { %v9507_v3 = vadd.f32 %v8832_v21, %v7472_v20  ;;  %v6520_v26 = vpop.f32.mrb[95].mxu1  ;;  %v7516_v21 = vld [vmem:[%s12501_s21 + $0x198] sm:$0xff] }
0x2b20   :  { %v9508_v62 = vadd.f32 %v7472_v20, %v6520_v26  ;;  %v7517_v26 = vld [vmem:[%s12501_s21 + $0x1a0] sm:$0xff] }
0x2b21   :  { %v6556_v0 = vadd.f32 %v9507_v3, %v12080_v32  ;;  %v9452_v3 = vpack.c.bf16 %v7516_v21, %v7515_v40  ;;  %v7528_v40 = vld [vmem:[%s12501_s21 + $0x1f8] sm:$0xff]  ;;  %v7506_v21 = vld [vmem:[%s12504_s20 + $0x3] ss:$0 sm:$0xff] }
0x2b22   :  { %v6555_v55 = vadd.f32 %v9508_v62, %v12078_v12  ;;  %v8835_v43 = vpop.f32.mrb[96].mxu1  ;;  %v7518_v62 = vld [vmem:[%s12501_s21 + $0x1a8] sm:$0xff] }
0x2b23   :  { %v9509_v25 = vadd.f32 %v8835_v43, %v7472_v20  ;;  %v6530_v15 = vpop.f32.mrb[97].mxu1  ;;  %v6568_v35 = vsel %vm778_vm2, %v6556_v0, 0.0 }
0x2b24   :  { %v9510_v17 = vadd.f32 %v7472_v20, %v6530_v15  ;;  %6569 = vadd.xlane.f32.xlu0 %v6568_v35  ;;  %v6565_v23 = vsel %vm778_vm2, %v6555_v55, 0.0 }
0x2b25   :  { %v6558_v6 = vadd.f32 %v9509_v25, %v12092_v5  ;;  %6566 = vadd.xlane.f32.xlu1 %v6565_v23 }
0x2b26   :  { %v6557_v11 = vadd.f32 %v9510_v17, %v12089_v34  ;;  %v8838_v4 = vpop.f32.mrb[98].mxu1 }
0x2b27   :  { %v9511_v61 = vadd.f32 %v8838_v4, %v7472_v20  ;;  %v6540_v48 = vpop.f32.mrb[99].mxu1  ;;  %v6574_v32 = vsel %vm778_vm2, %v6558_v6, 0.0 }
0x2b28   :  { %v9512_v12 = vadd.f32 %v7472_v20, %v6540_v48  ;;  %v6571_v22 = vsel %vm778_vm2, %v6557_v11, 0.0  ;;  %v9448_v20 = vpack.c.bf16 %v7514_v10, %v7513_v52  ;;  %v9472_v52 = vpack.c.bf16 %v7526_v50, %v7525_v44  ;;  %v7527_v10 = vld [vmem:[%s12501_s21 + $0x1f0] sm:$0xff] }
0x2b29   :  { %v6560_v24 = vadd.f32 %v9511_v61, %v12100_v41  ;;  %6575 = vadd.xlane.f32.xlu1 %v6574_v32  ;;  %6572 = vadd.xlane.f32.xlu0 %v6571_v22 }
0x2b2a   :  { %v6559_v59 = vadd.f32 %v9512_v12, %v12098_v28  ;;  %9449 = vmatprep.subr.bf16.mxu1 %v9448_v20 }
0x2b2b   :  { %v6580_v51 = vsel %vm778_vm2, %v6560_v24, 0.0  ;;  %9451 = vmatpush3.bf16.msra.mxu1 %v9448_v20  ;;  %v9476_v20 = vpack.c.bf16 %v7528_v40, %v7527_v10 }
0x2b2c   :  { %v6577_v5 = vsel %vm778_vm2, %v6559_v59, 0.0  ;;  %9453 = vmatprep.subr.bf16.mxu1 %v9452_v3 }
0x2b2d   :  { %6581 = vadd.xlane.f32.xlu1 %v6580_v51  ;;  %6578 = vadd.xlane.f32.xlu0 %v6577_v5 }
0x2b2f   :  { %9455 = vmatpush3.bf16.msra.mxu1 %v9452_v3 }
0x2bb1   :  { %v6570_v34 = vpop.xlane.xlu0 %6569 }
0x2bb2   :  { %v6584_v45 = vmul.f32 0.03125, %v6570_v34  ;;  %v6567_v42 = vpop.xlane.xlu1 %6566  ;;  %v7499_v34 = vld [vmem:[%s12502_s15 + $0x3] ss:$0 sm:$0xff] }
0x2bb3   :  { %v6583_v37 = vmul.f32 0.03125, %v6567_v42 }
0x2bb4   :  { %v12302_v53 = vsub.f32 %v6556_v0, %v6584_v45  ;;  %v9456_v0 = vpack.c.bf16 %v7518_v62, %v7517_v26 }
0x2bb5   :  { %v12304_v30 = vsub.f32 %v6555_v55, %v6583_v37 }
0x2bb6   :  { %v6576_v18 = vpop.xlane.xlu1 %6575  ;;  %v6573_v41 = vpop.xlane.xlu0 %6572  ;;  %v6596_v13 = vmul.f32 %v12302_v53, %v12302_v53  ;;  %9457 = vmatprep.subr.bf16.mxu1 %v9456_v0 }
0x2bb7   :  { %v6586_v28 = vmul.f32 0.03125, %v6576_v18  ;;  %v6585_v63 = vmul.f32 0.03125, %v6573_v41  ;;  %v6595_v7 = vmul.f32 %v12304_v30, %v12304_v30  ;;  %9459 = vmatpush3.bf16.msra.mxu1 %v9456_v0  ;;  %v7500_v18 = vld [vmem:[%s12503_s16 + $0x3] ss:$0 sm:$0xff] }
0x2bb8   :  { %v6604_v38 = vsel %vm778_vm2, %v6596_v13, 0.0 }
0x2bb9   :  { %v12311_v57 = vsub.f32 %v6558_v6, %v6586_v28  ;;  %v12313_v56 = vsub.f32 %v6557_v11, %v6585_v63  ;;  %6605 = vadd.xlane.f32.xlu1 %v6604_v38  ;;  %v6601_v19 = vsel %vm778_vm2, %v6595_v7, 0.0 }
0x2bba   :  { %v6582_v39 = vpop.xlane.xlu1 %6581  ;;  %6602 = vadd.xlane.f32.xlu0 %v6601_v19  ;;  %v6579_v33 = vpop.xlane.xlu0 %6578 }
0x2bbb   :  { %v6588_v60 = vmul.f32 0.03125, %v6582_v39  ;;  %v6587_v54 = vmul.f32 0.03125, %v6579_v33  ;;  %v6598_v46 = vmul.f32 %v12311_v57, %v12311_v57  ;;  %v6597_v14 = vmul.f32 %v12313_v56, %v12313_v56 }
0x2bbd   :  { %v12320_v16 = vsub.f32 %v6560_v24, %v6588_v60  ;;  %v12322_v29 = vsub.f32 %v6559_v59, %v6587_v54  ;;  %v6610_v9 = vsel %vm778_vm2, %v6598_v46, 0.0  ;;  %v6607_v8 = vsel %vm778_vm2, %v6597_v14, 0.0 }
0x2bbe   :  { %6611 = vadd.xlane.f32.xlu1 %v6610_v9  ;;  %6608 = vadd.xlane.f32.xlu0 %v6607_v8 }
0x2bbf   :  { %v6600_v47 = vmul.f32 %v12320_v16, %v12320_v16  ;;  %v6599_v31 = vmul.f32 %v12322_v29, %v12322_v29 }
0x2bc1   :  { %v6616_v27 = vsel %vm778_vm2, %v6600_v47, 0.0  ;;  %v6613_v58 = vsel %vm778_vm2, %v6599_v31, 0.0 }
0x2bc2   :  { %6617 = vadd.xlane.f32.xlu1 %v6616_v27  ;;  %6614 = vadd.xlane.f32.xlu0 %v6613_v58  ;;  %v7521_v27 = vld [vmem:[%s12501_s21 + $0x1c0] sm:$0xff]  ;;  %v7522_v58 = vld [vmem:[%s12501_s21 + $0x1c8] sm:$0xff] }
0x2bc3   :  { %v9464_v2 = vpack.c.bf16 %v7522_v58, %v7521_v27 }
0x2c46   :  { %v6606_v55 = vpop.xlane.xlu1 %6605 }
0x2c47   :  { %v6620_v43 = vmul.f32 0.03125, %v6606_v55  ;;  %v6603_v25 = vpop.xlane.xlu0 %6602 }
0x2c48   :  { %v6619_v15 = vmul.f32 0.03125, %v6603_v25 }
0x2c49   :  { %v6626_v35 = vadd.f32 1e-05, %v6620_v43 }
0x2c4a   :  { %v6625_v17 = vadd.f32 1e-05, %v6619_v15 }
0x2c4b   :  { %10095 = vrsqrt.f32 %v6626_v35  ;;  %v6612_v23 = vpop.xlane.xlu1 %6611  ;;  %v6609_v6 = vpop.xlane.xlu0 %6608 }
0x2c4c   :  { %10097 = vrsqrt.f32 %v6625_v17  ;;  %v6622_v11 = vmul.f32 0.03125, %v6612_v23  ;;  %v6621_v4 = vmul.f32 0.03125, %v6609_v6 }
0x2c4e   :  { %v6628_v61 = vadd.f32 1e-05, %v6622_v11  ;;  %v6627_v48 = vadd.f32 1e-05, %v6621_v4 }
0x2c4f   :  { %v6618_v32 = vpop.xlane.xlu1 %6617  ;;  %v6615_v12 = vpop.xlane.xlu0 %6614 }
0x2c50   :  { %10099 = vrsqrt.f32 %v6628_v61  ;;  %v6624_v22 = vmul.f32 0.03125, %v6618_v32  ;;  %v6623_v24 = vmul.f32 0.03125, %v6615_v12 }
0x2c51   :  { %10101 = vrsqrt.f32 %v6627_v48 }
0x2c52   :  { %v6630_v59 = vadd.f32 1e-05, %v6624_v22  ;;  %v6629_v51 = vadd.f32 1e-05, %v6623_v24 }
0x2c54   :  { %10103 = vrsqrt.f32 %v6630_v59 }
0x2c55   :  { %v10096_v5 = vpop.eup %10095  ;;  %10105 = vrsqrt.f32 %v6629_v51 }
0x2c56   :  { %v10098_v45 = vpop.eup %10097  ;;  %v6638_v42 = vmul.f32 %v10096_v5, %v12302_v53 }
0x2c57   :  { %v6637_v37 = vmul.f32 %v10098_v45, %v12304_v30 }
0x2c58   :  { %v6650_v41 = vmul.f32 %v7499_v34, %v6638_v42 }
0x2c59   :  { %v6649_v13 = vmul.f32 %v7499_v34, %v6637_v37 }
0x2c5a   :  { %v10100_v28 = vpop.eup %10099  ;;  %v12373_v19 = vadd.f32 %v7500_v18, %v6650_v41 }
0x2c5b   :  { %v10102_v63 = vpop.eup %10101  ;;  %v12370_v7 = vadd.f32 %v7500_v18, %v6649_v13  ;;  %v6640_v38 = vmul.f32 %v10100_v28, %v12311_v57 }
0x2c5c   :  { %v6639_v39 = vmul.f32 %v10102_v63, %v12313_v56 }
0x2c5d   :  { %8847 = vmatprep.mubr.msk.f32.mxu0 %vm778_vm2, %v12370_v7  ;;  %v6652_v53 = vmul.f32 %v7499_v34, %v6640_v38 }
0x2c5e   :  { %v10104_v30 = vpop.eup %10103  ;;  %8848 = vmatmul.mubr.msk.f32.vlgmr.msra.gmra.mrb[110].mxu0 %vm778_vm2, %v12373_v19  ;;  %v6651_v33 = vmul.f32 %v7499_v34, %v6639_v39 }
0x2c5f   :  { %v10106_v60 = vpop.eup %10105  ;;  %v12380_v54 = vadd.f32 %v7500_v18, %v6652_v53  ;;  %v6642_v46 = vmul.f32 %v10104_v30, %v12320_v16  ;;  %v7519_v16 = vld [vmem:[%s12501_s21 + $0x1b0] sm:$0xff] }
0x2c60   :  { %v12383_v14 = vadd.f32 %v7500_v18, %v6651_v33  ;;  %v6641_v57 = vmul.f32 %v10106_v60, %v12322_v29  ;;  %v7520_v29 = vld [vmem:[%s12501_s21 + $0x1b8] sm:$0xff] }
0x2c61   :  { %v6654_v9 = vmul.f32 %v7499_v34, %v6642_v46  ;;  %v9460_v31 = vpack.c.bf16 %v7520_v29, %v7519_v16  ;;  %v7530_v16 = vld [vmem:[%s12505_s22 + $0x3] ss:$0 sm:$0xff] }
0x2c62   :  { %8850 = vmatprep.mubr.msk.f32.mxu0 %vm778_vm2, %v12383_v14  ;;  %v6653_v56 = vmul.f32 %v7499_v34, %v6641_v57 }
0x2c63   :  { %8851 = vmatmul.mubr.msk.f32.gmra.mrb[112].mxu0 %vm778_vm2, %v12380_v54  ;;  %v12390_v8 = vadd.f32 %v7500_v18, %v6654_v9  ;;  %9461 = vmatprep.subr.bf16.mxu1 %v9460_v31 }
0x2c64   :  { %v12392_v47 = vadd.f32 %v7500_v18, %v6653_v56  ;;  %9463 = vmatpush3.bf16.msra.mxu1 %v9460_v31 }
0x2c65   :  { %9465 = vmatprep.subr.bf16.mxu1 %v9464_v2 }
0x2c66   :  { %8853 = vmatprep.mubr.msk.f32.mxu0 %vm778_vm2, %v12392_v47 }
0x2c67   :  { %8854 = vmatmul.mubr.msk.f32.gmra.mrb[114].mxu0 %vm778_vm2, %v12390_v8 }
0x2c68   :  { %9467 = vmatpush3.bf16.msra.mxu1 %v9464_v2 }
0x2c69   :  { %9469 = vmatprep.subr.bf16.mxu1 %v9468_v49 }
0x2c6c   :  { %9471 = vmatpush3.bf16.msra.mxu1 %v9468_v49 }
0x2c6d   :  { %9473 = vmatprep.subr.bf16.mxu1 %v9472_v52 }
0x2c70   :  { %9475 = vmatpush3.bf16.msra.mxu1 %v9472_v52 }
0x2c71   :  { %9477 = vmatprep.subr.bf16.mxu1 %v9476_v20 }
0x2c74   :  { %9479 = vmatpush3.bf16.msra.mxu1 %v9476_v20 }
0x2d31   :  { %v8849_v3 = vpop.f32.mrb[110].mxu0 }
0x2d32   :  { %v6770_v26 = vadd.f32 %v8849_v3, %v7506_v21  ;;  %v6764_v62 = vpop.f32.mrb[111].mxu0 }
0x2d33   :  { %v6765_v0 = vadd.f32 %v7506_v21, %v6764_v62 }
0x2d34   :  { %v6800_v55 = vmul.f32 0.70710677, %v6770_v26  ;;  %v6794_v34 = vmul.f32 0.5, %v6770_v26 }
0x2d35   :  { %v6799_v43 = vmul.f32 0.70710677, %v6765_v0  ;;  %v6793_v51 = vmul.f32 0.5, %v6765_v0 }
0x2d36   :  { %10107 = verf.f32 %v6800_v55  ;;  %v8852_v25 = vpop.f32.mrb[112].mxu0 }
0x2d37   :  { %10109 = verf.f32 %v6799_v43  ;;  %v6780_v15 = vadd.f32 %v8852_v25, %v7506_v21  ;;  %v6774_v35 = vpop.f32.mrb[113].mxu0 }
0x2d38   :  { %v6775_v17 = vadd.f32 %v7506_v21, %v6774_v35 }
0x2d39   :  { %v6802_v23 = vmul.f32 0.70710677, %v6780_v15  ;;  %v6796_v63 = vmul.f32 0.5, %v6780_v15 }
0x2d3a   :  { %v6801_v6 = vmul.f32 0.70710677, %v6775_v17  ;;  %v8855_v11 = vpop.f32.mrb[114].mxu0  ;;  %v6795_v13 = vmul.f32 0.5, %v6775_v17 }
0x2d3b   :  { %10111 = verf.f32 %v6802_v23  ;;  %v6790_v4 = vadd.f32 %v8855_v11, %v7506_v21  ;;  %v6784_v61 = vpop.f32.mrb[115].mxu0 }
0x2d3c   :  { %10113 = verf.f32 %v6801_v6  ;;  %v6785_v48 = vadd.f32 %v7506_v21, %v6784_v61 }
0x2d3d   :  { %v6804_v32 = vmul.f32 0.70710677, %v6790_v4  ;;  %v6798_v57 = vmul.f32 0.5, %v6790_v4 }
0x2d3e   :  { %v6803_v12 = vmul.f32 0.70710677, %v6785_v48  ;;  %v6797_v60 = vmul.f32 0.5, %v6785_v48 }
0x2d3f   :  { %10115 = verf.f32 %v6804_v32 }
0x2d40   :  { %v10108_v22 = vpop.eup %10107  ;;  %10117 = verf.f32 %v6803_v12 }
0x2d41   :  { %v10110_v24 = vpop.eup %10109  ;;  %v6812_v59 = vadd.f32 1.0, %v10108_v22 }
0x2d42   :  { %v6811_v5 = vadd.f32 1.0, %v10110_v24 }
0x2d43   :  { %v6818_v37 = vmul.f32 %v6812_v59, %v6794_v34 }
0x2d44   :  { %v6817_v45 = vmul.f32 %v6811_v5, %v6793_v51 }
0x2d45   :  { %v10112_v42 = vpop.eup %10111 }
0x2d46   :  { %v10114_v18 = vpop.eup %10113  ;;  %v6814_v41 = vadd.f32 1.0, %v10112_v42  ;;  %8888 = vmatprep.mubr.f32.mxu1 %v6817_v45 }
0x2d47   :  { %v6813_v28 = vadd.f32 1.0, %v10114_v18  ;;  %8889 = vmatmul.mubr.f32.vlgmr.msra.gmra.mrb[106].mxu1 %v6818_v37 }
0x2d48   :  { %v6820_v33 = vmul.f32 %v6814_v41, %v6796_v63 }
0x2d49   :  { %v10116_v38 = vpop.eup %10115  ;;  %v6819_v39 = vmul.f32 %v6813_v28, %v6795_v13 }
0x2d4a   :  { %v10118_v53 = vpop.eup %10117  ;;  %v6816_v30 = vadd.f32 1.0, %v10116_v38 }
0x2d4b   :  { %v6815_v46 = vadd.f32 1.0, %v10118_v53  ;;  %8891 = vmatprep.mubr.f32.mxu1 %v6819_v39  ;;  %v10138_v39 = vmov 0.0|0.0   ;;  %v10140_v53 = vmov 0.0  }
0x2d4c   :  { %8892 = vmatmul.mubr.f32.gmra.mrb[108].mxu1 %v6820_v33  ;;  %v6822_v56 = vmul.f32 %v6816_v30, %v6798_v57  ;;  %9480 = vmatprep.subr.bf16.mxu0 %v10138_v39 }
0x2d4d   :  { %v6821_v9 = vmul.f32 %v6815_v46, %v6797_v60  ;;  %8909 = vmatprep.mubr.msk.f32.mxu0 %vm10139_vm6, %v10140_v53 }
0x2d4f   :  { %8894 = vmatprep.mubr.f32.mxu1 %v6821_v9 }
0x2d50   :  { %8895 = vmatmul.mubr.f32.gmra.mrb[110].mxu1 %v6822_v56 }
0x2e1a   :  { %v8890_v29 = vpop.f32.mrb[106].mxu1 }
0x2e1b   :  { %v6920_v31 = vadd.f32 %v8890_v29, %v7530_v16  ;;  %v6914_v27 = vpop.f32.mrb[107].mxu1 }
0x2e1c   :  { %v6915_v58 = vadd.f32 %v7530_v16, %v6914_v27 }
0x2e1d   :  { %v6944_v2 = vadd.f32 %v6920_v31, %v12373_v19 }
0x2e1e   :  { %v6943_v36 = vadd.f32 %v6915_v58, %v12370_v7 }
0x2e1f   :  { %v8893_v1 = vpop.f32.mrb[108].mxu1  ;;  %v6956_v49 = vsel %vm778_vm2, %v6944_v2, 0.0 }
0x2e20   :  { %v6930_v44 = vadd.f32 %v8893_v1, %v7530_v16  ;;  %v6924_v50 = vpop.f32.mrb[109].mxu1  ;;  %6957 = vadd.xlane.f32.xlu1 %v6956_v49  ;;  %v6953_v52 = vsel %vm778_vm2, %v6943_v36, 0.0 }
0x2e21   :  { %v6925_v10 = vadd.f32 %v7530_v16, %v6924_v50  ;;  %6954 = vadd.xlane.f32.xlu0 %v6953_v52 }
0x2e22   :  { %v6946_v40 = vadd.f32 %v6930_v44, %v12380_v54 }
0x2e23   :  { %v6945_v20 = vadd.f32 %v6925_v10, %v12383_v14  ;;  %v8896_v21 = vpop.f32.mrb[110].mxu1  ;;  %v7533_v10 = vld [vmem:[%s12506_s17 + $0x3] ss:$0 sm:$0xff] }
0x2e24   :  { %v6940_v3 = vadd.f32 %v8896_v21, %v7530_v16  ;;  %v6934_v26 = vpop.f32.mrb[111].mxu1  ;;  %v6962_v19 = vsel %vm778_vm2, %v6946_v40, 0.0 }
0x2e25   :  { %v6935_v7 = vadd.f32 %v7530_v16, %v6934_v26  ;;  %6963 = vadd.xlane.f32.xlu1 %v6962_v19  ;;  %v6959_v62 = vsel %vm778_vm2, %v6945_v20, 0.0 }
0x2e26   :  { %v6948_v0 = vadd.f32 %v6940_v3, %v12390_v8  ;;  %6960 = vadd.xlane.f32.xlu0 %v6959_v62  ;;  %v7534_v3 = vld [vmem:[%s12507_s18 + $0x3] ss:$0 sm:$0xff] }
0x2e27   :  { %v6947_v55 = vadd.f32 %v6935_v7, %v12392_v47 }
0x2e28   :  { %v6968_v43 = vsel %vm778_vm2, %v6948_v0, 0.0 }
0x2e29   :  { %6969 = vadd.xlane.f32.xlu1 %v6968_v43  ;;  %v6965_v54 = vsel %vm778_vm2, %v6947_v55, 0.0 }
0x2e2a   :  { %6966 = vadd.xlane.f32.xlu0 %v6965_v54 }
0x2ead   :  { %v6958_v14 = vpop.xlane.xlu1 %6957 }
0x2eae   :  { %v6972_v25 = vmul.f32 0.03125, %v6958_v14  ;;  %v6955_v15 = vpop.xlane.xlu0 %6954 }
0x2eaf   :  { %v6971_v35 = vmul.f32 0.03125, %v6955_v15 }
0x2eb0   :  { %v12446_v17 = vsub.f32 %v6944_v2, %v6972_v25 }
0x2eb1   :  { %v12448_v23 = vsub.f32 %v6943_v36, %v6971_v35 }
0x2eb2   :  { %v6964_v6 = vpop.xlane.xlu1 %6963  ;;  %v6984_v8 = vmul.f32 %v12446_v17, %v12446_v17 }
0x2eb3   :  { %v6974_v11 = vmul.f32 0.03125, %v6964_v6  ;;  %v6961_v47 = vpop.xlane.xlu0 %6960  ;;  %v6983_v4 = vmul.f32 %v12448_v23, %v12448_v23 }
0x2eb4   :  { %v6973_v61 = vmul.f32 0.03125, %v6961_v47  ;;  %v6992_v48 = vsel %vm778_vm2, %v6984_v8, 0.0 }
0x2eb5   :  { %v12455_v32 = vsub.f32 %v6946_v40, %v6974_v11  ;;  %6993 = vadd.xlane.f32.xlu1 %v6992_v48  ;;  %v6989_v12 = vsel %vm778_vm2, %v6983_v4, 0.0 }
0x2eb6   :  { %v6979_v22 = vsub.f32 %v6945_v20, %v6973_v61  ;;  %v6970_v24 = vpop.xlane.xlu1 %6969  ;;  %6990 = vadd.xlane.f32.xlu0 %v6989_v12  ;;  %v7055_v12 = vld [vmem:[%s12509_s6] sm:$0xff] }
0x2eb7   :  { %v6976_v59 = vmul.f32 0.03125, %v6970_v24  ;;  %v6967_v51 = vpop.xlane.xlu0 %6966  ;;  %v6986_v5 = vmul.f32 %v12455_v32, %v12455_v32 }
0x2eb8   :  { %v6975_v34 = vmul.f32 0.03125, %v6967_v51  ;;  %v6985_v45 = vmul.f32 %v6979_v22, %v6979_v22 }
0x2eb9   :  { %v6982_v42 = vsub.f32 %v6948_v0, %v6976_v59  ;;  %v6998_v37 = vsel %vm778_vm2, %v6986_v5, 0.0 }
0x2eba   :  { %v6981_v18 = vsub.f32 %v6947_v55, %v6975_v34  ;;  %6999 = vadd.xlane.f32.xlu1 %v6998_v37  ;;  %v6995_v41 = vsel %vm778_vm2, %v6985_v45, 0.0 }
0x2ebb   :  { %6996 = vadd.xlane.f32.xlu0 %v6995_v41  ;;  %v6988_v13 = vmul.f32 %v6982_v42, %v6982_v42 }
0x2ebc   :  { %v6987_v28 = vmul.f32 %v6981_v18, %v6981_v18 }
0x2ebd   :  { %v7004_v63 = vsel %vm778_vm2, %v6988_v13, 0.0 }
0x2ebe   :  { %7005 = vadd.xlane.f32.xlu1 %v7004_v63  ;;  %v7001_v38 = vsel %vm778_vm2, %v6987_v28, 0.0 }
0x2ebf   :  { %7002 = vadd.xlane.f32.xlu0 %v7001_v38 }
0x2f42   :  { %v6994_v30 = vpop.xlane.xlu1 %6993 }
0x2f43   :  { %v7008_v33 = vmul.f32 0.03125, %v6994_v30  ;;  %v6991_v60 = vpop.xlane.xlu0 %6990 }
0x2f44   :  { %v7007_v46 = vmul.f32 0.03125, %v6991_v60 }
0x2f45   :  { %v7014_v57 = vadd.f32 1e-05, %v7008_v33 }
0x2f46   :  { %v7013_v9 = vadd.f32 1e-05, %v7007_v46 }
0x2f47   :  { %10119 = vrsqrt.f32 %v7014_v57  ;;  %v7000_v56 = vpop.xlane.xlu1 %6999 }
0x2f48   :  { %10121 = vrsqrt.f32 %v7013_v9  ;;  %v7010_v16 = vmul.f32 0.03125, %v7000_v56  ;;  %v6997_v29 = vpop.xlane.xlu0 %6996 }
0x2f49   :  { %v7009_v31 = vmul.f32 0.03125, %v6997_v29 }
0x2f4a   :  { %v7016_v27 = vadd.f32 1e-05, %v7010_v16 }
0x2f4b   :  { %v7015_v58 = vadd.f32 1e-05, %v7009_v31  ;;  %v7006_v2 = vpop.xlane.xlu1 %7005 }
0x2f4c   :  { %10123 = vrsqrt.f32 %v7016_v27  ;;  %v7012_v36 = vmul.f32 0.03125, %v7006_v2  ;;  %v7003_v1 = vpop.xlane.xlu0 %7002 }
0x2f4d   :  { %10125 = vrsqrt.f32 %v7015_v58  ;;  %v7011_v49 = vmul.f32 0.03125, %v7003_v1 }
0x2f4e   :  { %v7018_v44 = vadd.f32 1e-05, %v7012_v36 }
0x2f4f   :  { %v7017_v50 = vadd.f32 1e-05, %v7011_v49 }
0x2f50   :  { %10127 = vrsqrt.f32 %v7018_v44 }
0x2f51   :  { %v10120_v52 = vpop.eup %10119  ;;  %10129 = vrsqrt.f32 %v7017_v50 }
0x2f52   :  { %v10122_v40 = vpop.eup %10121  ;;  %v7026_v20 = vmul.f32 %v10120_v52, %v12446_v17 }
0x2f53   :  { %v7025_v21 = vmul.f32 %v10122_v40, %v12448_v23 }
0x2f54   :  { %v7038_v26 = vmul.f32 %v7533_v10, %v7026_v20 }
0x2f55   :  { %v7037_v19 = vmul.f32 %v7533_v10, %v7025_v21 }
0x2f56   :  { %v10124_v7 = vpop.eup %10123  ;;  %v7050_v62 = vadd.f32 %v7534_v3, %v7038_v26 }
0x2f57   :  { %v10126_v0 = vpop.eup %10125  ;;  %v7028_v55 = vmul.f32 %v10124_v7, %v12455_v32  ;;  %v7049_v43 = vadd.f32 %v7534_v3, %v7037_v19 }
0x2f58   :  { %v7027_v54 = vmul.f32 %v10126_v0, %v6979_v22  ;;  %v7535_v22 = vld [vmem:[%s12508_s3] ss:$0 sm:$0xff] }
0x2f59   :  { %v9481_v14 = vpack.c.bf16 %v7050_v62, %v7049_v43  ;;  %v7040_v25 = vmul.f32 %v7533_v10, %v7028_v55  ;;  %v7063_v59 = vmul.f32 %v7535_v22, %v7055_v12 }
0x2f5a   :  { %v10128_v15 = vpop.eup %10127  ;;  %v7039_v35 = vmul.f32 %v7533_v10, %v7027_v54 }
0x2f5b   :  { %v10130_v17 = vpop.eup %10129  ;;  %v7030_v6 = vmul.f32 %v10128_v15, %v6982_v42  ;;  %9482 = vmatpush3.bf16.msra.mxu0 %v9481_v14  ;;  %v7052_v23 = vadd.f32 %v7534_v3, %v7040_v25 }
0x2f5c   :  { %v7029_v8 = vmul.f32 %v10130_v17, %v6981_v18  ;;  %9483 = vmatprep.subr.bf16.mxu0 %v10138_v39  ;;  %v7051_v11 = vadd.f32 %v7534_v3, %v7039_v35 }
0x2f5d   :  { %v7042_v47 = vmul.f32 %v7533_v10, %v7030_v6 }
0x2f5e   :  { %v9484_v4 = vpack.c.bf16 %v7052_v23, %v7051_v11  ;;  %v7041_v61 = vmul.f32 %v7533_v10, %v7029_v8 }
0x2f5f   :  { %v7054_v48 = vadd.f32 %v7534_v3, %v7042_v47 }
0x2f60   :  { %9485 = vmatpush3.bf16.msra.mxu0 %v9484_v4  ;;  %v7053_v32 = vadd.f32 %v7534_v3, %v7041_v61 }
0x2f61   :  { %9486 = vmatprep.subr.bf16.mxu0 %v10138_v39 }
0x2f62   :  { %v9487_v24 = vpack.c.bf16 %v7054_v48, %v7053_v32 }
0x2f64   :  { %9488 = vmatpush3.bf16.msra.mxu0 %v9487_v24 }
0x2f67   :  { %8910 = vmatmul.mubr.msk.f32.vlgmr.msra.gmra.mrb[116].mxu0 %vm1043_vm5, %v7063_v59 }
0x303a   :  { %v7133_v51 = vpop.f32.mrb[116].mxu0 }
0x303b   :  { %7137 = vst.msk [vmem:[%s12510_s23] sm:$0xff] %vm778_vm2, %v7133_v51  ;;  %v8911_v5 = vpop.f32.mrb[117].mxu0 }

</bundles_post_ra>
